<compile_context>
chip_gen: v6e
topology: v6e:2x2x1
jax: 0.10.0
libtpu: 0.0.40
codegen_flags: <defaults>
</compile_context>

<pallas_src>
import math

import jax
import jax.numpy as jnp
from jax import lax
from jax.experimental import pallas as pl
from jax.experimental.pallas import tpu as pltpu

DIM = 256                  # module default
SCALE = 2.0 * math.pi


def _sine_pos_enc_kernel(mask_ref, ls_y_ref, ls_x_ref, off_ref, out_ref):
    # mask_ref : (1, H, W) int32 block (one batch element)
    # ls_y_ref : (1, half) f32  = repeated logspace [l0,l0,l1,l1,...] / y_max
    # ls_x_ref : (1, half) f32  = repeated logspace / x_max
    # off_ref  : (1, half) f32  = [0, pi/2, 0, pi/2, ...]  (sin-only interleave)
    # out_ref  : (1, H, W, dim) f32
    _, H, W = mask_ref.shape
    half = ls_y_ref.shape[1]

    nm = (1 - mask_ref[0]).astype(jnp.float32)                       # (H, W)

    # Triangular ones generated in-register (no HBM traffic, no extra DMA streams).
    row_h = lax.broadcasted_iota(jnp.int32, (H, H), 0)
    col_h = lax.broadcasted_iota(jnp.int32, (H, H), 1)
    tril = (row_h >= col_h).astype(jnp.float32)                      # cumsum over H

    row_w = lax.broadcasted_iota(jnp.int32, (W, W), 0)
    col_w = lax.broadcasted_iota(jnp.int32, (W, W), 1)
    triu = (row_w <= col_w).astype(jnp.float32)                      # cumsum over W

    # cumsums as triangular matmuls (MXU friendly, exact for small integer counts)
    y_cs = jnp.dot(tril, nm, preferred_element_type=jnp.float32)     # (H, W)
    x_cs = jnp.dot(nm, triu, preferred_element_type=jnp.float32)     # (H, W)

    ls_y = ls_y_ref[...]                                             # (1, half)
    ls_x = ls_x_ref[...]
    off = off_ref[...]

    # sin-only interleave: even lanes sin(p), odd lanes cos(p) = sin(p + pi/2)
    pos_y = jnp.sin(y_cs[:, :, None] * ls_y[None, :, :] + off[None, :, :])  # (H,W,half)
    pos_x = jnp.sin(x_cs[:, :, None] * ls_x[None, :, :] + off[None, :, :])  # (H,W,half)

    # one wide lane-dense store of the full last dimension
    out_ref[0] = jnp.concatenate([pos_y, pos_x], axis=-1)            # (H, W, dim)


def sine_positional_encoding(mask, dim=DIM, scale=SCALE):
    """mask: (B, H, W) int/bool array (1 = masked). Returns (B, H, W, dim) float32."""
    B, H, W = mask.shape
    assert dim % 4 == 0
    half = dim // 2            # per sine transform
    nfreq = half // 2          # number of frequencies

    mask = mask.astype(jnp.int32)
    nm = 1 - mask

    # Global maxima of the cumsums, computed cheaply in the wrapper:
    # a cumsum of non-negative values is maximized at its last element.
    y_max = jnp.max(jnp.sum(nm, axis=1)).astype(jnp.float32)         # max over (B, W)
    x_max = jnp.max(jnp.sum(nm, axis=2)).astype(jnp.float32)         # max over (B, H)

    # deterministic "parameters" (buffers) — same construction as torch.logspace
    logspace = jnp.asarray(scale, jnp.float32) ** jnp.linspace(
        1.0, -4.0, nfreq, dtype=jnp.float32)                         # (nfreq,)
    logspace_rep = jnp.repeat(logspace, 2).reshape(1, half)          # [l0,l0,l1,l1,...]

    ls_y = logspace_rep / y_max                                      # fold 1/max into scale
    ls_x = logspace_rep / x_max
    off = jnp.tile(jnp.asarray([0.0, math.pi / 2.0], jnp.float32), nfreq).reshape(1, half)

    return pl.pallas_call(
        _sine_pos_enc_kernel,
        out_shape=jax.ShapeDtypeStruct((B, H, W, dim), jnp.float32),
        grid=(B,),
        in_specs=[
            pl.BlockSpec((1, H, W), lambda b: (b, 0, 0)),
            pl.BlockSpec((1, half), lambda b: (0, 0)),
            pl.BlockSpec((1, half), lambda b: (0, 0)),
            pl.BlockSpec((1, half), lambda b: (0, 0)),
        ],
        out_specs=pl.BlockSpec((1, H, W, dim), lambda b: (b, 0, 0, 0)),
        compiler_params=pltpu.CompilerParams(
            dimension_semantics=("parallel",)),
    )(mask, ls_y, ls_x, off)


def _reference(mask, dim=DIM, scale=SCALE):
    """Pure-JAX reference mirroring the PyTorch module."""
    half = dim // 2
    nfreq = half // 2
    logspace = jnp.asarray(scale, jnp.float32) ** jnp.linspace(
        1.0, -4.0, nfreq, dtype=jnp.float32)

    mask = mask.astype(jnp.int32)
    nm = 1 - mask
    y = jnp.cumsum(nm, axis=1).astype(jnp.float32)
    x = jnp.cumsum(nm, axis=2).astype(jnp.float32)

    def sine_transform(off):
        pos = off[..., None] * logspace                              # (B,H,W,nfreq)
        z = jnp.stack([jnp.sin(pos), jnp.cos(pos)], axis=-1)         # (B,H,W,nfreq,2)
        return z.reshape(*off.shape, half)                           # interleave

    pos_y = sine_transform(y / jnp.max(y))
    pos_x = sine_transform(x / jnp.max(x))
    return jnp.concatenate([pos_y, pos_x], axis=-1)


if __name__ == "__main__":
    key = jax.random.PRNGKey(0)
    B, H, W = 2, 16, 16
    # padding-style mask: 1 = padded, 0 = valid (keep plenty of zeros so max > 0)
    mask = jax.random.bernoulli(key, p=0.3, shape=(B, H, W)).astype(jnp.int32)

    out = sine_positional_encoding(mask)
    out = jax.block_until_ready(out)

    ref = _reference(mask)
    assert out.shape == (B, H, W, DIM), out.shape
    assert out.dtype == jnp.float32
    assert jnp.allclose(out, ref, atol=2e-5, rtol=2e-5), float(jnp.max(jnp.abs(out - ref)))

    print("KERNEL_OK")
</pallas_src>

<mosaic_0001>
module attributes {stable_mosaic.version = 11 : i64} {
  func.func @_sine_pos_enc_kernel(%arg0: i32, %arg1: memref<1x16x16xi32, #tpu.memory_space<vmem>>, %arg2: memref<1x128xf32, #tpu.memory_space<vmem>>, %arg3: memref<1x128xf32, #tpu.memory_space<vmem>>, %arg4: memref<1x128xf32, #tpu.memory_space<vmem>>, %arg5: memref<1x16x16x256xf32, #tpu.memory_space<vmem>>) attributes {dimension_semantics = [#tpu.dimension_semantics<parallel>], iteration_bounds = array<i64: 2>, scalar_prefetch = 0 : i64, scratch_operands = 0 : i64, tpu.core_type = #tpu.core_type<tc>, window_params = [{transform_indices = @transform_0, window_bounds = array<i64: 1, 16, 16>}, {pipeline_mode = #tpu.pipeline_mode<synchronous>, transform_indices = @transform_1, window_bounds = array<i64: 1, 128>}, {pipeline_mode = #tpu.pipeline_mode<synchronous>, transform_indices = @transform_2, window_bounds = array<i64: 1, 128>}, {pipeline_mode = #tpu.pipeline_mode<synchronous>, transform_indices = @transform_3, window_bounds = array<i64: 1, 128>}, {transform_indices = @transform_4, window_bounds = array<i64: 1, 16, 16, 256>}]} {
    %c0 = arith.constant 0 : index
    %c0_0 = arith.constant 0 : index
    %c0_1 = arith.constant 0 : index
    %0 = vector.load %arg1[%c0, %c0_0, %c0_1] : memref<1x16x16xi32, #tpu.memory_space<vmem>>, vector<1x16x16xi32>
    %1 = vector.shape_cast %0 : vector<1x16x16xi32> to vector<16x16xi32>
    %c1_i32 = arith.constant 1 : i32
    %2 = vector.broadcast %c1_i32 : i32 to vector<16x16xi32>
    %3 = arith.subi %2, %1 : vector<16x16xi32>
    %4 = arith.sitofp %3 : vector<16x16xi32> to vector<16x16xf32>
    %5 = tpu.iota {dimensions = array<i32: 0>} : vector<16x16xi32>
    %6 = tpu.iota {dimensions = array<i32: 1>} : vector<16x16xi32>
    %7 = arith.cmpi sge, %5, %6 : vector<16x16xi32>
    %8 = arith.extui %7 : vector<16x16xi1> to vector<16x16xi32>
    %9 = arith.sitofp %8 : vector<16x16xi32> to vector<16x16xf32>
    %10 = tpu.iota {dimensions = array<i32: 0>} : vector<16x16xi32>
    %11 = tpu.iota {dimensions = array<i32: 1>} : vector<16x16xi32>
    %12 = arith.cmpi sle, %10, %11 : vector<16x16xi32>
    %13 = arith.extui %12 : vector<16x16xi1> to vector<16x16xi32>
    %14 = arith.sitofp %13 : vector<16x16xi32> to vector<16x16xf32>
    %cst = arith.constant dense<0.000000e+00> : vector<16x16xf32>
    %15 = tpu.matmul %9, %4, %cst {dimension_numbers = #tpu.dot_dimension_numbers<[1], [0], [0], [1], [0, 0, 1, 1], [], []>} : vector<16x16xf32>, vector<16x16xf32>, vector<16x16xf32> -> vector<16x16xf32>
    %cst_2 = arith.constant dense<0.000000e+00> : vector<16x16xf32>
    %16 = tpu.matmul %4, %14, %cst_2 {dimension_numbers = #tpu.dot_dimension_numbers<[1], [0], [0], [1], [0, 0, 1, 1], [], []>} : vector<16x16xf32>, vector<16x16xf32>, vector<16x16xf32> -> vector<16x16xf32>
    %c0_3 = arith.constant 0 : index
    %c0_4 = arith.constant 0 : index
    %17 = vector.load %arg2[%c0_3, %c0_4] : memref<1x128xf32, #tpu.memory_space<vmem>>, vector<1x128xf32>
    %c0_5 = arith.constant 0 : index
    %c0_6 = arith.constant 0 : index
    %18 = vector.load %arg3[%c0_5, %c0_6] : memref<1x128xf32, #tpu.memory_space<vmem>>, vector<1x128xf32>
    %c0_7 = arith.constant 0 : index
    %c0_8 = arith.constant 0 : index
    %19 = vector.load %arg4[%c0_7, %c0_8] : memref<1x128xf32, #tpu.memory_space<vmem>>, vector<1x128xf32>
    %20 = vector.shape_cast %15 : vector<16x16xf32> to vector<16x16x1xf32>
    %21 = vector.shape_cast %17 : vector<1x128xf32> to vector<1x1x128xf32>
    %22 = vector.broadcast %20 : vector<16x16x1xf32> to vector<16x16x128xf32>
    %23 = vector.broadcast %21 : vector<1x1x128xf32> to vector<16x16x128xf32>
    %24 = arith.mulf %22, %23 : vector<16x16x128xf32>
    %25 = vector.shape_cast %19 : vector<1x128xf32> to vector<1x1x128xf32>
    %26 = vector.broadcast %25 : vector<1x1x128xf32> to vector<16x16x128xf32>
    %27 = arith.addf %24, %26 : vector<16x16x128xf32>
    %28 = math.sin %27 : vector<16x16x128xf32>
    %29 = vector.shape_cast %16 : vector<16x16xf32> to vector<16x16x1xf32>
    %30 = vector.shape_cast %18 : vector<1x128xf32> to vector<1x1x128xf32>
    %31 = vector.broadcast %29 : vector<16x16x1xf32> to vector<16x16x128xf32>
    %32 = vector.broadcast %30 : vector<1x1x128xf32> to vector<16x16x128xf32>
    %33 = arith.mulf %31, %32 : vector<16x16x128xf32>
    %34 = vector.shape_cast %19 : vector<1x128xf32> to vector<1x1x128xf32>
    %35 = vector.broadcast %34 : vector<1x1x128xf32> to vector<16x16x128xf32>
    %36 = arith.addf %33, %35 : vector<16x16x128xf32>
    %37 = math.sin %36 : vector<16x16x128xf32>
    %38 = tpu.concatenate %28, %37 in 2 : vector<16x16x128xf32>, vector<16x16x128xf32> -> vector<16x16x256xf32>
    %c0_9 = arith.constant 0 : index
    %c0_10 = arith.constant 0 : index
    %c0_11 = arith.constant 0 : index
    %c0_12 = arith.constant 0 : index
    %39 = vector.load %arg5[%c0_9, %c0_10, %c0_11, %c0_12] : memref<1x16x16x256xf32, #tpu.memory_space<vmem>>, vector<1x16x16x256xf32>
    %40 = vector.shape_cast %39 : vector<1x16x16x256xf32> to vector<16x16x256xf32>
    %41 = vector.shape_cast %38 : vector<16x16x256xf32> to vector<1x16x16x256xf32>
    tpu.vector_store %arg5[%c0_9, %c0_10, %c0_11, %c0_12], %41 {strides = array<i32>} : memref<1x16x16x256xf32, #tpu.memory_space<vmem>>, vector<1x16x16x256xf32>,
    return
  }
  func.func @transform_0(%arg0: i32) -> (i32, i32, i32) {
    %c0_i32 = arith.constant 0 : i32
    %c0_i32_0 = arith.constant 0 : i32
    %c0_i32_1 = arith.constant 0 : i32
    return %arg0, %c0_i32, %c0_i32_0 : i32, i32, i32
  }
  func.func @transform_1(%arg0: i32) -> (i32, i32) {
    %c0_i32 = arith.constant 0 : i32
    %c0_i32_0 = arith.constant 0 : i32
    %c0_i32_1 = arith.constant 0 : i32
    return %c0_i32, %c0_i32_0 : i32, i32
  }
  func.func @transform_2(%arg0: i32) -> (i32, i32) {
    %c0_i32 = arith.constant 0 : i32
    %c0_i32_0 = arith.constant 0 : i32
    %c0_i32_1 = arith.constant 0 : i32
    return %c0_i32, %c0_i32_0 : i32, i32
  }
  func.func @transform_3(%arg0: i32) -> (i32, i32) {
    %c0_i32 = arith.constant 0 : i32
    %c0_i32_0 = arith.constant 0 : i32
    %c0_i32_1 = arith.constant 0 : i32
    return %c0_i32, %c0_i32_0 : i32, i32
  }
  func.func @transform_4(%arg0: i32) -> (i32, i32, i32, i32) {
    %c0_i32 = arith.constant 0 : i32
    %c0_i32_0 = arith.constant 0 : i32
    %c0_i32_1 = arith.constant 0 : i32
    %c0_i32_2 = arith.constant 0 : i32
    return %arg0, %c0_i32, %c0_i32_0, %c0_i32_1 : i32, i32, i32, i32
  }
}

</mosaic_0001>

<bundles_post_ra>
// kernel: tpu_custom_call.1
= control target key start
LH: loop header
LB: loop body
LE: loop exit
PB: predicated region body
PF: predicated region fallthrough
CT: control target
= control target key end

     0   :  { %9 = vsyncpa [#allocation3], 0  ;;  %s13940_s0 = inlined_call_operand.hbm [shape: s32[2,16,16], index: 0, kind: input, shape index: {}]   ;;  %s13941_s1 = inlined_call_operand.vmem [shape: f32[1,128], index: 1, kind: input, shape index: {}]   ;;  %s13942_s2 = inlined_call_operand.vmem [shape: f32[1,128], index: 2, kind: input, shape index: {}]   ;;  %s13943_s3 = inlined_call_operand.vmem [shape: f32[1,128], index: 3, kind: input, shape index: {}]   ;;  %s13944_s4 = inlined_call_operand.hbm [shape: f32[2,16,16,256], index: 4, kind: output, shape index: {}]  }
   0x1   :  { %11 = vsyncpa [#allocation3 + $0x1], 0 }
   0x2   :  { %12 = vsyncpa [#allocation4], 0 }
   0x3   :  { %14 = vsyncpa [#allocation4 + $0x1], 0  ;;  %s8741_s15 = smov 0   ;;  %s8743_s16 = smov 0  }
   0x4   :  { %s8745_s17 = smov 0   ;;  %s8747_s18 = smov 0  }
   0x5 LB: > { %s8762_s19 = sadd.s32 4294967295, %s8700_s18   ;;  %s7710_s20 = sadd.s32 4294967294, %s8700_s18   ;;  %s8700_s18 = sphi %s8747_s18, %s14083_s18   ;;  %s8696_s17 = sphi %s8745_s17, %s14082_s17   ;;  %s8692_s16 = sphi %s8743_s16, %s14081_s16   ;;  %s8688_s15 = sphi %s8741_s15, %s14080_s15  }
   0x6   : > { %s8766_s21 = sadd.s32 1, %s8700_s18   ;;  %s27_s22 = sadd.s32 1, %s8696_s17 }
   0x7   : > { %s24_s23 = ssub.s32 %s8700_s18, %s8766_s21  ;;  %p34_p0 = scmp.ne.s32.totalorder %s8696_s17, %s8692_s16 }
   0x8   : > { %p25_p1 = scmp.eq.s32.totalorder %s24_s23, 0  ;;  %p35_p2 = scmp.eq.s32.totalorder %s8700_s18, 0 }
   0x9   : > { %p40_p3 = scmp.ne.s32.totalorder %s8692_s16, %s8688_s15  ;;  %p41_p4 = scmp.eq.s32.totalorder %s8762_s19, 0 }
   0xa   : > { %s8778_s24 = scalar_select %p25_p1, %s8696_s17, %s27_s22  }
   0xb   : > { %p8780_p5 = por %p35_p2, %p34_p0  ;;  %p8784_p6 = por %p41_p4, %p40_p3 }
   0xc   : > { %p127_p7 = scmp.eq.s32.totalorder %s8762_s19, 1  ;;  %p133_p8 = scmp.eq.s32.totalorder %s7710_s20, 1 }
   0xd   : > { %s13948_s26 = scalar_select %p8784_p6, 1, 0 }
   0xe   : > { %p8285_p10 = scmp.lt.s32.totalorder %s8700_s18, 2  ;;  %p8791_p11 = por %p127_p7, %p34_p0 }
   0xf   : > { %p8795_p12 = por %p133_p8, %p40_p3  ;;  %s162_s29 = sand.u32 1, %s8696_s17  }
  0x10   : > { %s13949_s27 = scalar_select %p8791_p11, 1, 0 }
  0x11   : > { %s13950_s28 = scalar_select %p8795_p12, 1, 0 }
  0x12   : > { %s7993_s30 = sshll.u32 %s8700_s18, 8  ;;  %s7713_s5 = sshll.u32 %s162_s29, 4 }
  0x13   : > { %s8804_s8 = scalar_lea.hbm %s13940_s0, %s7993_s30  ;;  %s166_s9 = scalar_lea.vmem [#allocation2], %s7713_s5 }
  0x14   : > { %s173_s10 = sshll.u32 %s166_s9, 4  ;;  %p8808_p13 = pnand %p8285_p10, %p8780_p5  ;;  %s8812_s10 = int_to_ptr.vmem [resolvable:$true] %s173_s10 }
  0x15   : > { %s8814_s12 = scalar_lea.sflag [#allocation3], %s162_s29  ;;  %s8608_s13 = scalar_lea.hbm %s8804_s8, 256 }
  0x16   : > { %p8609_p0 = scmp.ne.s32.totalorder %s8804_s8, %s8608_s13  ;;  %p8610_p1 = pneg %p8808_p13 }
  0x17   : > { %s8613_s22 = scalar_lea.hbm %s13940_s0, 512  ;;  %p8614_p4 = scmp.lt.s32.totalorder %s8804_s8, %s13940_s0 }
  0x18   : > { %p8611_p2 = pnand %p8610_p1, %p8609_p0  ;;  %p8615_p5 = scmp.lt.s32.totalorder %s8613_s22, %s8608_s13 }
  0x1a   : > { %p8612_p3 = pneg %p8611_p2  ;;  %p8616_p7 = por %p8615_p5, %p8614_p4 }
  0x1c   : > { %p8617_p8 = pnand %p8616_p7, %p8612_p3 }
  0x1e   : > { %8620 = shalt.err (!%p8617_p8)
}
  0x1f   : > { %s8621_s29 = scalar_lea.vmem %s8812_s10, 256  ;;  %s8702_s30 = smov [#allocation2]  }
  0x20   : > { %p8622_p10 = scmp.ne.s32.totalorder %s8812_s10, %s8621_s29  ;;  %s8626_s5 = sshll.u32 %s8702_s30, 4  ;;  %s8627_s5 = int_to_ptr.vmem [resolvable:$false] %s8626_s5 }
  0x21   : > { %s8628_s6 = scalar_lea.vmem %s8627_s5, 512  ;;  %p8629_p2 = scmp.lt.s32.totalorder %s8812_s10, %s8627_s5 }
  0x22   : > { %p8624_p9 = pnand %p8622_p10, %p8610_p1  ;;  %p8630_p12 = scmp.lt.s32.totalorder %s8628_s6, %s8621_s29 }
  0x24   : > { %p8625_p0 = pneg %p8624_p9  ;;  %p8631_p11 = por %p8630_p12, %p8629_p2 }
  0x26   : > { %p8632_p6 = pnand %p8631_p11, %p8625_p0 }
  0x28   : > { %8635 = shalt.err (!%p8632_p6)
}
  0x29   : > { %s8703_s7 = smov 128   ;;  %s8704_s9 = smov 8  }
  0x2a   : > { %8280 = dma.hbm_to_vmem [thread:$0]  (!%p8808_p13), %s8804_s8, 256, %s8812_s10, %s8814_s12, %s8703_s7, %s8703_s7, %s8704_s9  }
  0x2b   : > { %p7716_p9 = scmp.ge.s32.totalorder %s8700_s18, 1  ;;  %p181_p1 = scmp.lt.s32.totalorder %s8700_s18, 3 }
  0x2d   : > { %p182_p3 = pnand %p7716_p9, %p181_p1 }
  0x2e   : > { %s8838_s13 = sand.u32 (!%p182_p3), 1, %s8692_s16   ;;  %p13952_p6 = scmp.ne.s32.totalorder (!%p182_p3), %s13948_s26, 0 }
  0x2f   : > { %185 = sbr.rel (%p182_p3) target bundleno = 2030 (0x7ee), region = 36  ;;  %s7717_s14 = sshll.u32 (!%p182_p3), %s8838_s13, 4 }
  0x30   : > { %s188_s20 = scalar_lea.sflag (!%p182_p3), [#allocation3], %s8838_s13  ;;  %s191_s22 = scalar_lea.vmem (!%p182_p3), [#allocation2], %s7717_s14 }
  0x34   : > { %8679 = dma.done.wait (%p13952_p6), %s188_s20, 256  }
  0x35   : > { %8681 = vsyncadd (%p13952_p6), %s188_s20, 4294967040  ;;  %v222_v0 = vlaneseq  ;;  %vm239_vm1 = vcmask 130048   ;;  %v8705_v4 = vmov 0.0   ;;  %v8706_v6 = vmov 1.0   ;;  %v216_v7 = vld [vmem:[%s191_s22] sm:$0xff]  ;;  %v217_v8 = vld [vmem:[%s191_s22 + $0x8] sm:$0xff] }
  0x36   : > { %v218_v9 = vsub.s32 1, %v216_v7  ;;  %v219_v10 = vsub.s32 1, %v217_v8  ;;  %v8901_v56 = vld [vmem:[%s13942_s2] ss:$0 sm:$0xff]  ;;  %s7718_s12 = sshll.u32 %s8838_s13, 9  ;;  %p14077_p12 = scmp.ne.s32.totalorder %s13949_s27, 0 }
  0x37   : > { %v223_v1 = vshrl.u32 %v222_v0, 7  ;;  %v226_v2 = vand.u32 127, %v222_v0  ;;  %v8906_v57 = vld [vmem:[%s13943_s3] ss:$0 sm:$0xff]  ;;  %s9190_s23 = scalar_lea.vmem [#allocation5], %s7718_s12  ;;  %s7994_s12 = sshll.u32 %s8762_s19, 13 }
  0x38   : > { %v220_v11 = vcvt.s32.f32 %v218_v9  ;;  %v221_v12 = vcvt.s32.f32 %v219_v10  ;;  %s7637_s25 = sshll.u32 %s9190_s23, 4  ;;  %s13893_s5 = scalar_lea.hbm %s13944_s4, %s7994_s12  ;;  %s13895_s25 = int_to_ptr.vmem [resolvable:$true] %s7637_s25 }
  0x39   : > { %v224_v3 = vadd.s32 8, %v223_v1  ;;  %vm227_vm0 = vcmp.ge.s32.totalorder %v223_v1, %v226_v2  ;;  %vm233_vm3 = vcmp.le.s32.totalorder %v223_v1, %v226_v2  ;;  %v8850_v14 = vsub.s32 0, %v223_v1  ;;  %s7624_s19 = scalar_lea.sflag [#allocation4], %s8838_s13  ;;  %s8636_s6 = scalar_lea.vmem %s13895_s25, 8192 }
  0x3a   : > { %v7719_v5 = vsel %vm227_vm0, 1.0, %v8705_v4  ;;  %8014 = vmatprep.mubr.msk.f32.mxu1 %vm239_vm1, %v220_v11  ;;  %8003 = vmatprep.subr.mxu0 %v221_v12  ;;  %v8852_v15 = vsub.s32 7, %v223_v1  ;;  %v8855_v18 = vsub.s32 1, %v223_v1  ;;  %v8861_v21 = vsub.s32 2, %v223_v1  ;;  %p8637_p11 = scmp.ne.s32.totalorder %s13895_s25, %s8636_s6  ;;  %s8713_s7 = smov [#allocation5]  }
  0x3b   : > { %vm234_vm2 = vcmp.le.s32.totalorder %v224_v3, %v226_v2  ;;  %8007 = vmatprep.mubr.msk.f32.mxu0 %vm239_vm1, %v7719_v5  ;;  %vm228_vm4 = vcmp.ge.s32.totalorder %v224_v3, %v226_v2  ;;  %8004 = vmatpush3.msra.mxu0 %v221_v12  ;;  %v8864_v23 = vsub.s32 3, %v223_v1  ;;  %v8867_v25 = vsub.s32 4, %v223_v1  ;;  %s8640_s9 = sshll.u32 %s8713_s7, 4  ;;  %s8641_s9 = int_to_ptr.vmem [resolvable:$false] %s8640_s9 }
  0x3c   : > { %8010 = vmatprep.subr.msk.mxu1 %vm234_vm2, %v8706_v6  ;;  %v7720_v13 = vsel %vm228_vm4, 1.0, %v8705_v4  ;;  %8005 = vmatprep.subr.mxu0 %v220_v11  ;;  %v8870_v27 = vsub.s32 5, %v223_v1  ;;  %v8873_v29 = vsub.s32 6, %v223_v1  ;;  %p8638_p13 = pnand %p8637_p11, %p14077_p12  ;;  %s8642_s14 = scalar_lea.vmem %s8641_s9, 16384 }
  0x3d   : > { %8011 = vmatpush3.msk.msra.mxu1 %vm234_vm2, %v8706_v6  ;;  %8006 = vmatpush3.msra.mxu0 %v220_v11  ;;  %p8643_p5 = scmp.lt.s32.totalorder %s13895_s25, %s8641_s9  ;;  %p8644_p7 = scmp.lt.s32.totalorder %s8642_s14, %s8636_s6 }
  0x3e   : > { %8012 = vmatprep.subr.msk.mxu1 %vm233_vm3, %v8706_v6  ;;  %8008 = vmatmul.mubr.msk.f32.vlgmr.msra.gmra.mxu0 %vm239_vm1, %v7720_v13  ;;  %p8639_p4 = pneg %p8638_p13 }
  0x3f   : > { %8013 = vmatpush3.msk.msra.mxu1 %vm233_vm3, %v8706_v6  ;;  %p8645_p8 = por %p8644_p7, %p8643_p5 }
  0x40   : > { %8015 = vmatmul.mubr.msk.f32.vlgmr.msra.gmra.mxu1 %vm239_vm1, %v221_v12 }
  0x41   : > { %p8646_p10 = pnand %p8645_p8, %p8639_p4 }
  0xfe   : > { %v8009_v40 = vpop.f32.mrf.mxu0 }
  0xff   : > { %v496_v41 = vrot.slane %v8009_v40, %v8850_v14  ;;  %v507_v42 = vrot.slane %v8009_v40, %v8855_v18  ;;  %v518_v43 = vrot.slane %v8009_v40, %v8861_v21  ;;  %v529_v44 = vrot.slane %v8009_v40, %v8864_v23 }
 0x100   : > { %v8016_v16 = vpop.f32.mrf.mxu1  ;;  %v540_v45 = vrot.slane %v8009_v40, %v8867_v25  ;;  %v551_v46 = vrot.slane %v8009_v40, %v8870_v27  ;;  %v562_v47 = vrot.slane %v8009_v40, %v8873_v29  ;;  %v573_v48 = vrot.slane %v8009_v40, %v8852_v15  ;;  %v312_v49 = vpop.f32.mrf.mxu0 }
 0x101   : > { %v4076_v17 = vrot.slane %v8016_v16, %v8850_v14  ;;  %v8858_v19 = vrot.slane %v8016_v16, %v8852_v15  ;;  %v4087_v20 = vrot.slane %v8016_v16, %v8855_v18  ;;  %v4098_v22 = vrot.slane %v8016_v16, %v8861_v21 }
 0x102   : > { %v4109_v24 = vrot.slane %v8016_v16, %v8864_v23  ;;  %v4120_v26 = vrot.slane %v8016_v16, %v8867_v25  ;;  %v4131_v28 = vrot.slane %v8016_v16, %v8870_v27  ;;  %v4142_v30 = vrot.slane %v8016_v16, %v8873_v29  ;;  %v393_v31 = vpop.f32.mrf.mxu1 }
 0x103   : > { %4082 = vbcast.lane.b32.xlu1 %v4076_v17, 264  ;;  %4078 = vbcast.lane.b32.xlu0 %v4076_v17, 256  ;;  %v3988_v32 = vrot.slane %v393_v31, %v8850_v14  ;;  %v3999_v33 = vrot.slane %v393_v31, %v8855_v18  ;;  %v4010_v34 = vrot.slane %v393_v31, %v8861_v21 }
 0x104   : > { %v4021_v35 = vrot.slane %v393_v31, %v8864_v23  ;;  %v4032_v36 = vrot.slane %v393_v31, %v8867_v25  ;;  %v4043_v37 = vrot.slane %v393_v31, %v8870_v27  ;;  %v4054_v38 = vrot.slane %v393_v31, %v8873_v29 }
 0x105   : > { %v4065_v39 = vrot.slane %v393_v31, %v8852_v15  ;;  %v419_v50 = vrot.slane %v312_v49, %v8855_v18  ;;  %v408_v51 = vrot.slane %v312_v49, %v8850_v14  ;;  %v430_v52 = vrot.slane %v312_v49, %v8861_v21 }
 0x106   : > { %v441_v53 = vrot.slane %v312_v49, %v8864_v23  ;;  %v452_v54 = vrot.slane %v312_v49, %v8867_v25  ;;  %v463_v55 = vrot.slane %v312_v49, %v8870_v27  ;;  %v474_v60 = vrot.slane %v312_v49, %v8873_v29 }
 0x107   : > { %4093 = vbcast.lane.b32.xlu1 %v4087_v20, 264  ;;  %4089 = vbcast.lane.b32.xlu0 %v4087_v20, 256  ;;  %v485_v2 = vrot.slane %v312_v49, %v8852_v15 }
 0x10b   : > { %4104 = vbcast.lane.b32.xlu1 %v4098_v22, 264  ;;  %4100 = vbcast.lane.b32.xlu0 %v4098_v22, 256 }
 0x10f   : > { %4115 = vbcast.lane.b32.xlu1 %v4109_v24, 264  ;;  %4111 = vbcast.lane.b32.xlu0 %v4109_v24, 256 }
 0x113   : > { %4126 = vbcast.lane.b32.xlu1 %v4120_v26, 264  ;;  %4122 = vbcast.lane.b32.xlu0 %v4120_v26, 256 }
 0x117   : > { %4137 = vbcast.lane.b32.xlu1 %v4131_v28, 264  ;;  %4133 = vbcast.lane.b32.xlu0 %v4131_v28, 256 }
 0x11b   : > { %4148 = vbcast.lane.b32.xlu1 %v4142_v30, 264  ;;  %4144 = vbcast.lane.b32.xlu0 %v4142_v30, 256 }
 0x11f   : > { %3994 = vbcast.lane.b32.xlu1 %v3988_v32, 264  ;;  %3990 = vbcast.lane.b32.xlu0 %v3988_v32, 256 }
 0x123   : > { %4005 = vbcast.lane.b32.xlu1 %v3999_v33, 264  ;;  %4001 = vbcast.lane.b32.xlu0 %v3999_v33, 256  ;;  %v8707_v33 = vmov 683565275  }
 0x127   : > { %4016 = vbcast.lane.b32.xlu1 %v4010_v34, 264  ;;  %4012 = vbcast.lane.b32.xlu0 %v4010_v34, 256 }
 0x12b   : > { %4027 = vbcast.lane.b32.xlu1 %v4021_v35, 264  ;;  %4023 = vbcast.lane.b32.xlu0 %v4021_v35, 256 }
 0x12f   : > { %4038 = vbcast.lane.b32.xlu1 %v4032_v36, 264  ;;  %4034 = vbcast.lane.b32.xlu0 %v4032_v36, 256 }
 0x133   : > { %4049 = vbcast.lane.b32.xlu1 %v4043_v37, 264  ;;  %4045 = vbcast.lane.b32.xlu0 %v4043_v37, 256  ;;  %v8708_v37 = vmov 2475754826  }
 0x137   : > { %4060 = vbcast.lane.b32.xlu1 %v4054_v38, 264  ;;  %4056 = vbcast.lane.b32.xlu0 %v4054_v38, 256 }
 0x13b   : > { %4071 = vbcast.lane.b32.xlu1 %v4065_v39, 264  ;;  %4067 = vbcast.lane.b32.xlu0 %v4065_v39, 256  ;;  %v8709_v39 = vmov 2131351028  }
 0x13f   : > { %502 = vbcast.lane.b32.xlu1 %v496_v41, 264  ;;  %498 = vbcast.lane.b32.xlu0 %v496_v41, 256  ;;  %v8710_v41 = vmov 2102212464  }
 0x143   : > { %513 = vbcast.lane.b32.xlu1 %v507_v42, 264  ;;  %509 = vbcast.lane.b32.xlu0 %v507_v42, 256 }
 0x147   : > { %524 = vbcast.lane.b32.xlu1 %v518_v43, 264  ;;  %520 = vbcast.lane.b32.xlu0 %v518_v43, 256  ;;  %v8711_v43 = vmov 920167782  }
 0x14b   : > { %535 = vbcast.lane.b32.xlu1 %v529_v44, 264  ;;  %531 = vbcast.lane.b32.xlu0 %v529_v44, 256 }
 0x14f   : > { %546 = vbcast.lane.b32.xlu1 %v540_v45, 264  ;;  %542 = vbcast.lane.b32.xlu0 %v540_v45, 256 }
 0x153   : > { %557 = vbcast.lane.b32.xlu1 %v551_v46, 264  ;;  %553 = vbcast.lane.b32.xlu0 %v551_v46, 256 }
 0x157   : > { %568 = vbcast.lane.b32.xlu1 %v562_v47, 264  ;;  %564 = vbcast.lane.b32.xlu0 %v562_v47, 256 }
 0x15b   : > { %579 = vbcast.lane.b32.xlu1 %v573_v48, 264  ;;  %575 = vbcast.lane.b32.xlu0 %v573_v48, 256 }
 0x15f   : > { %421 = vbcast.lane.b32.xlu1 %v419_v50, 256  ;;  %410 = vbcast.lane.b32.xlu0 %v408_v51, 256 }
 0x163   : > { %425 = vbcast.lane.b32.xlu1 %v419_v50, 264  ;;  %414 = vbcast.lane.b32.xlu0 %v408_v51, 264  ;;  %v8712_v50 = vmov 1326507024  }
 0x167   : > { %436 = vbcast.lane.b32.xlu1 %v430_v52, 264  ;;  %432 = vbcast.lane.b32.xlu0 %v430_v52, 256 }
 0x16b   : > { %447 = vbcast.lane.b32.xlu1 %v441_v53, 264  ;;  %443 = vbcast.lane.b32.xlu0 %v441_v53, 256 }
 0x16f   : > { %458 = vbcast.lane.b32.xlu1 %v452_v54, 264  ;;  %454 = vbcast.lane.b32.xlu0 %v452_v54, 256 }
 0x173   : > { %469 = vbcast.lane.b32.xlu1 %v463_v55, 264  ;;  %465 = vbcast.lane.b32.xlu0 %v463_v55, 256 }
 0x175   : > { %v4083_v58 = vpop.permute.xlu1 %4082  ;;  %v4079_v59 = vpop.permute.xlu0 %4078 }
 0x176   : > { %v4184_v61 = vmul.f32 %v8901_v56, %v4083_v58  ;;  %v4183_v62 = vmul.f32 %v8901_v56, %v4079_v59 }
 0x177   : > { %480 = vbcast.lane.b32.xlu1 %v474_v60, 264  ;;  %476 = vbcast.lane.b32.xlu0 %v474_v60, 256 }
 0x178   : > { %v8912_v63 = vadd.f32 %v8906_v57, %v4184_v61  ;;  %v8915_v0 = vadd.f32 %v8906_v57, %v4183_v62 }
 0x179   : > { %v4094_v1 = vpop.permute.xlu1 %4093  ;;  %v4090_v22 = vpop.permute.xlu0 %4089 }
 0x17a   : > { %v5999_v3 = vand.u32 2147483647, %v8912_v63  ;;  %v6002_v4 = vand.u32 2139095040, %v8912_v63  ;;  %v5895_v5 = vand.u32 2147483647, %v8915_v0  ;;  %v5898_v6 = vand.u32 2139095040, %v8915_v0 }
 0x17b   : > { %491 = vbcast.lane.b32.xlu1 %v485_v2, 264  ;;  %487 = vbcast.lane.b32.xlu0 %v485_v2, 256  ;;  %v4186_v9 = vmul.f32 %v8901_v56, %v4094_v1  ;;  %v8935_v28 = vmul.f32 %v8901_v56, %v4090_v22  ;;  %vm6001_vm2 = vcmp.lt.s32.totalorder %v8912_v63, 0  ;;  %vm5897_vm3 = vcmp.lt.s32.totalorder %v8915_v0, 0 }
 0x17c   : > { %v6003_v7 = vshrl.u32 %v6002_v4, 23  ;;  %v6006_v8 = vand.u32 8388607, %v5999_v3  ;;  %v5899_v10 = vshrl.u32 %v5898_v6, 23  ;;  %v5902_v11 = vand.u32 8388607, %v5895_v5 }
 0x17d   : > { %v8928_v13 = vadd.f32 %v8906_v57, %v4186_v9 }
 0x17e   : > { %v7928_v12 = vadd.s32 4294967169, %v6003_v7  ;;  %v7924_v14 = vadd.s32 4294967169, %v5899_v10  ;;  %v6007_v15 = vor.u32 8388608, %v6006_v8  ;;  %v5903_v17 = vor.u32 8388608, %v5902_v11 }
 0x17f   : > { %4159 = vbcast.lane.b32.xlu1 %v8858_v19, 264  ;;  %4155 = vbcast.lane.b32.xlu0 %v8858_v19, 256  ;;  %v6207_v20 = vand.u32 2147483647, %v8928_v13  ;;  %v6210_v21 = vand.u32 2139095040, %v8928_v13 }
 0x180   : > { %v6009_v16 = vadd.s32 1, %v7928_v12  ;;  %v5905_v18 = vadd.s32 1, %v7924_v14  ;;  %v8937_v19 = vshll.u32 %v6007_v15, 8  ;;  %v8941_v30 = vshll.u32 %v5903_v17, 8 }
 0x181   : > { %v6211_v24 = vshrl.u32 %v6210_v21, 23  ;;  %v8945_v31 = vand.u32 8388607, %v6207_v20 }
 0x182   : > { %vm6010_vm5 = vcmp.gt.s32.totalorder %v6009_v16, 0  ;;  %vm5906_vm6 = vcmp.gt.s32.totalorder %v5905_v18, 0 }
 0x183   : > { %v6011_v23 = vsel %vm6010_vm5, %v6009_v16, 0  ;;  %v5907_v27 = vsel %vm5906_vm6, %v5905_v18, 0  ;;  %v8948_v36 = vadd.s32 4294967169, %v6211_v24  ;;  %vm9056_vm6 = vcmp.le.f32.partialorder %v5999_v3, 0.7853982 }
 0x184   : > { %v6012_v25 = vshrl.u32 %v6011_v23, 5  ;;  %v6013_v26 = vand.u32 31, %v6011_v23  ;;  %v8939_v29 = vshrl.u32 %v5907_v27, 5  ;;  %v5909_v35 = vand.u32 31, %v5907_v27 }
 0x186   : > { %v6014_v32 = vsub.s32 32, %v6013_v26  ;;  %v6016_v34 = vshll.u32 %v8707_v33, %v6013_v26  ;;  %v6019_v38 = vshll.u32 %v8708_v37, %v6013_v26  ;;  %v6022_v40 = vshll.u32 %v8709_v39, %v6013_v26 }
 0x187   : > { %v6025_v42 = vshll.u32 %v8710_v41, %v6013_v26  ;;  %v6028_v44 = vshll.u32 %v8711_v43, %v6013_v26  ;;  %vm6031_vm7 = vcmp.lt.s32.totalorder %v6012_v25, 1  ;;  %vm6032_vm8 = vcmp.lt.s32.totalorder %v6012_v25, 2 }
 0x188   : > { %v6017_v45 = vshrl.u32 %v8708_v37, %v6014_v32  ;;  %v6020_v46 = vshrl.u32 %v8709_v39, %v6014_v32  ;;  %v6023_v47 = vshrl.u32 %v8710_v41, %v6014_v32  ;;  %v6015_v48 = vshrl.u32 %v8707_v33, %v6014_v32 }
 0x189   : > { %v6026_v49 = vshrl.u32 %v8711_v43, %v6014_v32  ;;  %v6029_v51 = vshrl.u32 %v8712_v50, %v6014_v32  ;;  %v5910_v55 = vsub.s32 32, %v5909_v35  ;;  %vm6033_vm9 = vcmp.lt.s32.totalorder %v6012_v25, 3 }
 0x18a   : > { %v6018_v52 = vor.u32 %v6017_v45, %v6016_v34  ;;  %v6021_v53 = vor.u32 %v6020_v46, %v6019_v38  ;;  %v6024_v54 = vor.u32 %v6023_v47, %v6022_v40  ;;  %vm6034_vm10 = vcmp.lt.s32.totalorder %v6012_v25, 4 }
 0x18b   : > { %v6027_v58 = vor.u32 %v6026_v49, %v6025_v42  ;;  %v6030_v59 = vor.u32 %v6029_v51, %v6028_v44  ;;  %v5912_v7 = vshll.u32 %v8707_v33, %v5909_v35  ;;  %v5913_v10 = vshrl.u32 %v8708_v37, %v5910_v55 }
 0x18c   : > { %v6035_v60 = vsel %vm6031_vm7, %v6015_v48, %v6018_v52  ;;  %v6036_v61 = vsel %vm6034_vm10, %v6024_v54, 2102212464  ;;  %v6039_v62 = vsel %vm6031_vm7, %v6018_v52, %v6021_v53  ;;  %v6043_v1 = vsel %vm6031_vm7, %v6021_v53, %v6024_v54 }
 0x18d   : > { %v6037_v2 = vsel %vm6033_vm9, %v6021_v53, %v6036_v61  ;;  %v6040_v4 = vsel %vm6034_vm10, %v6027_v58, 920167782  ;;  %v6044_v6 = vsel %vm6034_vm10, %v6030_v59, 1326507024  ;;  %v5915_v11 = vshll.u32 %v8708_v37, %v5909_v35 }
 0x18e   : > { %v6041_v8 = vsel %vm6033_vm9, %v6024_v54, %v6040_v4  ;;  %v6045_v9 = vsel %vm6033_vm9, %v6027_v58, %v6044_v6  ;;  %v6038_v12 = vsel %vm6032_vm8, %v6035_v60, %v6037_v2  ;;  %v5916_v16 = vshrl.u32 %v8709_v39, %v5910_v55 }
 0x18f   : > { %v6042_v14 = vsel %vm6032_vm8, %v6039_v62, %v6041_v8  ;;  %v6046_v15 = vsel %vm6032_vm8, %v6043_v1, %v6045_v9  ;;  %v5914_v23 = vor.u32 %v5913_v10, %v5912_v7  ;;  %v5918_v26 = vshll.u32 %v8709_v39, %v5909_v35 }
 0x190   : > { %v8971_v17 = vmul.u32.u64.low %v8937_v19, %v6046_v15  ;;  %v8972_v18 = vmul.u32.u64.high %v8937_v19, %v6046_v15, %v8971_v17  ;;  %v8975_v21 = vmul.u32.u64.low %v8937_v19, %v6042_v14  ;;  %v8976_v22 = vmul.u32.u64.high %v8937_v19, %v6042_v14, %v8975_v21 }
 0x191   : > { %v5917_v24 = vor.u32 %v5916_v16, %v5915_v11  ;;  %v5919_v27 = vshrl.u32 %v8710_v41, %v5910_v55  ;;  %v5911_v32 = vshrl.u32 %v8707_v33, %v5910_v55  ;;  %v5921_v25 = vshll.u32 %v8710_v41, %v5909_v35 }
 0x192   : > { %v5922_v34 = vshrl.u32 %v8711_v43, %v5910_v55  ;;  %v5925_v38 = vshrl.u32 %v8712_v50, %v5910_v55  ;;  %v6054_v40 = vmul.u32 %v8937_v19, %v6038_v12  ;;  %v5924_v44 = vshll.u32 %v8711_v43, %v5909_v35 }
 0x193   : > { %v5920_v42 = vor.u32 %v5919_v27, %v5918_v26  ;;  %vm5927_vm11 = vcmp.lt.s32.totalorder %v8939_v29, 1  ;;  %vm6056_vm12 = vc.u32 %v8972_v18, %v8975_v21  ;;  %v6057_v45 = vadd.s32 1, %v8976_v22 }
 0x194   : > { %v5923_v46 = vor.u32 %v5922_v34, %v5921_v25  ;;  %vm5928_vm13 = vcmp.lt.s32.totalorder %v8939_v29, 2  ;;  %v5926_v47 = vor.u32 %v5925_v38, %v5924_v44  ;;  %vm5929_vm14 = vcmp.lt.s32.totalorder %v8939_v29, 3 }
 0x195   : > { %vm5930_vm15 = vcmp.lt.s32.totalorder %v8939_v29, 4  ;;  %v5935_v48 = vsel %vm5927_vm11, %v5914_v23, %v5917_v24  ;;  %v6058_v19 = vsel %vm6056_vm12, %v6057_v45, %v8976_v22  ;;  %v5939_v35 = vsel %vm5927_vm11, %v5917_v24, %v5920_v42 }
 0x196   : > { %v5932_v49 = vsel %vm5930_vm15, %v5920_v42, 2102212464  ;;  %v5936_v51 = vsel %vm5930_vm15, %v5923_v46, 920167782  ;;  %v6059_v52 = vadd.s32 %v6058_v19, %v6054_v40  ;;  %v5931_v53 = vsel %vm5927_vm11, %v5911_v32, %v5914_v23 }
 0x197   : > { %v5937_v54 = vsel %vm5929_vm14, %v5920_v42, %v5936_v51  ;;  %v5940_v55 = vsel %vm5930_vm15, %v5926_v47, 1326507024  ;;  %v5933_v58 = vsel %vm5929_vm14, %v5917_v24, %v5932_v49  ;;  %v6217_v61 = vadd.s32 1, %v8948_v36 }
 0x198   : > { %v5938_v59 = vsel %vm5928_vm13, %v5935_v48, %v5937_v54  ;;  %v5941_v60 = vsel %vm5929_vm14, %v5923_v46, %v5940_v55  ;;  %v6060_v62 = vadd.s32 536870912, %v6059_v52  ;;  %v5934_v9 = vsel %vm5928_vm13, %v5931_v53, %v5933_v58 }
 0x199   : > { %v5942_v1 = vsel %vm5928_vm13, %v5939_v35, %v5941_v60  ;;  %v8999_v2 = vmul.u32.u64.low %v8941_v30, %v5938_v59  ;;  %v9000_v4 = vmul.u32.u64.high %v8941_v30, %v5938_v59, %v8999_v2  ;;  %vm6218_vm0 = vcmp.gt.s32.totalorder %v6217_v61, 0 }
 0x19a   : > { %v9004_v6 = vmul.u32.u64.low %v8941_v30, %v5942_v1  ;;  %v9005_v7 = vmul.u32.u64.high %v8941_v30, %v5942_v1, %v9004_v6  ;;  %v6061_v8 = vshrl.u32 %v6060_v62, 30  ;;  %v6219_v10 = vsel %vm6218_vm0, %v6217_v61, 0 }
 0x19b   : > { %v9011_v36 = vadd.f32 %v8906_v57, %v8935_v28  ;;  %v6221_v11 = vand.u32 31, %v6219_v10  ;;  %v5953_v14 = vadd.s32 1, %v9000_v4  ;;  %v6215_v15 = vor.u32 8388608, %v8945_v31 }
 0x19c   : > { %v6062_v12 = vshll.u32 %v6061_v8, 30  ;;  %v5950_v16 = vmul.u32 %v8941_v30, %v5934_v9  ;;  %vm5952_vm1 = vc.u32 %v9005_v7, %v8999_v2  ;;  %v6055_v24 = vadd.s32 %v8975_v21, %v8972_v18 }
 0x19d   : > { %v6222_v17 = vsub.s32 32, %v6221_v11  ;;  %v5954_v29 = vsel %vm5952_vm1, %v5953_v14, %v9000_v4  ;;  %v6103_v23 = vand.u32 2147483647, %v9011_v36  ;;  %v9025_v31 = vshll.u32 %v6215_v15, 8 }
 0x19e   : > { %v9018_v22 = vsub.s32 %v6059_v52, %v6062_v12  ;;  %v5955_v28 = vadd.s32 %v5954_v29, %v5950_v16  ;;  %v9027_v27 = vshrl.u32 %v6219_v10, 5  ;;  %v6106_v25 = vand.u32 2139095040, %v9011_v36 }
 0x19f   : > { %v6225_v32 = vshrl.u32 %v8708_v37, %v6222_v17  ;;  %v6228_v38 = vshrl.u32 %v8709_v39, %v6222_v17  ;;  %v6231_v40 = vshrl.u32 %v8710_v41, %v6222_v17  ;;  %v9036_v18 = vand.u32 8388607, %v6103_v23 }
 0x1a0   : > { %v6065_v26 = vsub.s32 0, %v9018_v22  ;;  %v5956_v30 = vadd.s32 536870912, %v5955_v28  ;;  %v6085_v21 = vsub.s32 4, %v6061_v8  ;;  %v6224_v44 = vshll.u32 %v8707_v33, %v6221_v11 }
 0x1a1   : > { %v6234_v45 = vshrl.u32 %v8711_v43, %v6222_v17  ;;  %v6227_v47 = vshll.u32 %v8708_v37, %v6221_v11  ;;  %v6230_v48 = vshll.u32 %v8709_v39, %v6221_v11  ;;  %v6237_v19 = vshrl.u32 %v8712_v50, %v6222_v17 }
 0x1a2   : > { %v7929_v34 = vmin.u32 %v6065_v26, %v9018_v22  ;;  %v5957_v42 = vshrl.u32 %v5956_v30, 30  ;;  %v6226_v51 = vor.u32 %v6225_v32, %v6224_v44  ;;  %v6233_v35 = vshll.u32 %v8710_v41, %v6221_v11 }
 0x1a3   : > { %v6107_v52 = vshrl.u32 %v6106_v25, 23  ;;  %v6229_v54 = vor.u32 %v6228_v38, %v6227_v47  ;;  %v6232_v55 = vor.u32 %v6231_v40, %v6230_v48  ;;  %v6236_v58 = vshll.u32 %v8711_v43, %v6221_v11 }
 0x1a4   : > { %v6067_v46 = vclz %v7929_v34  ;;  %v5958_v49 = vshll.u32 %v5957_v42, 30  ;;  %v9047_v59 = vsel %vm6001_vm2, %v6085_v21, %v6061_v8  ;;  %v6223_v61 = vshrl.u32 %v8707_v33, %v6222_v17 }
 0x1a5   : > { %v6235_v62 = vor.u32 %v6234_v45, %v6233_v35  ;;  %v5981_v1 = vsub.s32 4, %v5957_v42  ;;  %v6238_v4 = vor.u32 %v6237_v19, %v6236_v58  ;;  %vm6239_vm5 = vcmp.lt.s32.totalorder %v9027_v27, 1 }
 0x1a6   : > { %v7930_v53 = vadd.s32 4294967294, %v6067_v46  ;;  %v9050_v60 = vsub.s32 %v5955_v28, %v5958_v49  ;;  %vm6241_vm7 = vcmp.lt.s32.totalorder %v9027_v27, 3  ;;  %vm6242_vm8 = vcmp.lt.s32.totalorder %v9027_v27, 4 }
 0x1a7   : > { %vm9065_vm9 = vcmp.le.f32.partialorder %v5895_v5, 0.7853982  ;;  %v6244_v14 = vsel %vm6242_vm8, %v6232_v55, 2102212464  ;;  %v6247_v3 = vsel %vm6239_vm5, %v6226_v51, %v6229_v54  ;;  %v6248_v17 = vsel %vm6242_vm8, %v6235_v62, 920167782 }
 0x1a8   : > { %vm7931_vm4 = vcmp.lt.s32.totalorder %v7930_v53, 0  ;;  %v5961_v9 = vsub.s32 0, %v9050_v60  ;;  %v6251_v29 = vsel %vm6239_vm5, %v6229_v54, %v6232_v55  ;;  %v6249_v5 = vsel %vm6241_vm7, %v6232_v55, %v6248_v17 }
 0x1a9   : > { %v6070_v8 = vsel %vm7931_vm4, 0, %v7930_v53  ;;  %v6252_v30 = vsel %vm6242_vm8, %v6238_v4, 1326507024  ;;  %vm6240_vm10 = vcmp.lt.s32.totalorder %v9027_v27, 2  ;;  %v6243_v25 = vsel %vm6239_vm5, %v6223_v61, %v6226_v51  ;;  %v4105_v4 = vpop.permute.xlu1 %4104 }
 0x1aa   : > { %v6071_v10 = vsub.s32 32, %v6070_v8  ;;  %v6075_v11 = vsub.s32 4294967266, %v6070_v8  ;;  %v6072_v15 = vshll.u32 %v9018_v22, %v6070_v8  ;;  %v7925_v16 = vmin.u32 %v5961_v9, %v9050_v60 }
 0x1ab   : > { %v6245_v22 = vsel %vm6241_vm7, %v6229_v54, %v6244_v14  ;;  %v6250_v40 = vsel %vm6240_vm10, %v6247_v3, %v6249_v5  ;;  %v5982_v48 = vsel %vm5897_vm3, %v5981_v1, %v5957_v42  ;;  %v5951_v51 = vadd.s32 %v8999_v2, %v9005_v7 }
 0x1ac   : > { %v6073_v28 = vshrl.u32 %v6055_v24, %v6071_v10  ;;  %v6076_v26 = vadd.s32 127, %v6075_v11  ;;  %v5963_v32 = vclz %v7925_v16  ;;  %v6253_v24 = vsel %vm6241_vm7, %v6235_v62, %v6252_v30 }
 0x1ad   : > { %v6254_v44 = vsel %vm6240_vm10, %v6251_v29, %v6253_v24  ;;  %v9085_v45 = vmul.u32.u64.low %v9025_v31, %v6250_v40  ;;  %v9086_v46 = vmul.u32.u64.high %v9025_v31, %v6250_v40, %v9085_v45  ;;  %v6246_v27 = vsel %vm6240_vm10, %v6243_v25, %v6245_v22 }
 0x1ae   : > { %v6074_v34 = vor.u32 %v6073_v28, %v6072_v15  ;;  %v6077_v38 = vshll.u32 %v6076_v26, 23  ;;  %v7926_v21 = vadd.s32 4294967294, %v5963_v32  ;;  %v7932_v35 = vadd.s32 4294967169, %v6107_v52  ;;  %v4101_v28 = vpop.permute.xlu0 %4100 }
 0x1af   : > { %v9091_v19 = vmul.u32.u64.low %v9025_v31, %v6254_v44  ;;  %v9092_v49 = vmul.u32.u64.high %v9025_v31, %v6254_v44, %v9091_v19  ;;  %v6088_v55 = vsel %vm9056_vm6, 0, %v9047_v59  ;;  %v5984_v42 = vsel %vm9065_vm9, 0, %v5982_v48 }
 0x1b0   : > { %v6078_v47 = vor.u32 4788187, %v6077_v38  ;;  %vm7927_vm11 = vcmp.lt.s32.totalorder %v7926_v21, 0  ;;  %v6081_v54 = vcvt.s32.f32 %v6074_v34  ;;  %v6265_v1 = vadd.s32 1, %v9086_v46 }
 0x1b1   : > { %v5966_v58 = vsel %vm7927_vm11, 0, %v7926_v21  ;;  %v6262_v2 = vmul.u32 %v9025_v31, %v6246_v27  ;;  %vm6264_vm12 = vc.u32 %v9092_v49, %v9085_v45  ;;  %v6113_v7 = vadd.s32 1, %v7932_v35 }
 0x1b2   : > { %v6079_v53 = vand.u32 2147483647, %v6078_v47  ;;  %v5967_v61 = vsub.s32 32, %v5966_v58  ;;  %v5971_v62 = vsub.s32 4294967266, %v5966_v58  ;;  %v5968_v52 = vshll.u32 %v9050_v60, %v5966_v58 }
 0x1b3   : > { %v6266_v59 = vsel %vm6264_vm12, %v6265_v1, %v9086_v46  ;;  %vm6114_vm13 = vcmp.gt.s32.totalorder %v6113_v7, 0  ;;  %v4188_v3 = vmul.f32 %v8901_v56, %v4105_v4  ;;  %v6092_v15 = vadd.s32 3, %v6088_v55 }
 0x1b4   : > { %v6082_v8 = vmul.f32 %v6081_v54, %v6079_v53  ;;  %v5969_v9 = vshrl.u32 %v5951_v51, %v5967_v61  ;;  %v5972_v10 = vadd.s32 127, %v5971_v62  ;;  %v6267_v14 = vadd.s32 %v6266_v59, %v6262_v2 }
 0x1b5   : > { %v6115_v29 = vsel %vm6114_vm13, %v6113_v7, 0  ;;  %v5988_v26 = vadd.s32 3, %v5984_v42  ;;  %v6111_v25 = vor.u32 8388608, %v9036_v18  ;;  %v9114_v38 = vmul.f32 %v8901_v56, %v4101_v28 }
 0x1b6   : > { %v6083_v11 = vxor.u32 2147483648, %v6082_v8  ;;  %v5970_v16 = vor.u32 %v5969_v9, %v5968_v52  ;;  %v5973_v17 = vshll.u32 %v5972_v10, 23  ;;  %v6268_v5 = vadd.s32 536870912, %v6267_v14 }
 0x1b7   : > { %v6117_v60 = vand.u32 31, %v6115_v29  ;;  %v9116_v40 = vand.u32 3, %v6092_v15  ;;  %vm6209_vm14 = vcmp.lt.s32.totalorder %v8928_v13, 0  ;;  %v9119_v44 = vand.u32 3, %v5988_v26 }
 0x1b8   : > { %v6084_v31 = vsel %vm6001_vm2, %v6083_v11, %v6082_v8  ;;  %v5974_v32 = vor.u32 4788187, %v5973_v17  ;;  %v6269_v22 = vshrl.u32 %v6268_v5, 30  ;;  %v5977_v21 = vcvt.s32.f32 %v5970_v16 }
 0x1b9   : > { %v6087_v30 = vsel %vm9056_vm6, %v8912_v63, %v6084_v31  ;;  %v6118_v34 = vsub.s32 32, %v6117_v60  ;;  %v9122_v6 = vadd.s32 %v9085_v45, %v9092_v49  ;;  %v9125_v18 = vadd.f32 %v8906_v57, %v4188_v3 }
 0x1ba   : > { %8331 = vcosq.f32 %v6087_v30  ;;  %v5975_v24 = vand.u32 2147483647, %v5974_v32  ;;  %v6270_v46 = vshll.u32 %v6269_v22, 30  ;;  %v6126_v48 = vshll.u32 %v8709_v39, %v6117_v60 }
 0x1bb   : > { %8333 = vsinq.f32 %v6087_v30  ;;  %v6127_v19 = vshrl.u32 %v8710_v41, %v6118_v34  ;;  %v9129_v51 = vshll.u32 %v6111_v25, 8  ;;  %v6121_v35 = vshrl.u32 %v8708_v37, %v6118_v34 }
 0x1bc   : > { %v5978_v47 = vmul.f32 %v5977_v21, %v5975_v24  ;;  %v9131_v27 = vsub.s32 %v6267_v14, %v6270_v46  ;;  %v6124_v53 = vshrl.u32 %v8709_v39, %v6118_v34  ;;  %v6130_v45 = vshrl.u32 %v8711_v43, %v6118_v34 }
 0x1bd   : > { %v9136_v54 = vshrl.u32 %v6115_v29, 5  ;;  %v6120_v55 = vshll.u32 %v8707_v33, %v6117_v60  ;;  %v6129_v58 = vshll.u32 %v8710_v41, %v6117_v60  ;;  %v6293_v62 = vsub.s32 4, %v6269_v22 }
 0x1be   : > { %v5979_v49 = vxor.u32 2147483648, %v5978_v47  ;;  %v6273_v61 = vsub.s32 0, %v9131_v27  ;;  %v6123_v42 = vshll.u32 %v8708_v37, %v6117_v60  ;;  %v6128_v1 = vor.u32 %v6127_v19, %v6126_v48 }
 0x1bf   : > { %vm6098_vm15 = vcmp.eq.s32.totalorder %v9116_v40, 2  ;;  %v6131_v8 = vor.u32 %v6130_v45, %v6129_v58  ;;  %v6132_v2 = vshll.u32 %v8711_v43, %v6117_v60  ;;  %v6133_v7 = vshrl.u32 %v8712_v50, %v6118_v34 }
 0x1c0   : > { %v5980_v4 = vsel %vm5897_vm3, %v5979_v49, %v5978_v47  ;;  %vm6095_vm0 = vcmp.eq.s32.totalorder %v9116_v40, 0  ;;  %v7937_v9 = vmin.u32 %v6273_v61, %v9131_v27  ;;  %v6122_v10 = vor.u32 %v6121_v35, %v6120_v55 }
 0x1c1   : > { %v5983_v52 = vsel %vm9065_vm9, %v8915_v0, %v5980_v4  ;;  %v6125_v59 = vor.u32 %v6124_v53, %v6123_v42  ;;  %vm6094_vm1 = vcmp.lt.s32.totalorder %v9116_v40, 2  ;;  %v6119_v11 = vshrl.u32 %v8707_v33, %v6118_v34 }
 0x1c2   : > { %8335 = vcosq.f32 %v5983_v52  ;;  %v6134_v14 = vor.u32 %v6133_v7, %v6132_v2  ;;  %v6415_v3 = vand.u32 2147483647, %v9125_v18  ;;  %vm6091_vm2 = vweird.f32 %v8912_v63 }
 0x1c3   : > { %8337 = vsinq.f32 %v5983_v52  ;;  %v6275_v15 = vclz %v7937_v9  ;;  %v9158_v12 = vsel %vm6209_vm14, %v6293_v62, %v6269_v22  ;;  %vm6138_vm3 = vcmp.lt.s32.totalorder %v9136_v54, 4 }
 0x1c4   : > { %vm6135_vm4 = vcmp.lt.s32.totalorder %v9136_v54, 1  ;;  %vm6136_vm5 = vcmp.lt.s32.totalorder %v9136_v54, 2  ;;  %v6140_v16 = vsel %vm6138_vm3, %v6128_v1, 2102212464  ;;  %v6144_v17 = vsel %vm6138_vm3, %v6131_v8, 920167782 }
 0x1c5   : > { %v7938_v29 = vadd.s32 4294967294, %v6275_v15  ;;  %vm6137_vm6 = vcmp.lt.s32.totalorder %v9136_v54, 3  ;;  %v6139_v28 = vsel %vm6135_vm4, %v6119_v11, %v6122_v10  ;;  %v6147_v31 = vsel %vm6135_vm4, %v6125_v59, %v6128_v1 }
 0x1c6   : > { %v6143_v5 = vsel %vm6135_vm4, %v6122_v10, %v6125_v59  ;;  %v6145_v60 = vsel %vm6137_vm6, %v6128_v1, %v6144_v17  ;;  %v6148_v30 = vsel %vm6138_vm3, %v6134_v14, 1326507024  ;;  %v6418_v32 = vand.u32 2139095040, %v9125_v18 }
 0x1c7   : > { %v8332_v26 = vpop.eup %8331  ;;  %vm7939_vm7 = vcmp.lt.s32.totalorder %v7938_v29, 0  ;;  %v6141_v34 = vsel %vm6137_vm6, %v6125_v59, %v6140_v16  ;;  %v6149_v24 = vsel %vm6137_vm6, %v6131_v8, %v6148_v30  ;;  %v6146_v45 = vsel %vm6136_vm5, %v6143_v5, %v6145_v60 }
 0x1c8   : > { %v8334_v25 = vpop.eup %8333  ;;  %v6099_v22 = vxor.u32 2147483648, %v8332_v26  ;;  %v6278_v46 = vsel %vm7939_vm7, 0, %v7938_v29  ;;  %v6150_v47 = vsel %vm6136_vm5, %v6147_v31, %v6149_v24  ;;  %v6419_v48 = vshrl.u32 %v6418_v32, 23 }
 0x1c9   : > { %v6096_v21 = vxor.u32 2147483648, %v8334_v25  ;;  %v6279_v35 = vsub.s32 32, %v6278_v46  ;;  %v6283_v53 = vsub.s32 4294967266, %v6278_v46  ;;  %v6280_v42 = vshll.u32 %v9131_v27, %v6278_v46 }
 0x1ca   : > { %v6100_v19 = vsel %vm6098_vm15, %v6099_v22, %v8334_v25  ;;  %v9175_v55 = vmul.u32.u64.low %v9129_v51, %v6150_v47  ;;  %v9176_v58 = vmul.u32.u64.high %v9129_v51, %v6150_v47, %v9175_v55  ;;  %v7944_v61 = vadd.s32 4294967169, %v6419_v48 }
 0x1cb   : > { %v6097_v49 = vsel %vm6095_vm0, %v8332_v26, %v6096_v21  ;;  %v6281_v1 = vshrl.u32 %v9122_v6, %v6279_v35  ;;  %v6284_v4 = vadd.s32 127, %v6283_v53  ;;  %vm5987_vm8 = vweird.f32 %v8915_v0 }
 0x1cc   : > { %v6101_v62 = vsel %vm6094_vm1, %v6097_v49, %v6100_v19  ;;  %v9186_v2 = vmul.u32.u64.low %v9129_v51, %v6146_v45  ;;  %v9187_v7 = vmul.u32.u64.high %v9129_v51, %v6146_v45, %v9186_v2  ;;  %v6425_v52 = vadd.s32 1, %v7944_v61 }
 0x1cd   : > { %v6102_v8 = vsel %vm6091_vm2, nan, %v6101_v62  ;;  %vm5990_vm9 = vcmp.lt.s32.totalorder %v9119_v44, 2  ;;  %vm9196_vm10 = vcmp.le.f32.partialorder %v6207_v20, 0.7853982  ;;  %v6282_v63 = vor.u32 %v6281_v1, %v6280_v42 }
 0x1ce   : > { %7594 = vst [vmem:[%s9190_s23 + $0x118] sm:$0xff] %v6102_v8  ;;  %v6285_v6 = vshll.u32 %v6284_v4, 23  ;;  %vm5991_vm11 = vcmp.eq.s32.totalorder %v9119_v44, 0  ;;  %v6296_v27 = vsel %vm9196_vm10, 0, %v9158_v12  ;;  %v6142_v9 = vsel %vm6136_vm5, %v6139_v28, %v6141_v34 }
 0x1cf   : > { %vm6426_vm12 = vcmp.gt.s32.totalorder %v6425_v52, 0  ;;  %v8336_v10 = vpop.eup %8335  ;;  %vm6160_vm13 = vc.u32 %v9176_v58, %v9186_v2  ;;  %v6422_v20 = vand.u32 8388607, %v6415_v3  ;;  %vm5994_vm15 = vcmp.eq.s32.totalorder %v9119_v44, 2 }
 0x1d0   : > { %v6286_v59 = vor.u32 4788187, %v6285_v6  ;;  %v6427_v11 = vsel %vm6426_vm12, %v6425_v52, 0  ;;  %v8338_v14 = vpop.eup %8337  ;;  %v5995_v15 = vxor.u32 2147483648, %v8336_v10  ;;  %v6161_v16 = vadd.s32 1, %v9187_v7 }
 0x1d1   : > { %v6429_v12 = vand.u32 31, %v6427_v11  ;;  %v5992_v17 = vxor.u32 2147483648, %v8338_v14  ;;  %v6289_v29 = vcvt.s32.f32 %v6282_v63  ;;  %v6158_v28 = vmul.u32 %v9129_v51, %v6142_v9 }
 0x1d2   : > { %v6287_v54 = vand.u32 2147483647, %v6286_v59  ;;  %v5996_v31 = vsel %vm5994_vm15, %v5995_v15, %v8338_v14  ;;  %v6300_v26 = vadd.s32 3, %v6296_v27  ;;  %v6162_v5 = vsel %vm6160_vm13, %v6161_v16, %v9187_v7 }
 0x1d3   : > { %v6430_v60 = vsub.s32 32, %v6429_v12  ;;  %v5993_v30 = vsel %vm5991_vm11, %v8336_v10, %v5992_v17  ;;  %v6163_v25 = vadd.s32 %v6162_v5, %v6158_v28  ;;  %v6423_v22 = vor.u32 8388608, %v6422_v20 }
 0x1d4   : > { %v6290_v32 = vmul.f32 %v6289_v29, %v6287_v54  ;;  %v5997_v34 = vsel %vm5990_vm9, %v5993_v30, %v5996_v31  ;;  %v6432_v24 = vshll.u32 %v8707_v33, %v6429_v12  ;;  %v6428_v19 = vshrl.u32 %v6427_v11, 5 }
 0x1d5   : > { %v6433_v21 = vshrl.u32 %v8708_v37, %v6430_v60  ;;  %v6436_v51 = vshrl.u32 %v8709_v39, %v6430_v60  ;;  %v5998_v46 = vsel %vm5987_vm8, nan, %v5997_v34  ;;  %v6164_v48 = vadd.s32 536870912, %v6163_v25 }
 0x1d6   : > { %v6291_v47 = vxor.u32 2147483648, %v6290_v32  ;;  %7592 = vst [vmem:[%s9190_s23 + $0x108] sm:$0xff] %v5998_v46  ;;  %v6435_v53 = vshll.u32 %v8708_v37, %v6429_v12  ;;  %v6438_v45 = vshll.u32 %v8709_v39, %v6429_v12  ;;  %v6439_v44 = vshrl.u32 %v8710_v41, %v6430_v60 }
 0x1d7   : > { %v6434_v35 = vor.u32 %v6433_v21, %v6432_v24  ;;  %v6165_v55 = vshrl.u32 %v6164_v48, 30  ;;  %v6441_v61 = vshll.u32 %v8710_v41, %v6429_v12  ;;  %v6442_v0 = vshrl.u32 %v8711_v43, %v6430_v60 }
 0x1d8   : > { %v6292_v49 = vsel %vm6209_vm14, %v6291_v47, %v6290_v32  ;;  %v6437_v42 = vor.u32 %v6436_v51, %v6435_v53  ;;  %v6444_v1 = vshll.u32 %v8711_v43, %v6429_v12  ;;  %v6445_v4 = vshrl.u32 %v8712_v50, %v6430_v60 }
 0x1d9   : > { %v6295_v62 = vsel %vm9196_vm10, %v8928_v13, %v6292_v49  ;;  %v6166_v8 = vshll.u32 %v6165_v55, 30  ;;  %v6440_v7 = vor.u32 %v6439_v44, %v6438_v45  ;;  %v6443_v52 = vor.u32 %v6442_v0, %v6441_v61 }
 0x1da   : > { %8339 = vcosq.f32 %v6295_v62  ;;  %v6446_v63 = vor.u32 %v6445_v4, %v6444_v1  ;;  %vm6447_vm14 = vcmp.lt.s32.totalorder %v6428_v19, 1  ;;  %vm6450_vm0 = vcmp.lt.s32.totalorder %v6428_v19, 4 }
 0x1db   : > { %8341 = vsinq.f32 %v6295_v62  ;;  %v9236_v6 = vsub.s32 %v6163_v25, %v6166_v8  ;;  %v9240_v27 = vadd.f32 %v8906_v57, %v9114_v38  ;;  %v9242_v40 = vand.u32 3, %v6300_v26 }
 0x1dc   : > { %vm6449_vm1 = vcmp.lt.s32.totalorder %v6428_v19, 3  ;;  %v6455_v9 = vsel %vm6447_vm14, %v6434_v35, %v6437_v42  ;;  %v6456_v10 = vsel %vm6450_vm0, %v6443_v52, 920167782  ;;  %vm6448_vm2 = vcmp.lt.s32.totalorder %v6428_v19, 2 }
 0x1dd   : > { %v6169_v59 = vsub.s32 0, %v9236_v6  ;;  %v6457_v20 = vsel %vm6449_vm1, %v6440_v7, %v6456_v10  ;;  %v6463_v11 = vshll.u32 %v6423_v22, 8  ;;  %v6452_v14 = vsel %vm6450_vm0, %v6440_v7, 2102212464 }
 0x1de   : > { %v6458_v15 = vsel %vm6448_vm2, %v6455_v9, %v6457_v20  ;;  %v6459_v16 = vsel %vm6447_vm14, %v6437_v42, %v6440_v7  ;;  %v6460_v12 = vsel %vm6450_vm0, %v6446_v63, 1326507024  ;;  %v6189_v17 = vsub.s32 4, %v6165_v55 }
 0x1df   : > { %v7933_v38 = vmin.u32 %v6169_v59, %v9236_v6  ;;  %v6431_v54 = vshrl.u32 %v8707_v33, %v6430_v60  ;;  %v6461_v29 = vsel %vm6449_vm1, %v6443_v52, %v6460_v12  ;;  %v6314_v5 = vand.u32 2139095040, %v9240_v27  ;;  %v4116_v52 = vpop.permute.xlu1 %4115 }
 0x1e0   : > { %v6462_v28 = vsel %vm6448_vm2, %v6459_v16, %v6461_v29  ;;  %v9253_v31 = vmul.u32.u64.low %v6463_v11, %v6458_v15  ;;  %v9254_v26 = vmul.u32.u64.high %v6463_v11, %v6458_v15, %v9253_v31  ;;  %v6453_v25 = vsel %vm6449_vm1, %v6437_v42, %v6452_v14 }
 0x1e1   : > { %v6171_v30 = vclz %v7933_v38  ;;  %v6451_v32 = vsel %vm6447_vm14, %v6431_v54, %v6434_v35  ;;  %vm6105_vm3 = vcmp.lt.s32.totalorder %v9011_v36, 0  ;;  %v6315_v60 = vshrl.u32 %v6314_v5, 23 }
 0x1e2   : > { %v9261_v22 = vmul.u32.u64.low %v6463_v11, %v6462_v28  ;;  %v9262_v34 = vmul.u32.u64.high %v6463_v11, %v6462_v28, %v9261_v22  ;;  %vm6299_vm4 = vweird.f32 %v8928_v13  ;;  %vm6302_vm5 = vcmp.lt.s32.totalorder %v9242_v40, 2 }
 0x1e3   : > { %vm9268_vm6 = vcmp.le.f32.partialorder %v6103_v23, 0.7853982  ;;  %v7934_v21 = vadd.s32 4294967294, %v6171_v30  ;;  %v6190_v51 = vsel %vm6105_vm3, %v6189_v17, %v6165_v55  ;;  %vm6303_vm7 = vcmp.eq.s32.totalorder %v9242_v40, 0 }
 0x1e4   : > { %v6454_v46 = vsel %vm6448_vm2, %v6451_v32, %v6453_v25  ;;  %v6473_v47 = vadd.s32 1, %v9254_v26  ;;  %v7940_v48 = vadd.s32 4294967169, %v6315_v60  ;;  %vm6306_vm8 = vcmp.eq.s32.totalorder %v9242_v40, 2 }
 0x1e5   : > { %v6159_v35 = vadd.s32 %v9186_v2, %v9176_v58  ;;  %vm7935_vm9 = vcmp.lt.s32.totalorder %v7934_v21, 0  ;;  %v6311_v23 = vand.u32 2147483647, %v9240_v27  ;;  %v6192_v44 = vsel %vm9268_vm6, 0, %v6190_v51 }
 0x1e6   : > { %v6174_v45 = vsel %vm7935_vm9, 0, %v7934_v21  ;;  %vm6472_vm10 = vc.u32 %v9262_v34, %v9253_v31  ;;  %v6321_v19 = vadd.s32 1, %v7940_v48  ;;  %v6470_v62 = vmul.u32 %v6463_v11, %v6454_v46 }
 0x1e7   : > { %v8340_v53 = vpop.eup %8339  ;;  %v6175_v61 = vsub.s32 32, %v6174_v45  ;;  %v6179_v0 = vsub.s32 4294967266, %v6174_v45  ;;  %v6176_v58 = vshll.u32 %v9236_v6, %v6174_v45  ;;  %v6474_v2 = vsel %vm6472_vm10, %v6473_v47, %v9254_v26 }
 0x1e8   : > { %v8342_v49 = vpop.eup %8341  ;;  %v6307_v55 = vxor.u32 2147483648, %v8340_v53  ;;  %vm6322_vm11 = vcmp.gt.s32.totalorder %v6321_v19, 0  ;;  %v6475_v7 = vadd.s32 %v6474_v2, %v6470_v62  ;;  %v6196_v9 = vadd.s32 3, %v6192_v44 }
 0x1e9   : > { %v6304_v42 = vxor.u32 2147483648, %v8342_v49  ;;  %v6177_v4 = vshrl.u32 %v6159_v35, %v6175_v61  ;;  %v6180_v8 = vadd.s32 127, %v6179_v0  ;;  %v6318_v10 = vand.u32 8388607, %v6311_v23 }
 0x1ea   : > { %v6308_v1 = vsel %vm6306_vm8, %v6307_v55, %v8342_v49  ;;  %v6323_v59 = vsel %vm6322_vm11, %v6321_v19, 0  ;;  %v6476_v14 = vadd.s32 536870912, %v6475_v7  ;;  %v4190_v12 = vmul.f32 %v8901_v56, %v4116_v52 }
 0x1eb   : > { %v6305_v63 = vsel %vm6303_vm7, %v8340_v53, %v6304_v42  ;;  %v6178_v20 = vor.u32 %v6177_v4, %v6176_v58  ;;  %v6181_v11 = vshll.u32 %v6180_v8, 23  ;;  %v6325_v16 = vand.u32 31, %v6323_v59 }
 0x1ec   : > { %v6309_v6 = vsel %vm6302_vm5, %v6305_v63, %v6308_v1  ;;  %v9299_v17 = vshrl.u32 %v6476_v14, 30  ;;  %v6319_v54 = vor.u32 8388608, %v6318_v10  ;;  %v9301_v5 = vand.u32 3, %v6196_v9 }
 0x1ed   : > { %v6310_v15 = vsel %vm6299_vm4, nan, %v6309_v6  ;;  %v6182_v38 = vor.u32 4788187, %v6181_v11  ;;  %v6326_v29 = vsub.s32 32, %v6325_v16  ;;  %v6185_v26 = vcvt.s32.f32 %v6178_v20 }
 0x1ee   : > { %7598 = vst [vmem:[%s9190_s23 + $0x138] sm:$0xff] %v6310_v15  ;;  %v6478_v40 = vshll.u32 %v9299_v17, 30  ;;  %v9308_v56 = vadd.f32 %v8906_v57, %v4190_v12  ;;  %v6328_v60 = vshll.u32 %v8707_v33, %v6325_v16  ;;  %v6324_v51 = vshrl.u32 %v6323_v59, 5 }
 0x1ef   : > { %v6183_v28 = vand.u32 2147483647, %v6182_v38  ;;  %v6329_v30 = vshrl.u32 %v8708_v37, %v6326_v29  ;;  %v6332_v13 = vshrl.u32 %v8709_v39, %v6326_v29  ;;  %v6335_v32 = vshrl.u32 %v8710_v41, %v6326_v29 }
 0x1f0   : > { %v9310_v22 = vsub.s32 %v6475_v7, %v6478_v40  ;;  %v6338_v21 = vshrl.u32 %v8711_v43, %v6326_v29  ;;  %v6331_v46 = vshll.u32 %v8708_v37, %v6325_v16  ;;  %v6334_v47 = vshll.u32 %v8709_v39, %v6325_v16 }
 0x1f1   : > { %v6186_v25 = vmul.f32 %v6185_v26, %v6183_v28  ;;  %v9316_v48 = vshll.u32 %v6319_v54, 8  ;;  %v6330_v45 = vor.u32 %v6329_v30, %v6328_v60  ;;  %v6337_v57 = vshll.u32 %v8710_v41, %v6325_v16  ;;  %v4112_v60 = vpop.permute.xlu0 %4111 }
 0x1f2   : > { %v6481_v53 = vsub.s32 0, %v9310_v22  ;;  %v6333_v44 = vor.u32 %v6332_v13, %v6331_v46  ;;  %v6336_v19 = vor.u32 %v6335_v32, %v6334_v47  ;;  %v6340_v49 = vshll.u32 %v8711_v43, %v6325_v16 }
 0x1f3   : > { %v6187_v35 = vxor.u32 2147483648, %v6186_v25  ;;  %v6341_v55 = vshrl.u32 %v8712_v50, %v6326_v29  ;;  %v6339_v62 = vor.u32 %v6338_v21, %v6337_v57  ;;  %v6626_v42 = vand.u32 2139095040, %v9308_v56 }
 0x1f4   : > { %v7945_v0 = vmin.u32 %v6481_v53, %v9310_v22  ;;  %v6501_v2 = vsub.s32 4, %v9299_v17  ;;  %v6327_v1 = vshrl.u32 %v8707_v33, %v6326_v29  ;;  %vm6417_vm12 = vcmp.lt.s32.totalorder %v9125_v18, 0 }
 0x1f5   : > { %v6188_v61 = vsel %vm6105_vm3, %v6187_v35, %v6186_v25  ;;  %v6342_v4 = vor.u32 %v6341_v55, %v6340_v49  ;;  %vm6343_vm13 = vcmp.lt.s32.totalorder %v6324_v51, 1  ;;  %vm6346_vm15 = vcmp.lt.s32.totalorder %v6324_v51, 4 }
 0x1f6   : > { %v6191_v58 = vsel %vm9268_vm6, %v9011_v36, %v6188_v61  ;;  %v6483_v8 = vclz %v7945_v0  ;;  %vm6344_vm14 = vcmp.lt.s32.totalorder %v6324_v51, 2  ;;  %v6348_v7 = vsel %vm6346_vm15, %v6336_v19, 2102212464 }
 0x1f7   : > { %8343 = vcosq.f32 %v6191_v58  ;;  %v6351_v52 = vsel %vm6343_vm13, %v6330_v45, %v6333_v44  ;;  %vm6345_vm0 = vcmp.lt.s32.totalorder %v6324_v51, 3  ;;  %v6352_v9 = vsel %vm6346_vm15, %v6339_v62, 920167782 }
 0x1f8   : > { %8345 = vsinq.f32 %v6191_v58  ;;  %v7946_v63 = vadd.s32 4294967294, %v6483_v8  ;;  %v6355_v24 = vsel %vm6343_vm13, %v6333_v44, %v6336_v19  ;;  %v6347_v10 = vsel %vm6343_vm13, %v6327_v1, %v6330_v45  ;;  %v9379_v1 = vld [vmem:[%s13943_s3] ss:$0 sm:$0xff] }
 0x1f9   : > { %v6353_v59 = vsel %vm6345_vm0, %v6336_v19, %v6352_v9  ;;  %v6356_v6 = vsel %vm6346_vm15, %v6342_v4, 1326507024  ;;  %v6627_v20 = vshrl.u32 %v6626_v42, 23  ;;  %v6349_v11 = vsel %vm6345_vm0, %v6333_v44, %v6348_v7 }
 0x1fa   : > { %vm7947_vm1 = vcmp.lt.s32.totalorder %v7946_v63, 0  ;;  %v6354_v14 = vsel %vm6344_vm14, %v6351_v52, %v6353_v59  ;;  %v6357_v15 = vsel %vm6345_vm0, %v6339_v62, %v6356_v6  ;;  %v6471_v29 = vadd.s32 %v9253_v31, %v9262_v34 }
 0x1fb   : > { %v6486_v16 = vsel %vm7947_vm1, 0, %v7946_v63  ;;  %v6358_v12 = vsel %vm6344_vm14, %v6355_v24, %v6357_v15  ;;  %v9335_v38 = vmul.u32.u64.low %v9316_v48, %v6354_v14  ;;  %v9336_v54 = vmul.u32.u64.high %v9316_v48, %v6354_v14, %v9335_v38 }
 0x1fc   : > { %v6487_v28 = vsub.s32 32, %v6486_v16  ;;  %v6491_v26 = vsub.s32 4294967266, %v6486_v16  ;;  %v7952_v40 = vadd.s32 4294967169, %v6627_v20  ;;  %v6350_v30 = vsel %vm6344_vm14, %v6347_v10, %v6349_v11 }
 0x1fd   : > { %v9343_v13 = vmul.u32.u64.low %v9316_v48, %v6358_v12  ;;  %v9344_v32 = vmul.u32.u64.high %v9316_v48, %v6358_v12, %v9343_v13  ;;  %v6623_v25 = vand.u32 2147483647, %v9308_v56  ;;  %v6488_v21 = vshll.u32 %v9310_v22, %v6486_v16  ;;  %v9362_v22 = vld [vmem:[%s13942_s2] ss:$0 sm:$0xff] }
 0x1fe   : > { %v6489_v46 = vshrl.u32 %v6471_v29, %v6487_v28  ;;  %v6492_v47 = vadd.s32 127, %v6491_v26  ;;  %v6633_v35 = vadd.s32 1, %v7952_v40  ;;  %vm9350_vm2 = vcmp.le.f32.partialorder %v6415_v3, 0.7853982 }
 0x1ff   : > { %v6502_v34 = vsel %vm6417_vm12, %v6501_v2, %v9299_v17  ;;  %v6369_v51 = vadd.s32 1, %v9336_v54  ;;  %vm6195_vm3 = vweird.f32 %v9011_v36  ;;  %v4189_v3 = vmul.f32 %v9362_v22, %v4112_v60 }
 0x200   : > { %v6490_v53 = vor.u32 %v6489_v46, %v6488_v21  ;;  %v6493_v45 = vshll.u32 %v6492_v47, 23  ;;  %vm6634_vm4 = vcmp.gt.s32.totalorder %v6633_v35, 0  ;;  %vm6198_vm5 = vcmp.lt.s32.totalorder %v9301_v5, 2 }
 0x201   : > { %v6366_v57 = vmul.u32 %v9316_v48, %v6350_v30  ;;  %vm6368_vm6 = vc.u32 %v9344_v32, %v9335_v38  ;;  %v6635_v17 = vsel %vm6634_vm4, %v6633_v35, 0  ;;  %v6504_v19 = vsel %vm9350_vm2, 0, %v6502_v34 }
 0x202   : > { %v6494_v44 = vor.u32 4788187, %v6493_v45  ;;  %v6370_v49 = vsel %vm6368_vm6, %v6369_v51, %v9336_v54  ;;  %v6630_v55 = vand.u32 8388607, %v6623_v25  ;;  %vm6199_vm7 = vcmp.eq.s32.totalorder %v9301_v5, 0 }
 0x203   : > { %vm6202_vm8 = vcmp.eq.s32.totalorder %v9301_v5, 2  ;;  %v6371_v0 = vadd.s32 %v6370_v49, %v6366_v57  ;;  %v6637_v48 = vand.u32 31, %v6635_v17  ;;  %v6497_v2 = vcvt.s32.f32 %v6490_v53 }
 0x204   : > { %v8344_v61 = vpop.eup %8343  ;;  %v6495_v58 = vand.u32 2147483647, %v6494_v44  ;;  %v9382_v4 = vadd.f32 %v9379_v1, %v4189_v3  ;;  %v6508_v7 = vadd.s32 3, %v6504_v19  ;;  %v6631_v10 = vor.u32 8388608, %v6630_v55 }
 0x205   : > { %v8346_v62 = vpop.eup %8345  ;;  %v6203_v42 = vxor.u32 2147483648, %v8344_v61  ;;  %v6372_v52 = vadd.s32 536870912, %v6371_v0  ;;  %v6638_v63 = vsub.s32 32, %v6637_v48  ;;  %v6640_v59 = vshll.u32 %v8707_v33, %v6637_v48 }
 0x206   : > { %v6200_v8 = vxor.u32 2147483648, %v8346_v62  ;;  %v6498_v24 = vmul.f32 %v6497_v2, %v6495_v58  ;;  %v6646_v14 = vshll.u32 %v8709_v39, %v6637_v48  ;;  %v6636_v26 = vshrl.u32 %v6635_v17, 5 }
 0x207   : > { %v6204_v9 = vsel %vm6202_vm8, %v6203_v42, %v8346_v62  ;;  %v9387_v20 = vshrl.u32 %v6372_v52, 30  ;;  %v6641_v11 = vshrl.u32 %v8708_v37, %v6638_v63  ;;  %v6644_v12 = vshrl.u32 %v8709_v39, %v6638_v63 }
 0x208   : > { %v6201_v6 = vsel %vm6199_vm7, %v8344_v61, %v6200_v8  ;;  %v6499_v16 = vxor.u32 2147483648, %v6498_v24  ;;  %v6647_v54 = vshrl.u32 %v8710_v41, %v6638_v63  ;;  %v6522_v40 = vand.u32 2139095040, %v9382_v4 }
 0x209   : > { %v6205_v15 = vsel %vm6198_vm5, %v6201_v6, %v6204_v9  ;;  %v6374_v28 = vshll.u32 %v9387_v20, 30  ;;  %v6642_v13 = vor.u32 %v6641_v11, %v6640_v59  ;;  %v6643_v5 = vshll.u32 %v8708_v37, %v6637_v48 }
 0x20a   : > { %v6206_v29 = vsel %vm6195_vm3, nan, %v6205_v15  ;;  %v6500_v30 = vsel %vm6417_vm12, %v6499_v16, %v6498_v24  ;;  %v6648_v60 = vor.u32 %v6647_v54, %v6646_v14  ;;  %v6649_v36 = vshll.u32 %v8710_v41, %v6637_v48 }
 0x20b   : > { %7596 = vst [vmem:[%s9190_s23 + $0x128] sm:$0xff] %v6206_v29  ;;  %v6503_v21 = vsel %vm9350_vm2, %v9125_v18, %v6500_v30  ;;  %v9406_v46 = vsub.s32 %v6371_v0, %v6374_v28  ;;  %v6650_v47 = vshrl.u32 %v8711_v43, %v6638_v63  ;;  %v6645_v35 = vor.u32 %v6644_v12, %v6643_v5 }
 0x20c   : > { %8347 = vcosq.f32 %v6503_v21  ;;  %v6652_v34 = vshll.u32 %v8711_v43, %v6637_v48  ;;  %v6653_v51 = vshrl.u32 %v8712_v50, %v6638_v63  ;;  %v9412_v53 = vand.u32 3, %v6508_v7 }
 0x20d   : > { %8349 = vsinq.f32 %v6503_v21  ;;  %v6377_v45 = vsub.s32 0, %v9406_v46  ;;  %v6651_v3 = vor.u32 %v6650_v47, %v6649_v36  ;;  %vm6658_vm9 = vcmp.lt.s32.totalorder %v6636_v26, 4 }
 0x20e   : > { %v6654_v31 = vor.u32 %v6653_v51, %v6652_v34  ;;  %v6671_v57 = vshll.u32 %v6631_v10, 8  ;;  %v6523_v17 = vshrl.u32 %v6522_v40, 23  ;;  %v6639_v19 = vshrl.u32 %v8707_v33, %v6638_v63 }
 0x20f   : > { %v7941_v44 = vmin.u32 %v6377_v45, %v9406_v46  ;;  %vm6655_vm10 = vcmp.lt.s32.totalorder %v6636_v26, 1  ;;  %v6660_v49 = vsel %vm6658_vm9, %v6648_v60, 2102212464  ;;  %v6664_v61 = vsel %vm6658_vm9, %v6651_v3, 920167782 }
 0x210   : > { %v6663_v55 = vsel %vm6655_vm10, %v6642_v13, %v6645_v35  ;;  %v6667_v0 = vsel %vm6655_vm10, %v6645_v35, %v6648_v60  ;;  %v6668_v48 = vsel %vm6658_vm9, %v6654_v31, 1326507024  ;;  %vm6656_vm11 = vcmp.lt.s32.totalorder %v6636_v26, 2 }
 0x211   : > { %v6379_v62 = vclz %v7941_v44  ;;  %vm6657_vm12 = vcmp.lt.s32.totalorder %v6636_v26, 3  ;;  %v6659_v42 = vsel %vm6655_vm10, %v6639_v19, %v6642_v13  ;;  %v7948_v7 = vadd.s32 4294967169, %v6523_v17 }
 0x212   : > { %v6661_v58 = vsel %vm6657_vm12, %v6645_v35, %v6660_v49  ;;  %v6665_v2 = vsel %vm6657_vm12, %v6648_v60, %v6664_v61  ;;  %v6669_v8 = vsel %vm6657_vm12, %v6651_v3, %v6668_v48  ;;  %vm6313_vm13 = vcmp.lt.s32.totalorder %v9240_v27, 0 }
 0x213   : > { %v7942_v52 = vadd.s32 4294967294, %v6379_v62  ;;  %v6666_v9 = vsel %vm6656_vm11, %v6663_v55, %v6665_v2  ;;  %v6670_v24 = vsel %vm6656_vm11, %v6667_v0, %v6669_v8  ;;  %v6662_v11 = vsel %vm6656_vm11, %v6659_v42, %v6661_v58 }
 0x214   : > { %v9417_v10 = vmul.u32.u64.low %v6671_v57, %v6670_v24  ;;  %v9418_v59 = vmul.u32.u64.high %v6671_v57, %v6670_v24, %v9417_v10  ;;  %v9420_v63 = vmul.u32.u64.low %v6671_v57, %v6666_v9  ;;  %v9421_v6 = vmul.u32.u64.high %v6671_v57, %v6666_v9, %v9420_v63 }
 0x215   : > { %vm7943_vm15 = vcmp.lt.s32.totalorder %v7942_v52, 0  ;;  %v6529_v14 = vadd.s32 1, %v7948_v7  ;;  %vm6507_vm14 = vweird.f32 %v9125_v18  ;;  %vm6514_vm0 = vcmp.eq.s32.totalorder %v9412_v53, 2 }
 0x216   : > { %v6382_v15 = vsel %vm7943_vm15, 0, %v7942_v52  ;;  %v6397_v16 = vsub.s32 4, %v9387_v20  ;;  %v6519_v12 = vand.u32 2147483647, %v9382_v4  ;;  %v6367_v54 = vadd.s32 %v9335_v38, %v9344_v32  ;;  %v4123_v52 = vpop.permute.xlu0 %4122 }
 0x217   : > { %v6383_v29 = vsub.s32 32, %v6382_v15  ;;  %v6387_v28 = vsub.s32 4294967266, %v6382_v15  ;;  %vm6530_vm1 = vcmp.gt.s32.totalorder %v6529_v14, 0  ;;  %v6678_v26 = vmul.u32 %v6671_v57, %v6662_v11  ;;  %v4127_v57 = vpop.permute.xlu1 %4126 }
 0x218   : > { %vm6680_vm2 = vc.u32 %v9418_v59, %v9420_v63  ;;  %v6681_v40 = vadd.s32 1, %v9421_v6  ;;  %v6531_v30 = vsel %vm6530_vm1, %v6529_v14, 0  ;;  %v6384_v5 = vshll.u32 %v9406_v46, %v6382_v15 }
 0x219   : > { %v8348_v13 = vpop.eup %8347  ;;  %v6385_v60 = vshrl.u32 %v6367_v54, %v6383_v29  ;;  %v6388_v21 = vadd.s32 127, %v6387_v28  ;;  %v6533_v36 = vand.u32 31, %v6531_v30  ;;  %v6398_v38 = vsel %vm6313_vm13, %v6397_v16, %v9387_v20 }
 0x21a   : > { %v8350_v47 = vpop.eup %8349  ;;  %v6515_v35 = vxor.u32 2147483648, %v8348_v13  ;;  %v6682_v32 = vsel %vm6680_vm2, %v6681_v40, %v9421_v6  ;;  %v6526_v34 = vand.u32 8388607, %v6519_v12  ;;  %vm6511_vm3 = vcmp.eq.s32.totalorder %v9412_v53, 0 }
 0x21b   : > { %v6512_v51 = vxor.u32 2147483648, %v8350_v47  ;;  %v6386_v45 = vor.u32 %v6385_v60, %v6384_v5  ;;  %v6389_v3 = vshll.u32 %v6388_v21, 23  ;;  %v6683_v31 = vadd.s32 %v6682_v32, %v6678_v26 }
 0x21c   : > { %v6516_v46 = vsel %vm6514_vm0, %v6515_v35, %v8350_v47  ;;  %vm9446_vm4 = vcmp.le.f32.partialorder %v6311_v23, 0.7853982  ;;  %v6534_v17 = vsub.s32 32, %v6533_v36  ;;  %vm6510_vm5 = vcmp.lt.s32.totalorder %v9412_v53, 2 }
 0x21d   : > { %v6513_v44 = vsel %vm6511_vm3, %v8348_v13, %v6512_v51  ;;  %v6390_v19 = vor.u32 4788187, %v6389_v3  ;;  %v6684_v49 = vadd.s32 536870912, %v6683_v31  ;;  %v6400_v61 = vsel %vm9446_vm4, 0, %v6398_v38 }
 0x21e   : > { %v6517_v55 = vsel %vm6510_vm5, %v6513_v44, %v6516_v46  ;;  %v6527_v0 = vor.u32 8388608, %v6526_v34  ;;  %v4192_v48 = vmul.f32 %v9362_v22, %v4127_v57  ;;  %v6393_v42 = vcvt.s32.f32 %v6386_v45 }
 0x21f   : > { %v6518_v62 = vsel %vm6507_vm14, nan, %v6517_v55  ;;  %v6391_v23 = vand.u32 2147483647, %v6390_v19  ;;  %v9456_v58 = vshrl.u32 %v6684_v49, 30  ;;  %v6532_v2 = vshrl.u32 %v6531_v30, 5 }
 0x220   : > { %7602 = vst [vmem:[%s9190_s23 + $0x158] sm:$0xff] %v6518_v62  ;;  %v6537_v53 = vshrl.u32 %v8708_v37, %v6534_v17  ;;  %v6540_v8 = vshrl.u32 %v8709_v39, %v6534_v17  ;;  %v6543_v7 = vshrl.u32 %v8710_v41, %v6534_v17  ;;  %v6542_v10 = vshll.u32 %v8709_v39, %v6533_v36 }
 0x221   : > { %v6394_v9 = vmul.f32 %v6393_v42, %v6391_v23  ;;  %v6686_v24 = vshll.u32 %v9456_v58, 30  ;;  %v6546_v18 = vshrl.u32 %v8711_v43, %v6534_v17  ;;  %v6536_v6 = vshll.u32 %v8707_v33, %v6533_v36 }
 0x222   : > { %v6539_v11 = vshll.u32 %v8708_v37, %v6533_v36  ;;  %v6545_v14 = vshll.u32 %v8710_v41, %v6533_v36  ;;  %v6549_v15 = vshrl.u32 %v8712_v50, %v6534_v17  ;;  %v6544_v29 = vor.u32 %v6543_v7, %v6542_v10 }
 0x223   : > { %v6395_v16 = vxor.u32 2147483648, %v6394_v9  ;;  %v9469_v54 = vsub.s32 %v6683_v31, %v6686_v24  ;;  %v4191_v28 = vmul.f32 %v9362_v22, %v4123_v52  ;;  %v6538_v26 = vor.u32 %v6537_v53, %v6536_v6 }
 0x224   : > { %v6541_v40 = vor.u32 %v6540_v8, %v6539_v11  ;;  %v6547_v30 = vor.u32 %v6546_v18, %v6545_v14  ;;  %v6548_v13 = vshll.u32 %v8711_v43, %v6533_v36  ;;  %v6404_v60 = vadd.s32 3, %v6400_v61 }
 0x225   : > { %v6396_v5 = vsel %vm6313_vm13, %v6395_v16, %v6394_v9  ;;  %v6689_v21 = vsub.s32 0, %v9469_v54  ;;  %v9477_v47 = vadd.f32 %v9379_v1, %v4192_v48  ;;  %vm6625_vm6 = vcmp.lt.s32.totalorder %v9308_v56, 0 }
 0x226   : > { %v6399_v35 = vsel %vm9446_vm4, %v9240_v27, %v6396_v5  ;;  %v6550_v38 = vor.u32 %v6549_v15, %v6548_v13  ;;  %vm6554_vm7 = vcmp.lt.s32.totalorder %v6532_v2, 4  ;;  %v6567_v32 = vshll.u32 %v6527_v0, 8 }
 0x227   : > { %8351 = vcosq.f32 %v6399_v35  ;;  %v7953_v36 = vmin.u32 %v6689_v21, %v9469_v54  ;;  %vm6551_vm8 = vcmp.lt.s32.totalorder %v6532_v2, 1  ;;  %v6556_v34 = vsel %vm6554_vm7, %v6544_v29, 2102212464 }
 0x228   : > { %8353 = vsinq.f32 %v6399_v35  ;;  %v6535_v51 = vshrl.u32 %v8707_v33, %v6534_v17  ;;  %v6559_v45 = vsel %vm6551_vm8, %v6538_v26, %v6541_v40  ;;  %v6560_v3 = vsel %vm6554_vm7, %v6547_v30, 920167782 }
 0x229   : > { %vm9489_vm9 = vcmp.le.f32.partialorder %v6623_v25, 0.7853982  ;;  %v6691_v57 = vclz %v7953_v36  ;;  %vm6552_vm10 = vcmp.lt.s32.totalorder %v6532_v2, 2  ;;  %vm6553_vm11 = vcmp.lt.s32.totalorder %v6532_v2, 3  ;;  %v4138_v36 = vpop.permute.xlu1 %4137 }
 0x22a   : > { %v6563_v46 = vsel %vm6551_vm8, %v6541_v40, %v6544_v29  ;;  %v6555_v20 = vsel %vm6551_vm8, %v6535_v51, %v6538_v26  ;;  %v6557_v44 = vsel %vm6553_vm11, %v6541_v40, %v6556_v34  ;;  %v6561_v19 = vsel %vm6553_vm11, %v6544_v29, %v6560_v3 }
 0x22b   : > { %v6564_v49 = vsel %vm6554_vm7, %v6550_v38, 1326507024  ;;  %v7954_v55 = vadd.s32 4294967294, %v6691_v57  ;;  %v6709_v17 = vsub.s32 4, %v9456_v58  ;;  %v6562_v61 = vsel %vm6552_vm10, %v6559_v45, %v6561_v19 }
 0x22c   : > { %v6565_v0 = vsel %vm6553_vm11, %v6547_v30, %v6564_v49  ;;  %v9495_v62 = vmul.u32.u64.low %v6567_v32, %v6562_v61  ;;  %v9496_v25 = vmul.u32.u64.high %v6567_v32, %v6562_v61, %v9495_v62  ;;  %v6834_v23 = vand.u32 2139095040, %v9477_v47 }
 0x22d   : > { %v6566_v48 = vsel %vm6552_vm10, %v6563_v46, %v6565_v0  ;;  %vm7955_vm12 = vcmp.lt.s32.totalorder %v7954_v55, 0  ;;  %v6558_v42 = vsel %vm6552_vm10, %v6555_v20, %v6557_v44  ;;  %v6405_v7 = vand.u32 3, %v6404_v60 }
 0x22e   : > { %v9500_v53 = vmul.u32.u64.low %v6567_v32, %v6566_v48  ;;  %v9501_v8 = vmul.u32.u64.high %v6567_v32, %v6566_v48, %v9500_v53  ;;  %v6694_v2 = vsel %vm7955_vm12, 0, %v7954_v55  ;;  %v6835_v52 = vshrl.u32 %v6834_v23, 23 }
 0x22f   : > { %v9504_v9 = vadd.f32 %v9379_v1, %v4191_v28  ;;  %v6679_v24 = vadd.s32 %v9420_v63, %v9418_v59  ;;  %v6695_v10 = vsub.s32 32, %v6694_v2  ;;  %v6699_v18 = vsub.s32 4294967266, %v6694_v2 }
 0x230   : > { %v6710_v6 = vsel %vm6625_vm6, %v6709_v17, %v9456_v58  ;;  %v6574_v11 = vmul.u32 %v6567_v32, %v6558_v42  ;;  %v6577_v14 = vadd.s32 1, %v9496_v25  ;;  %v6831_v15 = vand.u32 2147483647, %v9477_v47 }
 0x231   : > { %v7960_v16 = vadd.s32 4294967169, %v6835_v52  ;;  %v6696_v29 = vshll.u32 %v9469_v54, %v6694_v2  ;;  %v6697_v26 = vshrl.u32 %v6679_v24, %v6695_v10  ;;  %v6700_v28 = vadd.s32 127, %v6699_v18 }
 0x232   : > { %vm6576_vm13 = vc.u32 %v9501_v8, %v9495_v62  ;;  %v6712_v59 = vsel %vm9489_vm9, 0, %v6710_v6  ;;  %v6730_v58 = vand.u32 2139095040, %v9504_v9  ;;  %vm6403_vm15 = vweird.f32 %v9240_v27 }
 0x233   : > { %v6578_v63 = vsel %vm6576_vm13, %v6577_v14, %v9496_v25  ;;  %v6841_v40 = vadd.s32 1, %v7960_v16  ;;  %v6698_v30 = vor.u32 %v6697_v26, %v6696_v29  ;;  %v6701_v13 = vshll.u32 %v6700_v28, 23 }
 0x234   : > { %v6579_v5 = vadd.s32 %v6578_v63, %v6574_v11  ;;  %v8352_v60 = vpop.eup %8351  ;;  %vm6407_vm14 = vcmp.eq.s32.totalorder %v6405_v7, 0  ;;  %vm6410_vm0 = vcmp.eq.s32.totalorder %v6405_v7, 2  ;;  %v6716_v38 = vadd.s32 3, %v6712_v59 }
 0x235   : > { %vm6842_vm1 = vcmp.gt.s32.totalorder %v6841_v40, 0  ;;  %v8354_v54 = vpop.eup %8353  ;;  %v6411_v21 = vxor.u32 2147483648, %v8352_v60  ;;  %v6702_v35 = vor.u32 4788187, %v6701_v13  ;;  %v6838_v51 = vand.u32 8388607, %v6831_v15 }
 0x236   : > { %v6580_v32 = vadd.s32 536870912, %v6579_v5  ;;  %v6408_v34 = vxor.u32 2147483648, %v8354_v54  ;;  %v6843_v45 = vsel %vm6842_vm1, %v6841_v40, 0  ;;  %v6731_v3 = vshrl.u32 %v6730_v58, 23 }
 0x237   : > { %v6412_v57 = vsel %vm6410_vm0, %v6411_v21, %v8354_v54  ;;  %v6703_v46 = vand.u32 2147483647, %v6702_v35  ;;  %v6705_v20 = vcvt.s32.f32 %v6698_v30  ;;  %vm6406_vm2 = vcmp.lt.s32.totalorder %v6405_v7, 2 }
 0x238   : > { %v6581_v44 = vshrl.u32 %v6580_v32, 30  ;;  %v6409_v19 = vsel %vm6407_vm14, %v8352_v60, %v6408_v34  ;;  %v6845_v49 = vand.u32 31, %v6843_v45  ;;  %v9525_v55 = vmul.f32 %v9362_v22, %v4138_v36 }
 0x239   : > { %v6413_v17 = vsel %vm6406_vm2, %v6409_v19, %v6412_v57  ;;  %v6706_v61 = vmul.f32 %v6705_v20, %v6703_v46  ;;  %v9527_v0 = vand.u32 3, %v6716_v38  ;;  %vm6521_vm3 = vcmp.lt.s32.totalorder %v9382_v4, 0 }
 0x23a   : > { %v6582_v48 = vshll.u32 %v6581_v44, 30  ;;  %v6414_v25 = vsel %vm6403_vm15, nan, %v6413_v17  ;;  %v6839_v23 = vor.u32 8388608, %v6838_v51  ;;  %v6846_v42 = vsub.s32 32, %v6845_v49 }
 0x23b   : > { %v6727_v53 = vand.u32 2147483647, %v9504_v9  ;;  %7600 = vst [vmem:[%s9190_s23 + $0x148] sm:$0xff] %v6414_v25  ;;  %v6707_v7 = vxor.u32 2147483648, %v6706_v61  ;;  %v6844_v52 = vshrl.u32 %v6843_v45, 5  ;;  %v7956_v24 = vadd.s32 4294967169, %v6731_v3 }
 0x23c   : > { %v9534_v2 = vsub.s32 %v6579_v5, %v6582_v48  ;;  %v6848_v10 = vshll.u32 %v8707_v33, %v6845_v49  ;;  %v6849_v18 = vshrl.u32 %v8708_v37, %v6846_v42  ;;  %v6851_v6 = vshll.u32 %v8708_v37, %v6845_v49 }
 0x23d   : > { %v6852_v11 = vshrl.u32 %v8709_v39, %v6846_v42  ;;  %v6708_v27 = vsel %vm6625_vm6, %v6707_v7, %v6706_v61  ;;  %v6854_v16 = vshll.u32 %v8709_v39, %v6845_v49  ;;  %v6855_v29 = vshrl.u32 %v8710_v41, %v6846_v42 }
 0x23e   : > { %v6585_v14 = vsub.s32 0, %v9534_v2  ;;  %v6711_v26 = vsel %vm9489_vm9, %v9308_v56, %v6708_v27  ;;  %v6605_v28 = vsub.s32 4, %v6581_v44  ;;  %v6850_v59 = vor.u32 %v6849_v18, %v6848_v10 }
 0x23f   : > { %v6853_v63 = vor.u32 %v6852_v11, %v6851_v6  ;;  %8355 = vcosq.f32 %v6711_v26  ;;  %v6856_v58 = vor.u32 %v6855_v29, %v6854_v16  ;;  %v6857_v30 = vshll.u32 %v8710_v41, %v6845_v49 }
 0x240   : > { %v7949_v40 = vmin.u32 %v6585_v14, %v9534_v2  ;;  %8357 = vsinq.f32 %v6711_v26  ;;  %v6858_v13 = vshrl.u32 %v8711_v43, %v6846_v42  ;;  %v6860_v5 = vshll.u32 %v8711_v43, %v6845_v49 }
 0x241   : > { %v6861_v60 = vshrl.u32 %v8712_v50, %v6846_v42  ;;  %v6575_v31 = vadd.s32 %v9495_v62, %v9501_v8  ;;  %v9555_v21 = vshll.u32 %v6839_v23, 8  ;;  %v6737_v35 = vadd.s32 1, %v7956_v24 }
 0x242   : > { %v6587_v54 = vclz %v7949_v40  ;;  %vm9559_vm4 = vcmp.le.f32.partialorder %v6519_v12, 0.7853982  ;;  %v6606_v32 = vsel %vm6521_vm3, %v6605_v28, %v6581_v44  ;;  %v6847_v36 = vshrl.u32 %v8707_v33, %v6846_v42 }
 0x243   : > { %v6859_v34 = vor.u32 %v6858_v13, %v6857_v30  ;;  %v6862_v51 = vor.u32 %v6861_v60, %v6860_v5  ;;  %vm6863_vm5 = vcmp.lt.s32.totalorder %v6844_v52, 1  ;;  %vm6865_vm6 = vcmp.lt.s32.totalorder %v6844_v52, 3 }
 0x244   : > { %v7950_v45 = vadd.s32 4294967294, %v6587_v54  ;;  %vm6866_vm7 = vcmp.lt.s32.totalorder %v6844_v52, 4  ;;  %v6871_v8 = vsel %vm6863_vm5, %v6850_v59, %v6853_v63  ;;  %v6875_v57 = vsel %vm6863_vm5, %v6853_v63, %v6856_v58 }
 0x245   : > { %v6868_v62 = vsel %vm6866_vm7, %v6856_v58, 2102212464  ;;  %v6872_v3 = vsel %vm6866_vm7, %v6859_v34, 920167782  ;;  %vm6864_vm9 = vcmp.lt.s32.totalorder %v6844_v52, 2  ;;  %v6867_v19 = vsel %vm6863_vm5, %v6847_v36, %v6850_v59 }
 0x246   : > { %vm7951_vm8 = vcmp.lt.s32.totalorder %v7950_v45, 0  ;;  %v6873_v12 = vsel %vm6865_vm6, %v6856_v58, %v6872_v3  ;;  %v6876_v46 = vsel %vm6866_vm7, %v6862_v51, 1326507024  ;;  %v6869_v48 = vsel %vm6865_vm6, %v6853_v63, %v6868_v62 }
 0x247   : > { %v6590_v20 = vsel %vm7951_vm8, 0, %v7950_v45  ;;  %v6874_v44 = vsel %vm6864_vm9, %v6871_v8, %v6873_v12  ;;  %v6877_v49 = vsel %vm6865_vm6, %v6859_v34, %v6876_v46  ;;  %vm6718_vm10 = vcmp.lt.s32.totalorder %v9527_v0, 2 }
 0x248   : > { %v6591_v17 = vsub.s32 32, %v6590_v20  ;;  %v6595_v61 = vsub.s32 4294967266, %v6590_v20  ;;  %v6878_v25 = vsel %vm6864_vm9, %v6875_v57, %v6877_v49  ;;  %vm6715_vm11 = vweird.f32 %v9308_v56 }
 0x249   : > { %v9573_v23 = vmul.u32.u64.low %v9555_v21, %v6878_v25  ;;  %v9574_v42 = vmul.u32.u64.high %v9555_v21, %v6878_v25, %v9573_v23  ;;  %v9577_v7 = vmul.u32.u64.low %v9555_v21, %v6874_v44  ;;  %v9578_v24 = vmul.u32.u64.high %v9555_v21, %v6874_v44, %v9577_v7 }
 0x24a   : > { %v6592_v10 = vshll.u32 %v9534_v2, %v6590_v20  ;;  %v6593_v18 = vshrl.u32 %v6575_v31, %v6591_v17  ;;  %v6596_v6 = vadd.s32 127, %v6595_v61  ;;  %vm6738_vm12 = vcmp.gt.s32.totalorder %v6737_v35, 0 }
 0x24b   : > { %vm6719_vm13 = vcmp.eq.s32.totalorder %v9527_v0, 0  ;;  %v6870_v11 = vsel %vm6864_vm9, %v6867_v19, %v6869_v48  ;;  %v6734_v27 = vand.u32 8388607, %v6727_v53  ;;  %v6739_v14 = vsel %vm6738_vm12, %v6737_v35, 0 }
 0x24c   : > { %v6594_v16 = vor.u32 %v6593_v18, %v6592_v10  ;;  %v6597_v29 = vshll.u32 %v6596_v6, 23  ;;  %v6608_v26 = vsel %vm9559_vm4, 0, %v6606_v32  ;;  %v6741_v28 = vand.u32 31, %v6739_v14  ;;  %v8356_v59 = vpop.eup %8355 }
 0x24d   : > { %vm6722_vm15 = vcmp.eq.s32.totalorder %v9527_v0, 2  ;;  %vm6888_vm14 = vc.u32 %v9574_v42, %v9577_v7  ;;  %v6889_v2 = vadd.s32 1, %v9578_v24  ;;  %v9595_v52 = vadd.f32 %v9379_v1, %v9525_v55  ;;  %v8358_v63 = vpop.eup %8357 }
 0x24e   : > { %v6723_v40 = vxor.u32 2147483648, %v8356_v59  ;;  %v6598_v58 = vor.u32 4788187, %v6597_v29  ;;  %v6886_v30 = vmul.u32 %v9555_v21, %v6870_v11  ;;  %v6742_v13 = vsub.s32 32, %v6741_v28 }
 0x24f   : > { %v6720_v5 = vxor.u32 2147483648, %v8358_v63  ;;  %v6612_v60 = vadd.s32 3, %v6608_v26  ;;  %v6890_v31 = vsel %vm6888_vm14, %v6889_v2, %v9578_v24  ;;  %v6735_v54 = vor.u32 8388608, %v6734_v27 }
 0x250   : > { %v6724_v35 = vsel %vm6722_vm15, %v6723_v40, %v8358_v63  ;;  %v6599_v32 = vand.u32 2147483647, %v6598_v58  ;;  %v6601_v36 = vcvt.s32.f32 %v6594_v16  ;;  %v6891_v34 = vadd.s32 %v6890_v31, %v6886_v30 }
 0x251   : > { %v6721_v55 = vsel %vm6719_vm13, %v8356_v59, %v6720_v5  ;;  %v6740_v51 = vshrl.u32 %v6739_v14, 5  ;;  %v6745_v45 = vshrl.u32 %v8708_v37, %v6742_v13  ;;  %v6748_v62 = vshrl.u32 %v8709_v39, %v6742_v13 }
 0x252   : > { %v6725_v21 = vsel %vm6718_vm10, %v6721_v55, %v6724_v35  ;;  %v6602_v8 = vmul.f32 %v6601_v36, %v6599_v32  ;;  %v6892_v3 = vadd.s32 536870912, %v6891_v34  ;;  %v6751_v57 = vshrl.u32 %v8710_v41, %v6742_v13 }
 0x253   : > { %v6726_v12 = vsel %vm6715_vm11, nan, %v6725_v21  ;;  %v6744_v46 = vshll.u32 %v8707_v33, %v6741_v28  ;;  %v6747_v20 = vshll.u32 %v8708_v37, %v6741_v28  ;;  %v6750_v19 = vshll.u32 %v8709_v39, %v6741_v28 }
 0x254   : > { %7606 = vst [vmem:[%s9190_s23 + $0x178] sm:$0xff] %v6726_v12  ;;  %v6603_v44 = vxor.u32 2147483648, %v6602_v8  ;;  %v6893_v49 = vshrl.u32 %v6892_v3, 30  ;;  %v6753_v17 = vshll.u32 %v8710_v41, %v6741_v28  ;;  %v6754_v0 = vshrl.u32 %v8711_v43, %v6742_v13 }
 0x255   : > { %v6746_v61 = vor.u32 %v6745_v45, %v6744_v46  ;;  %v6749_v48 = vor.u32 %v6748_v62, %v6747_v20  ;;  %v6756_v25 = vshll.u32 %v8711_v43, %v6741_v28  ;;  %v6757_v56 = vshrl.u32 %v8712_v50, %v6742_v13 }
 0x256   : > { %v6604_v23 = vsel %vm6521_vm3, %v6603_v44, %v6602_v8  ;;  %v6894_v24 = vshll.u32 %v6893_v49, 30  ;;  %v6752_v10 = vor.u32 %v6751_v57, %v6750_v19  ;;  %v6755_v18 = vor.u32 %v6754_v0, %v6753_v17 }
 0x257   : > { %v6607_v6 = vsel %vm9559_vm4, %v9382_v4, %v6604_v23  ;;  %v9621_v11 = vand.u32 3, %v6612_v60  ;;  %v6758_v27 = vor.u32 %v6757_v56, %v6756_v25  ;;  %v6775_v14 = vshll.u32 %v6735_v54, 8 }
 0x258   : > { %8359 = vcosq.f32 %v6607_v6  ;;  %v9623_v16 = vsub.s32 %v6891_v34, %v6894_v24  ;;  %vm6759_vm0 = vcmp.lt.s32.totalorder %v6740_v51, 1  ;;  %v7042_v29 = vand.u32 2139095040, %v9595_v52 }
 0x259   : > { %8361 = vsinq.f32 %v6607_v6  ;;  %v6743_v26 = vshrl.u32 %v8707_v33, %v6742_v13  ;;  %vm6762_vm1 = vcmp.lt.s32.totalorder %v6740_v51, 4  ;;  %v6767_v28 = vsel %vm6759_vm0, %v6746_v61, %v6749_v48 }
 0x25a   : > { %v6897_v59 = vsub.s32 0, %v9623_v16  ;;  %vm6761_vm2 = vcmp.lt.s32.totalorder %v6740_v51, 3  ;;  %v6764_v38 = vsel %vm6762_vm1, %v6752_v10, 2102212464  ;;  %v6768_v2 = vsel %vm6762_vm1, %v6755_v18, 920167782 }
 0x25b   : > { %vm6760_vm3 = vcmp.lt.s32.totalorder %v6740_v51, 2  ;;  %v6769_v63 = vsel %vm6761_vm2, %v6752_v10, %v6768_v2  ;;  %v6771_v40 = vsel %vm6759_vm0, %v6749_v48, %v6752_v10  ;;  %v6772_v58 = vsel %vm6762_vm1, %v6758_v27, 1326507024 }
 0x25c   : > { %v7961_v30 = vmin.u32 %v6897_v59, %v9623_v16  ;;  %v6763_v5 = vsel %vm6759_vm0, %v6743_v26, %v6746_v61  ;;  %v6770_v60 = vsel %vm6760_vm3, %v6767_v28, %v6769_v63  ;;  %v6773_v31 = vsel %vm6761_vm2, %v6755_v18, %v6772_v58  ;;  %v4134_v18 = vpop.permute.xlu0 %4133 }
 0x25d   : > { %v6765_v54 = vsel %vm6761_vm2, %v6749_v48, %v6764_v38  ;;  %v6774_v13 = vsel %vm6760_vm3, %v6771_v40, %v6773_v31  ;;  %v9631_v35 = vmul.u32.u64.low %v6775_v14, %v6770_v60  ;;  %v9632_v32 = vmul.u32.u64.high %v6775_v14, %v6770_v60, %v9631_v35  ;;  %v4149_v40 = vpop.permute.xlu1 %4148 }
 0x25e   : > { %v6899_v36 = vclz %v7961_v30  ;;  %v9635_v34 = vmul.u32.u64.low %v6775_v14, %v6774_v13  ;;  %v9636_v55 = vmul.u32.u64.high %v6775_v14, %v6774_v13, %v9635_v34  ;;  %v7043_v45 = vshrl.u32 %v7042_v29, 23 }
 0x25f   : > { %vm9640_vm4 = vcmp.le.f32.partialorder %v6831_v15, 0.7853982  ;;  %v6917_v8 = vsub.s32 4, %v6893_v49  ;;  %v6766_v3 = vsel %vm6760_vm3, %v6763_v5, %v6765_v54  ;;  %vm6614_vm5 = vcmp.lt.s32.totalorder %v9621_v11, 2 }
 0x260   : > { %v7962_v21 = vadd.s32 4294967294, %v6899_v36  ;;  %vm6833_vm6 = vcmp.lt.s32.totalorder %v9477_v47, 0  ;;  %v6785_v57 = vadd.s32 1, %v9632_v32  ;;  %v7968_v12 = vadd.s32 4294967169, %v7043_v45 }
 0x261   : > { %vm6615_vm7 = vcmp.eq.s32.totalorder %v9621_v11, 0  ;;  %v6887_v46 = vadd.s32 %v9577_v7, %v9574_v42  ;;  %v7039_v15 = vand.u32 2147483647, %v9595_v52  ;;  %v6782_v19 = vmul.u32 %v6775_v14, %v6766_v3 }
 0x262   : > { %vm7963_vm8 = vcmp.lt.s32.totalorder %v7962_v21, 0  ;;  %vm6784_vm9 = vc.u32 %v9636_v55, %v9631_v35  ;;  %v7049_v51 = vadd.s32 1, %v7968_v12  ;;  %v6918_v0 = vsel %vm6833_vm6, %v6917_v8, %v6893_v49 }
 0x263   : > { %v6902_v20 = vsel %vm7963_vm8, 0, %v7962_v21  ;;  %v6786_v61 = vsel %vm6784_vm9, %v6785_v57, %v9632_v32  ;;  %vm6618_vm10 = vcmp.eq.s32.totalorder %v9621_v11, 2  ;;  %v6920_v27 = vsel %vm9640_vm4, 0, %v6918_v0 }
 0x264   : > { %v6903_v44 = vsub.s32 32, %v6902_v20  ;;  %v6907_v17 = vsub.s32 4294967266, %v6902_v20  ;;  %v6904_v42 = vshll.u32 %v9623_v16, %v6902_v20  ;;  %v6787_v7 = vadd.s32 %v6786_v61, %v6782_v19 }
 0x265   : > { %v8360_v48 = vpop.eup %8359  ;;  %vm7050_vm11 = vcmp.gt.s32.totalorder %v7049_v51, 0  ;;  %v7046_v16 = vand.u32 8388607, %v7039_v15  ;;  %v4193_v63 = vmul.f32 %v9362_v22, %v4134_v18  ;;  %vm6611_vm12 = vweird.f32 %v9382_v4 }
 0x266   : > { %v8362_v25 = vpop.eup %8361  ;;  %v6619_v56 = vxor.u32 2147483648, %v8360_v48  ;;  %v6905_v23 = vshrl.u32 %v6887_v46, %v6903_v44  ;;  %v6908_v24 = vadd.s32 127, %v6907_v17  ;;  %v7051_v10 = vsel %vm7050_vm11, %v7049_v51, 0 }
 0x267   : > { %v6616_v6 = vxor.u32 2147483648, %v8362_v25  ;;  %v6788_v49 = vadd.s32 536870912, %v6787_v7  ;;  %v7053_v14 = vand.u32 31, %v7051_v10  ;;  %v9671_v60 = vadd.s32 3, %v6920_v27 }
 0x268   : > { %v6620_v29 = vsel %vm6618_vm10, %v6619_v56, %v8362_v25  ;;  %v6906_v26 = vor.u32 %v6905_v23, %v6904_v42  ;;  %v6909_v28 = vshll.u32 %v6908_v24, 23  ;;  %v7047_v32 = vor.u32 8388608, %v7046_v16 }
 0x269   : > { %v6617_v59 = vsel %vm6615_vm7, %v8360_v48, %v6616_v6  ;;  %v9665_v38 = vshrl.u32 %v6788_v49, 30  ;;  %v7054_v2 = vsub.s32 32, %v7053_v14  ;;  %v9676_v36 = vmul.f32 %v9362_v22, %v4149_v40 }
 0x26a   : > { %v6621_v58 = vsel %vm6614_vm5, %v6617_v59, %v6620_v29  ;;  %v6910_v30 = vor.u32 4788187, %v6909_v28  ;;  %v6913_v13 = vcvt.s32.f32 %v6906_v26  ;;  %v9683_v45 = vadd.f32 %v9379_v1, %v4193_v63 }
 0x26b   : > { %v6622_v5 = vsel %vm6611_vm12, nan, %v6621_v58  ;;  %v6790_v31 = vshll.u32 %v9665_v38, 30  ;;  %v7057_v4 = vshrl.u32 %v8708_v37, %v7054_v2  ;;  %v7060_v11 = vshrl.u32 %v8709_v39, %v7054_v2 }
 0x26c   : > { %7604 = vst [vmem:[%s9190_s23 + $0x168] sm:$0xff] %v6622_v5  ;;  %v6911_v54 = vand.u32 2147483647, %v6910_v30  ;;  %v7052_v8 = vshrl.u32 %v7051_v10, 5  ;;  %v7056_v3 = vshll.u32 %v8707_v33, %v7053_v14  ;;  %v7063_v57 = vshrl.u32 %v8710_v41, %v7054_v2 }
 0x26d   : > { %v9678_v34 = vsub.s32 %v6787_v7, %v6790_v31  ;;  %v7059_v22 = vshll.u32 %v8708_v37, %v7053_v14  ;;  %v7062_v46 = vshll.u32 %v8709_v39, %v7053_v14  ;;  %v7066_v20 = vshrl.u32 %v8711_v43, %v7054_v2 }
 0x26e   : > { %v6914_v21 = vmul.f32 %v6913_v13, %v6911_v54  ;;  %v7065_v51 = vshll.u32 %v8710_v41, %v7053_v14  ;;  %v7068_v44 = vshll.u32 %v8711_v43, %v7053_v14  ;;  %v7069_v17 = vshrl.u32 %v8712_v50, %v7054_v2 }
 0x26f   : > { %v6793_v12 = vsub.s32 0, %v9678_v34  ;;  %v6783_v0 = vadd.s32 %v9631_v35, %v9636_v55  ;;  %v7058_v48 = vor.u32 %v7057_v4, %v7056_v3  ;;  %v7061_v42 = vor.u32 %v7060_v11, %v7059_v22 }
 0x270   : > { %v6915_v19 = vxor.u32 2147483648, %v6914_v21  ;;  %v7064_v25 = vor.u32 %v7063_v57, %v7062_v46  ;;  %v7067_v56 = vor.u32 %v7066_v20, %v7065_v51  ;;  %v7070_v23 = vor.u32 %v7069_v17, %v7068_v44 }
 0x271   : > { %v7957_v61 = vmin.u32 %v6793_v12, %v9678_v34  ;;  %vm6729_vm13 = vcmp.lt.s32.totalorder %v9504_v9, 0  ;;  %v6813_v18 = vsub.s32 4, %v9665_v38  ;;  %v7087_v35 = vshll.u32 %v7047_v32, 8 }
 0x272   : > { %v6916_v7 = vsel %vm6833_vm6, %v6915_v19, %v6914_v21  ;;  %v7055_v55 = vshrl.u32 %v8707_v33, %v7054_v2  ;;  %vm7071_vm15 = vcmp.lt.s32.totalorder %v7052_v8, 1  ;;  %vm7073_vm14 = vcmp.lt.s32.totalorder %v7052_v8, 3 }
 0x273   : > { %v6919_v24 = vsel %vm9640_vm4, %v9477_v47, %v6916_v7  ;;  %v6795_v10 = vclz %v7957_v61  ;;  %vm7074_vm0 = vcmp.lt.s32.totalorder %v7052_v8, 4  ;;  %v7079_v27 = vsel %vm7071_vm15, %v7058_v48, %v7061_v42 }
 0x274   : > { %8363 = vcosq.f32 %v6919_v24  ;;  %v7076_v49 = vsel %vm7074_vm0, %v7064_v25, 2102212464  ;;  %v7080_v14 = vsel %vm7074_vm0, %v7067_v56, 920167782  ;;  %v7083_v29 = vsel %vm7071_vm15, %v7061_v42, %v7064_v25 }
 0x275   : > { %8365 = vsinq.f32 %v6919_v24  ;;  %v7958_v6 = vadd.s32 4294967294, %v6795_v10  ;;  %v7084_v62 = vsel %vm7074_vm0, %v7070_v23, 1326507024  ;;  %vm7072_vm2 = vcmp.lt.s32.totalorder %v7052_v8, 2 }
 0x276   : > { %v7081_v26 = vsel %vm7073_vm14, %v7064_v25, %v7080_v14  ;;  %v7085_v28 = vsel %vm7073_vm14, %v7067_v56, %v7084_v62  ;;  %v7075_v59 = vsel %vm7071_vm15, %v7055_v55, %v7058_v48  ;;  %v7077_v30 = vsel %vm7073_vm14, %v7061_v42, %v7076_v49 }
 0x277   : > { %vm7959_vm1 = vcmp.lt.s32.totalorder %v7958_v6, 0  ;;  %v7082_v2 = vsel %vm7072_vm2, %v7079_v27, %v7081_v26  ;;  %v7086_v63 = vsel %vm7072_vm2, %v7083_v29, %v7085_v28  ;;  %v6938_v5 = vand.u32 2139095040, %v9683_v45 }
 0x278   : > { %v6798_v16 = vsel %vm7959_vm1, 0, %v7958_v6  ;;  %v9711_v31 = vmul.u32.u64.low %v7087_v35, %v7086_v63  ;;  %v9712_v54 = vmul.u32.u64.high %v7087_v35, %v7086_v63, %v9711_v31  ;;  %v6814_v57 = vsel %vm6729_vm13, %v6813_v18, %v9665_v38 }
 0x279   : > { %v6799_v40 = vsub.s32 32, %v6798_v16  ;;  %v6803_v58 = vsub.s32 4294967266, %v6798_v16  ;;  %v9714_v13 = vmul.u32.u64.low %v7087_v35, %v7082_v2  ;;  %v9715_v32 = vmul.u32.u64.high %v7087_v35, %v7082_v2, %v9714_v13 }
 0x27a   : > { %v6800_v4 = vshll.u32 %v9678_v34, %v6798_v16  ;;  %v6939_v3 = vshrl.u32 %v6938_v5, 23  ;;  %v7078_v12 = vsel %vm7072_vm2, %v7075_v59, %v7077_v30  ;;  %v9725_v22 = vadd.f32 %v9379_v1, %v9676_v36 }
 0x27b   : > { %v6801_v11 = vshrl.u32 %v6783_v0, %v6799_v40  ;;  %v6804_v21 = vadd.s32 127, %v6803_v58  ;;  %vm9729_vm3 = vcmp.le.f32.partialorder %v6727_v53, 0.7853982  ;;  %v6925_v51 = vand.u32 3, %v9671_v60 }
 0x27c   : > { %v7964_v19 = vadd.s32 4294967169, %v6939_v3  ;;  %vm7096_vm4 = vc.u32 %v9712_v54, %v9714_v13  ;;  %v7097_v38 = vadd.s32 1, %v9715_v32  ;;  %v6935_v8 = vand.u32 2147483647, %v9683_v45 }
 0x27d   : > { %v6802_v34 = vor.u32 %v6801_v11, %v6800_v4  ;;  %v6805_v20 = vshll.u32 %v6804_v21, 23  ;;  %v6816_v36 = vsel %vm9729_vm3, 0, %v6814_v57  ;;  %v7094_v53 = vmul.u32 %v7087_v35, %v7078_v12 }
 0x27e   : > { %v6945_v44 = vadd.s32 1, %v7964_v19  ;;  %v7098_v17 = vsel %vm7096_vm4, %v7097_v38, %v9715_v32  ;;  %v7250_v0 = vand.u32 2139095040, %v9725_v22  ;;  %vm6930_vm6 = vcmp.eq.s32.totalorder %v6925_v51, 2 }
 0x27f   : > { %v6806_v1 = vor.u32 4788187, %v6805_v20  ;;  %v6809_v60 = vcvt.s32.f32 %v6802_v34  ;;  %v7099_v42 = vadd.s32 %v7098_v17, %v7094_v53  ;;  %v6820_v56 = vadd.s32 3, %v6816_v36 }
 0x280   : > { %vm6946_vm5 = vcmp.gt.s32.totalorder %v6945_v44, 0  ;;  %v6942_v35 = vand.u32 8388607, %v6935_v8  ;;  %vm6927_vm7 = vcmp.eq.s32.totalorder %v6925_v51, 0  ;;  %v7251_v27 = vshrl.u32 %v7250_v0, 23 }
 0x281   : > { %v8364_v61 = vpop.eup %8363  ;;  %v6807_v48 = vand.u32 2147483647, %v6806_v1  ;;  %v6947_v23 = vsel %vm6946_vm5, %v6945_v44, 0  ;;  %v7100_v18 = vadd.s32 536870912, %v7099_v42  ;;  %vm6926_vm8 = vcmp.lt.s32.totalorder %v6925_v51, 2 }
 0x282   : > { %v8366_v7 = vpop.eup %8365  ;;  %v6931_v25 = vxor.u32 2147483648, %v8364_v61  ;;  %v6949_v6 = vand.u32 31, %v6947_v23  ;;  %vm6923_vm9 = vweird.f32 %v9477_v47  ;;  %v9747_v26 = vand.u32 3, %v6820_v56 }
 0x283   : > { %v6928_v24 = vxor.u32 2147483648, %v8366_v7  ;;  %v6810_v10 = vmul.f32 %v6809_v60, %v6807_v48  ;;  %v9744_v29 = vshrl.u32 %v7100_v18, 30  ;;  %v6943_v63 = vor.u32 8388608, %v6942_v35 }
 0x284   : > { %v6932_v55 = vsel %vm6930_vm6, %v6931_v25, %v8366_v7  ;;  %v6950_v28 = vsub.s32 32, %v6949_v6  ;;  %v7976_v30 = vadd.s32 4294967169, %v7251_v27  ;;  %v6952_v31 = vshll.u32 %v8707_v33, %v6949_v6 }
 0x285   : > { %v6929_v49 = vsel %vm6927_vm7, %v8364_v61, %v6928_v24  ;;  %v6811_v14 = vxor.u32 2147483648, %v6810_v10  ;;  %v7102_v2 = vshll.u32 %v9744_v29, 30  ;;  %v6955_v32 = vshll.u32 %v8708_v37, %v6949_v6 }
 0x286   : > { %v6933_v62 = vsel %vm6926_vm8, %v6929_v49, %v6932_v55  ;;  %v6953_v58 = vshrl.u32 %v8708_v37, %v6950_v28  ;;  %v6956_v47 = vshrl.u32 %v8709_v39, %v6950_v28  ;;  %v6948_v4 = vshrl.u32 %v6947_v23, 5 }
 0x287   : > { %v6934_v16 = vsel %vm6923_vm9, nan, %v6933_v62  ;;  %v6812_v59 = vsel %vm6729_vm13, %v6811_v14, %v6810_v10  ;;  %v9758_v5 = vsub.s32 %v7099_v42, %v7102_v2  ;;  %v6958_v11 = vshll.u32 %v8709_v39, %v6949_v6 }
 0x288   : > { %7610 = vst [vmem:[%s9190_s23 + $0x198] sm:$0xff] %v6934_v16  ;;  %v6815_v40 = vsel %vm9729_vm3, %v9504_v9, %v6812_v59  ;;  %v7247_v21 = vand.u32 2147483647, %v9725_v22  ;;  %v6954_v57 = vor.u32 %v6953_v58, %v6952_v31  ;;  %v6957_v12 = vor.u32 %v6956_v47, %v6955_v32 }
 0x289   : > { %8367 = vcosq.f32 %v6815_v40  ;;  %v7105_v3 = vsub.s32 0, %v9758_v5  ;;  %v6959_v46 = vshrl.u32 %v8710_v41, %v6950_v28  ;;  %v6961_v34 = vshll.u32 %v8710_v41, %v6949_v6 }
 0x28a   : > { %8369 = vsinq.f32 %v6815_v40  ;;  %v6962_v20 = vshrl.u32 %v8711_v43, %v6950_v28  ;;  %v6964_v19 = vshll.u32 %v8711_v43, %v6949_v6  ;;  %v6965_v51 = vshrl.u32 %v8712_v50, %v6950_v28 }
 0x28b   : > { %v7969_v38 = vmin.u32 %v7105_v3, %v9758_v5  ;;  %v6960_v1 = vor.u32 %v6959_v46, %v6958_v11  ;;  %v6983_v36 = vshll.u32 %v6943_v63, 8  ;;  %v7257_v53 = vadd.s32 1, %v7976_v30 }
 0x28c   : > { %v6951_v44 = vshrl.u32 %v8707_v33, %v6950_v28  ;;  %v6963_v17 = vor.u32 %v6962_v20, %v6961_v34  ;;  %v6966_v0 = vor.u32 %v6965_v51, %v6964_v19  ;;  %vm6967_vm10 = vcmp.lt.s32.totalorder %v6948_v4, 1 }
 0x28d   : > { %v7107_v61 = vclz %v7969_v38  ;;  %vm6968_vm11 = vcmp.lt.s32.totalorder %v6948_v4, 2  ;;  %vm6969_vm12 = vcmp.lt.s32.totalorder %v6948_v4, 3  ;;  %vm6970_vm13 = vcmp.lt.s32.totalorder %v6948_v4, 4 }
 0x28e   : > { %vm6826_vm15 = vcmp.eq.s32.totalorder %v9747_v26, 2  ;;  %v6972_v48 = vsel %vm6970_vm13, %v6960_v1, 2102212464  ;;  %v6975_v60 = vsel %vm6967_vm10, %v6954_v57, %v6957_v12  ;;  %v6976_v42 = vsel %vm6970_vm13, %v6963_v17, 920167782 }
 0x28f   : > { %v6979_v7 = vsel %vm6967_vm10, %v6957_v12, %v6960_v1  ;;  %vm6823_vm14 = vcmp.eq.s32.totalorder %v9747_v26, 0  ;;  %v7970_v25 = vadd.s32 4294967294, %v7107_v61  ;;  %v6971_v56 = vsel %vm6967_vm10, %v6951_v44, %v6954_v57  ;;  %v4145_v57 = vpop.permute.xlu0 %4144 }
 0x290   : > { %v6977_v23 = vsel %vm6969_vm12, %v6960_v1, %v6976_v42  ;;  %v6980_v24 = vsel %vm6970_vm13, %v6966_v0, 1326507024  ;;  %vm7041_vm0 = vcmp.lt.s32.totalorder %v9595_v52, 0  ;;  %v6973_v10 = vsel %vm6969_vm12, %v6957_v12, %v6972_v48  ;;  %v9804_v1 = vld [vmem:[%s13942_s2] ss:$0 sm:$0xff] }
 0x291   : > { %v6978_v18 = vsel %vm6968_vm11, %v6975_v60, %v6977_v23  ;;  %v6981_v35 = vsel %vm6969_vm12, %v6963_v17, %v6980_v24  ;;  %vm7258_vm1 = vcmp.gt.s32.totalorder %v7257_v53, 0  ;;  %vm6819_vm2 = vweird.f32 %v9504_v9 }
 0x292   : > { %vm7971_vm3 = vcmp.lt.s32.totalorder %v7970_v25, 0  ;;  %v6982_v55 = vsel %vm6968_vm11, %v6979_v7, %v6981_v35  ;;  %v9778_v6 = vmul.u32.u64.low %v6983_v36, %v6978_v18  ;;  %v9779_v27 = vmul.u32.u64.high %v6983_v36, %v6978_v18, %v9778_v6 }
 0x293   : > { %v7095_v49 = vadd.s32 %v9714_v13, %v9712_v54  ;;  %v7110_v14 = vsel %vm7971_vm3, 0, %v7970_v25  ;;  %v9784_v62 = vmul.u32.u64.low %v6983_v36, %v6982_v55  ;;  %v9785_v28 = vmul.u32.u64.high %v6983_v36, %v6982_v55, %v9784_v62 }
 0x294   : > { %v7111_v16 = vsub.s32 32, %v7110_v14  ;;  %v7115_v59 = vsub.s32 4294967266, %v7110_v14  ;;  %v6974_v2 = vsel %vm6968_vm11, %v6971_v56, %v6973_v10  ;;  %v7259_v63 = vsel %vm7258_vm1, %v7257_v53, 0 }
 0x295   : > { %v7112_v58 = vshll.u32 %v9758_v5, %v7110_v14  ;;  %v7125_v47 = vsub.s32 4, %v9744_v29  ;;  %v7254_v30 = vand.u32 8388607, %v7247_v21  ;;  %v7261_v31 = vand.u32 31, %v7259_v63 }
 0x296   : > { %v8368_v40 = vpop.eup %8367  ;;  %v7113_v13 = vshrl.u32 %v7095_v49, %v7111_v16  ;;  %v7116_v11 = vadd.s32 127, %v7115_v59  ;;  %v6993_v3 = vadd.s32 1, %v9779_v27  ;;  %v6990_v4 = vmul.u32 %v6983_v36, %v6974_v2 }
 0x297   : > { %v8370_v32 = vpop.eup %8369  ;;  %v6827_v54 = vxor.u32 2147483648, %v8368_v40  ;;  %vm6992_vm4 = vc.u32 %v9785_v28, %v9778_v6  ;;  %v7262_v46 = vsub.s32 32, %v7261_v31  ;;  %vm6822_vm5 = vcmp.lt.s32.totalorder %v9747_v26, 2 }
 0x298   : > { %v6824_v12 = vxor.u32 2147483648, %v8370_v32  ;;  %v7114_v34 = vor.u32 %v7113_v13, %v7112_v58  ;;  %v7117_v20 = vshll.u32 %v7116_v11, 23  ;;  %v6994_v19 = vsel %vm6992_vm4, %v6993_v3, %v9779_v27 }
 0x299   : > { %v6828_v5 = vsel %vm6826_vm15, %v6827_v54, %v8370_v32  ;;  %v6995_v38 = vadd.s32 %v6994_v19, %v6990_v4  ;;  %v4195_v36 = vmul.f32 %v9804_v1, %v4145_v57  ;;  %v7126_v17 = vsel %vm7041_vm0, %v7125_v47, %v9744_v29 }
 0x29a   : > { %v6825_v51 = vsel %vm6823_vm14, %v8368_v40, %v6824_v12  ;;  %v7118_v44 = vor.u32 4788187, %v7117_v20  ;;  %v7255_v0 = vor.u32 8388608, %v7254_v30  ;;  %v7265_v48 = vshrl.u32 %v8708_v37, %v7262_v46 }
 0x29b   : > { %v6829_v53 = vsel %vm6822_vm5, %v6825_v51, %v6828_v5  ;;  %v6996_v26 = vadd.s32 536870912, %v6995_v38  ;;  %v7268_v60 = vshrl.u32 %v8709_v39, %v7262_v46  ;;  %v7121_v7 = vcvt.s32.f32 %v7114_v34 }
 0x29c   : > { %v6830_v61 = vsel %vm6819_vm2, nan, %v6829_v53  ;;  %v7119_v42 = vand.u32 2147483647, %v7118_v44  ;;  %v7260_v25 = vshrl.u32 %v7259_v63, 5  ;;  %v7271_v56 = vshrl.u32 %v8710_v41, %v7262_v46 }
 0x29d   : > { %7608 = vst [vmem:[%s9190_s23 + $0x188] sm:$0xff] %v6830_v61  ;;  %v6997_v23 = vshrl.u32 %v6996_v26, 30  ;;  %v7264_v24 = vshll.u32 %v8707_v33, %v7261_v31  ;;  %v7267_v29 = vshll.u32 %v8708_v37, %v7261_v31  ;;  %v7274_v10 = vshrl.u32 %v8711_v43, %v7262_v46 }
 0x29e   : > { %v7122_v9 = vmul.f32 %v7121_v7, %v7119_v42  ;;  %v7270_v18 = vshll.u32 %v8709_v39, %v7261_v31  ;;  %v7273_v35 = vshll.u32 %v8710_v41, %v7261_v31  ;;  %v7277_v55 = vshrl.u32 %v8712_v50, %v7262_v46 }
 0x29f   : > { %vm9824_vm6 = vcmp.le.f32.partialorder %v7039_v15, 0.7853982  ;;  %v6998_v49 = vshll.u32 %v6997_v23, 30  ;;  %v7266_v14 = vor.u32 %v7265_v48, %v7264_v24  ;;  %v7269_v62 = vor.u32 %v7268_v60, %v7267_v29  ;;  %v9836_v15 = vld [vmem:[%s13943_s3] ss:$0 sm:$0xff] }
 0x2a0   : > { %v7123_v16 = vxor.u32 2147483648, %v7122_v9  ;;  %v7272_v59 = vor.u32 %v7271_v56, %v7270_v18  ;;  %v7275_v2 = vor.u32 %v7274_v10, %v7273_v35  ;;  %v7276_v63 = vshll.u32 %v8711_v43, %v7261_v31 }
 0x2a1   : > { %v7128_v40 = vsel %vm9824_vm6, 0, %v7126_v17  ;;  %v9831_v58 = vsub.s32 %v6995_v38, %v6998_v49  ;;  %v7295_v47 = vshll.u32 %v7255_v0, 8  ;;  %v9839_v30 = vadd.f32 %v9836_v15, %v4195_v36 }
 0x2a2   : > { %v7124_v32 = vsel %vm7041_vm0, %v7123_v16, %v7122_v9  ;;  %v7263_v54 = vshrl.u32 %v8707_v33, %v7262_v46  ;;  %v7278_v31 = vor.u32 %v7277_v55, %v7276_v63  ;;  %vm7279_vm7 = vcmp.lt.s32.totalorder %v7260_v25, 1 }
 0x2a3   : > { %v7127_v13 = vsel %vm9824_vm6, %v9595_v52, %v7124_v32  ;;  %v7001_v11 = vsub.s32 0, %v9831_v58  ;;  %vm7282_vm8 = vcmp.lt.s32.totalorder %v7260_v25, 4  ;;  %v7287_v3 = vsel %vm7279_vm7, %v7266_v14, %v7269_v62 }
 0x2a4   : > { %8371 = vcosq.f32 %v7127_v13  ;;  %vm7281_vm9 = vcmp.lt.s32.totalorder %v7260_v25, 3  ;;  %v7284_v57 = vsel %vm7282_vm8, %v7272_v59, 2102212464  ;;  %v7288_v12 = vsel %vm7282_vm8, %v7275_v2, 920167782 }
 0x2a5   : > { %8373 = vsinq.f32 %v7127_v13  ;;  %v7965_v4 = vmin.u32 %v7001_v11, %v9831_v58  ;;  %vm7280_vm10 = vcmp.lt.s32.totalorder %v7260_v25, 2  ;;  %v7289_v46 = vsel %vm7281_vm9, %v7272_v59, %v7288_v12 }
 0x2a6   : > { %v7021_v5 = vsub.s32 4, %v6997_v23  ;;  %v7290_v34 = vsel %vm7280_vm10, %v7287_v3, %v7289_v46  ;;  %v7291_v20 = vsel %vm7279_vm7, %v7269_v62, %v7272_v59  ;;  %v7292_v19 = vsel %vm7282_vm8, %v7278_v31, 1326507024 }
 0x2a7   : > { %v7132_v51 = vadd.s32 3, %v7128_v40  ;;  %v7003_v38 = vclz %v7965_v4  ;;  %v7283_v36 = vsel %vm7279_vm7, %v7263_v54, %v7266_v14  ;;  %v7285_v53 = vsel %vm7281_vm9, %v7269_v62, %v7284_v57 }
 0x2a8   : > { %v7293_v44 = vsel %vm7281_vm9, %v7275_v2, %v7292_v19  ;;  %v9853_v17 = vmul.u32.u64.low %v7295_v47, %v7290_v34  ;;  %v9854_v0 = vmul.u32.u64.high %v7295_v47, %v7290_v34, %v9853_v17  ;;  %v7146_v61 = vand.u32 2139095040, %v9839_v30 }
 0x2a9   : > { %vm6937_vm11 = vcmp.lt.s32.totalorder %v9683_v45, 0  ;;  %v7966_v26 = vadd.s32 4294967294, %v7003_v38  ;;  %v7294_v48 = vsel %vm7280_vm10, %v7291_v20, %v7293_v44  ;;  %v7143_v60 = vand.u32 2147483647, %v9839_v30 }
 0x2aa   : > { %v7022_v42 = vsel %vm6937_vm11, %v7021_v5, %v6997_v23  ;;  %v9863_v7 = vmul.u32.u64.low %v7295_v47, %v7294_v48  ;;  %v9864_v56 = vmul.u32.u64.high %v7295_v47, %v7294_v48, %v9863_v7  ;;  %v7147_v24 = vshrl.u32 %v7146_v61, 23 }
 0x2ab   : > { %vm9868_vm12 = vcmp.le.f32.partialorder %v6935_v8, 0.7853982  ;;  %vm7967_vm13 = vcmp.lt.s32.totalorder %v7966_v26, 0  ;;  %v7286_v10 = vsel %vm7280_vm10, %v7283_v36, %v7285_v53  ;;  %v7133_v9 = vand.u32 3, %v7132_v51  ;;  %v3995_v8 = vpop.permute.xlu1 %3994 }
 0x2ac   : > { %v7006_v18 = vsel %vm7967_vm13, 0, %v7966_v26  ;;  %v7305_v35 = vadd.s32 1, %v9854_v0  ;;  %v7972_v55 = vadd.s32 4294967169, %v7147_v24  ;;  %v6991_v23 = vadd.s32 %v9778_v6, %v9785_v28 }
 0x2ad   : > { %v7007_v27 = vsub.s32 32, %v7006_v18  ;;  %v7011_v49 = vsub.s32 4294967266, %v7006_v18  ;;  %v7024_v14 = vsel %vm9868_vm12, 0, %v7022_v42  ;;  %v7302_v62 = vmul.u32 %v7295_v47, %v7286_v10 }
 0x2ae   : > { %vm7304_vm15 = vc.u32 %v9864_v56, %v9853_v17  ;;  %v7150_v25 = vand.u32 8388607, %v7143_v60  ;;  %v7153_v16 = vadd.s32 1, %v7972_v55  ;;  %v7008_v59 = vshll.u32 %v9831_v58, %v7006_v18 }
 0x2af   : > { %v7009_v2 = vshrl.u32 %v6991_v23, %v7007_v27  ;;  %v7012_v63 = vadd.s32 127, %v7011_v49  ;;  %v7306_v6 = vsel %vm7304_vm15, %v7305_v35, %v9854_v0  ;;  %vm7131_vm14 = vweird.f32 %v9595_v52 }
 0x2b0   : > { %v7307_v28 = vadd.s32 %v7306_v6, %v7302_v62  ;;  %vm7154_vm0 = vcmp.gt.s32.totalorder %v7153_v16, 0  ;;  %v4168_v40 = vmul.f32 %v9804_v1, %v3995_v8  ;;  %v7028_v31 = vadd.s32 3, %v7024_v14 }
 0x2b1   : > { %v8372_v47 = vpop.eup %8371  ;;  %v7010_v32 = vor.u32 %v7009_v2, %v7008_v59  ;;  %v7013_v54 = vshll.u32 %v7012_v63, 23  ;;  %v7155_v13 = vsel %vm7154_vm0, %v7153_v16, 0  ;;  %v7151_v12 = vor.u32 8388608, %v7150_v25 }
 0x2b2   : > { %v8374_v11 = vpop.eup %8373  ;;  %v7139_v3 = vxor.u32 2147483648, %v8372_v47  ;;  %v7308_v57 = vadd.s32 536870912, %v7307_v28  ;;  %v7157_v58 = vand.u32 31, %v7155_v13  ;;  %vm7135_vm1 = vcmp.eq.s32.totalorder %v7133_v9, 0 }
 0x2b3   : > { %v7136_v4 = vxor.u32 2147483648, %v8374_v11  ;;  %vm7138_vm2 = vcmp.eq.s32.totalorder %v7133_v9, 2  ;;  %v7014_v46 = vor.u32 4788187, %v7013_v54  ;;  %v9889_v19 = vadd.f32 %v9836_v15, %v4168_v40 }
 0x2b4   : > { %v7140_v5 = vsel %vm7138_vm2, %v7139_v3, %v8374_v11  ;;  %v9886_v34 = vshrl.u32 %v7308_v57, 30  ;;  %v7158_v20 = vsub.s32 32, %v7157_v58  ;;  %vm7134_vm3 = vcmp.lt.s32.totalorder %v7133_v9, 2 }
 0x2b5   : > { %v7137_v51 = vsel %vm7135_vm1, %v8372_v47, %v7136_v4  ;;  %v7015_v38 = vand.u32 2147483647, %v7014_v46  ;;  %v7017_v36 = vcvt.s32.f32 %v7010_v32  ;;  %v9891_v44 = vand.u32 3, %v7028_v31 }
 0x2b6   : > { %v7141_v53 = vsel %vm7134_vm3, %v7137_v51, %v7140_v5  ;;  %v7310_v0 = vshll.u32 %v9886_v34, 30  ;;  %v9894_v61 = vshll.u32 %v7151_v12, 8  ;;  %v7161_v42 = vshrl.u32 %v8708_v37, %v7158_v20 }
 0x2b7   : > { %v7142_v26 = vsel %vm7131_vm14, nan, %v7141_v53  ;;  %v7018_v48 = vmul.f32 %v7017_v36, %v7015_v38  ;;  %v7164_v7 = vshrl.u32 %v8709_v39, %v7158_v20  ;;  %v7160_v10 = vshll.u32 %v8707_v33, %v7157_v58 }
 0x2b8   : > { %7614 = vst [vmem:[%s9190_s23 + $0x1b8] sm:$0xff] %v7142_v26  ;;  %v9901_v24 = vsub.s32 %v7307_v28, %v7310_v0  ;;  %v7167_v9 = vshrl.u32 %v8710_v41, %v7158_v20  ;;  %v4338_v18 = vand.u32 2139095040, %v9889_v19  ;;  %v7156_v55 = vshrl.u32 %v7155_v13, 5 }
 0x2b9   : > { %v7019_v35 = vxor.u32 2147483648, %v7018_v48  ;;  %v7163_v23 = vshll.u32 %v8708_v37, %v7157_v58  ;;  %v7166_v52 = vshll.u32 %v8709_v39, %v7157_v58  ;;  %v7162_v49 = vor.u32 %v7161_v42, %v7160_v10 }
 0x2ba   : > { %v7313_v27 = vsub.s32 0, %v9901_v24  ;;  %v7169_v14 = vshll.u32 %v8710_v41, %v7157_v58  ;;  %v7170_v8 = vshrl.u32 %v8711_v43, %v7158_v20  ;;  %v7172_v16 = vshll.u32 %v8711_v43, %v7157_v58 }
 0x2bb   : > { %v7020_v62 = vsel %vm6937_vm11, %v7019_v35, %v7018_v48  ;;  %v7165_v25 = vor.u32 %v7164_v7, %v7163_v23  ;;  %v7173_v59 = vshrl.u32 %v8712_v50, %v7158_v20  ;;  %v7168_v6 = vor.u32 %v7167_v9, %v7166_v52 }
 0x2bc   : > { %v7023_v2 = vsel %vm9868_vm12, %v9683_v45, %v7020_v62  ;;  %v7977_v63 = vmin.u32 %v7313_v27, %v9901_v24  ;;  %v7171_v28 = vor.u32 %v7170_v8, %v7169_v14  ;;  %v7333_v40 = vsub.s32 4, %v9886_v34  ;;  %v3991_v8 = vpop.permute.xlu0 %3990 }
 0x2bd   : > { %8375 = vcosq.f32 %v7023_v2  ;;  %v7174_v47 = vor.u32 %v7173_v59, %v7172_v16  ;;  %v4339_v32 = vshrl.u32 %v4338_v18, 23  ;;  %v7159_v31 = vshrl.u32 %v8707_v33, %v7158_v20 }
 0x2be   : > { %8377 = vsinq.f32 %v7023_v2  ;;  %v7315_v54 = vclz %v7977_v63  ;;  %vm7175_vm4 = vcmp.lt.s32.totalorder %v7156_v55, 1  ;;  %vm7176_vm5 = vcmp.lt.s32.totalorder %v7156_v55, 2 }
 0x2bf   : > { %vm7177_vm6 = vcmp.lt.s32.totalorder %v7156_v55, 3  ;;  %vm7178_vm7 = vcmp.lt.s32.totalorder %v7156_v55, 4  ;;  %v7183_v13 = vsel %vm7175_vm4, %v7162_v49, %v7165_v25  ;;  %v7187_v57 = vsel %vm7175_vm4, %v7165_v25, %v7168_v6 }
 0x2c0   : > { %v7978_v29 = vadd.s32 4294967294, %v7315_v54  ;;  %v7180_v11 = vsel %vm7178_vm7, %v7168_v6, 2102212464  ;;  %v7184_v3 = vsel %vm7178_vm7, %v7171_v28, 920167782  ;;  %v7179_v12 = vsel %vm7175_vm4, %v7159_v31, %v7162_v49 }
 0x2c1   : > { %v7185_v58 = vsel %vm7177_vm6, %v7168_v6, %v7184_v3  ;;  %v7188_v4 = vsel %vm7178_vm7, %v7174_v47, 1326507024  ;;  %v7864_v46 = vadd.s32 4294967169, %v4339_v32  ;;  %v7181_v5 = vsel %vm7177_vm6, %v7165_v25, %v7180_v11 }
 0x2c2   : > { %vm7979_vm8 = vcmp.lt.s32.totalorder %v7978_v29, 0  ;;  %v7186_v51 = vsel %vm7176_vm5, %v7183_v13, %v7185_v58  ;;  %v7189_v38 = vsel %vm7177_vm6, %v7171_v28, %v7188_v4  ;;  %vm7249_vm9 = vcmp.lt.s32.totalorder %v9725_v22, 0 }
 0x2c3   : > { %v7318_v36 = vsel %vm7979_vm8, 0, %v7978_v29  ;;  %v7190_v20 = vsel %vm7176_vm5, %v7187_v57, %v7189_v38  ;;  %v9924_v53 = vmul.u32.u64.low %v9894_v61, %v7186_v51  ;;  %v9925_v0 = vmul.u32.u64.high %v9894_v61, %v7186_v51, %v9924_v53 }
 0x2c4   : > { %v7303_v26 = vadd.s32 %v9853_v17, %v9864_v56  ;;  %v7319_v48 = vsub.s32 32, %v7318_v36  ;;  %v7323_v42 = vsub.s32 4294967266, %v7318_v36  ;;  %vm9933_vm10 = vcmp.le.f32.partialorder %v7247_v21, 0.7853982 }
 0x2c5   : > { %v9938_v10 = vmul.u32.u64.low %v9894_v61, %v7190_v20  ;;  %v9939_v9 = vmul.u32.u64.high %v9894_v61, %v7190_v20, %v9938_v10  ;;  %v4345_v18 = vadd.s32 1, %v7864_v46  ;;  %v7320_v35 = vshll.u32 %v9901_v24, %v7318_v36 }
 0x2c6   : > { %v7321_v23 = vshrl.u32 %v7303_v26, %v7319_v48  ;;  %v7324_v52 = vadd.s32 127, %v7323_v42  ;;  %v7182_v27 = vsel %vm7176_vm5, %v7179_v12, %v7181_v5  ;;  %vm7027_vm11 = vweird.f32 %v9683_v45 }
 0x2c7   : > { %vm7030_vm12 = vcmp.lt.s32.totalorder %v9891_v44, 2  ;;  %v7334_v21 = vsel %vm7249_vm9, %v7333_v40, %v9886_v34  ;;  %v7201_v17 = vadd.s32 1, %v9925_v0  ;;  %vm4346_vm13 = vcmp.gt.s32.totalorder %v4345_v18, 0 }
 0x2c8   : > { %v7322_v56 = vor.u32 %v7321_v23, %v7320_v35  ;;  %v7325_v49 = vshll.u32 %v7324_v52, 23  ;;  %v4335_v14 = vand.u32 2147483647, %v9889_v19  ;;  %v4347_v24 = vsel %vm4346_vm13, %v4345_v18, 0 }
 0x2c9   : > { %vm7031_vm15 = vcmp.eq.s32.totalorder %v9891_v44, 0  ;;  %v7198_v55 = vmul.u32 %v9894_v61, %v7182_v27  ;;  %vm7200_vm14 = vc.u32 %v9939_v9, %v9924_v53  ;;  %v4349_v62 = vand.u32 31, %v4347_v24 }
 0x2ca   : > { %v8376_v25 = vpop.eup %8375  ;;  %vm7034_vm0 = vcmp.eq.s32.totalorder %v9891_v44, 2  ;;  %v7326_v34 = vor.u32 4788187, %v7325_v49  ;;  %v7336_v16 = vsel %vm9933_vm10, 0, %v7334_v21  ;;  %v7202_v59 = vsel %vm7200_vm14, %v7201_v17, %v9925_v0 }
 0x2cb   : > { %v8378_v2 = vpop.eup %8377  ;;  %v7035_v63 = vxor.u32 2147483648, %v8376_v25  ;;  %v7203_v6 = vadd.s32 %v7202_v59, %v7198_v55  ;;  %v4350_v28 = vsub.s32 32, %v4349_v62  ;;  %v4167_v40 = vmul.f32 %v9804_v1, %v3991_v8 }
 0x2cc   : > { %v7032_v61 = vxor.u32 2147483648, %v8378_v2  ;;  %v7327_v47 = vand.u32 2147483647, %v7326_v34  ;;  %v7329_v32 = vcvt.s32.f32 %v7322_v56  ;;  %v4342_v54 = vand.u32 8388607, %v4335_v14 }
 0x2cd   : > { %v7036_v31 = vsel %vm7034_vm0, %v7035_v63, %v8378_v2  ;;  %v7340_v13 = vadd.s32 3, %v7336_v16  ;;  %v7204_v29 = vadd.s32 536870912, %v7203_v6  ;;  %v4353_v11 = vshrl.u32 %v8708_v37, %v4350_v28 }
 0x2ce   : > { %v7033_v3 = vsel %vm7031_vm15, %v8376_v25, %v7032_v61  ;;  %v7330_v57 = vmul.f32 %v7329_v32, %v7327_v47  ;;  %v9964_v12 = vshrl.u32 %v4347_v24, 5  ;;  %v4356_v58 = vshrl.u32 %v8709_v39, %v4350_v28 }
 0x2cf   : > { %v7037_v4 = vsel %vm7030_vm12, %v7033_v3, %v7036_v31  ;;  %v9969_v46 = vshrl.u32 %v7204_v29, 30  ;;  %v4352_v5 = vshll.u32 %v8707_v33, %v4349_v62  ;;  %v4359_v51 = vshrl.u32 %v8710_v41, %v4350_v28 }
 0x2d0   : > { %v7038_v38 = vsel %vm7027_vm11, nan, %v7037_v4  ;;  %v7331_v36 = vxor.u32 2147483648, %v7330_v57  ;;  %v4355_v20 = vshll.u32 %v8708_v37, %v4349_v62  ;;  %v4358_v0 = vshll.u32 %v8709_v39, %v4349_v62 }
 0x2d1   : > { %7612 = vst [vmem:[%s9190_s23 + $0x1a8] sm:$0xff] %v7038_v38  ;;  %v7206_v26 = vshll.u32 %v9969_v46, 30  ;;  %v4354_v48 = vor.u32 %v4353_v11, %v4352_v5  ;;  %v4361_v44 = vshll.u32 %v8710_v41, %v4349_v62  ;;  %v4362_v42 = vshrl.u32 %v8711_v43, %v4350_v28 }
 0x2d2   : > { %v7332_v10 = vsel %vm7249_vm9, %v7331_v36, %v7330_v57  ;;  %v4357_v18 = vor.u32 %v4356_v58, %v4355_v20  ;;  %v4364_v45 = vshll.u32 %v8711_v43, %v4349_v62  ;;  %v4365_v35 = vshrl.u32 %v8712_v50, %v4350_v28  ;;  %v4006_v62 = vpop.permute.xlu1 %4005 }
 0x2d3   : > { %v7335_v23 = vsel %vm9933_vm10, %v9725_v22, %v7332_v10  ;;  %v9988_v52 = vsub.s32 %v7203_v6, %v7206_v26  ;;  %v4360_v27 = vor.u32 %v4359_v51, %v4358_v0  ;;  %v4363_v21 = vor.u32 %v4362_v42, %v4361_v44 }
 0x2d4   : > { %8379 = vcosq.f32 %v7335_v23  ;;  %v4343_v17 = vor.u32 8388608, %v4342_v54  ;;  %v4366_v56 = vor.u32 %v4365_v35, %v4364_v45  ;;  %v9991_v49 = vadd.f32 %v9836_v15, %v4167_v40 }
 0x2d5   : > { %8381 = vsinq.f32 %v7335_v23  ;;  %v7209_v24 = vsub.s32 0, %v9988_v52  ;;  %vm4367_vm1 = vcmp.lt.s32.totalorder %v9964_v12, 1  ;;  %vm4370_vm2 = vcmp.lt.s32.totalorder %v9964_v12, 4 }
 0x2d6   : > { %v4351_v7 = vshrl.u32 %v8707_v33, %v4350_v28  ;;  %vm4369_vm3 = vcmp.lt.s32.totalorder %v9964_v12, 3  ;;  %v4375_v8 = vsel %vm4367_vm1, %v4354_v48, %v4357_v18  ;;  %v4376_v55 = vsel %vm4370_vm2, %v4363_v21, 920167782 }
 0x2d7   : > { %v7973_v25 = vmin.u32 %v7209_v24, %v9988_v52  ;;  %vm4368_vm4 = vcmp.lt.s32.totalorder %v9964_v12, 2  ;;  %v4372_v34 = vsel %vm4370_vm2, %v4360_v27, 2102212464  ;;  %v4377_v16 = vsel %vm4369_vm3, %v4360_v27, %v4376_v55 }
 0x2d8   : > { %v4378_v59 = vsel %vm4368_vm4, %v4375_v8, %v4377_v16  ;;  %v4379_v2 = vsel %vm4367_vm1, %v4357_v18, %v4360_v27  ;;  %v4380_v63 = vsel %vm4370_vm2, %v4366_v56, 1326507024  ;;  %v4383_v6 = vshll.u32 %v4343_v17, 8 }
 0x2d9   : > { %v7341_v28 = vand.u32 3, %v7340_v13  ;;  %v7211_v40 = vclz %v7973_v25  ;;  %v4371_v61 = vsel %vm4367_vm1, %v4351_v7, %v4354_v48  ;;  %v4170_v47 = vmul.f32 %v9804_v1, %v4006_v62 }
 0x2da   : > { %v4373_v32 = vsel %vm4369_vm3, %v4357_v18, %v4372_v34  ;;  %v4381_v54 = vsel %vm4369_vm3, %v4363_v21, %v4380_v63  ;;  %v10015_v31 = vmul.u32.u64.low %v4383_v6, %v4378_v59  ;;  %v10016_v29 = vmul.u32.u64.high %v4383_v6, %v4378_v59, %v10015_v31 }
 0x2db   : > { %vm7145_vm5 = vcmp.lt.s32.totalorder %v9839_v30, 0  ;;  %v7974_v11 = vadd.s32 4294967294, %v7211_v40  ;;  %v4382_v13 = vsel %vm4368_vm4, %v4379_v2, %v4381_v54  ;;  %v4234_v3 = vand.u32 2139095040, %v9991_v49 }
 0x2dc   : > { %vm10024_vm6 = vcmp.le.f32.partialorder %v7143_v60, 0.7853982  ;;  %v7229_v58 = vsub.s32 4, %v9969_v46  ;;  %v10029_v4 = vmul.u32.u64.low %v4383_v6, %v4382_v13  ;;  %v10030_v5 = vmul.u32.u64.high %v4383_v6, %v4382_v13, %v10029_v4 }
 0x2dd   : > { %vm7342_vm7 = vcmp.lt.s32.totalorder %v7341_v28, 2  ;;  %vm7975_vm8 = vcmp.lt.s32.totalorder %v7974_v11, 0  ;;  %v4374_v51 = vsel %vm4368_vm4, %v4371_v61, %v4373_v32  ;;  %v4235_v38 = vshrl.u32 %v4234_v3, 23 }
 0x2de   : > { %v7214_v36 = vsel %vm7975_vm8, 0, %v7974_v11  ;;  %v4393_v20 = vadd.s32 1, %v10016_v29  ;;  %v4231_v0 = vand.u32 2147483647, %v9991_v49  ;;  %v10037_v60 = vadd.f32 %v9836_v15, %v4170_v47 }
 0x2df   : > { %v7199_v26 = vadd.s32 %v9924_v53, %v9939_v9  ;;  %v7215_v48 = vsub.s32 32, %v7214_v36  ;;  %v7219_v44 = vsub.s32 4294967266, %v7214_v36  ;;  %v7860_v42 = vadd.s32 4294967169, %v4235_v38 }
 0x2e0   : > { %v7216_v10 = vshll.u32 %v9988_v52, %v7214_v36  ;;  %v7230_v12 = vsel %vm7145_vm5, %v7229_v58, %v9969_v46  ;;  %v4390_v18 = vmul.u32 %v4383_v6, %v4374_v51  ;;  %vm4392_vm9 = vc.u32 %v10030_v5, %v10015_v31 }
 0x2e1   : > { %v8380_v45 = vpop.eup %8379  ;;  %v7217_v35 = vshrl.u32 %v7199_v26, %v7215_v48  ;;  %v7220_v23 = vadd.s32 127, %v7219_v44  ;;  %v4394_v27 = vsel %vm4392_vm9, %v4393_v20, %v10016_v29  ;;  %v4241_v21 = vadd.s32 1, %v7860_v42 }
 0x2e2   : > { %v8382_v17 = vpop.eup %8381  ;;  %vm7343_vm10 = vcmp.eq.s32.totalorder %v7341_v28, 0  ;;  %vm7346_vm11 = vcmp.eq.s32.totalorder %v7341_v28, 2  ;;  %v7347_v53 = vxor.u32 2147483648, %v8380_v45  ;;  %v4395_v9 = vadd.s32 %v4394_v27, %v4390_v18 }
 0x2e3   : > { %v7344_v56 = vxor.u32 2147483648, %v8382_v17  ;;  %v7218_v52 = vor.u32 %v7217_v35, %v7216_v10  ;;  %v7221_v24 = vshll.u32 %v7220_v23, 23  ;;  %vm4242_vm12 = vcmp.gt.s32.totalorder %v4241_v21, 0 }
 0x2e4   : > { %v7348_v46 = vsel %vm7346_vm11, %v7347_v53, %v8382_v17  ;;  %v7232_v7 = vsel %vm10024_vm6, 0, %v7230_v12  ;;  %v4396_v8 = vadd.s32 536870912, %v4395_v9  ;;  %v4243_v55 = vsel %vm4242_vm12, %v4241_v21, 0 }
 0x2e5   : > { %v7345_v62 = vsel %vm7343_vm10, %v8380_v45, %v7344_v56  ;;  %v7222_v25 = vor.u32 4788187, %v7221_v24  ;;  %v4238_v34 = vand.u32 8388607, %v4231_v0  ;;  %v4546_v16 = vand.u32 2139095040, %v10037_v60 }
 0x2e6   : > { %vm7339_vm13 = vweird.f32 %v9725_v22  ;;  %v7349_v59 = vsel %vm7342_vm7, %v7345_v62, %v7348_v46  ;;  %v10054_v2 = vshrl.u32 %v4396_v8, 30  ;;  %v4245_v63 = vand.u32 31, %v4243_v55 }
 0x2e7   : > { %v7350_v6 = vsel %vm7339_vm13, nan, %v7349_v59  ;;  %v7223_v40 = vand.u32 2147483647, %v7222_v25  ;;  %v7225_v61 = vcvt.s32.f32 %v7218_v52  ;;  %v7236_v47 = vadd.s32 3, %v7232_v7 }
 0x2e8   : > { %7618 = vst [vmem:[%s9190_s23 + $0x1d8] sm:$0xff] %v7350_v6  ;;  %v4398_v32 = vshll.u32 %v10054_v2, 30  ;;  %v4246_v54 = vsub.s32 32, %v4245_v63  ;;  %v4391_v11 = vadd.s32 %v10015_v31, %v10030_v5  ;;  %v4239_v13 = vor.u32 8388608, %v4238_v34 }
 0x2e9   : > { %v7226_v29 = vmul.f32 %v7225_v61, %v7223_v40  ;;  %v4547_v3 = vshrl.u32 %v4546_v16, 23  ;;  %v4244_v22 = vshrl.u32 %v4243_v55, 5  ;;  %v4248_v28 = vshll.u32 %v8707_v33, %v4245_v63 }
 0x2ea   : > { %v10059_v58 = vsub.s32 %v4395_v9, %v4398_v32  ;;  %v4249_v4 = vshrl.u32 %v8708_v37, %v4246_v54  ;;  %v4252_v38 = vshrl.u32 %v8709_v39, %v4246_v54  ;;  %v4254_v36 = vshll.u32 %v8709_v39, %v4245_v63 }
 0x2eb   : > { %v7227_v51 = vxor.u32 2147483648, %v7226_v29  ;;  %v4255_v20 = vshrl.u32 %v8710_v41, %v4246_v54  ;;  %v4251_v31 = vshll.u32 %v8708_v37, %v4245_v63  ;;  %v4257_v5 = vshll.u32 %v8710_v41, %v4245_v63 }
 0x2ec   : > { %v4401_v26 = vsub.s32 0, %v10059_v58  ;;  %v4258_v48 = vshrl.u32 %v8711_v43, %v4246_v54  ;;  %v4250_v42 = vor.u32 %v4249_v4, %v4248_v28  ;;  %v10072_v12 = vshll.u32 %v4239_v13, 8  ;;  %v4002_v13 = vpop.permute.xlu0 %4001 }
 0x2ed   : > { %v7228_v44 = vsel %vm7145_vm5, %v7227_v51, %v7226_v29  ;;  %v4256_v10 = vor.u32 %v4255_v20, %v4254_v36  ;;  %v4253_v35 = vor.u32 %v4252_v38, %v4251_v31  ;;  %v4260_v27 = vshll.u32 %v8711_v43, %v4245_v63 }
 0x2ee   : > { %v7231_v18 = vsel %vm10024_vm6, %v9839_v30, %v7228_v44  ;;  %v7865_v45 = vmin.u32 %v4401_v26, %v10059_v58  ;;  %v4259_v23 = vor.u32 %v4258_v48, %v4257_v5  ;;  %v4261_v21 = vshrl.u32 %v8712_v50, %v4246_v54 }
 0x2ef   : > { %8383 = vcosq.f32 %v7231_v18  ;;  %v7872_v17 = vadd.s32 4294967169, %v4547_v3  ;;  %vm4263_vm15 = vcmp.lt.s32.totalorder %v4244_v22, 1  ;;  %vm4266_vm14 = vcmp.lt.s32.totalorder %v4244_v22, 4 }
 0x2f0   : > { %8385 = vsinq.f32 %v7231_v18  ;;  %v4403_v53 = vclz %v7865_v45  ;;  %vm4337_vm0 = vcmp.lt.s32.totalorder %v9889_v19, 0  ;;  %v4247_v9 = vshrl.u32 %v8707_v33, %v4246_v54 }
 0x2f1   : > { %v4262_v57 = vor.u32 %v4261_v21, %v4260_v27  ;;  %vm4264_vm1 = vcmp.lt.s32.totalorder %v4244_v22, 2  ;;  %v4268_v56 = vsel %vm4266_vm14, %v4256_v10, 2102212464  ;;  %vm4265_vm2 = vcmp.lt.s32.totalorder %v4244_v22, 3 }
 0x2f2   : > { %v7866_v52 = vadd.s32 4294967294, %v4403_v53  ;;  %v4271_v24 = vsel %vm4263_vm15, %v4250_v42, %v4253_v35  ;;  %v4272_v46 = vsel %vm4266_vm14, %v4259_v23, 920167782  ;;  %v4267_v7 = vsel %vm4263_vm15, %v4247_v9, %v4250_v42 }
 0x2f3   : > { %v4273_v8 = vsel %vm4265_vm2, %v4256_v10, %v4272_v46  ;;  %v4275_v55 = vsel %vm4263_vm15, %v4253_v35, %v4256_v10  ;;  %v4276_v62 = vsel %vm4266_vm14, %v4262_v57, 1326507024  ;;  %vm10084_vm3 = vcmp.le.f32.partialorder %v4335_v14, 0.7853982 }
 0x2f4   : > { %vm7867_vm4 = vcmp.lt.s32.totalorder %v7866_v52, 0  ;;  %v4269_v34 = vsel %vm4265_vm2, %v4253_v35, %v4268_v56  ;;  %v4274_v16 = vsel %vm4264_vm1, %v4271_v24, %v4273_v8  ;;  %v4277_v59 = vsel %vm4265_vm2, %v4259_v23, %v4276_v62 }
 0x2f5   : > { %v4406_v63 = vsel %vm7867_vm4, 0, %v7866_v52  ;;  %v4278_v6 = vsel %vm4264_vm1, %v4275_v55, %v4277_v59  ;;  %v10091_v40 = vmul.u32.u64.low %v10072_v12, %v4274_v16  ;;  %v10092_v61 = vmul.u32.u64.high %v10072_v12, %v4274_v16, %v10091_v40 }
 0x2f6   : > { %v4407_v32 = vsub.s32 32, %v4406_v63  ;;  %v4411_v54 = vsub.s32 4294967266, %v4406_v63  ;;  %v4421_v14 = vsub.s32 4, %v10054_v2  ;;  %v4553_v29 = vadd.s32 1, %v7872_v17 }
 0x2f7   : > { %v7237_v3 = vand.u32 3, %v7236_v47  ;;  %v4270_v28 = vsel %vm4264_vm1, %v4267_v7, %v4269_v34  ;;  %v10098_v4 = vmul.u32.u64.low %v10072_v12, %v4278_v6  ;;  %v10099_v51 = vmul.u32.u64.high %v10072_v12, %v4278_v6, %v10098_v4 }
 0x2f8   : > { %v4408_v38 = vshll.u32 %v10059_v58, %v4406_v63  ;;  %v4409_v36 = vshrl.u32 %v4391_v11, %v4407_v32  ;;  %v4412_v20 = vadd.s32 127, %v4411_v54  ;;  %vm4554_vm5 = vcmp.gt.s32.totalorder %v4553_v29, 0 }
 0x2f9   : > { %vm7235_vm6 = vweird.f32 %v9839_v30  ;;  %v4289_v26 = vadd.s32 1, %v10092_v61  ;;  %v4543_v31 = vand.u32 2147483647, %v10037_v60  ;;  %v4555_v5 = vsel %vm4554_vm5, %v4553_v29, 0 }
 0x2fa   : > { %v4169_v47 = vmul.f32 %v9804_v1, %v4002_v13  ;;  %v4410_v22 = vor.u32 %v4409_v36, %v4408_v38  ;;  %v4413_v48 = vshll.u32 %v4412_v20, 23  ;;  %v4422_v44 = vsel %vm4337_vm0, %v4421_v14, %v10054_v2 }
 0x2fb   : > { %v4557_v42 = vand.u32 31, %v4555_v5  ;;  %vm7238_vm7 = vcmp.lt.s32.totalorder %v7237_v3, 2  ;;  %vm7239_vm8 = vcmp.eq.s32.totalorder %v7237_v3, 0  ;;  %v4286_v11 = vmul.u32 %v10072_v12, %v4270_v28 }
 0x2fc   : > { %vm4288_vm9 = vc.u32 %v10099_v51, %v10091_v40  ;;  %v8384_v58 = vpop.eup %8383  ;;  %vm7242_vm10 = vcmp.eq.s32.totalorder %v7237_v3, 2  ;;  %v4414_v10 = vor.u32 4788187, %v4413_v48  ;;  %v4424_v27 = vsel %vm10084_vm3, 0, %v4422_v44 }
 0x2fd   : > { %v4290_v18 = vsel %vm4288_vm9, %v4289_v26, %v10092_v61  ;;  %v4558_v45 = vsub.s32 32, %v4557_v42  ;;  %v8386_v35 = vpop.eup %8385  ;;  %v7243_v23 = vxor.u32 2147483648, %v8384_v58  ;;  %v4550_v21 = vand.u32 8388607, %v4543_v31 }
 0x2fe   : > { %v4291_v2 = vadd.s32 %v4290_v18, %v4286_v11  ;;  %v7240_v17 = vxor.u32 2147483648, %v8386_v35  ;;  %v4415_v12 = vand.u32 2147483647, %v4414_v10  ;;  %v4417_v53 = vcvt.s32.f32 %v4410_v22  ;;  %v4017_v18 = vpop.permute.xlu1 %4016 }
 0x2ff   : > { %v10117_v9 = vshrl.u32 %v4555_v5, 5  ;;  %v7244_v57 = vsel %vm7242_vm10, %v7243_v23, %v8386_v35  ;;  %v4561_v52 = vshrl.u32 %v8708_v37, %v4558_v45  ;;  %v4564_v24 = vshrl.u32 %v8709_v39, %v4558_v45 }
 0x300   : > { %v4292_v56 = vadd.s32 536870912, %v4291_v2  ;;  %v7241_v46 = vsel %vm7239_vm8, %v8384_v58, %v7240_v17  ;;  %v4418_v7 = vmul.f32 %v4417_v53, %v4415_v12  ;;  %v4560_v8 = vshll.u32 %v8707_v33, %v4557_v42 }
 0x301   : > { %v4567_v55 = vshrl.u32 %v8710_v41, %v4558_v45  ;;  %v7245_v62 = vsel %vm7238_vm7, %v7241_v46, %v7244_v57  ;;  %v4563_v16 = vshll.u32 %v8708_v37, %v4557_v42  ;;  %v4566_v59 = vshll.u32 %v8709_v39, %v4557_v42 }
 0x302   : > { %v4293_v34 = vshrl.u32 %v4292_v56, 30  ;;  %v7246_v63 = vsel %vm7235_vm6, nan, %v7245_v62  ;;  %v4419_v6 = vxor.u32 2147483648, %v4418_v7  ;;  %v4569_v61 = vshll.u32 %v8710_v41, %v4557_v42 }
 0x303   : > { %v4570_v32 = vshrl.u32 %v8711_v43, %v4558_v45  ;;  %7616 = vst [vmem:[%s9190_s23 + $0x1c8] sm:$0xff] %v7246_v63  ;;  %v4562_v14 = vor.u32 %v4561_v52, %v4560_v8  ;;  %v4565_v29 = vor.u32 %v4564_v24, %v4563_v16  ;;  %v4573_v13 = vshrl.u32 %v8712_v50, %v4558_v45 }
 0x304   : > { %v4294_v54 = vshll.u32 %v4293_v34, 30  ;;  %v4420_v3 = vsel %vm4337_vm0, %v4419_v6, %v4418_v7  ;;  %vm4233_vm11 = vcmp.lt.s32.totalorder %v9991_v49, 0  ;;  %v4568_v28 = vor.u32 %v4567_v55, %v4566_v59 }
 0x305   : > { %v4571_v4 = vor.u32 %v4570_v32, %v4569_v61  ;;  %v4572_v30 = vshll.u32 %v8711_v43, %v4557_v42  ;;  %v4423_v38 = vsel %vm10084_vm3, %v9889_v19, %v4420_v3  ;;  %v4428_v36 = vadd.s32 3, %v4424_v27 }
 0x306   : > { %v10140_v20 = vsub.s32 %v4291_v2, %v4294_v54  ;;  %v4551_v26 = vor.u32 8388608, %v4550_v21  ;;  %8387 = vcosq.f32 %v4423_v38  ;;  %v4559_v5 = vshrl.u32 %v8707_v33, %v4558_v45 }
 0x307   : > { %v4574_v22 = vor.u32 %v4573_v13, %v4572_v30  ;;  %v10144_v48 = vadd.f32 %v9836_v15, %v4169_v47  ;;  %8389 = vsinq.f32 %v4423_v38  ;;  %vm4575_vm12 = vcmp.lt.s32.totalorder %v10117_v9, 1 }
 0x308   : > { %v4297_v44 = vsub.s32 0, %v10140_v20  ;;  %vm4578_vm13 = vcmp.lt.s32.totalorder %v10117_v9, 4  ;;  %vm4577_vm15 = vcmp.lt.s32.totalorder %v10117_v9, 3  ;;  %v4583_v42 = vsel %vm4575_vm12, %v4562_v14, %v4565_v29 }
 0x309   : > { %v4580_v25 = vsel %vm4578_vm13, %v4568_v28, 2102212464  ;;  %v4584_v11 = vsel %vm4578_vm13, %v4571_v4, 920167782  ;;  %v4317_v10 = vsub.s32 4, %v4293_v34  ;;  %vm4576_vm14 = vcmp.lt.s32.totalorder %v10117_v9, 2 }
 0x30a   : > { %v7861_v58 = vmin.u32 %v4297_v44, %v10140_v20  ;;  %v4585_v47 = vsel %vm4577_vm15, %v4568_v28, %v4584_v11  ;;  %v4587_v35 = vsel %vm4575_vm12, %v4565_v29, %v4568_v28  ;;  %v4588_v23 = vsel %vm4578_vm13, %v4574_v22, 1326507024 }
 0x30b   : > { %v4586_v45 = vsel %vm4576_vm14, %v4583_v42, %v4585_v47  ;;  %v4591_v27 = vshll.u32 %v4551_v26, 8  ;;  %v4429_v2 = vand.u32 3, %v4428_v36  ;;  %v4579_v17 = vsel %vm4575_vm12, %v4559_v5, %v4562_v14 }
 0x30c   : > { %v4299_v21 = vclz %v7861_v58  ;;  %v4581_v12 = vsel %vm4577_vm15, %v4565_v29, %v4580_v25  ;;  %v4589_v53 = vsel %vm4577_vm15, %v4571_v4, %v4588_v23  ;;  %v4172_v52 = vmul.f32 %v9804_v1, %v4017_v18 }
 0x30d   : > { %v10166_v57 = vmul.u32.u64.low %v4591_v27, %v4586_v45  ;;  %v10167_v56 = vmul.u32.u64.high %v4591_v27, %v4586_v45, %v10166_v57  ;;  %v4318_v46 = vsel %vm4233_vm11, %v4317_v10, %v4293_v34  ;;  %v4590_v7 = vsel %vm4576_vm14, %v4587_v35, %v4589_v53 }
 0x30e   : > { %v7862_v24 = vadd.s32 4294967294, %v4299_v21  ;;  %v4442_v8 = vand.u32 2139095040, %v10144_v48  ;;  %v4582_v55 = vsel %vm4576_vm14, %v4579_v17, %v4581_v12  ;;  %v4439_v59 = vand.u32 2147483647, %v10144_v48 }
 0x30f   : > { %v10178_v62 = vmul.u32.u64.low %v4591_v27, %v4590_v7  ;;  %v10179_v16 = vmul.u32.u64.high %v4591_v27, %v4590_v7, %v10178_v62  ;;  %vm4430_vm0 = vcmp.lt.s32.totalorder %v4429_v2, 2  ;;  %vm10184_vm1 = vcmp.le.f32.partialorder %v4231_v0, 0.7853982 }
 0x310   : > { %vm7863_vm2 = vcmp.lt.s32.totalorder %v7862_v24, 0  ;;  %v4443_v34 = vshrl.u32 %v4442_v8, 23  ;;  %v4287_v63 = vadd.s32 %v10091_v40, %v10099_v51  ;;  %v4320_v9 = vsel %vm10184_vm1, 0, %v4318_v46 }
 0x311   : > { %v4302_v6 = vsel %vm7863_vm2, 0, %v7862_v24  ;;  %v4601_v61 = vadd.s32 1, %v10167_v56  ;;  %v4598_v14 = vmul.u32 %v4591_v27, %v4582_v55  ;;  %vm4600_vm3 = vc.u32 %v10179_v16, %v10166_v57 }
 0x312   : > { %v4303_v32 = vsub.s32 32, %v4302_v6  ;;  %v4307_v54 = vsub.s32 4294967266, %v4302_v6  ;;  %v7868_v29 = vadd.s32 4294967169, %v4443_v34  ;;  %v4304_v0 = vshll.u32 %v10140_v20, %v4302_v6 }
 0x313   : > { %v4446_v13 = vand.u32 8388607, %v4439_v59  ;;  %v10199_v40 = vadd.f32 %v9836_v15, %v4172_v52  ;;  %v8388_v51 = vpop.eup %8387  ;;  %v4602_v4 = vsel %vm4600_vm3, %v4601_v61, %v10167_v56  ;;  %vm4431_vm4 = vcmp.eq.s32.totalorder %v4429_v2, 0 }
 0x314   : > { %v4305_v3 = vshrl.u32 %v4287_v63, %v4303_v32  ;;  %v4308_v28 = vadd.s32 127, %v4307_v54  ;;  %v4449_v30 = vadd.s32 1, %v7868_v29  ;;  %v8390_v38 = vpop.eup %8389  ;;  %vm4434_vm5 = vcmp.eq.s32.totalorder %v4429_v2, 2 }
 0x315   : > { %v4435_v36 = vxor.u32 2147483648, %v8388_v51  ;;  %v4603_v20 = vadd.s32 %v4602_v4, %v4598_v14  ;;  %v4432_v26 = vxor.u32 2147483648, %v8390_v38  ;;  %v4324_v25 = vadd.s32 3, %v4320_v9 }
 0x316   : > { %v4306_v5 = vor.u32 %v4305_v3, %v4304_v0  ;;  %v4309_v22 = vshll.u32 %v4308_v28, 23  ;;  %vm4450_vm6 = vcmp.gt.s32.totalorder %v4449_v30, 0  ;;  %v4447_v10 = vor.u32 8388608, %v4446_v13 }
 0x317   : > { %v4436_v44 = vsel %vm4434_vm5, %v4435_v36, %v8390_v38  ;;  %v4604_v15 = vadd.s32 536870912, %v4603_v20  ;;  %v4451_v42 = vsel %vm4450_vm6, %v4449_v30, 0  ;;  %v4433_v11 = vsel %vm4431_vm4, %v8388_v51, %v4432_v26 }
 0x318   : > { %v4310_v58 = vor.u32 4788187, %v4309_v22  ;;  %v4754_v47 = vand.u32 2139095040, %v10199_v40  ;;  %vm4427_vm7 = vweird.f32 %v9889_v19  ;;  %v4437_v18 = vsel %vm4430_vm0, %v4433_v11, %v4436_v44 }
 0x319   : > { %v10205_v45 = vshrl.u32 %v4604_v15, 30  ;;  %v4453_v35 = vand.u32 31, %v4451_v42  ;;  %v4438_v23 = vsel %vm4427_vm7, nan, %v4437_v18  ;;  %v4313_v21 = vcvt.s32.f32 %v4306_v5 }
 0x31a   : > { %v4311_v27 = vand.u32 2147483647, %v4310_v58  ;;  %7562 = vst [vmem:[%s9190_s23 + $0x18] sm:$0xff] %v4438_v23  ;;  %v10209_v56 = vand.u32 3, %v4324_v25  ;;  %v10211_v52 = vshll.u32 %v4447_v10, 8  ;;  %v4755_v24 = vshrl.u32 %v4754_v47, 23  ;;  %v4013_v58 = vpop.permute.xlu0 %4012 }
 0x31b   : > { %v4606_v17 = vshll.u32 %v10205_v45, 30  ;;  %v4454_v12 = vsub.s32 32, %v4453_v35  ;;  %v10215_v19 = vshrl.u32 %v4451_v42, 5  ;;  %v4456_v2 = vshll.u32 %v8707_v33, %v4453_v35 }
 0x31c   : > { %v4314_v53 = vmul.f32 %v4313_v21, %v4311_v27  ;;  %v4462_v62 = vshll.u32 %v8709_v39, %v4453_v35  ;;  %v4459_v6 = vshll.u32 %v8708_v37, %v4453_v35  ;;  %v4465_v9 = vshll.u32 %v8710_v41, %v4453_v35 }
 0x31d   : > { %v10213_v46 = vsub.s32 %v4603_v20, %v4606_v17  ;;  %v4457_v7 = vshrl.u32 %v8708_v37, %v4454_v12  ;;  %v4460_v55 = vshrl.u32 %v8709_v39, %v4454_v12  ;;  %v4463_v34 = vshrl.u32 %v8710_v41, %v4454_v12 }
 0x31e   : > { %v4315_v8 = vxor.u32 2147483648, %v4314_v53  ;;  %v4466_v61 = vshrl.u32 %v8711_v43, %v4454_v12  ;;  %v7880_v29 = vadd.s32 4294967169, %v4755_v24  ;;  %vm4545_vm8 = vcmp.lt.s32.totalorder %v10037_v60, 0 }
 0x31f   : > { %v4609_v63 = vsub.s32 0, %v10213_v46  ;;  %v4458_v54 = vor.u32 %v4457_v7, %v4456_v2  ;;  %v4464_v14 = vor.u32 %v4463_v34, %v4462_v62  ;;  %v4461_v51 = vor.u32 %v4460_v55, %v4459_v6 }
 0x320   : > { %v4316_v32 = vsel %vm4233_vm11, %v4315_v8, %v4314_v53  ;;  %v4467_v3 = vor.u32 %v4466_v61, %v4465_v9  ;;  %v4468_v28 = vshll.u32 %v8711_v43, %v4453_v35  ;;  %v4469_v4 = vshrl.u32 %v8712_v50, %v4454_v12  ;;  %v10267_v53 = vld [vmem:[%s13942_s2] ss:$0 sm:$0xff] }
 0x321   : > { %v4319_v0 = vsel %vm10184_vm1, %v9991_v49, %v4316_v32  ;;  %v7873_v13 = vmin.u32 %v4609_v63, %v10213_v46  ;;  %vm4471_vm9 = vcmp.lt.s32.totalorder %v10215_v19, 1  ;;  %vm4472_vm10 = vcmp.lt.s32.totalorder %v10215_v19, 2 }
 0x322   : > { %8391 = vcosq.f32 %v4319_v0  ;;  %vm4474_vm11 = vcmp.lt.s32.totalorder %v10215_v19, 4  ;;  %v4629_v1 = vsub.s32 4, %v10205_v45  ;;  %v4455_v38 = vshrl.u32 %v8707_v33, %v4454_v12 }
 0x323   : > { %8393 = vsinq.f32 %v4319_v0  ;;  %v4611_v30 = vclz %v7873_v13  ;;  %v4470_v36 = vor.u32 %v4469_v4, %v4468_v28  ;;  %v4476_v20 = vsel %vm4474_vm11, %v4464_v14, 2102212464 }
 0x324   : > { %vm10242_vm12 = vcmp.le.f32.partialorder %v4543_v31, 0.7853982  ;;  %vm4473_vm13 = vcmp.lt.s32.totalorder %v10215_v19, 3  ;;  %v4479_v22 = vsel %vm4471_vm9, %v4458_v54, %v4461_v51  ;;  %v4480_v44 = vsel %vm4474_vm11, %v4467_v3, 920167782 }
 0x325   : > { %v7874_v5 = vadd.s32 4294967294, %v4611_v30  ;;  %v4475_v25 = vsel %vm4471_vm9, %v4455_v38, %v4458_v54  ;;  %v4481_v15 = vsel %vm4473_vm13, %v4464_v14, %v4480_v44  ;;  %v4483_v42 = vsel %vm4471_vm9, %v4461_v51, %v4464_v14 }
 0x326   : > { %v4484_v11 = vsel %vm4474_vm11, %v4470_v36, 1326507024  ;;  %v4477_v31 = vsel %vm4473_vm13, %v4461_v51, %v4476_v20  ;;  %v4482_v10 = vsel %vm4472_vm10, %v4479_v22, %v4481_v15  ;;  %v4599_v21 = vadd.s32 %v10166_v57, %v10179_v16 }
 0x327   : > { %vm7875_vm15 = vcmp.lt.s32.totalorder %v7874_v5, 0  ;;  %v4485_v47 = vsel %vm4473_vm13, %v4467_v3, %v4484_v11  ;;  %v10258_v23 = vmul.u32.u64.low %v10211_v52, %v4482_v10  ;;  %v10259_v27 = vmul.u32.u64.high %v10211_v52, %v4482_v10, %v10258_v23 }
 0x328   : > { %v4614_v18 = vsel %vm7875_vm15, 0, %v7874_v5  ;;  %v4486_v35 = vsel %vm4472_vm10, %v4483_v42, %v4485_v47  ;;  %v4171_v24 = vmul.f32 %v10267_v53, %v4013_v58  ;;  %v4630_v2 = vsel %vm4545_vm8, %v4629_v1, %v10205_v45 }
 0x329   : > { %v4615_v17 = vsub.s32 32, %v4614_v18  ;;  %v4619_v12 = vsub.s32 4294967266, %v4614_v18  ;;  %v10274_v7 = vmul.u32.u64.low %v10211_v52, %v4486_v35  ;;  %v10275_v8 = vmul.u32.u64.high %v10211_v52, %v4486_v35, %v10274_v7 }
 0x32a   : > { %v4761_v55 = vadd.s32 1, %v7880_v29  ;;  %v4616_v57 = vshll.u32 %v10213_v46, %v4614_v18  ;;  %v4478_v34 = vsel %vm4472_vm10, %v4475_v25, %v4477_v31  ;;  %vm4323_vm14 = vweird.f32 %v9991_v49  ;;  %v10287_v46 = vld [vmem:[%s13943_s3] ss:$0 sm:$0xff] }
 0x32b   : > { %v4617_v16 = vshrl.u32 %v4599_v21, %v4615_v17  ;;  %v4620_v62 = vadd.s32 127, %v4619_v12  ;;  %vm4326_vm0 = vcmp.lt.s32.totalorder %v10209_v56, 2  ;;  %v4497_v63 = vadd.s32 1, %v10259_v27 }
 0x32c   : > { %v4751_v45 = vand.u32 2147483647, %v10199_v40  ;;  %vm4762_vm1 = vcmp.gt.s32.totalorder %v4761_v55, 0  ;;  %v10290_v19 = vadd.f32 %v10287_v46, %v4171_v24  ;;  %v4632_v32 = vsel %vm10242_vm12, 0, %v4630_v2 }
 0x32d   : > { %v4618_v6 = vor.u32 %v4617_v16, %v4616_v57  ;;  %v4621_v9 = vshll.u32 %v4620_v62, 23  ;;  %v4763_v61 = vsel %vm4762_vm1, %v4761_v55, 0  ;;  %v4494_v54 = vmul.u32 %v10211_v52, %v4478_v34 }
 0x32e   : > { %vm4496_vm2 = vc.u32 %v10275_v8, %v10258_v23  ;;  %v4765_v14 = vand.u32 31, %v4763_v61  ;;  %vm4327_vm3 = vcmp.eq.s32.totalorder %v10209_v56, 0  ;;  %vm4330_vm4 = vcmp.eq.s32.totalorder %v10209_v56, 2 }
 0x32f   : > { %v8392_v29 = vpop.eup %8391  ;;  %v4622_v0 = vor.u32 4788187, %v4621_v9  ;;  %v4498_v13 = vsel %vm4496_vm2, %v4497_v63, %v10259_v27  ;;  %v4758_v4 = vand.u32 8388607, %v4751_v45  ;;  %v4625_v38 = vcvt.s32.f32 %v4618_v6 }
 0x330   : > { %v8394_v51 = vpop.eup %8393  ;;  %v4331_v3 = vxor.u32 2147483648, %v8392_v29  ;;  %v4499_v28 = vadd.s32 %v4498_v13, %v4494_v54  ;;  %v4766_v30 = vsub.s32 32, %v4765_v14  ;;  %v4636_v36 = vadd.s32 3, %v4632_v32 }
 0x331   : > { %v4328_v52 = vxor.u32 2147483648, %v8394_v51  ;;  %v4623_v1 = vand.u32 2147483647, %v4622_v0  ;;  %v4650_v44 = vand.u32 2139095040, %v10290_v19  ;;  %v4764_v42 = vshrl.u32 %v4763_v61, 5 }
 0x332   : > { %v4332_v20 = vsel %vm4330_vm4, %v4331_v3, %v8394_v51  ;;  %v4500_v5 = vadd.s32 536870912, %v4499_v28  ;;  %v4769_v22 = vshrl.u32 %v8708_v37, %v4766_v30  ;;  %v4772_v11 = vshrl.u32 %v8709_v39, %v4766_v30 }
 0x333   : > { %v4329_v25 = vsel %vm4327_vm3, %v8392_v29, %v4328_v52  ;;  %v4626_v15 = vmul.f32 %v4625_v38, %v4623_v1  ;;  %v4768_v10 = vshll.u32 %v8707_v33, %v4765_v14  ;;  %v4775_v47 = vshrl.u32 %v8710_v41, %v4766_v30 }
 0x334   : > { %v4333_v58 = vsel %vm4326_vm0, %v4329_v25, %v4332_v20  ;;  %v10309_v31 = vshrl.u32 %v4500_v5, 30  ;;  %v4771_v27 = vshll.u32 %v8708_v37, %v4765_v14  ;;  %v4774_v21 = vshll.u32 %v8709_v39, %v4765_v14 }
 0x335   : > { %v4334_v18 = vsel %vm4323_vm14, nan, %v4333_v58  ;;  %v4627_v35 = vxor.u32 2147483648, %v4626_v15  ;;  %v4770_v12 = vor.u32 %v4769_v22, %v4768_v10  ;;  %v4777_v56 = vshll.u32 %v8710_v41, %v4765_v14 }
 0x336   : > { %7560 = vst [vmem:[%s9190_s23 + $0x8] sm:$0xff] %v4334_v18  ;;  %v4502_v17 = vshll.u32 %v10309_v31, 30  ;;  %v4778_v24 = vshrl.u32 %v8711_v43, %v4766_v30  ;;  %v4773_v7 = vor.u32 %v4772_v11, %v4771_v27  ;;  %v4780_v49 = vshll.u32 %v8711_v43, %v4765_v14 }
 0x337   : > { %v4628_v2 = vsel %vm4545_vm8, %v4627_v35, %v4626_v15  ;;  %v4781_v55 = vshrl.u32 %v8712_v50, %v4766_v30  ;;  %v4776_v62 = vor.u32 %v4775_v47, %v4774_v21  ;;  %v4759_v63 = vor.u32 8388608, %v4758_v4 }
 0x338   : > { %v4631_v57 = vsel %vm10242_vm12, %v10037_v60, %v4628_v2  ;;  %v10328_v16 = vsub.s32 %v4499_v28, %v4502_v17  ;;  %v4779_v34 = vor.u32 %v4778_v24, %v4777_v56  ;;  %v4651_v9 = vshrl.u32 %v4650_v44, 23 }
 0x339   : > { %8395 = vcosq.f32 %v4631_v57  ;;  %v4782_v6 = vor.u32 %v4781_v55, %v4780_v49  ;;  %vm4783_vm5 = vcmp.lt.s32.totalorder %v4764_v42, 1  ;;  %vm4786_vm6 = vcmp.lt.s32.totalorder %v4764_v42, 4 }
 0x33a   : > { %8397 = vsinq.f32 %v4631_v57  ;;  %v4505_v61 = vsub.s32 0, %v10328_v16  ;;  %v4767_v32 = vshrl.u32 %v8707_v33, %v4766_v30  ;;  %vm4785_vm7 = vcmp.lt.s32.totalorder %v4764_v42, 3 }
 0x33b   : > { %v4791_v54 = vsel %vm4783_vm5, %v4770_v12, %v4773_v7  ;;  %v4792_v26 = vsel %vm4786_vm6, %v4779_v34, 920167782  ;;  %vm4784_vm8 = vcmp.lt.s32.totalorder %v4764_v42, 2  ;;  %v4788_v29 = vsel %vm4786_vm6, %v4776_v62, 2102212464 }
 0x33c   : > { %v7869_v14 = vmin.u32 %v4505_v61, %v10328_v16  ;;  %v4793_v0 = vsel %vm4785_vm7, %v4776_v62, %v4792_v26  ;;  %v4795_v51 = vsel %vm4783_vm5, %v4773_v7, %v4776_v62  ;;  %v4796_v3 = vsel %vm4786_vm6, %v4782_v6, 1326507024 }
 0x33d   : > { %v4794_v13 = vsel %vm4784_vm8, %v4791_v54, %v4793_v0  ;;  %v4799_v28 = vshll.u32 %v4759_v63, 8  ;;  %v4637_v4 = vand.u32 3, %v4636_v36  ;;  %v4787_v1 = vsel %vm4783_vm5, %v4767_v32, %v4770_v12 }
 0x33e   : > { %v4507_v52 = vclz %v7869_v14  ;;  %v4789_v30 = vsel %vm4785_vm7, %v4773_v7, %v4788_v29  ;;  %v4797_v38 = vsel %vm4785_vm7, %v4779_v34, %v4796_v3  ;;  %v7876_v25 = vadd.s32 4294967169, %v4651_v9 }
 0x33f   : > { %v10337_v20 = vmul.u32.u64.low %v4799_v28, %v4794_v13  ;;  %v10338_v5 = vmul.u32.u64.high %v4799_v28, %v4794_v13, %v10337_v20  ;;  %v4798_v44 = vsel %vm4784_vm8, %v4795_v51, %v4797_v38  ;;  %vm4441_vm9 = vcmp.lt.s32.totalorder %v10144_v48, 0 }
 0x340   : > { %v7870_v22 = vadd.s32 4294967294, %v4507_v52  ;;  %v4525_v15 = vsub.s32 4, %v10309_v31  ;;  %v10344_v11 = vmul.u32.u64.low %v4799_v28, %v4798_v44  ;;  %v10345_v58 = vmul.u32.u64.high %v4799_v28, %v4798_v44, %v10344_v11 }
 0x341   : > { %vm10349_vm10 = vcmp.le.f32.partialorder %v4439_v59, 0.7853982  ;;  %v4790_v10 = vsel %vm4784_vm8, %v4787_v1, %v4789_v30  ;;  %v4657_v47 = vadd.s32 1, %v7876_v25  ;;  %vm4635_vm12 = vweird.f32 %v10037_v60 }
 0x342   : > { %vm7871_vm11 = vcmp.lt.s32.totalorder %v7870_v22, 0  ;;  %vm4638_vm13 = vcmp.lt.s32.totalorder %v4637_v4, 2  ;;  %v4809_v35 = vadd.s32 1, %v10338_v5  ;;  %v4647_v27 = vand.u32 2147483647, %v10290_v19 }
 0x343   : > { %v4510_v18 = vsel %vm7871_vm11, 0, %v7870_v22  ;;  %v4495_v21 = vadd.s32 %v10258_v23, %v10275_v8  ;;  %vm4658_vm15 = vcmp.gt.s32.totalorder %v4657_v47, 0  ;;  %v4526_v42 = vsel %vm4441_vm9, %v4525_v15, %v10309_v31  ;;  %v4028_v31 = vpop.permute.xlu1 %4027 }
 0x344   : > { %v4511_v17 = vsub.s32 32, %v4510_v18  ;;  %v4515_v59 = vsub.s32 4294967266, %v4510_v18  ;;  %v4806_v12 = vmul.u32 %v4799_v28, %v4790_v10  ;;  %vm4808_vm14 = vc.u32 %v10345_v58, %v10337_v20 }
 0x345   : > { %v4659_v56 = vsel %vm4658_vm15, %v4657_v47, 0  ;;  %v4512_v2 = vshll.u32 %v10328_v16, %v4510_v18  ;;  %v4810_v55 = vsel %vm4808_vm14, %v4809_v35, %v10338_v5  ;;  %v4654_v62 = vand.u32 8388607, %v4647_v27 }
 0x346   : > { %v8396_v24 = vpop.eup %8395  ;;  %v4513_v7 = vshrl.u32 %v4495_v21, %v4511_v17  ;;  %v4516_v49 = vadd.s32 127, %v4515_v59  ;;  %v4811_v57 = vadd.s32 %v4810_v55, %v4806_v12  ;;  %v4661_v34 = vand.u32 31, %v4659_v56 }
 0x347   : > { %v8398_v23 = vpop.eup %8397  ;;  %v4643_v8 = vxor.u32 2147483648, %v8396_v24  ;;  %vm4642_vm0 = vcmp.eq.s32.totalorder %v4637_v4, 2  ;;  %vm4639_vm1 = vcmp.eq.s32.totalorder %v4637_v4, 0  ;;  %v4528_v14 = vsel %vm10349_vm10, 0, %v4526_v42 }
 0x348   : > { %v4640_v63 = vxor.u32 2147483648, %v8398_v23  ;;  %v4514_v6 = vor.u32 %v4513_v7, %v4512_v2  ;;  %v4517_v9 = vshll.u32 %v4516_v49, 23  ;;  %v4812_v16 = vadd.s32 536870912, %v4811_v57 }
 0x349   : > { %v4644_v61 = vsel %vm4642_vm0, %v4643_v8, %v8398_v23  ;;  %v4662_v32 = vsub.s32 32, %v4661_v34  ;;  %v4174_v29 = vmul.f32 %v10267_v53, %v4028_v31  ;;  %v4655_v51 = vor.u32 8388608, %v4654_v62 }
 0x34a   : > { %v4641_v54 = vsel %vm4639_vm1, %v8396_v24, %v4640_v63  ;;  %v4518_v26 = vor.u32 4788187, %v4517_v9  ;;  %v10372_v13 = vshrl.u32 %v4812_v16, 30  ;;  %v4521_v1 = vcvt.s32.f32 %v4514_v6 }
 0x34b   : > { %v4645_v0 = vsel %vm4638_vm13, %v4641_v54, %v4644_v61  ;;  %v4665_v3 = vshrl.u32 %v8708_v37, %v4662_v32  ;;  %v4668_v30 = vshrl.u32 %v8709_v39, %v4662_v32  ;;  %v4660_v5 = vshrl.u32 %v4659_v56, 5 }
 0x34c   : > { %v4646_v28 = vsel %vm4635_vm12, nan, %v4645_v0  ;;  %v4519_v52 = vand.u32 2147483647, %v4518_v26  ;;  %v4814_v38 = vshll.u32 %v10372_v13, 30  ;;  %v4664_v22 = vshll.u32 %v8707_v33, %v4661_v34 }
 0x34d   : > { %7566 = vst [vmem:[%s9190_s23 + $0x38] sm:$0xff] %v4646_v28  ;;  %v4671_v4 = vshrl.u32 %v8710_v41, %v4662_v32  ;;  %v4667_v25 = vshll.u32 %v8708_v37, %v4661_v34  ;;  %v4673_v15 = vshll.u32 %v8710_v41, %v4661_v34  ;;  %v4674_v60 = vshrl.u32 %v8711_v43, %v4662_v32  ;;  %v4024_v28 = vpop.permute.xlu0 %4023 }
 0x34e   : > { %v4522_v44 = vmul.f32 %v4521_v1, %v4519_v52  ;;  %v10385_v11 = vsub.s32 %v4811_v57, %v4814_v38  ;;  %v4666_v10 = vor.u32 %v4665_v3, %v4664_v22  ;;  %v4670_v47 = vshll.u32 %v8709_v39, %v4661_v34 }
 0x34f   : > { %v4669_v35 = vor.u32 %v4668_v30, %v4667_v25  ;;  %v4675_v21 = vor.u32 %v4674_v60, %v4673_v15  ;;  %v4677_v17 = vshrl.u32 %v8712_v50, %v4662_v32  ;;  %v4532_v59 = vadd.s32 3, %v4528_v14 }
 0x350   : > { %v4523_v18 = vxor.u32 2147483648, %v4522_v44  ;;  %vm4753_vm2 = vcmp.lt.s32.totalorder %v10199_v40, 0  ;;  %v4817_v42 = vsub.s32 0, %v10385_v11  ;;  %v4672_v12 = vor.u32 %v4671_v4, %v4670_v47 }
 0x351   : > { %v4676_v56 = vshll.u32 %v8711_v43, %v4661_v34  ;;  %vm4679_vm3 = vcmp.lt.s32.totalorder %v4660_v5, 1  ;;  %v4695_v2 = vshll.u32 %v4655_v51, 8  ;;  %v10395_v7 = vadd.f32 %v10287_v46, %v4174_v29 }
 0x352   : > { %v4524_v24 = vsel %vm4441_vm9, %v4523_v18, %v4522_v44  ;;  %v7881_v55 = vmin.u32 %v4817_v42, %v10385_v11  ;;  %vm4682_vm4 = vcmp.lt.s32.totalorder %v4660_v5, 4  ;;  %v4663_v8 = vshrl.u32 %v8707_v33, %v4662_v32 }
 0x353   : > { %v4527_v49 = vsel %vm10349_vm10, %v10144_v48, %v4524_v24  ;;  %v4678_v23 = vor.u32 %v4677_v17, %v4676_v56  ;;  %v4687_v57 = vsel %vm4679_vm3, %v4666_v10, %v4669_v35  ;;  %v4688_v62 = vsel %vm4682_vm4, %v4675_v21, 920167782 }
 0x354   : > { %8399 = vcosq.f32 %v4527_v49  ;;  %vm10406_vm5 = vcmp.le.f32.partialorder %v4751_v45, 0.7853982  ;;  %v4819_v36 = vclz %v7881_v55  ;;  %vm4681_vm6 = vcmp.lt.s32.totalorder %v4660_v5, 3 }
 0x355   : > { %8401 = vsinq.f32 %v4527_v49  ;;  %v4684_v31 = vsel %vm4682_vm4, %v4672_v12, 2102212464  ;;  %v4837_v63 = vsub.s32 4, %v10372_v13  ;;  %vm4680_vm7 = vcmp.lt.s32.totalorder %v4660_v5, 2 }
 0x356   : > { %v4689_v6 = vsel %vm4681_vm6, %v4672_v12, %v4688_v62  ;;  %v4691_v9 = vsel %vm4679_vm3, %v4669_v35, %v4672_v12  ;;  %v7882_v61 = vadd.s32 4294967294, %v4819_v36  ;;  %v4683_v16 = vsel %vm4679_vm3, %v4663_v8, %v4666_v10 }
 0x357   : > { %v4690_v32 = vsel %vm4680_vm7, %v4687_v57, %v4689_v6  ;;  %v4692_v45 = vsel %vm4682_vm4, %v4678_v23, 1326507024  ;;  %v4685_v54 = vsel %vm4681_vm6, %v4669_v35, %v4684_v31  ;;  %v4807_v0 = vadd.s32 %v10337_v20, %v10345_v58  ;;  %v4039_v6 = vpop.permute.xlu1 %4038 }
 0x358   : > { %v4693_v26 = vsel %vm4681_vm6, %v4675_v21, %v4692_v45  ;;  %v10416_v14 = vmul.u32.u64.low %v4695_v2, %v4690_v32  ;;  %v10417_v29 = vmul.u32.u64.high %v4695_v2, %v4690_v32, %v10416_v14  ;;  %vm7883_vm8 = vcmp.lt.s32.totalorder %v7882_v61, 0 }
 0x359   : > { %v4694_v51 = vsel %vm4680_vm7, %v4691_v9, %v4693_v26  ;;  %v4962_v3 = vand.u32 2139095040, %v10395_v7  ;;  %v4822_v52 = vsel %vm7883_vm8, 0, %v7882_v61  ;;  %v4838_v1 = vsel %vm4753_vm2, %v4837_v63, %v10372_v13 }
 0x35a   : > { %v10427_v30 = vmul.u32.u64.low %v4695_v2, %v4694_v51  ;;  %v10428_v38 = vmul.u32.u64.high %v4695_v2, %v4694_v51, %v10427_v30  ;;  %v4823_v22 = vsub.s32 32, %v4822_v52  ;;  %v4827_v4 = vsub.s32 4294967266, %v4822_v52 }
 0x35b   : > { %v4686_v44 = vsel %vm4680_vm7, %v4683_v16, %v4685_v54  ;;  %v4963_v25 = vshrl.u32 %v4962_v3, 23  ;;  %v4533_v20 = vand.u32 3, %v4532_v59  ;;  %v4705_v58 = vadd.s32 1, %v10417_v29 }
 0x35c   : > { %v4959_v15 = vand.u32 2147483647, %v10395_v7  ;;  %v4173_v60 = vmul.f32 %v10267_v53, %v4024_v28  ;;  %v4824_v10 = vshll.u32 %v10385_v11, %v4822_v52  ;;  %v4825_v47 = vshrl.u32 %v4807_v0, %v4823_v22 }
 0x35d   : > { %v4828_v18 = vadd.s32 127, %v4827_v4  ;;  %v7888_v13 = vadd.s32 4294967169, %v4963_v25  ;;  %v4840_v35 = vsel %vm10406_vm5, 0, %v4838_v1  ;;  %v4702_v21 = vmul.u32 %v4695_v2, %v4686_v44 }
 0x35e   : > { %vm4704_vm9 = vc.u32 %v10428_v38, %v10416_v14  ;;  %v4826_v5 = vor.u32 %v4825_v47, %v4824_v10  ;;  %v4966_v56 = vand.u32 8388607, %v4959_v15  ;;  %v10443_v11 = vadd.f32 %v10287_v46, %v4173_v60 }
 0x35f   : > { %v4829_v17 = vshll.u32 %v4828_v18, 23  ;;  %v4706_v59 = vsel %vm4704_vm9, %v4705_v58, %v10417_v29  ;;  %v4969_v42 = vadd.s32 1, %v7888_v13  ;;  %vm4535_vm10 = vcmp.eq.s32.totalorder %v4533_v20, 0 }
 0x360   : > { %v4707_v12 = vadd.s32 %v4706_v59, %v4702_v21  ;;  %vm4538_vm11 = vcmp.eq.s32.totalorder %v4533_v20, 2  ;;  %v4844_v23 = vadd.s32 3, %v4840_v35  ;;  %v4833_v31 = vcvt.s32.f32 %v4826_v5 }
 0x361   : > { %v8400_v24 = vpop.eup %8399  ;;  %v4830_v49 = vor.u32 4788187, %v4829_v17  ;;  %vm4970_vm12 = vcmp.gt.s32.totalorder %v4969_v42, 0  ;;  %v4967_v16 = vor.u32 8388608, %v4966_v56  ;;  %v4858_v32 = vand.u32 2139095040, %v10443_v11 }
 0x362   : > { %v8402_v2 = vpop.eup %8401  ;;  %v4539_v55 = vxor.u32 2147483648, %v8400_v24  ;;  %v4708_v8 = vadd.s32 536870912, %v4707_v12  ;;  %v4971_v57 = vsel %vm4970_vm12, %v4969_v42, 0  ;;  %vm4534_vm13 = vcmp.lt.s32.totalorder %v4533_v20, 2 }
 0x363   : > { %v4536_v62 = vxor.u32 2147483648, %v8402_v2  ;;  %v4831_v36 = vand.u32 2147483647, %v4830_v49  ;;  %v4973_v63 = vand.u32 31, %v4971_v57  ;;  %vm4531_vm15 = vweird.f32 %v10144_v48 }
 0x364   : > { %v4540_v9 = vsel %vm4538_vm11, %v4539_v55, %v8402_v2  ;;  %v10445_v61 = vshrl.u32 %v4708_v8, 30  ;;  %v10452_v51 = vmul.f32 %v10267_v53, %v4039_v6  ;;  %v10454_v52 = vand.u32 3, %v4844_v23 }
 0x365   : > { %v4537_v45 = vsel %vm4535_vm10, %v8400_v24, %v4536_v62  ;;  %v4834_v54 = vmul.f32 %v4833_v31, %v4831_v36  ;;  %v4974_v26 = vsub.s32 32, %v4973_v63  ;;  %v10461_v4 = vshll.u32 %v4967_v16, 8 }
 0x366   : > { %v4541_v29 = vsel %vm4534_vm13, %v4537_v45, %v4540_v9  ;;  %v4710_v0 = vshll.u32 %v10445_v61, 30  ;;  %v4859_v48 = vshrl.u32 %v4858_v32, 23  ;;  %v4972_v25 = vshrl.u32 %v4971_v57, 5 }
 0x367   : > { %v4542_v3 = vsel %vm4531_vm15, nan, %v4541_v29  ;;  %v4835_v28 = vxor.u32 2147483648, %v4834_v54  ;;  %v4977_v1 = vshrl.u32 %v8708_v37, %v4974_v26  ;;  %v4980_v22 = vshrl.u32 %v8709_v39, %v4974_v26 }
 0x368   : > { %7564 = vst [vmem:[%s9190_s23 + $0x28] sm:$0xff] %v4542_v3  ;;  %v10458_v30 = vsub.s32 %v4707_v12, %v4710_v0  ;;  %v4976_v20 = vshll.u32 %v8707_v33, %v4973_v63  ;;  %v4983_v58 = vshrl.u32 %v8710_v41, %v4974_v26  ;;  %v4979_v47 = vshll.u32 %v8708_v37, %v4973_v63 }
 0x369   : > { %v4836_v44 = vsel %vm4753_vm2, %v4835_v28, %v4834_v54  ;;  %v4982_v18 = vshll.u32 %v8709_v39, %v4973_v63  ;;  %v4985_v35 = vshll.u32 %v8710_v41, %v4973_v63  ;;  %v4986_v21 = vshrl.u32 %v8711_v43, %v4974_v26 }
 0x36a   : > { %v4839_v60 = vsel %vm10406_vm5, %v10199_v40, %v4836_v44  ;;  %v4713_v10 = vsub.s32 0, %v10458_v30  ;;  %v4978_v13 = vor.u32 %v4977_v1, %v4976_v20  ;;  %v4981_v17 = vor.u32 %v4980_v22, %v4979_v47 }
 0x36b   : > { %8403 = vcosq.f32 %v4839_v60  ;;  %v4984_v59 = vor.u32 %v4983_v58, %v4982_v18  ;;  %v4987_v42 = vor.u32 %v4986_v21, %v4985_v35  ;;  %v4988_v34 = vshll.u32 %v8711_v43, %v4973_v63 }
 0x36c   : > { %8405 = vsinq.f32 %v4839_v60  ;;  %v7877_v5 = vmin.u32 %v4713_v10, %v10458_v30  ;;  %v4989_v12 = vshrl.u32 %v8712_v50, %v4974_v26  ;;  %v4855_v56 = vand.u32 2147483647, %v10443_v11 }
 0x36d   : > { %v4975_v49 = vshrl.u32 %v8707_v33, %v4974_v26  ;;  %vm4991_vm14 = vcmp.lt.s32.totalorder %v4972_v25, 1  ;;  %v7884_v2 = vadd.s32 4294967169, %v4859_v48  ;;  %vm4992_vm0 = vcmp.lt.s32.totalorder %v4972_v25, 2 }
 0x36e   : > { %v4715_v24 = vclz %v7877_v5  ;;  %v4990_v55 = vor.u32 %v4989_v12, %v4988_v34  ;;  %vm4993_vm1 = vcmp.lt.s32.totalorder %v4972_v25, 3  ;;  %vm4994_vm2 = vcmp.lt.s32.totalorder %v4972_v25, 4 }
 0x36f   : > { %vm4649_vm3 = vcmp.lt.s32.totalorder %v10290_v19, 0  ;;  %v4996_v8 = vsel %vm4994_vm2, %v4984_v59, 2102212464  ;;  %v4999_v57 = vsel %vm4991_vm14, %v4978_v13, %v4981_v17  ;;  %v5000_v62 = vsel %vm4994_vm2, %v4987_v42, 920167782 }
 0x370   : > { %v7878_v23 = vadd.s32 4294967294, %v4715_v24  ;;  %v4995_v36 = vsel %vm4991_vm14, %v4975_v49, %v4978_v13  ;;  %v5001_v31 = vsel %vm4993_vm1, %v4984_v59, %v5000_v62  ;;  %v5003_v63 = vsel %vm4991_vm14, %v4981_v17, %v4984_v59 }
 0x371   : > { %v5004_v6 = vsel %vm4994_vm2, %v4990_v55, 1326507024  ;;  %v4997_v9 = vsel %vm4993_vm1, %v4981_v17, %v4996_v8  ;;  %v5002_v16 = vsel %vm4992_vm0, %v4999_v57, %v5001_v31  ;;  %vm10484_vm5 = vcmp.le.f32.partialorder %v4647_v27, 0.7853982 }
 0x372   : > { %vm7879_vm4 = vcmp.lt.s32.totalorder %v7878_v23, 0  ;;  %v5005_v32 = vsel %vm4993_vm1, %v4987_v42, %v5004_v6  ;;  %v10490_v29 = vmul.u32.u64.low %v10461_v4, %v5002_v16  ;;  %v10491_v0 = vmul.u32.u64.high %v10461_v4, %v5002_v16, %v10490_v29 }
 0x373   : > { %v4718_v54 = vsel %vm7879_vm4, 0, %v7878_v23  ;;  %v5006_v26 = vsel %vm4992_vm0, %v5003_v63, %v5005_v32  ;;  %vm4846_vm6 = vcmp.lt.s32.totalorder %v10454_v52, 2  ;;  %v4703_v3 = vadd.s32 %v10416_v14, %v10428_v38 }
 0x374   : > { %v4719_v28 = vsub.s32 32, %v4718_v54  ;;  %v4723_v1 = vsub.s32 4294967266, %v4718_v54  ;;  %vm4843_vm7 = vweird.f32 %v10199_v40  ;;  %v4733_v27 = vsub.s32 4, %v10445_v61 }
 0x375   : > { %v10500_v22 = vmul.u32.u64.low %v10461_v4, %v5006_v26  ;;  %v10501_v48 = vmul.u32.u64.high %v10461_v4, %v5006_v26, %v10500_v22  ;;  %v4865_v44 = vadd.s32 1, %v7884_v2  ;;  %v4720_v20 = vshll.u32 %v10458_v30, %v4718_v54 }
 0x376   : > { %v4721_v58 = vshrl.u32 %v4703_v3, %v4719_v28  ;;  %v4724_v60 = vadd.s32 127, %v4723_v1  ;;  %v4998_v10 = vsel %vm4992_vm0, %v4995_v36, %v4997_v9  ;;  %vm4847_vm8 = vcmp.eq.s32.totalorder %v10454_v52, 0 }
 0x377   : > { %v5017_v14 = vadd.s32 1, %v10491_v0  ;;  %v4862_v38 = vand.u32 8388607, %v4855_v56  ;;  %vm4866_vm9 = vcmp.gt.s32.totalorder %v4865_v44, 0  ;;  %vm4850_vm10 = vcmp.eq.s32.totalorder %v10454_v52, 2 }
 0x378   : > { %v8404_v47 = vpop.eup %8403  ;;  %v4722_v18 = vor.u32 %v4721_v58, %v4720_v20  ;;  %v4725_v13 = vshll.u32 %v4724_v60, 23  ;;  %v4867_v35 = vsel %vm4866_vm9, %v4865_v44, 0  ;;  %v4734_v25 = vsel %vm4649_vm3, %v4733_v27, %v10445_v61 }
 0x379   : > { %v8406_v21 = vpop.eup %8405  ;;  %v4851_v30 = vxor.u32 2147483648, %v8404_v47  ;;  %v5014_v5 = vmul.u32 %v10461_v4, %v4998_v10  ;;  %vm5016_vm11 = vc.u32 %v10501_v48, %v10490_v29  ;;  %v10519_v34 = vadd.f32 %v10287_v46, %v10452_v51 }
 0x37a   : > { %v4848_v17 = vxor.u32 2147483648, %v8406_v21  ;;  %v4726_v59 = vor.u32 4788187, %v4725_v13  ;;  %v5018_v42 = vsel %vm5016_vm11, %v5017_v14, %v10491_v0  ;;  %v4863_v49 = vor.u32 8388608, %v4862_v38 }
 0x37b   : > { %v4852_v12 = vsel %vm4850_vm10, %v4851_v30, %v8406_v21  ;;  %v5019_v24 = vadd.s32 %v5018_v42, %v5014_v5  ;;  %v4869_v2 = vand.u32 31, %v4867_v35  ;;  %v4729_v55 = vcvt.s32.f32 %v4722_v18 }
 0x37c   : > { %v4849_v61 = vsel %vm4847_vm8, %v8404_v47, %v4848_v17  ;;  %v4727_v4 = vand.u32 2147483647, %v4726_v59  ;;  %v4736_v23 = vsel %vm10484_vm5, 0, %v4734_v25  ;;  %v10527_v62 = vshrl.u32 %v4867_v35, 5 }
 0x37d   : > { %v4853_v8 = vsel %vm4846_vm6, %v4849_v61, %v4852_v12  ;;  %v5020_v57 = vadd.s32 536870912, %v5019_v24  ;;  %v4870_v51 = vsub.s32 32, %v4869_v2  ;;  %v4872_v63 = vshll.u32 %v8707_v33, %v4869_v2 }
 0x37e   : > { %v4854_v36 = vsel %vm4843_vm7, nan, %v4853_v8  ;;  %v4730_v31 = vmul.f32 %v4729_v55, %v4727_v4  ;;  %v4875_v6 = vshll.u32 %v8708_v37, %v4869_v2  ;;  %v4878_v32 = vshll.u32 %v8709_v39, %v4869_v2 }
 0x37f   : > { %7570 = vst [vmem:[%s9190_s23 + $0x58] sm:$0xff] %v4854_v36  ;;  %v10534_v9 = vshrl.u32 %v5020_v57, 30  ;;  %v4873_v16 = vshrl.u32 %v8708_v37, %v4870_v51  ;;  %v4876_v52 = vshrl.u32 %v8709_v39, %v4870_v51  ;;  %v4879_v26 = vshrl.u32 %v8710_v41, %v4870_v51 }
 0x380   : > { %v4731_v54 = vxor.u32 2147483648, %v4730_v31  ;;  %v4881_v40 = vshll.u32 %v8710_v41, %v4869_v2  ;;  %v4882_v0 = vshrl.u32 %v8711_v43, %v4870_v51  ;;  %v4740_v3 = vadd.s32 3, %v4736_v23 }
 0x381   : > { %v5022_v28 = vshll.u32 %v10534_v9, 30  ;;  %v4874_v1 = vor.u32 %v4873_v16, %v4872_v63  ;;  %v4877_v22 = vor.u32 %v4876_v52, %v4875_v6  ;;  %v4880_v44 = vor.u32 %v4879_v26, %v4878_v32 }
 0x382   : > { %v4732_v27 = vsel %vm4649_vm3, %v4731_v54, %v4730_v31  ;;  %v4883_v20 = vor.u32 %v4882_v0, %v4881_v40  ;;  %v4884_v10 = vshll.u32 %v8711_v43, %v4869_v2  ;;  %v4885_v14 = vshrl.u32 %v8712_v50, %v4870_v51 }
 0x383   : > { %v4735_v58 = vsel %vm10484_vm5, %v10290_v19, %v4732_v27  ;;  %v10548_v60 = vsub.s32 %v5019_v24, %v5022_v28  ;;  %vm4887_vm12 = vcmp.lt.s32.totalorder %v10527_v62, 1  ;;  %v4903_v38 = vshll.u32 %v4863_v49, 8 }
 0x384   : > { %8407 = vcosq.f32 %v4735_v58  ;;  %v5170_v47 = vand.u32 2139095040, %v10519_v34  ;;  %v4886_v13 = vor.u32 %v4885_v14, %v4884_v10  ;;  %vm4890_vm13 = vcmp.lt.s32.totalorder %v10527_v62, 4 }
 0x385   : > { %8409 = vsinq.f32 %v4735_v58  ;;  %v5025_v18 = vsub.s32 0, %v10548_v60  ;;  %vm4888_vm15 = vcmp.lt.s32.totalorder %v10527_v62, 2  ;;  %vm4889_vm14 = vcmp.lt.s32.totalorder %v10527_v62, 3 }
 0x386   : > { %v4895_v45 = vsel %vm4887_vm12, %v4874_v1, %v4877_v22  ;;  %v4896_v35 = vsel %vm4890_vm13, %v4883_v20, 920167782  ;;  %v4871_v30 = vshrl.u32 %v8707_v33, %v4870_v51  ;;  %v4892_v25 = vsel %vm4890_vm13, %v4880_v44, 2102212464 }
 0x387   : > { %v7889_v21 = vmin.u32 %v5025_v18, %v10548_v60  ;;  %v4897_v5 = vsel %vm4889_vm14, %v4880_v44, %v4896_v35  ;;  %v4899_v59 = vsel %vm4887_vm12, %v4877_v22, %v4880_v44  ;;  %v4900_v42 = vsel %vm4890_vm13, %v4886_v13, 1326507024 }
 0x388   : > { %v4898_v17 = vsel %vm4888_vm15, %v4895_v45, %v4897_v5  ;;  %v5171_v12 = vshrl.u32 %v5170_v47, 23  ;;  %v4741_v24 = vand.u32 3, %v4740_v3  ;;  %v4891_v2 = vsel %vm4887_vm12, %v4871_v30, %v4874_v1 }
 0x389   : > { %v5027_v49 = vclz %v7889_v21  ;;  %v4893_v61 = vsel %vm4889_vm14, %v4877_v22, %v4892_v25  ;;  %v4901_v4 = vsel %vm4889_vm14, %v4883_v20, %v4900_v42  ;;  %vm10576_vm0 = vcmp.le.f32.partialorder %v4959_v15, 0.7853982 }
 0x38a   : > { %v10568_v55 = vmul.u32.u64.low %v4903_v38, %v4898_v17  ;;  %v10569_v23 = vmul.u32.u64.high %v4903_v38, %v4898_v17, %v10568_v55  ;;  %v4902_v57 = vsel %vm4888_vm15, %v4899_v59, %v4901_v4  ;;  %v7896_v51 = vadd.s32 4294967169, %v5171_v12 }
 0x38b   : > { %v7890_v8 = vadd.s32 4294967294, %v5027_v49  ;;  %v5045_v31 = vsub.s32 4, %v10534_v9  ;;  %v10581_v63 = vmul.u32.u64.low %v4903_v38, %v4902_v57  ;;  %v10582_v6 = vmul.u32.u64.high %v4903_v38, %v4902_v57, %v10581_v63 }
 0x38c   : > { %vm4961_vm1 = vcmp.lt.s32.totalorder %v10395_v7, 0  ;;  %v4894_v16 = vsel %vm4888_vm15, %v4891_v2, %v4893_v61  ;;  %v5177_v52 = vadd.s32 1, %v7896_v51  ;;  %vm4739_vm3 = vweird.f32 %v10290_v19 }
 0x38d   : > { %vm7891_vm2 = vcmp.lt.s32.totalorder %v7890_v8, 0  ;;  %vm4742_vm4 = vcmp.lt.s32.totalorder %v4741_v24, 2  ;;  %v4913_v15 = vadd.s32 1, %v10569_v23  ;;  %v5167_v54 = vand.u32 2147483647, %v10519_v34 }
 0x38e   : > { %v5030_v32 = vsel %vm7891_vm2, 0, %v7890_v8  ;;  %v5015_v26 = vadd.s32 %v10490_v29, %v10501_v48  ;;  %vm5178_vm5 = vcmp.gt.s32.totalorder %v5177_v52, 0  ;;  %v5046_v62 = vsel %vm4961_vm1, %v5045_v31, %v10534_v9  ;;  %v4035_v9 = vpop.permute.xlu0 %4034 }
 0x38f   : > { %v5031_v40 = vsub.s32 32, %v5030_v32  ;;  %v5035_v0 = vsub.s32 4294967266, %v5030_v32  ;;  %v4910_v3 = vmul.u32 %v4903_v38, %v4894_v16  ;;  %vm4912_vm6 = vc.u32 %v10582_v6, %v10568_v55 }
 0x390   : > { %v5179_v28 = vsel %vm5178_vm5, %v5177_v52, 0  ;;  %v5032_v27 = vshll.u32 %v10548_v60, %v5030_v32  ;;  %v4914_v20 = vsel %vm4912_vm6, %v4913_v15, %v10569_v23  ;;  %v5174_v10 = vand.u32 8388607, %v5167_v54 }
 0x391   : > { %v8408_v1 = vpop.eup %8407  ;;  %v5033_v22 = vshrl.u32 %v5015_v26, %v5031_v40  ;;  %v5036_v44 = vadd.s32 127, %v5035_v0  ;;  %v4915_v58 = vadd.s32 %v4914_v20, %v4910_v3  ;;  %v5181_v14 = vand.u32 31, %v5179_v28 }
 0x392   : > { %v8410_v29 = vpop.eup %8409  ;;  %v4747_v48 = vxor.u32 2147483648, %v8408_v1  ;;  %vm4746_vm7 = vcmp.eq.s32.totalorder %v4741_v24, 2  ;;  %vm4743_vm8 = vcmp.eq.s32.totalorder %v4741_v24, 0  ;;  %v5048_v30 = vsel %vm10576_vm0, 0, %v5046_v62 }
 0x393   : > { %v4744_v38 = vxor.u32 2147483648, %v8410_v29  ;;  %v5034_v47 = vor.u32 %v5033_v22, %v5032_v27  ;;  %v5037_v18 = vshll.u32 %v5036_v44, 23  ;;  %v4916_v60 = vadd.s32 536870912, %v4915_v58 }
 0x394   : > { %v4748_v13 = vsel %vm4746_vm7, %v4747_v48, %v8410_v29  ;;  %v5182_v45 = vsub.s32 32, %v5181_v14  ;;  %v4175_v25 = vmul.f32 %v10267_v53, %v4035_v9  ;;  %v5175_v59 = vor.u32 8388608, %v5174_v10 }
 0x395   : > { %v4745_v35 = vsel %vm4743_vm8, %v8408_v1, %v4744_v38  ;;  %v5038_v21 = vor.u32 4788187, %v5037_v18  ;;  %v10605_v17 = vshrl.u32 %v4916_v60, 30  ;;  %v5041_v2 = vcvt.s32.f32 %v5034_v47 }
 0x396   : > { %v4749_v5 = vsel %vm4742_vm4, %v4745_v35, %v4748_v13  ;;  %v5185_v42 = vshrl.u32 %v8708_v37, %v5182_v45  ;;  %v5188_v61 = vshrl.u32 %v8709_v39, %v5182_v45  ;;  %v5180_v23 = vshrl.u32 %v5179_v28, 5 }
 0x397   : > { %v4750_v12 = vsel %vm4739_vm3, nan, %v4749_v5  ;;  %v5039_v49 = vand.u32 2147483647, %v5038_v21  ;;  %v4918_v4 = vshll.u32 %v10605_v17, 30  ;;  %v5184_v53 = vshll.u32 %v8707_v33, %v5181_v14 }
 0x398   : > { %7568 = vst [vmem:[%s9190_s23 + $0x48] sm:$0xff] %v4750_v12  ;;  %v5191_v24 = vshrl.u32 %v8710_v41, %v5182_v45  ;;  %v5187_v57 = vshll.u32 %v8708_v37, %v5181_v14  ;;  %v5193_v51 = vshll.u32 %v8710_v41, %v5181_v14  ;;  %v5194_v19 = vshrl.u32 %v8711_v43, %v5182_v45 }
 0x399   : > { %v5042_v8 = vmul.f32 %v5041_v2, %v5039_v49  ;;  %v10618_v31 = vsub.s32 %v4915_v58, %v4918_v4  ;;  %v5186_v63 = vor.u32 %v5185_v42, %v5184_v53  ;;  %v5190_v16 = vshll.u32 %v8709_v39, %v5181_v14 }
 0x39a   : > { %v5189_v32 = vor.u32 %v5188_v61, %v5187_v57  ;;  %v5195_v15 = vor.u32 %v5194_v19, %v5193_v51  ;;  %v5197_v26 = vshrl.u32 %v8712_v50, %v5182_v45  ;;  %v5052_v40 = vadd.s32 3, %v5048_v30  ;;  %v10669_v57 = vld [vmem:[%s13942_s2] ss:$0 sm:$0xff] }
 0x39b   : > { %v5043_v52 = vxor.u32 2147483648, %v5042_v8  ;;  %vm4857_vm9 = vcmp.lt.s32.totalorder %v10443_v11, 0  ;;  %v4921_v0 = vsub.s32 0, %v10618_v31  ;;  %v5192_v62 = vor.u32 %v5191_v24, %v5190_v16 }
 0x39c   : > { %v5196_v3 = vshll.u32 %v8711_v43, %v5181_v14  ;;  %vm5199_vm10 = vcmp.lt.s32.totalorder %v5180_v23, 1  ;;  %v5215_v1 = vshll.u32 %v5175_v59, 8  ;;  %v10628_v27 = vadd.f32 %v10287_v46, %v4175_v25  ;;  %v4050_v59 = vpop.permute.xlu1 %4049 }
 0x39d   : > { %v5044_v28 = vsel %vm4961_vm1, %v5043_v52, %v5042_v8  ;;  %v7885_v44 = vmin.u32 %v4921_v0, %v10618_v31  ;;  %vm5202_vm11 = vcmp.lt.s32.totalorder %v5180_v23, 4  ;;  %v5183_v29 = vshrl.u32 %v8707_v33, %v5182_v45 }
 0x39e   : > { %v5047_v22 = vsel %vm10576_vm0, %v10395_v7, %v5044_v28  ;;  %v5198_v20 = vor.u32 %v5197_v26, %v5196_v3  ;;  %v5207_v48 = vsel %vm5199_vm10, %v5186_v63, %v5189_v32  ;;  %v5208_v58 = vsel %vm5202_vm11, %v5195_v15, 920167782 }
 0x39f   : > { %8411 = vcosq.f32 %v5047_v22  ;;  %vm10639_vm12 = vcmp.le.f32.partialorder %v4855_v56, 0.7853982  ;;  %v4923_v36 = vclz %v7885_v44  ;;  %vm5201_vm13 = vcmp.lt.s32.totalorder %v5180_v23, 3 }
 0x3a0   : > { %8413 = vsinq.f32 %v5047_v22  ;;  %v5204_v10 = vsel %vm5202_vm11, %v5192_v62, 2102212464  ;;  %v4941_v14 = vsub.s32 4, %v10605_v17  ;;  %vm5200_vm15 = vcmp.lt.s32.totalorder %v5180_v23, 2 }
 0x3a1   : > { %v5209_v9 = vsel %vm5201_vm13, %v5192_v62, %v5208_v58  ;;  %v5211_v38 = vsel %vm5199_vm10, %v5189_v32, %v5192_v62  ;;  %v7886_v47 = vadd.s32 4294967294, %v4923_v36  ;;  %v5203_v18 = vsel %vm5199_vm10, %v5183_v29, %v5186_v63 }
 0x3a2   : > { %v5210_v13 = vsel %vm5200_vm15, %v5207_v48, %v5209_v9  ;;  %v5212_v56 = vsel %vm5202_vm11, %v5198_v20, 1326507024  ;;  %v5205_v60 = vsel %vm5201_vm13, %v5189_v32, %v5204_v10  ;;  %v4911_v30 = vadd.s32 %v10568_v55, %v10582_v6  ;;  %v4046_v9 = vpop.permute.xlu0 %4045 }
 0x3a3   : > { %v5213_v45 = vsel %vm5201_vm13, %v5195_v15, %v5212_v56  ;;  %v10649_v35 = vmul.u32.u64.low %v5215_v1, %v5210_v13  ;;  %v10650_v21 = vmul.u32.u64.high %v5215_v1, %v5210_v13, %v10649_v35  ;;  %vm7887_vm14 = vcmp.lt.s32.totalorder %v7886_v47, 0 }
 0x3a4   : > { %v5214_v25 = vsel %vm5200_vm15, %v5211_v38, %v5213_v45  ;;  %v5066_v5 = vand.u32 2139095040, %v10628_v27  ;;  %v4926_v42 = vsel %vm7887_vm14, 0, %v7886_v47  ;;  %v4942_v12 = vsel %vm4857_vm9, %v4941_v14, %v10605_v17 }
 0x3a5   : > { %v10660_v49 = vmul.u32.u64.low %v5215_v1, %v5214_v25  ;;  %v10661_v2 = vmul.u32.u64.high %v5215_v1, %v5214_v25, %v10660_v49  ;;  %v4927_v61 = vsub.s32 32, %v4926_v42  ;;  %v4931_v4 = vsub.s32 4294967266, %v4926_v42 }
 0x3a6   : > { %v5206_v53 = vsel %vm5200_vm15, %v5203_v18, %v5205_v60  ;;  %v5067_v24 = vshrl.u32 %v5066_v5, 23  ;;  %v5053_v55 = vand.u32 3, %v5052_v40  ;;  %v5225_v6 = vadd.s32 1, %v10650_v21 }
 0x3a7   : > { %v5063_v8 = vand.u32 2147483647, %v10628_v27  ;;  %v4178_v17 = vmul.f32 %v10669_v57, %v4050_v59  ;;  %v4928_v51 = vshll.u32 %v10618_v31, %v4926_v42  ;;  %v4929_v19 = vshrl.u32 %v4911_v30, %v4927_v61  ;;  %v10683_v31 = vld [vmem:[%s13943_s3] ss:$0 sm:$0xff] }
 0x3a8   : > { %v4932_v63 = vadd.s32 127, %v4931_v4  ;;  %v7892_v16 = vadd.s32 4294967169, %v5067_v24  ;;  %v4944_v23 = vsel %vm10639_vm12, 0, %v4942_v12  ;;  %v5222_v52 = vmul.u32 %v5215_v1, %v5206_v53 }
 0x3a9   : > { %vm5224_vm0 = vc.u32 %v10661_v2, %v10649_v35  ;;  %v4930_v32 = vor.u32 %v4929_v19, %v4928_v51  ;;  %v5070_v62 = vand.u32 8388607, %v5063_v8  ;;  %v10686_v3 = vadd.f32 %v10683_v31, %v4178_v17 }
 0x3aa   : > { %v4933_v15 = vshll.u32 %v4932_v63, 23  ;;  %v5226_v26 = vsel %vm5224_vm0, %v5225_v6, %v10650_v21  ;;  %v5073_v40 = vadd.s32 1, %v7892_v16  ;;  %vm5055_vm1 = vcmp.eq.s32.totalorder %v5053_v55, 0 }
 0x3ab   : > { %v5227_v0 = vadd.s32 %v5226_v26, %v5222_v52  ;;  %vm5058_vm2 = vcmp.eq.s32.totalorder %v5053_v55, 2  ;;  %v4948_v20 = vadd.s32 3, %v4944_v23  ;;  %v4937_v10 = vcvt.s32.f32 %v4930_v32 }
 0x3ac   : > { %v8412_v28 = vpop.eup %8411  ;;  %v4934_v1 = vor.u32 4788187, %v4933_v15  ;;  %vm5074_vm3 = vcmp.gt.s32.totalorder %v5073_v40, 0  ;;  %v5071_v18 = vor.u32 8388608, %v5070_v62  ;;  %v5378_v13 = vand.u32 2139095040, %v10686_v3 }
 0x3ad   : > { %v8414_v22 = vpop.eup %8413  ;;  %v5059_v44 = vxor.u32 2147483648, %v8412_v28  ;;  %v5228_v29 = vadd.s32 536870912, %v5227_v0  ;;  %v5075_v48 = vsel %vm5074_vm3, %v5073_v40, 0  ;;  %vm5054_vm4 = vcmp.lt.s32.totalorder %v5053_v55, 2 }
 0x3ae   : > { %v5056_v58 = vxor.u32 2147483648, %v8414_v22  ;;  %v4935_v36 = vand.u32 2147483647, %v4934_v1  ;;  %v5077_v14 = vand.u32 31, %v5075_v48  ;;  %vm5051_vm5 = vweird.f32 %v10395_v7 }
 0x3af   : > { %v5060_v38 = vsel %vm5058_vm2, %v5059_v44, %v8414_v22  ;;  %v10688_v47 = vshrl.u32 %v5228_v29, 30  ;;  %v10695_v25 = vmul.f32 %v10669_v57, %v4046_v9  ;;  %v10697_v42 = vand.u32 3, %v4948_v20 }
 0x3b0   : > { %v5057_v56 = vsel %vm5055_vm1, %v8412_v28, %v5056_v58  ;;  %v4938_v60 = vmul.f32 %v4937_v10, %v4935_v36  ;;  %v5078_v45 = vsub.s32 32, %v5077_v14  ;;  %v10704_v4 = vshll.u32 %v5071_v18, 8 }
 0x3b1   : > { %v5061_v21 = vsel %vm5054_vm4, %v5057_v56, %v5060_v38  ;;  %v5230_v30 = vshll.u32 %v10688_v47, 30  ;;  %v5379_v7 = vshrl.u32 %v5378_v13, 23  ;;  %v5076_v24 = vshrl.u32 %v5075_v48, 5 }
 0x3b2   : > { %v5062_v5 = vsel %vm5051_vm5, nan, %v5061_v21  ;;  %v4939_v59 = vxor.u32 2147483648, %v4938_v60  ;;  %v5081_v12 = vshrl.u32 %v8708_v37, %v5078_v45  ;;  %v5084_v61 = vshrl.u32 %v8709_v39, %v5078_v45 }
 0x3b3   : > { %7574 = vst [vmem:[%s9190_s23 + $0x78] sm:$0xff] %v5062_v5  ;;  %v10701_v49 = vsub.s32 %v5227_v0, %v5230_v30  ;;  %v5080_v55 = vshll.u32 %v8707_v33, %v5077_v14  ;;  %v5087_v6 = vshrl.u32 %v8710_v41, %v5078_v45  ;;  %v5083_v19 = vshll.u32 %v8708_v37, %v5077_v14 }
 0x3b4   : > { %v4940_v53 = vsel %vm4857_vm9, %v4939_v59, %v4938_v60  ;;  %v5086_v63 = vshll.u32 %v8709_v39, %v5077_v14  ;;  %v5089_v23 = vshll.u32 %v8710_v41, %v5077_v14  ;;  %v5090_v52 = vshrl.u32 %v8711_v43, %v5078_v45 }
 0x3b5   : > { %v4943_v17 = vsel %vm10639_vm12, %v10443_v11, %v4940_v53  ;;  %v5233_v51 = vsub.s32 0, %v10701_v49  ;;  %v5082_v16 = vor.u32 %v5081_v12, %v5080_v55  ;;  %v5085_v15 = vor.u32 %v5084_v61, %v5083_v19 }
 0x3b6   : > { %8415 = vcosq.f32 %v4943_v17  ;;  %v5088_v26 = vor.u32 %v5087_v6, %v5086_v63  ;;  %v5091_v40 = vor.u32 %v5090_v52, %v5089_v23  ;;  %v5092_v46 = vshll.u32 %v8711_v43, %v5077_v14 }
 0x3b7   : > { %8417 = vsinq.f32 %v4943_v17  ;;  %v7897_v32 = vmin.u32 %v5233_v51, %v10701_v49  ;;  %v5093_v0 = vshrl.u32 %v8712_v50, %v5078_v45  ;;  %v5375_v62 = vand.u32 2147483647, %v10686_v3 }
 0x3b8   : > { %v5079_v1 = vshrl.u32 %v8707_v33, %v5078_v45  ;;  %vm5095_vm6 = vcmp.lt.s32.totalorder %v5076_v24, 1  ;;  %v7904_v22 = vadd.s32 4294967169, %v5379_v7  ;;  %vm5096_vm7 = vcmp.lt.s32.totalorder %v5076_v24, 2 }
 0x3b9   : > { %v5235_v28 = vclz %v7897_v32  ;;  %v5094_v44 = vor.u32 %v5093_v0, %v5092_v46  ;;  %vm5097_vm8 = vcmp.lt.s32.totalorder %v5076_v24, 3  ;;  %vm5098_vm9 = vcmp.lt.s32.totalorder %v5076_v24, 4 }
 0x3ba   : > { %vm5169_vm10 = vcmp.lt.s32.totalorder %v10519_v34, 0  ;;  %v5100_v29 = vsel %vm5098_vm9, %v5088_v26, 2102212464  ;;  %v5103_v48 = vsel %vm5095_vm6, %v5082_v16, %v5085_v15  ;;  %v5104_v58 = vsel %vm5098_vm9, %v5091_v40, 920167782 }
 0x3bb   : > { %v7898_v20 = vadd.s32 4294967294, %v5235_v28  ;;  %v5099_v36 = vsel %vm5095_vm6, %v5079_v1, %v5082_v16  ;;  %v5105_v10 = vsel %vm5097_vm8, %v5088_v26, %v5104_v58  ;;  %v5107_v14 = vsel %vm5095_vm6, %v5085_v15, %v5088_v26 }
 0x3bc   : > { %v5108_v9 = vsel %vm5098_vm9, %v5094_v44, 1326507024  ;;  %v5101_v38 = vsel %vm5097_vm8, %v5085_v15, %v5100_v29  ;;  %v5106_v18 = vsel %vm5096_vm7, %v5103_v48, %v5105_v10  ;;  %vm10727_vm12 = vcmp.le.f32.partialorder %v5167_v54, 0.7853982 }
 0x3bd   : > { %vm7899_vm11 = vcmp.lt.s32.totalorder %v7898_v20, 0  ;;  %v5109_v13 = vsel %vm5097_vm8, %v5091_v40, %v5108_v9  ;;  %v10733_v21 = vmul.u32.u64.low %v10704_v4, %v5106_v18  ;;  %v10734_v30 = vmul.u32.u64.high %v10704_v4, %v5106_v18, %v10733_v21 }
 0x3be   : > { %v5238_v60 = vsel %vm7899_vm11, 0, %v7898_v20  ;;  %v5110_v45 = vsel %vm5096_vm7, %v5107_v14, %v5109_v13  ;;  %vm4950_vm13 = vcmp.lt.s32.totalorder %v10697_v42, 2  ;;  %v5223_v5 = vadd.s32 %v10649_v35, %v10661_v2 }
 0x3bf   : > { %v5239_v59 = vsub.s32 32, %v5238_v60  ;;  %v5243_v12 = vsub.s32 4294967266, %v5238_v60  ;;  %vm4947_vm15 = vweird.f32 %v10443_v11  ;;  %v5253_v54 = vsub.s32 4, %v10688_v47 }
 0x3c0   : > { %v10743_v61 = vmul.u32.u64.low %v10704_v4, %v5110_v45  ;;  %v10744_v7 = vmul.u32.u64.high %v10704_v4, %v5110_v45, %v10743_v61  ;;  %v5385_v53 = vadd.s32 1, %v7904_v22  ;;  %v5240_v55 = vshll.u32 %v10701_v49, %v5238_v60 }
 0x3c1   : > { %v5241_v6 = vshrl.u32 %v5223_v5, %v5239_v59  ;;  %v5244_v17 = vadd.s32 127, %v5243_v12  ;;  %v5102_v51 = vsel %vm5096_vm7, %v5099_v36, %v5101_v38  ;;  %vm4951_vm14 = vcmp.eq.s32.totalorder %v10697_v42, 0 }
 0x3c2   : > { %v5121_v35 = vadd.s32 1, %v10734_v30  ;;  %v5382_v2 = vand.u32 8388607, %v5375_v62  ;;  %vm5386_vm0 = vcmp.gt.s32.totalorder %v5385_v53, 0  ;;  %vm4954_vm1 = vcmp.eq.s32.totalorder %v10697_v42, 2 }
 0x3c3   : > { %v8416_v19 = vpop.eup %8415  ;;  %v5242_v63 = vor.u32 %v5241_v6, %v5240_v55  ;;  %v5245_v16 = vshll.u32 %v5244_v17, 23  ;;  %v5387_v23 = vsel %vm5386_vm0, %v5385_v53, 0  ;;  %v5254_v24 = vsel %vm5169_vm10, %v5253_v54, %v10688_v47 }
 0x3c4   : > { %v8418_v52 = vpop.eup %8417  ;;  %v4955_v49 = vxor.u32 2147483648, %v8416_v19  ;;  %v5118_v32 = vmul.u32 %v10704_v4, %v5102_v51  ;;  %vm5120_vm2 = vc.u32 %v10744_v7, %v10733_v21  ;;  %v10762_v46 = vadd.f32 %v10683_v31, %v10695_v25 }
 0x3c5   : > { %v4952_v15 = vxor.u32 2147483648, %v8418_v52  ;;  %v5246_v26 = vor.u32 4788187, %v5245_v16  ;;  %v5122_v40 = vsel %vm5120_vm2, %v5121_v35, %v10734_v30  ;;  %v5383_v1 = vor.u32 8388608, %v5382_v2 }
 0x3c6   : > { %v4956_v0 = vsel %vm4954_vm1, %v4955_v49, %v8418_v52  ;;  %v5123_v28 = vadd.s32 %v5122_v40, %v5118_v32  ;;  %v5389_v22 = vand.u32 31, %v5387_v23  ;;  %v5249_v44 = vcvt.s32.f32 %v5242_v63 }
 0x3c7   : > { %v4953_v47 = vsel %vm4951_vm14, %v8416_v19, %v4952_v15  ;;  %v5247_v4 = vand.u32 2147483647, %v5246_v26  ;;  %v5256_v20 = vsel %vm10727_vm12, 0, %v5254_v24  ;;  %v10770_v58 = vshrl.u32 %v5387_v23, 5 }
 0x3c8   : > { %v4957_v29 = vsel %vm4950_vm13, %v4953_v47, %v4956_v0  ;;  %v5124_v48 = vadd.s32 536870912, %v5123_v28  ;;  %v5390_v25 = vsub.s32 32, %v5389_v22  ;;  %v5392_v14 = vshll.u32 %v8707_v33, %v5389_v22 }
 0x3c9   : > { %v4958_v36 = vsel %vm4947_vm15, nan, %v4957_v29  ;;  %v5250_v10 = vmul.f32 %v5249_v44, %v5247_v4  ;;  %v5395_v9 = vshll.u32 %v8708_v37, %v5389_v22  ;;  %v5398_v13 = vshll.u32 %v8709_v39, %v5389_v22 }
 0x3ca   : > { %7572 = vst [vmem:[%s9190_s23 + $0x68] sm:$0xff] %v4958_v36  ;;  %v10777_v38 = vshrl.u32 %v5124_v48, 30  ;;  %v5393_v18 = vshrl.u32 %v8708_v37, %v5390_v25  ;;  %v5396_v42 = vshrl.u32 %v8709_v39, %v5390_v25  ;;  %v5399_v45 = vshrl.u32 %v8710_v41, %v5390_v25 }
 0x3cb   : > { %v5251_v60 = vxor.u32 2147483648, %v5250_v10  ;;  %v5401_v11 = vshll.u32 %v8710_v41, %v5389_v22  ;;  %v5402_v30 = vshrl.u32 %v8711_v43, %v5390_v25  ;;  %v5260_v5 = vadd.s32 3, %v5256_v20 }
 0x3cc   : > { %v5126_v59 = vshll.u32 %v10777_v38, 30  ;;  %v5394_v12 = vor.u32 %v5393_v18, %v5392_v14  ;;  %v5397_v61 = vor.u32 %v5396_v42, %v5395_v9  ;;  %v5400_v53 = vor.u32 %v5399_v45, %v5398_v13 }
 0x3cd   : > { %v5252_v54 = vsel %vm5169_vm10, %v5251_v60, %v5250_v10  ;;  %v5403_v55 = vor.u32 %v5402_v30, %v5401_v11  ;;  %v5404_v51 = vshll.u32 %v8711_v43, %v5389_v22  ;;  %v5405_v35 = vshrl.u32 %v8712_v50, %v5390_v25 }
 0x3ce   : > { %v5255_v6 = vsel %vm10727_vm12, %v10519_v34, %v5252_v54  ;;  %v10791_v17 = vsub.s32 %v5123_v28, %v5126_v59  ;;  %vm5407_vm3 = vcmp.lt.s32.totalorder %v10770_v58, 1  ;;  %v5423_v2 = vshll.u32 %v5383_v1, 8 }
 0x3cf   : > { %8419 = vcosq.f32 %v5255_v6  ;;  %v5274_v19 = vand.u32 2139095040, %v10762_v46  ;;  %v5406_v16 = vor.u32 %v5405_v35, %v5404_v51  ;;  %vm5410_vm4 = vcmp.lt.s32.totalorder %v10770_v58, 4 }
 0x3d0   : > { %8421 = vsinq.f32 %v5255_v6  ;;  %v5129_v63 = vsub.s32 0, %v10791_v17  ;;  %vm5408_vm5 = vcmp.lt.s32.totalorder %v10770_v58, 2  ;;  %vm5409_vm6 = vcmp.lt.s32.totalorder %v10770_v58, 3 }
 0x3d1   : > { %v5415_v56 = vsel %vm5407_vm3, %v5394_v12, %v5397_v61  ;;  %v5416_v23 = vsel %vm5410_vm4, %v5403_v55, 920167782  ;;  %v5391_v49 = vshrl.u32 %v8707_v33, %v5390_v25  ;;  %v5412_v24 = vsel %vm5410_vm4, %v5400_v53, 2102212464 }
 0x3d2   : > { %v7893_v52 = vmin.u32 %v5129_v63, %v10791_v17  ;;  %v5417_v32 = vsel %vm5409_vm6, %v5400_v53, %v5416_v23  ;;  %v5419_v26 = vsel %vm5407_vm3, %v5397_v61, %v5400_v53  ;;  %v5420_v40 = vsel %vm5410_vm4, %v5406_v16, 1326507024 }
 0x3d3   : > { %v5418_v15 = vsel %vm5408_vm5, %v5415_v56, %v5417_v32  ;;  %v5275_v0 = vshrl.u32 %v5274_v19, 23  ;;  %v5261_v28 = vand.u32 3, %v5260_v5  ;;  %v5411_v22 = vsel %vm5407_vm3, %v5391_v49, %v5394_v12 }
 0x3d4   : > { %v5131_v1 = vclz %v7893_v52  ;;  %v5413_v47 = vsel %vm5409_vm6, %v5397_v61, %v5412_v24  ;;  %v5421_v4 = vsel %vm5409_vm6, %v5403_v55, %v5420_v40  ;;  %vm10819_vm7 = vcmp.le.f32.partialorder %v5063_v8, 0.7853982 }
 0x3d5   : > { %v10811_v44 = vmul.u32.u64.low %v5423_v2, %v5418_v15  ;;  %v10812_v20 = vmul.u32.u64.high %v5423_v2, %v5418_v15, %v10811_v44  ;;  %v5422_v48 = vsel %vm5408_vm5, %v5419_v26, %v5421_v4  ;;  %v7900_v25 = vadd.s32 4294967169, %v5275_v0 }
 0x3d6   : > { %v7894_v29 = vadd.s32 4294967294, %v5131_v1  ;;  %v5149_v10 = vsub.s32 4, %v10777_v38  ;;  %v10824_v14 = vmul.u32.u64.low %v5423_v2, %v5422_v48  ;;  %v10825_v9 = vmul.u32.u64.high %v5423_v2, %v5422_v48, %v10824_v14 }
 0x3d7   : > { %vm5065_vm8 = vcmp.lt.s32.totalorder %v10628_v27, 0  ;;  %v5414_v18 = vsel %vm5408_vm5, %v5411_v22, %v5413_v47  ;;  %v5281_v42 = vadd.s32 1, %v7900_v25  ;;  %vm5259_vm10 = vweird.f32 %v10519_v34 }
 0x3d8   : > { %vm7895_vm9 = vcmp.lt.s32.totalorder %v7894_v29, 0  ;;  %vm5262_vm11 = vcmp.lt.s32.totalorder %v5261_v28, 2  ;;  %v5433_v8 = vadd.s32 1, %v10812_v20  ;;  %v5271_v60 = vand.u32 2147483647, %v10762_v46 }
 0x3d9   : > { %v5134_v13 = vsel %vm7895_vm9, 0, %v7894_v29  ;;  %v5119_v45 = vadd.s32 %v10733_v21, %v10744_v7  ;;  %vm5282_vm12 = vcmp.gt.s32.totalorder %v5281_v42, 0  ;;  %v5150_v58 = vsel %vm5065_vm8, %v5149_v10, %v10777_v38  ;;  %v4061_v38 = vpop.permute.xlu1 %4060 }
 0x3da   : > { %v5135_v11 = vsub.s32 32, %v5134_v13  ;;  %v5139_v30 = vsub.s32 4294967266, %v5134_v13  ;;  %v5430_v5 = vmul.u32 %v5423_v2, %v5414_v18  ;;  %vm5432_vm13 = vc.u32 %v10825_v9, %v10811_v44 }
 0x3db   : > { %v5283_v59 = vsel %vm5282_vm12, %v5281_v42, 0  ;;  %v5136_v54 = vshll.u32 %v10791_v17, %v5134_v13  ;;  %v5434_v55 = vsel %vm5432_vm13, %v5433_v8, %v10812_v20  ;;  %v5278_v51 = vand.u32 8388607, %v5271_v60 }
 0x3dc   : > { %v8420_v12 = vpop.eup %8419  ;;  %v5137_v61 = vshrl.u32 %v5119_v45, %v5135_v11  ;;  %v5140_v53 = vadd.s32 127, %v5139_v30  ;;  %v5435_v6 = vadd.s32 %v5434_v55, %v5430_v5  ;;  %v5285_v35 = vand.u32 31, %v5283_v59 }
 0x3dd   : > { %v8422_v21 = vpop.eup %8421  ;;  %v5267_v7 = vxor.u32 2147483648, %v8420_v12  ;;  %vm5266_vm15 = vcmp.eq.s32.totalorder %v5261_v28, 2  ;;  %vm5263_vm14 = vcmp.eq.s32.totalorder %v5261_v28, 0  ;;  %v5152_v49 = vsel %vm10819_vm7, 0, %v5150_v58 }
 0x3de   : > { %v5264_v2 = vxor.u32 2147483648, %v8422_v21  ;;  %v5138_v19 = vor.u32 %v5137_v61, %v5136_v54  ;;  %v5141_v63 = vshll.u32 %v5140_v53, 23  ;;  %v5436_v17 = vadd.s32 536870912, %v5435_v6 }
 0x3df   : > { %v5268_v16 = vsel %vm5266_vm15, %v5267_v7, %v8422_v21  ;;  %v5286_v56 = vsub.s32 32, %v5285_v35  ;;  %v4180_v24 = vmul.f32 %v10669_v57, %v4061_v38  ;;  %v5279_v26 = vor.u32 8388608, %v5278_v51 }
 0x3e0   : > { %v5265_v23 = vsel %vm5263_vm14, %v8420_v12, %v5264_v2  ;;  %v5142_v52 = vor.u32 4788187, %v5141_v63  ;;  %v10848_v15 = vshrl.u32 %v5436_v17, 30  ;;  %v5145_v22 = vcvt.s32.f32 %v5138_v19 }
 0x3e1   : > { %v5269_v32 = vsel %vm5262_vm11, %v5265_v23, %v5268_v16  ;;  %v5289_v40 = vshrl.u32 %v8708_v37, %v5286_v56  ;;  %v5292_v47 = vshrl.u32 %v8709_v39, %v5286_v56  ;;  %v5284_v20 = vshrl.u32 %v5283_v59, 5 }
 0x3e2   : > { %v5270_v0 = vsel %vm5259_vm10, nan, %v5269_v32  ;;  %v5143_v1 = vand.u32 2147483647, %v5142_v52  ;;  %v5438_v4 = vshll.u32 %v10848_v15, 30  ;;  %v5288_v29 = vshll.u32 %v8707_v33, %v5285_v35 }
 0x3e3   : > { %7578 = vst [vmem:[%s9190_s23 + $0x98] sm:$0xff] %v5270_v0  ;;  %v5295_v28 = vshrl.u32 %v8710_v41, %v5286_v56  ;;  %v5291_v25 = vshll.u32 %v8708_v37, %v5285_v35  ;;  %v5297_v10 = vshll.u32 %v8710_v41, %v5285_v35  ;;  %v5298_v34 = vshrl.u32 %v8711_v43, %v5286_v56  ;;  %v4057_v0 = vpop.permute.xlu0 %4056 }
 0x3e4   : > { %v5146_v48 = vmul.f32 %v5145_v22, %v5143_v1  ;;  %v10861_v14 = vsub.s32 %v5435_v6, %v5438_v4  ;;  %v5290_v18 = vor.u32 %v5289_v40, %v5288_v29  ;;  %v5294_v42 = vshll.u32 %v8709_v39, %v5285_v35 }
 0x3e5   : > { %v5293_v8 = vor.u32 %v5292_v47, %v5291_v25  ;;  %v5299_v45 = vor.u32 %v5298_v34, %v5297_v10  ;;  %v5301_v11 = vshrl.u32 %v8712_v50, %v5286_v56  ;;  %v5156_v30 = vadd.s32 3, %v5152_v49 }
 0x3e6   : > { %v5147_v13 = vxor.u32 2147483648, %v5146_v48  ;;  %vm5377_vm0 = vcmp.lt.s32.totalorder %v10686_v3, 0  ;;  %v5441_v58 = vsub.s32 0, %v10861_v14  ;;  %v5296_v5 = vor.u32 %v5295_v28, %v5294_v42 }
 0x3e7   : > { %v5300_v59 = vshll.u32 %v8711_v43, %v5285_v35  ;;  %vm5303_vm1 = vcmp.lt.s32.totalorder %v5284_v20, 1  ;;  %v5319_v54 = vshll.u32 %v5279_v26, 8  ;;  %v10871_v61 = vadd.f32 %v10683_v31, %v4180_v24 }
 0x3e8   : > { %v5148_v12 = vsel %vm5065_vm8, %v5147_v13, %v5146_v48  ;;  %v7905_v55 = vmin.u32 %v5441_v58, %v10861_v14  ;;  %vm5306_vm2 = vcmp.lt.s32.totalorder %v5284_v20, 4  ;;  %v5287_v7 = vshrl.u32 %v8707_v33, %v5286_v56 }
 0x3e9   : > { %v5151_v53 = vsel %vm10819_vm7, %v10628_v27, %v5148_v12  ;;  %v5302_v21 = vor.u32 %v5301_v11, %v5300_v59  ;;  %v5311_v6 = vsel %vm5303_vm1, %v5290_v18, %v5293_v8  ;;  %v5312_v51 = vsel %vm5306_vm2, %v5299_v45, 920167782 }
 0x3ea   : > { %8423 = vcosq.f32 %v5151_v53  ;;  %vm10882_vm3 = vcmp.le.f32.partialorder %v5375_v62, 0.7853982  ;;  %v5443_v36 = vclz %v7905_v55  ;;  %vm5305_vm4 = vcmp.lt.s32.totalorder %v5284_v20, 3 }
 0x3eb   : > { %8425 = vsinq.f32 %v5151_v53  ;;  %v5308_v38 = vsel %vm5306_vm2, %v5296_v5, 2102212464  ;;  %v5461_v2 = vsub.s32 4, %v10848_v15  ;;  %vm5304_vm5 = vcmp.lt.s32.totalorder %v5284_v20, 2 }
 0x3ec   : > { %v5313_v19 = vsel %vm5305_vm4, %v5296_v5, %v5312_v51  ;;  %v5315_v63 = vsel %vm5303_vm1, %v5293_v8, %v5296_v5  ;;  %v7906_v16 = vadd.s32 4294967294, %v5443_v36  ;;  %v5307_v17 = vsel %vm5303_vm1, %v5287_v7, %v5290_v18 }
 0x3ed   : > { %v5314_v56 = vsel %vm5304_vm5, %v5311_v6, %v5313_v19  ;;  %v5316_v62 = vsel %vm5306_vm2, %v5302_v21, 1326507024  ;;  %v5309_v23 = vsel %vm5305_vm4, %v5293_v8, %v5308_v38  ;;  %v5431_v32 = vadd.s32 %v10811_v44, %v10825_v9  ;;  %v4072_v19 = vpop.permute.xlu1 %4071 }
 0x3ee   : > { %v5317_v52 = vsel %vm5305_vm4, %v5299_v45, %v5316_v62  ;;  %v10892_v49 = vmul.u32.u64.low %v5319_v54, %v5314_v56  ;;  %v10893_v24 = vmul.u32.u64.high %v5319_v54, %v5314_v56, %v10892_v49  ;;  %vm7907_vm6 = vcmp.lt.s32.totalorder %v7906_v16, 0 }
 0x3ef   : > { %v5318_v26 = vsel %vm5304_vm5, %v5315_v63, %v5317_v52  ;;  %v5586_v40 = vand.u32 2139095040, %v10871_v61  ;;  %v5446_v1 = vsel %vm7907_vm6, 0, %v7906_v16  ;;  %v5462_v22 = vsel %vm5377_vm0, %v5461_v2, %v10848_v15 }
 0x3f0   : > { %v10903_v47 = vmul.u32.u64.low %v5319_v54, %v5318_v26  ;;  %v10904_v4 = vmul.u32.u64.high %v5319_v54, %v5318_v26, %v10903_v47  ;;  %v5447_v29 = vsub.s32 32, %v5446_v1  ;;  %v5451_v28 = vsub.s32 4294967266, %v5446_v1 }
 0x3f1   : > { %v5310_v48 = vsel %vm5304_vm5, %v5307_v17, %v5309_v23  ;;  %v5587_v25 = vshrl.u32 %v5586_v40, 23  ;;  %v5157_v44 = vand.u32 3, %v5156_v30  ;;  %v5329_v9 = vadd.s32 1, %v10893_v24 }
 0x3f2   : > { %v5583_v10 = vand.u32 2147483647, %v10871_v61  ;;  %v4179_v34 = vmul.f32 %v10669_v57, %v4057_v0  ;;  %v5448_v18 = vshll.u32 %v10861_v14, %v5446_v1  ;;  %v5449_v42 = vshrl.u32 %v5431_v32, %v5447_v29 }
 0x3f3   : > { %v5452_v13 = vadd.s32 127, %v5451_v28  ;;  %v7912_v15 = vadd.s32 4294967169, %v5587_v25  ;;  %v5464_v8 = vsel %vm10882_vm3, 0, %v5462_v22  ;;  %v5326_v45 = vmul.u32 %v5319_v54, %v5310_v48 }
 0x3f4   : > { %vm5328_vm7 = vc.u32 %v10904_v4, %v10892_v49  ;;  %v5450_v20 = vor.u32 %v5449_v42, %v5448_v18  ;;  %v5590_v59 = vand.u32 8388607, %v5583_v10  ;;  %v10919_v14 = vadd.f32 %v10683_v31, %v4179_v34 }
 0x3f5   : > { %v5453_v11 = vshll.u32 %v5452_v13, 23  ;;  %v5330_v30 = vsel %vm5328_vm7, %v5329_v9, %v10893_v24  ;;  %v5593_v58 = vadd.s32 1, %v7912_v15  ;;  %vm5159_vm8 = vcmp.eq.s32.totalorder %v5157_v44, 0 }
 0x3f6   : > { %v5331_v5 = vadd.s32 %v5330_v30, %v5326_v45  ;;  %vm5162_vm9 = vcmp.eq.s32.totalorder %v5157_v44, 2  ;;  %v5468_v21 = vadd.s32 3, %v5464_v8  ;;  %v5457_v38 = vcvt.s32.f32 %v5450_v20 }
 0x3f7   : > { %v8424_v12 = vpop.eup %8423  ;;  %v5454_v53 = vor.u32 4788187, %v5453_v11  ;;  %vm5594_vm10 = vcmp.gt.s32.totalorder %v5593_v58, 0  ;;  %v5591_v17 = vor.u32 8388608, %v5590_v59  ;;  %v5482_v56 = vand.u32 2139095040, %v10919_v14 }
 0x3f8   : > { %v8426_v54 = vpop.eup %8425  ;;  %v5163_v55 = vxor.u32 2147483648, %v8424_v12  ;;  %v5332_v7 = vadd.s32 536870912, %v5331_v5  ;;  %v5595_v6 = vsel %vm5594_vm10, %v5593_v58, 0  ;;  %vm5158_vm11 = vcmp.lt.s32.totalorder %v5157_v44, 2 }
 0x3f9   : > { %v5160_v51 = vxor.u32 2147483648, %v8426_v54  ;;  %v5455_v36 = vand.u32 2147483647, %v5454_v53  ;;  %v5597_v2 = vand.u32 31, %v5595_v6  ;;  %vm5155_vm12 = vweird.f32 %v10628_v27 }
 0x3fa   : > { %v5164_v63 = vsel %vm5162_vm9, %v5163_v55, %v8426_v54  ;;  %v10921_v16 = vshrl.u32 %v5332_v7, 30  ;;  %v10928_v26 = vmul.f32 %v10669_v57, %v4072_v19  ;;  %v10930_v1 = vand.u32 3, %v5468_v21 }
 0x3fb   : > { %v5161_v62 = vsel %vm5159_vm8, %v8424_v12, %v5160_v51  ;;  %v5458_v23 = vmul.f32 %v5457_v38, %v5455_v36  ;;  %v5598_v52 = vsub.s32 32, %v5597_v2  ;;  %v10937_v28 = vshll.u32 %v5591_v17, 8 }
 0x3fc   : > { %v5165_v24 = vsel %vm5158_vm11, %v5161_v62, %v5164_v63  ;;  %v5334_v32 = vshll.u32 %v10921_v16, 30  ;;  %v5483_v27 = vshrl.u32 %v5482_v56, 23  ;;  %v5596_v25 = vshrl.u32 %v5595_v6, 5 }
 0x3fd   : > { %v5166_v40 = vsel %vm5155_vm12, nan, %v5165_v24  ;;  %v5459_v0 = vxor.u32 2147483648, %v5458_v23  ;;  %v5601_v22 = vshrl.u32 %v8708_v37, %v5598_v52  ;;  %v5604_v29 = vshrl.u32 %v8709_v39, %v5598_v52 }
 0x3fe   : > { %7576 = vst [vmem:[%s9190_s23 + $0x88] sm:$0xff] %v5166_v40  ;;  %v10934_v47 = vsub.s32 %v5331_v5, %v5334_v32  ;;  %v5600_v57 = vshll.u32 %v8707_v33, %v5597_v2  ;;  %v5607_v44 = vshrl.u32 %v8710_v41, %v5598_v52  ;;  %v5603_v18 = vshll.u32 %v8708_v37, %v5597_v2 }
 0x3ff   : > { %v5460_v48 = vsel %vm5377_vm0, %v5459_v0, %v5458_v23  ;;  %v5606_v42 = vshll.u32 %v8709_v39, %v5597_v2  ;;  %v5609_v15 = vshll.u32 %v8710_v41, %v5597_v2  ;;  %v5610_v8 = vshrl.u32 %v8711_v43, %v5598_v52 }
 0x400   : > { %v5463_v9 = vsel %vm10882_vm3, %v10686_v3, %v5460_v48  ;;  %v5337_v34 = vsub.s32 0, %v10934_v47  ;;  %v5602_v13 = vor.u32 %v5601_v22, %v5600_v57  ;;  %v5605_v20 = vor.u32 %v5604_v29, %v5603_v18 }
 0x401   : > { %8427 = vcosq.f32 %v5463_v9  ;;  %v5608_v11 = vor.u32 %v5607_v44, %v5606_v42  ;;  %v5611_v30 = vor.u32 %v5610_v8, %v5609_v15  ;;  %v5612_v35 = vshll.u32 %v8711_v43, %v5597_v2 }
 0x402   : > { %8429 = vsinq.f32 %v5463_v9  ;;  %v7901_v45 = vmin.u32 %v5337_v34, %v10934_v47  ;;  %v5613_v58 = vshrl.u32 %v8712_v50, %v5598_v52  ;;  %v5479_v5 = vand.u32 2147483647, %v10919_v14 }
 0x403   : > { %v5599_v12 = vshrl.u32 %v8707_v33, %v5598_v52  ;;  %vm5615_vm13 = vcmp.lt.s32.totalorder %v5596_v25, 1  ;;  %v7908_v53 = vadd.s32 4294967169, %v5483_v27  ;;  %vm5616_vm15 = vcmp.lt.s32.totalorder %v5596_v25, 2 }
 0x404   : > { %v5339_v59 = vclz %v7901_v45  ;;  %v5614_v54 = vor.u32 %v5613_v58, %v5612_v35  ;;  %vm5617_vm14 = vcmp.lt.s32.totalorder %v5596_v25, 3  ;;  %vm5618_vm0 = vcmp.lt.s32.totalorder %v5596_v25, 4 }
 0x405   : > { %vm5273_vm1 = vcmp.lt.s32.totalorder %v10762_v46, 0  ;;  %v5620_v21 = vsel %vm5618_vm0, %v5608_v11, 2102212464  ;;  %v5623_v7 = vsel %vm5615_vm13, %v5602_v13, %v5605_v20  ;;  %v5624_v6 = vsel %vm5618_vm0, %v5611_v30, 920167782 }
 0x406   : > { %v7902_v55 = vadd.s32 4294967294, %v5339_v59  ;;  %v5619_v51 = vsel %vm5615_vm13, %v5599_v12, %v5602_v13  ;;  %v5625_v36 = vsel %vm5617_vm14, %v5608_v11, %v5624_v6  ;;  %v5627_v38 = vsel %vm5615_vm13, %v5605_v20, %v5608_v11 }
 0x407   : > { %v5628_v2 = vsel %vm5618_vm0, %v5614_v54, 1326507024  ;;  %v5621_v19 = vsel %vm5617_vm14, %v5605_v20, %v5620_v21  ;;  %v5626_v63 = vsel %vm5616_vm15, %v5623_v7, %v5625_v36  ;;  %vm10960_vm3 = vcmp.le.f32.partialorder %v5271_v60, 0.7853982 }
 0x408   : > { %vm7903_vm2 = vcmp.lt.s32.totalorder %v7902_v55, 0  ;;  %v5629_v17 = vsel %vm5617_vm14, %v5611_v30, %v5628_v2  ;;  %v10966_v52 = vmul.u32.u64.low %v10937_v28, %v5626_v63  ;;  %v10967_v24 = vmul.u32.u64.high %v10937_v28, %v5626_v63, %v10966_v52 }
 0x409   : > { %v5342_v62 = vsel %vm7903_vm2, 0, %v7902_v55  ;;  %v5630_v23 = vsel %vm5616_vm15, %v5627_v38, %v5629_v17  ;;  %vm5470_vm4 = vcmp.lt.s32.totalorder %v10930_v1, 2  ;;  %v5327_v32 = vadd.s32 %v10892_v49, %v10904_v4 }
 0x40a   : > { %v5343_v40 = vsub.s32 32, %v5342_v62  ;;  %v5347_v0 = vsub.s32 4294967266, %v5342_v62  ;;  %vm5467_vm5 = vweird.f32 %v10686_v3  ;;  %v5357_v60 = vsub.s32 4, %v10921_v16 }
 0x40b   : > { %v10976_v22 = vmul.u32.u64.low %v10937_v28, %v5630_v23  ;;  %v10977_v29 = vmul.u32.u64.high %v10937_v28, %v5630_v23, %v10976_v22  ;;  %v5489_v27 = vadd.s32 1, %v7908_v53  ;;  %v5344_v48 = vshll.u32 %v10934_v47, %v5342_v62 }
 0x40c   : > { %v5345_v57 = vshrl.u32 %v5327_v32, %v5343_v40  ;;  %v5348_v44 = vadd.s32 127, %v5347_v0  ;;  %v5622_v9 = vsel %vm5616_vm15, %v5619_v51, %v5621_v19  ;;  %vm5471_vm6 = vcmp.eq.s32.totalorder %v10930_v1, 0 }
 0x40d   : > { %v5641_v49 = vadd.s32 1, %v10967_v24  ;;  %v5486_v4 = vand.u32 8388607, %v5479_v5  ;;  %vm5490_vm7 = vcmp.gt.s32.totalorder %v5489_v27, 0  ;;  %vm5474_vm8 = vcmp.eq.s32.totalorder %v10930_v1, 2 }
 0x40e   : > { %v8428_v34 = vpop.eup %8427  ;;  %v5346_v18 = vor.u32 %v5345_v57, %v5344_v48  ;;  %v5349_v42 = vshll.u32 %v5348_v44, 23  ;;  %v5491_v13 = vsel %vm5490_vm7, %v5489_v27, 0  ;;  %v5358_v25 = vsel %vm5273_vm1, %v5357_v60, %v10921_v16 }
 0x40f   : > { %v8430_v15 = vpop.eup %8429  ;;  %v5475_v47 = vxor.u32 2147483648, %v8428_v34  ;;  %v5638_v8 = vmul.u32 %v10937_v28, %v5622_v9  ;;  %vm5640_vm9 = vc.u32 %v10977_v29, %v10966_v52  ;;  %v10995_v30 = vadd.f32 %v10683_v31, %v10928_v26 }
 0x410   : > { %v5472_v45 = vxor.u32 2147483648, %v8430_v15  ;;  %v5350_v20 = vor.u32 4788187, %v5349_v42  ;;  %v5642_v11 = vsel %vm5640_vm9, %v5641_v49, %v10967_v24  ;;  %v5487_v59 = vor.u32 8388608, %v5486_v4 }
 0x411   : > { %v5476_v35 = vsel %vm5474_vm8, %v5475_v47, %v8430_v15  ;;  %v5643_v58 = vadd.s32 %v5642_v11, %v5638_v8  ;;  %v5493_v12 = vand.u32 31, %v5491_v13  ;;  %v5353_v53 = vcvt.s32.f32 %v5346_v18 }
 0x412   : > { %v5473_v16 = vsel %vm5471_vm6, %v8428_v34, %v5472_v45  ;;  %v5351_v28 = vand.u32 2147483647, %v5350_v20  ;;  %v5360_v54 = vsel %vm10960_vm3, 0, %v5358_v25  ;;  %v11003_v7 = vshrl.u32 %v5491_v13, 5 }
 0x413   : > { %v5477_v55 = vsel %vm5470_vm4, %v5473_v16, %v5476_v35  ;;  %v5644_v21 = vadd.s32 536870912, %v5643_v58  ;;  %v5494_v31 = vsub.s32 32, %v5493_v12  ;;  %v5496_v51 = vshll.u32 %v8707_v33, %v5493_v12 }
 0x414   : > { %v5478_v26 = vsel %vm5467_vm5, nan, %v5477_v55  ;;  %v5354_v6 = vmul.f32 %v5353_v53, %v5351_v28  ;;  %v5499_v36 = vshll.u32 %v8708_v37, %v5493_v12  ;;  %v5502_v19 = vshll.u32 %v8709_v39, %v5493_v12 }
 0x415   : > { %7582 = vst [vmem:[%s9190_s23 + $0xb8] sm:$0xff] %v5478_v26  ;;  %v11010_v38 = vshrl.u32 %v5644_v21, 30  ;;  %v5497_v2 = vshrl.u32 %v8708_v37, %v5494_v31  ;;  %v5500_v1 = vshrl.u32 %v8709_v39, %v5494_v31  ;;  %v5503_v17 = vshrl.u32 %v8710_v41, %v5494_v31 }
 0x416   : > { %v5355_v63 = vxor.u32 2147483648, %v5354_v6  ;;  %v5505_v3 = vshll.u32 %v8710_v41, %v5493_v12  ;;  %v5506_v62 = vshrl.u32 %v8711_v43, %v5494_v31  ;;  %v5364_v23 = vadd.s32 3, %v5360_v54 }
 0x417   : > { %v5646_v24 = vshll.u32 %v11010_v38, 30  ;;  %v5498_v32 = vor.u32 %v5497_v2, %v5496_v51  ;;  %v5501_v0 = vor.u32 %v5500_v1, %v5499_v36  ;;  %v5504_v60 = vor.u32 %v5503_v17, %v5502_v19 }
 0x418   : > { %v5356_v40 = vsel %vm5273_vm1, %v5355_v63, %v5354_v6  ;;  %v5507_v22 = vor.u32 %v5506_v62, %v5505_v3  ;;  %v5508_v57 = vshll.u32 %v8711_v43, %v5493_v12  ;;  %v5509_v44 = vshrl.u32 %v8712_v50, %v5494_v31 }
 0x419   : > { %v5359_v27 = vsel %vm10960_vm3, %v10762_v46, %v5356_v40  ;;  %v11024_v48 = vsub.s32 %v5643_v58, %v5646_v24  ;;  %vm5511_vm10 = vcmp.lt.s32.totalorder %v11003_v7, 1  ;;  %v5527_v9 = vshll.u32 %v5487_v59, 8 }
 0x41a   : > { %8431 = vcosq.f32 %v5359_v27  ;;  %v5794_v49 = vand.u32 2139095040, %v10995_v30  ;;  %v5510_v34 = vor.u32 %v5509_v44, %v5508_v57  ;;  %vm5514_vm11 = vcmp.lt.s32.totalorder %v11003_v7, 4 }
 0x41b   : > { %8433 = vsinq.f32 %v5359_v27  ;;  %v5649_v4 = vsub.s32 0, %v11024_v48  ;;  %vm5512_vm12 = vcmp.lt.s32.totalorder %v11003_v7, 2  ;;  %vm5513_vm13 = vcmp.lt.s32.totalorder %v11003_v7, 3 }
 0x41c   : > { %v5519_v56 = vsel %vm5511_vm10, %v5498_v32, %v5501_v0  ;;  %v5520_v18 = vsel %vm5514_vm11, %v5507_v22, 920167782  ;;  %v5495_v13 = vshrl.u32 %v8707_v33, %v5494_v31  ;;  %v5516_v15 = vsel %vm5514_vm11, %v5504_v60, 2102212464 }
 0x41d   : > { %v7913_v42 = vmin.u32 %v5649_v4, %v11024_v48  ;;  %v5521_v47 = vsel %vm5513_vm13, %v5504_v60, %v5520_v18  ;;  %v5523_v8 = vsel %vm5511_vm10, %v5501_v0, %v5504_v60  ;;  %v5524_v45 = vsel %vm5514_vm11, %v5510_v34, 1326507024 }
 0x41e   : > { %v5522_v25 = vsel %vm5512_vm12, %v5519_v56, %v5521_v47  ;;  %v5795_v20 = vshrl.u32 %v5794_v49, 23  ;;  %v5365_v11 = vand.u32 3, %v5364_v23  ;;  %v5515_v58 = vsel %vm5511_vm10, %v5495_v13, %v5498_v32 }
 0x41f   : > { %v5651_v35 = vclz %v7913_v42  ;;  %v5517_v59 = vsel %vm5513_vm13, %v5501_v0, %v5516_v15  ;;  %v5525_v12 = vsel %vm5513_vm13, %v5507_v22, %v5524_v45  ;;  %vm11052_vm15 = vcmp.le.f32.partialorder %v5583_v10, 0.7853982  ;;  %v8595_v42 = vld [vmem:[%s13942_s2] ss:$0 sm:$0xff] }
 0x420   : > { %v11044_v16 = vmul.u32.u64.low %v5527_v9, %v5522_v25  ;;  %v11045_v28 = vmul.u32.u64.high %v5527_v9, %v5522_v25, %v11044_v16  ;;  %v5526_v54 = vsel %vm5512_vm12, %v5523_v8, %v5525_v12  ;;  %v7920_v55 = vadd.s32 4294967169, %v5795_v20 }
 0x421   : > { %v7914_v53 = vadd.s32 4294967294, %v5651_v35  ;;  %v5669_v31 = vsub.s32 4, %v11010_v38  ;;  %v11057_v26 = vmul.u32.u64.low %v5527_v9, %v5526_v54  ;;  %v11058_v6 = vmul.u32.u64.high %v5527_v9, %v5526_v54, %v11057_v26 }
 0x422   : > { %vm5585_vm14 = vcmp.lt.s32.totalorder %v10871_v61, 0  ;;  %v5518_v51 = vsel %vm5512_vm12, %v5515_v58, %v5517_v59  ;;  %v5801_v36 = vadd.s32 1, %v7920_v55  ;;  %vm5363_vm1 = vweird.f32 %v10762_v46 }
 0x423   : > { %vm7915_vm0 = vcmp.lt.s32.totalorder %v7914_v53, 0  ;;  %vm5366_vm2 = vcmp.lt.s32.totalorder %v5365_v11, 2  ;;  %v5537_v10 = vadd.s32 1, %v11045_v28  ;;  %v5791_v1 = vand.u32 2147483647, %v10995_v30 }
 0x424   : > { %v5654_v2 = vsel %vm7915_vm0, 0, %v7914_v53  ;;  %v5639_v19 = vadd.s32 %v10966_v52, %v10977_v29  ;;  %vm5802_vm3 = vcmp.gt.s32.totalorder %v5801_v36, 0  ;;  %v5670_v7 = vsel %vm5585_vm14, %v5669_v31, %v11010_v38  ;;  %v4068_v38 = vpop.permute.xlu0 %4067 }
 0x425   : > { %v5655_v63 = vsub.s32 32, %v5654_v2  ;;  %v5659_v17 = vsub.s32 4294967266, %v5654_v2  ;;  %v5534_v3 = vmul.u32 %v5527_v9, %v5518_v51  ;;  %vm5536_vm4 = vc.u32 %v11058_v6, %v11044_v16 }
 0x426   : > { %v5803_v62 = vsel %vm5802_vm3, %v5801_v36, 0  ;;  %v5656_v24 = vshll.u32 %v11024_v48, %v5654_v2  ;;  %v5538_v0 = vsel %vm5536_vm4, %v5537_v10, %v11045_v28  ;;  %v5798_v22 = vand.u32 8388607, %v5791_v1 }
 0x427   : > { %v8432_v23 = vpop.eup %8431  ;;  %v5657_v32 = vshrl.u32 %v5639_v19, %v5655_v63  ;;  %v5660_v40 = vadd.s32 127, %v5659_v17  ;;  %v5539_v60 = vadd.s32 %v5538_v0, %v5534_v3  ;;  %v5805_v27 = vand.u32 31, %v5803_v62 }
 0x428   : > { %v8434_v52 = vpop.eup %8433  ;;  %v5371_v29 = vxor.u32 2147483648, %v8432_v23  ;;  %vm5370_vm5 = vcmp.eq.s32.totalorder %v5365_v11, 2  ;;  %vm5367_vm6 = vcmp.eq.s32.totalorder %v5365_v11, 0  ;;  %v5672_v18 = vsel %vm11052_vm15, 0, %v5670_v7 }
 0x429   : > { %v5368_v57 = vxor.u32 2147483648, %v8434_v52  ;;  %v5658_v44 = vor.u32 %v5657_v32, %v5656_v24  ;;  %v5661_v9 = vshll.u32 %v5660_v40, 23  ;;  %v5540_v48 = vadd.s32 536870912, %v5539_v60  ;;  %v11108_v24 = vld [vmem:[%s13943_s3] ss:$0 sm:$0xff] }
 0x42a   : > { %v5372_v49 = vsel %vm5370_vm5, %v5371_v29, %v8434_v52  ;;  %v5806_v4 = vsub.s32 32, %v5805_v27  ;;  %v4181_v13 = vmul.f32 %v8595_v42, %v4068_v38  ;;  %v5799_v25 = vor.u32 8388608, %v5798_v22 }
 0x42b   : > { %v5369_v34 = vsel %vm5367_vm6, %v8432_v23, %v5368_v57  ;;  %v5662_v56 = vor.u32 4788187, %v5661_v9  ;;  %v11083_v47 = vshrl.u32 %v5540_v48, 30  ;;  %v5665_v35 = vcvt.s32.f32 %v5658_v44 }
 0x42c   : > { %v5373_v15 = vsel %vm5366_vm2, %v5369_v34, %v5372_v49  ;;  %v5809_v8 = vshrl.u32 %v8708_v37, %v5806_v4  ;;  %v5812_v58 = vshrl.u32 %v8709_v39, %v5806_v4  ;;  %v5804_v12 = vshrl.u32 %v5803_v62, 5 }
 0x42d   : > { %v5374_v45 = vsel %vm5363_vm1, nan, %v5373_v15  ;;  %v5663_v20 = vand.u32 2147483647, %v5662_v56  ;;  %v5542_v59 = vshll.u32 %v11083_v47, 30  ;;  %v5808_v28 = vshll.u32 %v8707_v33, %v5805_v27 }
 0x42e   : > { %7580 = vst [vmem:[%s9190_s23 + $0xa8] sm:$0xff] %v5374_v45  ;;  %v5815_v11 = vshrl.u32 %v8710_v41, %v5806_v4  ;;  %v5811_v54 = vshll.u32 %v8708_v37, %v5805_v27  ;;  %v5817_v55 = vshll.u32 %v8710_v41, %v5805_v27  ;;  %v5818_v46 = vshrl.u32 %v8711_v43, %v5806_v4  ;;  %v503_v45 = vpop.permute.xlu1 %502 }
 0x42f   : > { %v5666_v53 = vmul.f32 %v5665_v35, %v5663_v20  ;;  %v11096_v31 = vsub.s32 %v5539_v60, %v5542_v59  ;;  %v5810_v26 = vor.u32 %v5809_v8, %v5808_v28  ;;  %v5814_v51 = vshll.u32 %v8709_v39, %v5805_v27  ;;  %v11143_v8 = vld [vmem:[%s13941_s1] ss:$0 sm:$0xff] }
 0x430   : > { %v5813_v2 = vor.u32 %v5812_v58, %v5811_v54  ;;  %v5819_v10 = vor.u32 %v5818_v46, %v5817_v55  ;;  %v5821_v19 = vshrl.u32 %v8712_v50, %v5806_v4  ;;  %v5676_v63 = vadd.s32 3, %v5672_v18 }
 0x431   : > { %v5667_v36 = vxor.u32 2147483648, %v5666_v53  ;;  %vm5481_vm7 = vcmp.lt.s32.totalorder %v10919_v14, 0  ;;  %v5545_v17 = vsub.s32 0, %v11096_v31  ;;  %v5816_v7 = vor.u32 %v5815_v11, %v5814_v51 }
 0x432   : > { %v5820_v3 = vshll.u32 %v8711_v43, %v5805_v27  ;;  %vm5823_vm8 = vcmp.lt.s32.totalorder %v5804_v12, 1  ;;  %v5839_v23 = vshll.u32 %v5799_v25, 8  ;;  %v11111_v32 = vadd.f32 %v11108_v24, %v4181_v13 }
 0x433   : > { %v5668_v62 = vsel %vm5585_vm14, %v5667_v36, %v5666_v53  ;;  %v7909_v0 = vmin.u32 %v5545_v17, %v11096_v31  ;;  %vm5826_vm9 = vcmp.lt.s32.totalorder %v5804_v12, 4  ;;  %v5807_v29 = vshrl.u32 %v8707_v33, %v5806_v4 }
 0x434   : > { %v5671_v40 = vsel %vm11052_vm15, %v10871_v61, %v5668_v62  ;;  %v5822_v52 = vor.u32 %v5821_v19, %v5820_v3  ;;  %v5831_v60 = vsel %vm5823_vm8, %v5810_v26, %v5813_v2  ;;  %v5832_v22 = vsel %vm5826_vm9, %v5819_v10, 920167782 }
 0x435   : > { %8435 = vcosq.f32 %v5671_v40  ;;  %vm11122_vm10 = vcmp.le.f32.partialorder %v5479_v5, 0.7853982  ;;  %v5547_v21 = vclz %v7909_v0  ;;  %vm5825_vm11 = vcmp.lt.s32.totalorder %v5804_v12, 3 }
 0x436   : > { %8437 = vsinq.f32 %v5671_v40  ;;  %v5828_v38 = vsel %vm5826_vm9, %v5816_v7, 2102212464  ;;  %v5565_v57 = vsub.s32 4, %v11083_v47  ;;  %vm5824_vm12 = vcmp.lt.s32.totalorder %v5804_v12, 2 }
 0x437   : > { %v5833_v44 = vsel %vm5825_vm11, %v5816_v7, %v5832_v22  ;;  %v5835_v9 = vsel %vm5823_vm8, %v5813_v2, %v5816_v7  ;;  %v7910_v49 = vadd.s32 4294967294, %v5547_v21  ;;  %v5827_v48 = vsel %vm5823_vm8, %v5807_v29, %v5810_v26 }
 0x438   : > { %v5834_v4 = vsel %vm5824_vm12, %v5831_v60, %v5833_v44  ;;  %v5836_v5 = vsel %vm5826_vm9, %v5822_v52, 1326507024  ;;  %v5829_v34 = vsel %vm5825_vm11, %v5813_v2, %v5828_v38  ;;  %v5535_v13 = vadd.s32 %v11044_v16, %v11058_v6  ;;  %v499_v44 = vpop.permute.xlu0 %498 }
 0x439   : > { %v5837_v56 = vsel %vm5825_vm11, %v5819_v10, %v5836_v5  ;;  %v11132_v18 = vmul.u32.u64.low %v5839_v23, %v5834_v4  ;;  %v11133_v42 = vmul.u32.u64.high %v5839_v23, %v5834_v4, %v11132_v18  ;;  %vm7911_vm13 = vcmp.lt.s32.totalorder %v7910_v49, 0 }
 0x43a   : > { %v5838_v15 = vsel %vm5824_vm12, %v5835_v9, %v5837_v56  ;;  %v5690_v25 = vand.u32 2139095040, %v11111_v32  ;;  %v5550_v20 = vsel %vm7911_vm13, 0, %v7910_v49  ;;  %v5566_v35 = vsel %vm5481_vm7, %v5565_v57, %v11083_v47 }
 0x43b   : > { %v11148_v58 = vmul.u32.u64.low %v5839_v23, %v5838_v15  ;;  %v11149_v59 = vmul.u32.u64.high %v5839_v23, %v5838_v15, %v11148_v58  ;;  %v5551_v16 = vsub.s32 32, %v5550_v20  ;;  %v5555_v6 = vsub.s32 4294967266, %v5550_v20 }
 0x43c   : > { %v5830_v28 = vsel %vm5824_vm12, %v5827_v48, %v5829_v34  ;;  %v5691_v11 = vshrl.u32 %v5690_v25, 23  ;;  %v5677_v53 = vand.u32 3, %v5676_v63  ;;  %v5849_v54 = vadd.s32 1, %v11133_v42 }
 0x43d   : > { %v5687_v55 = vand.u32 2147483647, %v11111_v32  ;;  %v604_v46 = vmul.f32 %v11143_v8, %v503_v45  ;;  %v5552_v26 = vshll.u32 %v11096_v31, %v5550_v20  ;;  %v5553_v51 = vshrl.u32 %v5535_v13, %v5551_v16 }
 0x43e   : > { %v5556_v36 = vadd.s32 127, %v5555_v6  ;;  %v7916_v47 = vadd.s32 4294967169, %v5691_v11  ;;  %v5568_v2 = vsel %vm11122_vm10, 0, %v5566_v35  ;;  %v5846_v10 = vmul.u32 %v5839_v23, %v5830_v28 }
 0x43f   : > { %vm5848_vm15 = vc.u32 %v11149_v59, %v11132_v18  ;;  %v5554_v12 = vor.u32 %v5553_v51, %v5552_v26  ;;  %v5694_v3 = vand.u32 8388607, %v5687_v55  ;;  %v11164_v31 = vadd.f32 %v11108_v24, %v604_v46 }
 0x440   : > { %v5557_v19 = vshll.u32 %v5556_v36, 23  ;;  %v5850_v63 = vsel %vm5848_vm15, %v5849_v54, %v11133_v42  ;;  %v5697_v17 = vadd.s32 1, %v7916_v47  ;;  %vm5679_vm14 = vcmp.eq.s32.totalorder %v5677_v53, 0 }
 0x441   : > { %v5851_v7 = vadd.s32 %v5850_v63, %v5846_v10  ;;  %vm5682_vm0 = vcmp.eq.s32.totalorder %v5677_v53, 2  ;;  %v5572_v52 = vadd.s32 3, %v5568_v2  ;;  %v5561_v38 = vcvt.s32.f32 %v5554_v12 }
 0x442   : > { %v8436_v62 = vpop.eup %8435  ;;  %v5558_v40 = vor.u32 4788187, %v5557_v19  ;;  %vm5698_vm1 = vcmp.gt.s32.totalorder %v5697_v17, 0  ;;  %v5695_v48 = vor.u32 8388608, %v5694_v3  ;;  %v2428_v4 = vand.u32 2139095040, %v11164_v31 }
 0x443   : > { %v8438_v23 = vpop.eup %8437  ;;  %v5683_v0 = vxor.u32 2147483648, %v8436_v62  ;;  %v5852_v29 = vadd.s32 536870912, %v5851_v7  ;;  %v5699_v60 = vsel %vm5698_vm1, %v5697_v17, 0  ;;  %vm5678_vm2 = vcmp.lt.s32.totalorder %v5677_v53, 2 }
 0x444   : > { %v5680_v22 = vxor.u32 2147483648, %v8438_v23  ;;  %v5559_v21 = vand.u32 2147483647, %v5558_v40  ;;  %v5701_v57 = vand.u32 31, %v5699_v60  ;;  %vm5675_vm3 = vweird.f32 %v10871_v61 }
 0x445   : > { %v5684_v9 = vsel %vm5682_vm0, %v5683_v0, %v8438_v23  ;;  %v11166_v49 = vshrl.u32 %v5852_v29, 30  ;;  %v11173_v15 = vmul.f32 %v11143_v8, %v499_v44  ;;  %v11175_v20 = vand.u32 3, %v5572_v52 }
 0x446   : > { %v5681_v5 = vsel %vm5679_vm14, %v8436_v62, %v5680_v22  ;;  %v5562_v34 = vmul.f32 %v5561_v38, %v5559_v21  ;;  %v5702_v56 = vsub.s32 32, %v5701_v57  ;;  %v11182_v6 = vshll.u32 %v5695_v48, 8 }
 0x447   : > { %v5685_v42 = vsel %vm5678_vm2, %v5681_v5, %v5684_v9  ;;  %v5854_v13 = vshll.u32 %v11166_v49, 30  ;;  %v2429_v61 = vshrl.u32 %v2428_v4, 23  ;;  %v5700_v11 = vshrl.u32 %v5699_v60, 5 }
 0x448   : > { %v5686_v25 = vsel %vm5675_vm3, nan, %v5685_v42  ;;  %v5563_v45 = vxor.u32 2147483648, %v5562_v34  ;;  %v5705_v35 = vshrl.u32 %v8708_v37, %v5702_v56  ;;  %v5708_v16 = vshrl.u32 %v8709_v39, %v5702_v56 }
 0x449   : > { %7586 = vst [vmem:[%s9190_s23 + $0xd8] sm:$0xff] %v5686_v25  ;;  %v11179_v58 = vsub.s32 %v5851_v7, %v5854_v13  ;;  %v5704_v53 = vshll.u32 %v8707_v33, %v5701_v57  ;;  %v5711_v54 = vshrl.u32 %v8710_v41, %v5702_v56  ;;  %v5707_v51 = vshll.u32 %v8708_v37, %v5701_v57 }
 0x44a   : > { %v5564_v28 = vsel %vm5481_vm7, %v5563_v45, %v5562_v34  ;;  %v5710_v36 = vshll.u32 %v8709_v39, %v5701_v57  ;;  %v5713_v2 = vshll.u32 %v8710_v41, %v5701_v57  ;;  %v5714_v10 = vshrl.u32 %v8711_v43, %v5702_v56 }
 0x44b   : > { %v5567_v46 = vsel %vm11122_vm10, %v10919_v14, %v5564_v28  ;;  %v5857_v26 = vsub.s32 0, %v11179_v58  ;;  %v5706_v47 = vor.u32 %v5705_v35, %v5704_v53  ;;  %v5709_v19 = vor.u32 %v5708_v16, %v5707_v51 }
 0x44c   : > { %8439 = vcosq.f32 %v5567_v46  ;;  %v5712_v63 = vor.u32 %v5711_v54, %v5710_v36  ;;  %v5715_v17 = vor.u32 %v5714_v10, %v5713_v2  ;;  %v5716_v27 = vshll.u32 %v8711_v43, %v5701_v57 }
 0x44d   : > { %8441 = vsinq.f32 %v5567_v46  ;;  %v7921_v12 = vmin.u32 %v5857_v26, %v11179_v58  ;;  %v5717_v7 = vshrl.u32 %v8712_v50, %v5702_v56  ;;  %v2425_v3 = vand.u32 2147483647, %v11164_v31 }
 0x44e   : > { %v5703_v40 = vshrl.u32 %v8707_v33, %v5702_v56  ;;  %vm5719_vm4 = vcmp.lt.s32.totalorder %v5700_v11, 1  ;;  %v7799_v23 = vadd.s32 4294967169, %v2429_v61  ;;  %vm5720_vm5 = vcmp.lt.s32.totalorder %v5700_v11, 2 }
 0x44f   : > { %v5859_v62 = vclz %v7921_v12  ;;  %v5718_v0 = vor.u32 %v5717_v7, %v5716_v27  ;;  %vm5721_vm6 = vcmp.lt.s32.totalorder %v5700_v11, 3  ;;  %vm5722_vm7 = vcmp.lt.s32.totalorder %v5700_v11, 4 }
 0x450   : > { %vm5793_vm8 = vcmp.lt.s32.totalorder %v10995_v30, 0  ;;  %v5724_v29 = vsel %vm5722_vm7, %v5712_v63, 2102212464  ;;  %v5727_v60 = vsel %vm5719_vm4, %v5706_v47, %v5709_v19  ;;  %v5728_v22 = vsel %vm5722_vm7, %v5715_v17, 920167782 }
 0x451   : > { %v7922_v52 = vadd.s32 4294967294, %v5859_v62  ;;  %v5723_v21 = vsel %vm5719_vm4, %v5703_v40, %v5706_v47  ;;  %v5729_v38 = vsel %vm5721_vm6, %v5712_v63, %v5728_v22  ;;  %v5731_v57 = vsel %vm5719_vm4, %v5709_v19, %v5712_v63 }
 0x452   : > { %v5732_v44 = vsel %vm5722_vm7, %v5718_v0, 1326507024  ;;  %v5725_v9 = vsel %vm5721_vm6, %v5709_v19, %v5724_v29  ;;  %v5730_v48 = vsel %vm5720_vm5, %v5727_v60, %v5729_v38  ;;  %vm11205_vm10 = vcmp.le.f32.partialorder %v5791_v1, 0.7853982 }
 0x453   : > { %vm7923_vm9 = vcmp.lt.s32.totalorder %v7922_v52, 0  ;;  %v5733_v4 = vsel %vm5721_vm6, %v5715_v17, %v5732_v44  ;;  %v11211_v42 = vmul.u32.u64.low %v11182_v6, %v5730_v48  ;;  %v11212_v13 = vmul.u32.u64.high %v11182_v6, %v5730_v48, %v11211_v42 }
 0x454   : > { %v5862_v34 = vsel %vm7923_vm9, 0, %v7922_v52  ;;  %v5734_v56 = vsel %vm5720_vm5, %v5731_v57, %v5733_v4  ;;  %vm5574_vm11 = vcmp.lt.s32.totalorder %v11175_v20, 2  ;;  %v5847_v25 = vadd.s32 %v11132_v18, %v11149_v59 }
 0x455   : > { %v5863_v45 = vsub.s32 32, %v5862_v34  ;;  %v5867_v35 = vsub.s32 4294967266, %v5862_v34  ;;  %vm5571_vm12 = vweird.f32 %v10919_v14  ;;  %v5877_v1 = vsub.s32 4, %v11166_v49 }
 0x456   : > { %v11221_v16 = vmul.u32.u64.low %v11182_v6, %v5734_v56  ;;  %v11222_v61 = vmul.u32.u64.high %v11182_v6, %v5734_v56, %v11221_v16  ;;  %v2435_v28 = vadd.s32 1, %v7799_v23  ;;  %v5864_v53 = vshll.u32 %v11179_v58, %v5862_v34 }
 0x457   : > { %v5865_v54 = vshrl.u32 %v5847_v25, %v5863_v45  ;;  %v5868_v46 = vadd.s32 127, %v5867_v35  ;;  %v5726_v26 = vsel %vm5720_vm5, %v5723_v21, %v5725_v9  ;;  %vm5575_vm13 = vcmp.eq.s32.totalorder %v11175_v20, 0 }
 0x458   : > { %v5745_v18 = vadd.s32 1, %v11212_v13  ;;  %v2432_v59 = vand.u32 8388607, %v2425_v3  ;;  %vm2436_vm15 = vcmp.gt.s32.totalorder %v2435_v28, 0  ;;  %vm5578_vm14 = vcmp.eq.s32.totalorder %v11175_v20, 2 }
 0x459   : > { %v8440_v51 = vpop.eup %8439  ;;  %v5866_v36 = vor.u32 %v5865_v54, %v5864_v53  ;;  %v5869_v47 = vshll.u32 %v5868_v46, 23  ;;  %v2437_v2 = vsel %vm2436_vm15, %v2435_v28, 0  ;;  %v5878_v11 = vsel %vm5793_vm8, %v5877_v1, %v11166_v49 }
 0x45a   : > { %v8442_v10 = vpop.eup %8441  ;;  %v5579_v58 = vxor.u32 2147483648, %v8440_v51  ;;  %v5742_v12 = vmul.u32 %v11182_v6, %v5726_v26  ;;  %vm5744_vm0 = vc.u32 %v11222_v61, %v11211_v42  ;;  %v11240_v27 = vadd.f32 %v11108_v24, %v11173_v15 }
 0x45b   : > { %v5576_v19 = vxor.u32 2147483648, %v8442_v10  ;;  %v5870_v63 = vor.u32 4788187, %v5869_v47  ;;  %v5746_v17 = vsel %vm5744_vm0, %v5745_v18, %v11212_v13  ;;  %v2433_v40 = vor.u32 8388608, %v2432_v59 }
 0x45c   : > { %v5580_v7 = vsel %vm5578_vm14, %v5579_v58, %v8442_v10  ;;  %v5747_v62 = vadd.s32 %v5746_v17, %v5742_v12  ;;  %v2439_v23 = vand.u32 31, %v2437_v2  ;;  %v5873_v0 = vcvt.s32.f32 %v5866_v36 }
 0x45d   : > { %v5577_v49 = vsel %vm5575_vm13, %v8440_v51, %v5576_v19  ;;  %v5871_v6 = vand.u32 2147483647, %v5870_v63  ;;  %v5880_v52 = vsel %vm11205_vm10, 0, %v5878_v11  ;;  %v11248_v22 = vshrl.u32 %v2437_v2, 5 }
 0x45e   : > { %v5581_v29 = vsel %vm5574_vm11, %v5577_v49, %v5580_v7  ;;  %v5748_v60 = vadd.s32 536870912, %v5747_v62  ;;  %v2440_v15 = vsub.s32 32, %v2439_v23  ;;  %v2442_v57 = vshll.u32 %v8707_v33, %v2439_v23 }
 0x45f   : > { %v5582_v21 = vsel %vm5571_vm12, nan, %v5581_v29  ;;  %v5874_v38 = vmul.f32 %v5873_v0, %v5871_v6  ;;  %v2445_v44 = vshll.u32 %v8708_v37, %v2439_v23  ;;  %v2448_v4 = vshll.u32 %v8709_v39, %v2439_v23 }
 0x460   : > { %7584 = vst [vmem:[%s9190_s23 + $0xc8] sm:$0xff] %v5582_v21  ;;  %v11255_v9 = vshrl.u32 %v5748_v60, 30  ;;  %v2443_v48 = vshrl.u32 %v8708_v37, %v2440_v15  ;;  %v2446_v20 = vshrl.u32 %v8709_v39, %v2440_v15  ;;  %v2449_v56 = vshrl.u32 %v8710_v41, %v2440_v15 }
 0x461   : > { %v5875_v34 = vxor.u32 2147483648, %v5874_v38  ;;  %v2451_v14 = vshll.u32 %v8710_v41, %v2439_v23  ;;  %v2452_v13 = vshrl.u32 %v8711_v43, %v2440_v15  ;;  %v5884_v25 = vadd.s32 3, %v5880_v52 }
 0x462   : > { %v5750_v45 = vshll.u32 %v11255_v9, 30  ;;  %v2444_v35 = vor.u32 %v2443_v48, %v2442_v57  ;;  %v2447_v16 = vor.u32 %v2446_v20, %v2445_v44  ;;  %v2450_v28 = vor.u32 %v2449_v56, %v2448_v4 }
 0x463   : > { %v5876_v1 = vsel %vm5793_vm8, %v5875_v34, %v5874_v38  ;;  %v2453_v53 = vor.u32 %v2452_v13, %v2451_v14  ;;  %v2454_v26 = vshll.u32 %v8711_v43, %v2439_v23  ;;  %v2455_v18 = vshrl.u32 %v8712_v50, %v2440_v15 }
 0x464   : > { %v5879_v54 = vsel %vm11205_vm10, %v10995_v30, %v5876_v1  ;;  %v11269_v46 = vsub.s32 %v5747_v62, %v5750_v45  ;;  %vm2457_vm1 = vcmp.lt.s32.totalorder %v11248_v22, 1  ;;  %v2473_v59 = vshll.u32 %v2433_v40, 8 }
 0x465   : > { %8443 = vcosq.f32 %v5879_v54  ;;  %v2324_v51 = vand.u32 2139095040, %v11240_v27  ;;  %v2456_v47 = vor.u32 %v2455_v18, %v2454_v26  ;;  %vm2460_vm2 = vcmp.lt.s32.totalorder %v11248_v22, 4 }
 0x466   : > { %8445 = vsinq.f32 %v5879_v54  ;;  %v5753_v36 = vsub.s32 0, %v11269_v46  ;;  %vm2458_vm3 = vcmp.lt.s32.totalorder %v11248_v22, 2  ;;  %vm2459_vm4 = vcmp.lt.s32.totalorder %v11248_v22, 3 }
 0x467   : > { %v2465_v5 = vsel %vm2457_vm1, %v2444_v35, %v2447_v16  ;;  %v2466_v2 = vsel %vm2460_vm2, %v2453_v53, 920167782  ;;  %v2441_v58 = vshrl.u32 %v8707_v33, %v2440_v15  ;;  %v2462_v11 = vsel %vm2460_vm2, %v2450_v28, 2102212464 }
 0x468   : > { %v7917_v10 = vmin.u32 %v5753_v36, %v11269_v46  ;;  %v2467_v12 = vsel %vm2459_vm4, %v2450_v28, %v2466_v2  ;;  %v2469_v63 = vsel %vm2457_vm1, %v2447_v16, %v2450_v28  ;;  %v2470_v17 = vsel %vm2460_vm2, %v2456_v47, 1326507024 }
 0x469   : > { %v2468_v19 = vsel %vm2458_vm3, %v2465_v5, %v2467_v12  ;;  %v2325_v7 = vshrl.u32 %v2324_v51, 23  ;;  %v5885_v62 = vand.u32 3, %v5884_v25  ;;  %v2461_v23 = vsel %vm2457_vm1, %v2441_v58, %v2444_v35 }
 0x46a   : > { %v5755_v40 = vclz %v7917_v10  ;;  %v2463_v49 = vsel %vm2459_vm4, %v2447_v16, %v2462_v11  ;;  %v2471_v6 = vsel %vm2459_vm4, %v2453_v53, %v2470_v17  ;;  %vm11297_vm5 = vcmp.le.f32.partialorder %v5687_v55, 0.7853982 }
 0x46b   : > { %v11289_v0 = vmul.u32.u64.low %v2473_v59, %v2468_v19  ;;  %v11290_v52 = vmul.u32.u64.high %v2473_v59, %v2468_v19, %v11289_v0  ;;  %v2472_v60 = vsel %vm2458_vm3, %v2469_v63, %v2471_v6  ;;  %v7795_v15 = vadd.s32 4294967169, %v2325_v7 }
 0x46c   : > { %v7918_v29 = vadd.s32 4294967294, %v5755_v40  ;;  %v5773_v38 = vsub.s32 4, %v11255_v9  ;;  %v11302_v57 = vmul.u32.u64.low %v2473_v59, %v2472_v60  ;;  %v11303_v44 = vmul.u32.u64.high %v2473_v59, %v2472_v60, %v11302_v57 }
 0x46d   : > { %vm5689_vm6 = vcmp.lt.s32.totalorder %v11111_v32, 0  ;;  %v2464_v48 = vsel %vm2458_vm3, %v2461_v23, %v2463_v49  ;;  %v2331_v20 = vadd.s32 1, %v7795_v15  ;;  %vm5883_vm8 = vweird.f32 %v10995_v30 }
 0x46e   : > { %vm7919_vm7 = vcmp.lt.s32.totalorder %v7918_v29, 0  ;;  %vm5886_vm9 = vcmp.lt.s32.totalorder %v5885_v62, 2  ;;  %v2483_v55 = vadd.s32 1, %v11290_v52  ;;  %v2321_v34 = vand.u32 2147483647, %v11240_v27 }
 0x46f   : > { %v5758_v4 = vsel %vm7919_vm7, 0, %v7918_v29  ;;  %v5743_v56 = vadd.s32 %v11211_v42, %v11222_v61  ;;  %vm2332_vm10 = vcmp.gt.s32.totalorder %v2331_v20, 0  ;;  %v5774_v22 = vsel %vm5689_vm6, %v5773_v38, %v11255_v9  ;;  %v514_v9 = vpop.permute.xlu1 %513 }
 0x470   : > { %v5759_v14 = vsub.s32 32, %v5758_v4  ;;  %v5763_v13 = vsub.s32 4294967266, %v5758_v4  ;;  %v2480_v25 = vmul.u32 %v2473_v59, %v2464_v48  ;;  %vm2482_vm11 = vc.u32 %v11303_v44, %v11289_v0 }
 0x471   : > { %v2333_v45 = vsel %vm2332_vm10, %v2331_v20, 0  ;;  %v5760_v1 = vshll.u32 %v11269_v46, %v5758_v4  ;;  %v2484_v53 = vsel %vm2482_vm11, %v2483_v55, %v11290_v52  ;;  %v2328_v26 = vand.u32 8388607, %v2321_v34 }
 0x472   : > { %v8444_v35 = vpop.eup %8443  ;;  %v5761_v16 = vshrl.u32 %v5743_v56, %v5759_v14  ;;  %v5764_v28 = vadd.s32 127, %v5763_v13  ;;  %v2485_v54 = vadd.s32 %v2484_v53, %v2480_v25  ;;  %v2335_v18 = vand.u32 31, %v2333_v45 }
 0x473   : > { %v8446_v42 = vpop.eup %8445  ;;  %v5891_v61 = vxor.u32 2147483648, %v8444_v35  ;;  %vm5890_vm12 = vcmp.eq.s32.totalorder %v5885_v62, 2  ;;  %vm5887_vm13 = vcmp.eq.s32.totalorder %v5885_v62, 0  ;;  %v5776_v58 = vsel %vm11297_vm5, 0, %v5774_v22 }
 0x474   : > { %v5888_v59 = vxor.u32 2147483648, %v8446_v42  ;;  %v5762_v51 = vor.u32 %v5761_v16, %v5760_v1  ;;  %v5765_v36 = vshll.u32 %v5764_v28, 23  ;;  %v2486_v46 = vadd.s32 536870912, %v2485_v54 }
 0x475   : > { %v5892_v47 = vsel %vm5890_vm12, %v5891_v61, %v8446_v42  ;;  %v2336_v5 = vsub.s32 32, %v2335_v18  ;;  %v606_v11 = vmul.f32 %v11143_v8, %v514_v9  ;;  %v2329_v63 = vor.u32 8388608, %v2328_v26 }
 0x476   : > { %v5889_v2 = vsel %vm5887_vm13, %v8444_v35, %v5888_v59  ;;  %v5766_v10 = vor.u32 4788187, %v5765_v36  ;;  %v11326_v19 = vshrl.u32 %v2486_v46, 30  ;;  %v5769_v23 = vcvt.s32.f32 %v5762_v51 }
 0x477   : > { %v5893_v12 = vsel %vm5886_vm9, %v5889_v2, %v5892_v47  ;;  %v2339_v17 = vshrl.u32 %v8708_v37, %v2336_v5  ;;  %v2342_v49 = vshrl.u32 %v8709_v39, %v2336_v5  ;;  %v2334_v52 = vshrl.u32 %v2333_v45, 5 }
 0x478   : > { %v5894_v7 = vsel %vm5883_vm8, nan, %v5893_v12  ;;  %v5767_v40 = vand.u32 2147483647, %v5766_v10  ;;  %v2488_v6 = vshll.u32 %v11326_v19, 30  ;;  %v2338_v29 = vshll.u32 %v8707_v33, %v2335_v18 }
 0x479   : > { %7590 = vst [vmem:[%s9190_s23 + $0xf8] sm:$0xff] %v5894_v7  ;;  %v2345_v62 = vshrl.u32 %v8710_v41, %v2336_v5  ;;  %v2341_v15 = vshll.u32 %v8708_v37, %v2335_v18  ;;  %v2347_v38 = vshll.u32 %v8710_v41, %v2335_v18  ;;  %v2348_v30 = vshrl.u32 %v8711_v43, %v2336_v5  ;;  %v510_v7 = vpop.permute.xlu0 %509 }
 0x47a   : > { %v5770_v60 = vmul.f32 %v5769_v23, %v5767_v40  ;;  %v11339_v57 = vsub.s32 %v2485_v54, %v2488_v6  ;;  %v2340_v48 = vor.u32 %v2339_v17, %v2338_v29  ;;  %v2344_v20 = vshll.u32 %v8709_v39, %v2335_v18 }
 0x47b   : > { %v2343_v55 = vor.u32 %v2342_v49, %v2341_v15  ;;  %v2349_v56 = vor.u32 %v2348_v30, %v2347_v38  ;;  %v2351_v14 = vshrl.u32 %v8712_v50, %v2336_v5  ;;  %v5780_v13 = vadd.s32 3, %v5776_v58 }
 0x47c   : > { %v5771_v4 = vxor.u32 2147483648, %v5770_v60  ;;  %vm2427_vm15 = vcmp.lt.s32.totalorder %v11164_v31, 0  ;;  %v2491_v22 = vsub.s32 0, %v11339_v57  ;;  %v2346_v25 = vor.u32 %v2345_v62, %v2344_v20 }
 0x47d   : > { %v2350_v45 = vshll.u32 %v8711_v43, %v2335_v18  ;;  %vm2353_vm14 = vcmp.lt.s32.totalorder %v2334_v52, 1  ;;  %v2369_v1 = vshll.u32 %v2329_v63, 8  ;;  %v11349_v16 = vadd.f32 %v11108_v24, %v606_v11 }
 0x47e   : > { %v5772_v35 = vsel %vm5689_vm6, %v5771_v4, %v5770_v60  ;;  %v7800_v53 = vmin.u32 %v2491_v22, %v11339_v57  ;;  %vm2356_vm0 = vcmp.lt.s32.totalorder %v2334_v52, 4  ;;  %v2337_v61 = vshrl.u32 %v8707_v33, %v2336_v5 }
 0x47f   : > { %v5775_v28 = vsel %vm11297_vm5, %v11111_v32, %v5772_v35  ;;  %v2352_v42 = vor.u32 %v2351_v14, %v2350_v45  ;;  %v2361_v54 = vsel %vm2353_vm14, %v2340_v48, %v2343_v55  ;;  %v2362_v26 = vsel %vm2356_vm0, %v2349_v56, 920167782 }
 0x480   : > { %8447 = vcosq.f32 %v5775_v28  ;;  %vm11360_vm1 = vcmp.le.f32.partialorder %v2425_v3, 0.7853982  ;;  %v2493_v21 = vclz %v7800_v53  ;;  %vm2355_vm2 = vcmp.lt.s32.totalorder %v2334_v52, 3 }
 0x481   : > { %8449 = vsinq.f32 %v5775_v28  ;;  %v2358_v9 = vsel %vm2356_vm0, %v2346_v25, 2102212464  ;;  %v2511_v59 = vsub.s32 4, %v11326_v19  ;;  %vm2354_vm3 = vcmp.lt.s32.totalorder %v2334_v52, 2 }
 0x482   : > { %v2363_v51 = vsel %vm2355_vm2, %v2346_v25, %v2362_v26  ;;  %v2365_v36 = vsel %vm2353_vm14, %v2343_v55, %v2346_v25  ;;  %v7801_v47 = vadd.s32 4294967294, %v2493_v21  ;;  %v2357_v46 = vsel %vm2353_vm14, %v2337_v61, %v2340_v48 }
 0x483   : > { %v2364_v5 = vsel %vm2354_vm3, %v2361_v54, %v2363_v51  ;;  %v2366_v3 = vsel %vm2356_vm0, %v2352_v42, 1326507024  ;;  %v2359_v2 = vsel %vm2355_vm2, %v2343_v55, %v2358_v9  ;;  %v2481_v12 = vadd.s32 %v11289_v0, %v11303_v44  ;;  %v525_v51 = vpop.permute.xlu1 %524 }
 0x484   : > { %v2367_v10 = vsel %vm2355_vm2, %v2349_v56, %v2366_v3  ;;  %v11370_v58 = vmul.u32.u64.low %v2369_v1, %v2364_v5  ;;  %v11371_v11 = vmul.u32.u64.high %v2369_v1, %v2364_v5, %v11370_v58  ;;  %vm7802_vm4 = vcmp.lt.s32.totalorder %v7801_v47, 0 }
 0x485   : > { %v2368_v63 = vsel %vm2354_vm3, %v2365_v36, %v2367_v10  ;;  %v2636_v17 = vand.u32 2139095040, %v11349_v16  ;;  %v2496_v40 = vsel %vm7802_vm4, 0, %v7801_v47  ;;  %v2512_v23 = vsel %vm2427_vm15, %v2511_v59, %v11326_v19 }
 0x486   : > { %v11381_v49 = vmul.u32.u64.low %v2369_v1, %v2368_v63  ;;  %v11382_v6 = vmul.u32.u64.high %v2369_v1, %v2368_v63, %v11381_v49  ;;  %v2497_v29 = vsub.s32 32, %v2496_v40  ;;  %v2501_v62 = vsub.s32 4294967266, %v2496_v40 }
 0x487   : > { %v2360_v60 = vsel %vm2354_vm3, %v2357_v46, %v2359_v2  ;;  %v2637_v15 = vshrl.u32 %v2636_v17, 23  ;;  %v5781_v0 = vand.u32 3, %v5780_v13  ;;  %v2379_v44 = vadd.s32 1, %v11371_v11 }
 0x488   : > { %v2633_v38 = vand.u32 2147483647, %v11349_v16  ;;  %v605_v30 = vmul.f32 %v11143_v8, %v510_v7  ;;  %v2498_v48 = vshll.u32 %v11339_v57, %v2496_v40  ;;  %v2499_v20 = vshrl.u32 %v2481_v12, %v2497_v29 }
 0x489   : > { %v2502_v4 = vadd.s32 127, %v2501_v62  ;;  %v7807_v19 = vadd.s32 4294967169, %v2637_v15  ;;  %v2514_v55 = vsel %vm11360_vm1, 0, %v2512_v23  ;;  %v2376_v56 = vmul.u32 %v2369_v1, %v2360_v60 }
 0x48a   : > { %vm2378_vm5 = vc.u32 %v11382_v6, %v11370_v58  ;;  %v2500_v52 = vor.u32 %v2499_v20, %v2498_v48  ;;  %v2640_v45 = vand.u32 8388607, %v2633_v38  ;;  %v11397_v57 = vadd.f32 %v11108_v24, %v605_v30 }
 0x48b   : > { %v2503_v14 = vshll.u32 %v2502_v4, 23  ;;  %v2380_v13 = vsel %vm2378_vm5, %v2379_v44, %v11371_v11  ;;  %v2643_v22 = vadd.s32 1, %v7807_v19  ;;  %vm5783_vm6 = vcmp.eq.s32.totalorder %v5781_v0, 0 }
 0x48c   : > { %v2381_v25 = vadd.s32 %v2380_v13, %v2376_v56  ;;  %vm5786_vm7 = vcmp.eq.s32.totalorder %v5781_v0, 2  ;;  %v2518_v42 = vadd.s32 3, %v2514_v55  ;;  %v2507_v9 = vcvt.s32.f32 %v2500_v52 }
 0x48d   : > { %v8448_v35 = vpop.eup %8447  ;;  %v2504_v28 = vor.u32 4788187, %v2503_v14  ;;  %vm2644_vm8 = vcmp.gt.s32.totalorder %v2643_v22, 0  ;;  %v2641_v46 = vor.u32 8388608, %v2640_v45  ;;  %v2532_v5 = vand.u32 2139095040, %v11397_v57 }
 0x48e   : > { %v8450_v1 = vpop.eup %8449  ;;  %v5787_v53 = vxor.u32 2147483648, %v8448_v35  ;;  %v2382_v61 = vadd.s32 536870912, %v2381_v25  ;;  %v2645_v54 = vsel %vm2644_vm8, %v2643_v22, 0  ;;  %vm5782_vm9 = vcmp.lt.s32.totalorder %v5781_v0, 2 }
 0x48f   : > { %v5784_v26 = vxor.u32 2147483648, %v8450_v1  ;;  %v2505_v21 = vand.u32 2147483647, %v2504_v28  ;;  %v2647_v59 = vand.u32 31, %v2645_v54  ;;  %vm5779_vm10 = vweird.f32 %v11111_v32 }
 0x490   : > { %v5788_v36 = vsel %vm5786_vm7, %v5787_v53, %v8450_v1  ;;  %v11399_v47 = vshrl.u32 %v2382_v61, 30  ;;  %v11406_v63 = vmul.f32 %v11143_v8, %v525_v51  ;;  %v11408_v40 = vand.u32 3, %v2518_v42 }
 0x491   : > { %v5785_v3 = vsel %vm5783_vm6, %v8448_v35, %v5784_v26  ;;  %v2508_v2 = vmul.f32 %v2507_v9, %v2505_v21  ;;  %v2648_v10 = vsub.s32 32, %v2647_v59  ;;  %v11415_v62 = vshll.u32 %v2641_v46, 8 }
 0x492   : > { %v5789_v11 = vsel %vm5782_vm9, %v5785_v3, %v5788_v36  ;;  %v2384_v12 = vshll.u32 %v11399_v47, 30  ;;  %v2533_v32 = vshrl.u32 %v2532_v5, 23  ;;  %v2646_v15 = vshrl.u32 %v2645_v54, 5 }
 0x493   : > { %v5790_v17 = vsel %vm5779_vm10, nan, %v5789_v11  ;;  %v2509_v7 = vxor.u32 2147483648, %v2508_v2  ;;  %v2651_v23 = vshrl.u32 %v8708_v37, %v2648_v10  ;;  %v2654_v29 = vshrl.u32 %v8709_v39, %v2648_v10 }
 0x494   : > { %7588 = vst [vmem:[%s9190_s23 + $0xe8] sm:$0xff] %v5790_v17  ;;  %v11412_v49 = vsub.s32 %v2381_v25, %v2384_v12  ;;  %v2650_v8 = vshll.u32 %v8707_v33, %v2647_v59  ;;  %v2657_v0 = vshrl.u32 %v8710_v41, %v2648_v10  ;;  %v2653_v48 = vshll.u32 %v8708_v37, %v2647_v59 }
 0x495   : > { %v2510_v60 = vsel %vm2427_vm15, %v2509_v7, %v2508_v2  ;;  %v2656_v20 = vshll.u32 %v8709_v39, %v2647_v59  ;;  %v2659_v19 = vshll.u32 %v8710_v41, %v2647_v59  ;;  %v2660_v55 = vshrl.u32 %v8711_v43, %v2648_v10 }
 0x496   : > { %v2513_v44 = vsel %vm11360_vm1, %v11164_v31, %v2510_v60  ;;  %v2387_v30 = vsub.s32 0, %v11412_v49  ;;  %v2652_v4 = vor.u32 %v2651_v23, %v2650_v8  ;;  %v2655_v52 = vor.u32 %v2654_v29, %v2653_v48 }
 0x497   : > { %8451 = vcosq.f32 %v2513_v44  ;;  %v2658_v14 = vor.u32 %v2657_v0, %v2656_v20  ;;  %v2661_v13 = vor.u32 %v2660_v55, %v2659_v19  ;;  %v2662_v18 = vshll.u32 %v8711_v43, %v2647_v59 }
 0x498   : > { %8453 = vsinq.f32 %v2513_v44  ;;  %v7796_v56 = vmin.u32 %v2387_v30, %v11412_v49  ;;  %v2663_v22 = vshrl.u32 %v8712_v50, %v2648_v10  ;;  %v2529_v25 = vand.u32 2147483647, %v11397_v57 }
 0x499   : > { %v2649_v35 = vshrl.u32 %v8707_v33, %v2648_v10  ;;  %vm2665_vm11 = vcmp.lt.s32.totalorder %v2646_v15, 1  ;;  %v7803_v28 = vadd.s32 4294967169, %v2533_v32  ;;  %vm2666_vm12 = vcmp.lt.s32.totalorder %v2646_v15, 2 }
 0x49a   : > { %v2389_v45 = vclz %v7796_v56  ;;  %v2664_v1 = vor.u32 %v2663_v22, %v2662_v18  ;;  %vm2667_vm13 = vcmp.lt.s32.totalorder %v2646_v15, 3  ;;  %vm2668_vm15 = vcmp.lt.s32.totalorder %v2646_v15, 4 }
 0x49b   : > { %vm2323_vm14 = vcmp.lt.s32.totalorder %v11240_v27, 0  ;;  %v2670_v42 = vsel %vm2668_vm15, %v2658_v14, 2102212464  ;;  %v2673_v61 = vsel %vm2665_vm11, %v2652_v4, %v2655_v52  ;;  %v2674_v54 = vsel %vm2668_vm15, %v2661_v13, 920167782 }
 0x49c   : > { %v7797_v53 = vadd.s32 4294967294, %v2389_v45  ;;  %v2669_v26 = vsel %vm2665_vm11, %v2649_v35, %v2652_v4  ;;  %v2675_v21 = vsel %vm2667_vm13, %v2658_v14, %v2674_v54  ;;  %v2677_v9 = vsel %vm2665_vm11, %v2655_v52, %v2658_v14 }
 0x49d   : > { %v2678_v59 = vsel %vm2668_vm15, %v2664_v1, 1326507024  ;;  %v2671_v51 = vsel %vm2667_vm13, %v2655_v52, %v2670_v42  ;;  %v2676_v36 = vsel %vm2666_vm12, %v2673_v61, %v2675_v21  ;;  %vm11438_vm1 = vcmp.le.f32.partialorder %v2321_v34, 0.7853982 }
 0x49e   : > { %vm7798_vm0 = vcmp.lt.s32.totalorder %v7797_v53, 0  ;;  %v2679_v46 = vsel %vm2667_vm13, %v2661_v13, %v2678_v59  ;;  %v11444_v10 = vmul.u32.u64.low %v11415_v62, %v2676_v36  ;;  %v11445_v11 = vmul.u32.u64.high %v11415_v62, %v2676_v36, %v11444_v10 }
 0x49f   : > { %v2392_v3 = vsel %vm7798_vm0, 0, %v7797_v53  ;;  %v2680_v2 = vsel %vm2666_vm12, %v2677_v9, %v2679_v46  ;;  %vm2520_vm2 = vcmp.lt.s32.totalorder %v11408_v40, 2  ;;  %v2377_v12 = vadd.s32 %v11370_v58, %v11382_v6 }
 0x4a0   : > { %v2393_v17 = vsub.s32 32, %v2392_v3  ;;  %v2397_v7 = vsub.s32 4294967266, %v2392_v3  ;;  %vm2517_vm3 = vweird.f32 %v11164_v31  ;;  %v2407_v34 = vsub.s32 4, %v11399_v47 }
 0x4a1   : > { %v11454_v23 = vmul.u32.u64.low %v11415_v62, %v2680_v2  ;;  %v11455_v29 = vmul.u32.u64.high %v11415_v62, %v2680_v2, %v11454_v23  ;;  %v2539_v32 = vadd.s32 1, %v7803_v28  ;;  %v2394_v60 = vshll.u32 %v11412_v49, %v2392_v3 }
 0x4a2   : > { %v2395_v8 = vshrl.u32 %v2377_v12, %v2393_v17  ;;  %v2398_v0 = vadd.s32 127, %v2397_v7  ;;  %v2672_v44 = vsel %vm2666_vm12, %v2669_v26, %v2671_v51  ;;  %vm2521_vm4 = vcmp.eq.s32.totalorder %v11408_v40, 0 }
 0x4a3   : > { %v2691_v58 = vadd.s32 1, %v11445_v11  ;;  %v2536_v6 = vand.u32 8388607, %v2529_v25  ;;  %vm2540_vm5 = vcmp.gt.s32.totalorder %v2539_v32, 0  ;;  %vm2524_vm6 = vcmp.eq.s32.totalorder %v11408_v40, 2 }
 0x4a4   : > { %v8452_v30 = vpop.eup %8451  ;;  %v2396_v48 = vor.u32 %v2395_v8, %v2394_v60  ;;  %v2399_v20 = vshll.u32 %v2398_v0, 23  ;;  %v2541_v4 = vsel %vm2540_vm5, %v2539_v32, 0  ;;  %v2408_v15 = vsel %vm2323_vm14, %v2407_v34, %v11399_v47 }
 0x4a5   : > { %v8454_v19 = vpop.eup %8453  ;;  %v2525_v49 = vxor.u32 2147483648, %v8452_v30  ;;  %v2688_v55 = vmul.u32 %v11415_v62, %v2672_v44  ;;  %vm2690_vm7 = vc.u32 %v11455_v29, %v11444_v10  ;;  %v11473_v13 = vadd.f32 %v11108_v24, %v11406_v63 }
 0x4a6   : > { %v2522_v56 = vxor.u32 2147483648, %v8454_v19  ;;  %v2400_v52 = vor.u32 4788187, %v2399_v20  ;;  %v2692_v14 = vsel %vm2690_vm7, %v2691_v58, %v11445_v11  ;;  %v2537_v45 = vor.u32 8388608, %v2536_v6 }
 0x4a7   : > { %v2526_v18 = vsel %vm2524_vm6, %v2525_v49, %v8454_v19  ;;  %v2693_v22 = vadd.s32 %v2692_v14, %v2688_v55  ;;  %v2543_v35 = vand.u32 31, %v2541_v4  ;;  %v2403_v28 = vcvt.s32.f32 %v2396_v48 }
 0x4a8   : > { %v2523_v47 = vsel %vm2521_vm4, %v8452_v30, %v2522_v56  ;;  %v2401_v62 = vand.u32 2147483647, %v2400_v52  ;;  %v2410_v1 = vsel %vm11438_vm1, 0, %v2408_v15  ;;  %v11481_v61 = vshrl.u32 %v2541_v4, 5 }
 0x4a9   : > { %v2527_v53 = vsel %vm2520_vm2, %v2523_v47, %v2526_v18  ;;  %v2694_v42 = vadd.s32 536870912, %v2693_v22  ;;  %v2544_v24 = vsub.s32 32, %v2543_v35  ;;  %v2546_v26 = vshll.u32 %v8707_v33, %v2543_v35 }
 0x4aa   : > { %v2528_v63 = vsel %vm2517_vm3, nan, %v2527_v53  ;;  %v2404_v54 = vmul.f32 %v2403_v28, %v2401_v62  ;;  %v2549_v21 = vshll.u32 %v8708_v37, %v2543_v35  ;;  %v2552_v51 = vshll.u32 %v8709_v39, %v2543_v35 }
 0x4ab   : > { %7593 = vst [vmem:[%s9190_s23 + $0x110] sm:$0xff] %v2528_v63  ;;  %v11488_v9 = vshrl.u32 %v2694_v42, 30  ;;  %v2547_v59 = vshrl.u32 %v8708_v37, %v2544_v24  ;;  %v2550_v40 = vshrl.u32 %v8709_v39, %v2544_v24  ;;  %v2553_v46 = vshrl.u32 %v8710_v41, %v2544_v24 }
 0x4ac   : > { %v2405_v36 = vxor.u32 2147483648, %v2404_v54  ;;  %v2555_v31 = vshll.u32 %v8710_v41, %v2543_v35  ;;  %v2556_v3 = vshrl.u32 %v8711_v43, %v2544_v24  ;;  %v2414_v2 = vadd.s32 3, %v2410_v1 }
 0x4ad   : > { %v2696_v11 = vshll.u32 %v11488_v9, 30  ;;  %v2548_v12 = vor.u32 %v2547_v59, %v2546_v26  ;;  %v2551_v7 = vor.u32 %v2550_v40, %v2549_v21  ;;  %v2554_v34 = vor.u32 %v2553_v46, %v2552_v51 }
 0x4ae   : > { %v2406_v17 = vsel %vm2323_vm14, %v2405_v36, %v2404_v54  ;;  %v2557_v23 = vor.u32 %v2556_v3, %v2555_v31  ;;  %v2558_v8 = vshll.u32 %v8711_v43, %v2543_v35  ;;  %v2559_v0 = vshrl.u32 %v8712_v50, %v2544_v24 }
 0x4af   : > { %v2409_v32 = vsel %vm11438_vm1, %v11240_v27, %v2406_v17  ;;  %v11502_v60 = vsub.s32 %v2693_v22, %v2696_v11  ;;  %vm2561_vm8 = vcmp.lt.s32.totalorder %v11481_v61, 1  ;;  %v2577_v44 = vshll.u32 %v2537_v45, 8 }
 0x4b0   : > { %8455 = vcosq.f32 %v2409_v32  ;;  %v2844_v58 = vand.u32 2139095040, %v11473_v13  ;;  %v2560_v30 = vor.u32 %v2559_v0, %v2558_v8  ;;  %vm2564_vm9 = vcmp.lt.s32.totalorder %v11481_v61, 4 }
 0x4b1   : > { %8457 = vsinq.f32 %v2409_v32  ;;  %v2699_v6 = vsub.s32 0, %v11502_v60  ;;  %vm2562_vm10 = vcmp.lt.s32.totalorder %v11481_v61, 2  ;;  %vm2563_vm11 = vcmp.lt.s32.totalorder %v11481_v61, 3 }
 0x4b2   : > { %v2569_v5 = vsel %vm2561_vm8, %v2548_v12, %v2551_v7  ;;  %v2570_v48 = vsel %vm2564_vm9, %v2557_v23, 920167782  ;;  %v2545_v4 = vshrl.u32 %v8707_v33, %v2544_v24  ;;  %v2566_v19 = vsel %vm2564_vm9, %v2554_v34, 2102212464 }
 0x4b3   : > { %v7808_v20 = vmin.u32 %v2699_v6, %v11502_v60  ;;  %v2571_v49 = vsel %vm2563_vm11, %v2554_v34, %v2570_v48  ;;  %v2573_v55 = vsel %vm2561_vm8, %v2551_v7, %v2554_v34  ;;  %v2574_v56 = vsel %vm2564_vm9, %v2560_v30, 1326507024 }
 0x4b4   : > { %v2572_v15 = vsel %vm2562_vm10, %v2569_v5, %v2571_v49  ;;  %v2845_v52 = vshrl.u32 %v2844_v58, 23  ;;  %v2415_v14 = vand.u32 3, %v2414_v2  ;;  %v2565_v22 = vsel %vm2561_vm8, %v2545_v4, %v2548_v12 }
 0x4b5   : > { %v2701_v18 = vclz %v7808_v20  ;;  %v2567_v45 = vsel %vm2563_vm11, %v2551_v7, %v2566_v19  ;;  %v2575_v35 = vsel %vm2563_vm11, %v2557_v23, %v2574_v56  ;;  %vm11530_vm12 = vcmp.le.f32.partialorder %v2633_v38, 0.7853982  ;;  %v11560_v20 = vld [vmem:[%s13941_s1] ss:$0 sm:$0xff] }
 0x4b6   : > { %v11522_v47 = vmul.u32.u64.low %v2577_v44, %v2572_v15  ;;  %v11523_v62 = vmul.u32.u64.high %v2577_v44, %v2572_v15, %v11522_v47  ;;  %v2576_v1 = vsel %vm2562_vm10, %v2573_v55, %v2575_v35  ;;  %v7815_v53 = vadd.s32 4294967169, %v2845_v52 }
 0x4b7   : > { %v7809_v28 = vadd.s32 4294967294, %v2701_v18  ;;  %v2719_v24 = vsub.s32 4, %v11488_v9  ;;  %v11535_v63 = vmul.u32.u64.low %v2577_v44, %v2576_v1  ;;  %v11536_v54 = vmul.u32.u64.high %v2577_v44, %v2576_v1, %v11535_v63 }
 0x4b8   : > { %vm2635_vm13 = vcmp.lt.s32.totalorder %v11349_v16, 0  ;;  %v2568_v26 = vsel %vm2562_vm10, %v2565_v22, %v2567_v45  ;;  %v2851_v21 = vadd.s32 1, %v7815_v53  ;;  %vm2413_vm14 = vweird.f32 %v11240_v27 }
 0x4b9   : > { %vm7810_vm15 = vcmp.lt.s32.totalorder %v7809_v28, 0  ;;  %vm2416_vm0 = vcmp.lt.s32.totalorder %v2415_v14, 2  ;;  %v2587_v38 = vadd.s32 1, %v11523_v62  ;;  %v2841_v40 = vand.u32 2147483647, %v11473_v13 }
 0x4ba   : > { %v2704_v59 = vsel %vm7810_vm15, 0, %v7809_v28  ;;  %v2689_v51 = vadd.s32 %v11444_v10, %v11455_v29  ;;  %vm2852_vm1 = vcmp.gt.s32.totalorder %v2851_v21, 0  ;;  %v2720_v61 = vsel %vm2635_vm13, %v2719_v24, %v11488_v9  ;;  %v521_v9 = vpop.permute.xlu0 %520 }
 0x4bb   : > { %v2705_v36 = vsub.s32 32, %v2704_v59  ;;  %v2709_v46 = vsub.s32 4294967266, %v2704_v59  ;;  %v2584_v31 = vmul.u32 %v2577_v44, %v2568_v26  ;;  %vm2586_vm2 = vc.u32 %v11536_v54, %v11522_v47 }
 0x4bc   : > { %v2853_v3 = vsel %vm2852_vm1, %v2851_v21, 0  ;;  %v2706_v11 = vshll.u32 %v11502_v60, %v2704_v59  ;;  %v2588_v7 = vsel %vm2586_vm2, %v2587_v38, %v11523_v62  ;;  %v2848_v23 = vand.u32 8388607, %v2841_v40 }
 0x4bd   : > { %v8456_v2 = vpop.eup %8455  ;;  %v2707_v12 = vshrl.u32 %v2689_v51, %v2705_v36  ;;  %v2710_v17 = vadd.s32 127, %v2709_v46  ;;  %v2589_v34 = vadd.s32 %v2588_v7, %v2584_v31  ;;  %v2855_v32 = vand.u32 31, %v2853_v3 }
 0x4be   : > { %v8458_v10 = vpop.eup %8457  ;;  %v2421_v29 = vxor.u32 2147483648, %v8456_v2  ;;  %vm2420_vm3 = vcmp.eq.s32.totalorder %v2415_v14, 2  ;;  %vm2417_vm4 = vcmp.eq.s32.totalorder %v2415_v14, 0  ;;  %v2722_v48 = vsel %vm11530_vm12, 0, %v2720_v61 }
 0x4bf   : > { %v2418_v8 = vxor.u32 2147483648, %v8458_v10  ;;  %v2708_v0 = vor.u32 %v2707_v12, %v2706_v11  ;;  %v2711_v44 = vshll.u32 %v2710_v17, 23  ;;  %v2590_v60 = vadd.s32 536870912, %v2589_v34  ;;  %v11589_v11 = vld [vmem:[%s13943_s3] ss:$0 sm:$0xff] }
 0x4c0   : > { %v2422_v58 = vsel %vm2420_vm3, %v2421_v29, %v8458_v10  ;;  %v2856_v6 = vsub.s32 32, %v2855_v32  ;;  %v607_v4 = vmul.f32 %v11560_v20, %v521_v9  ;;  %v2849_v15 = vor.u32 8388608, %v2848_v23 }
 0x4c1   : > { %v2419_v30 = vsel %vm2417_vm4, %v8456_v2, %v2418_v8  ;;  %v2712_v5 = vor.u32 4788187, %v2711_v44  ;;  %v11564_v49 = vshrl.u32 %v2590_v60, 30  ;;  %v2715_v18 = vcvt.s32.f32 %v2708_v0 }
 0x4c2   : > { %v2423_v19 = vsel %vm2416_vm0, %v2419_v30, %v2422_v58  ;;  %v2859_v55 = vshrl.u32 %v8708_v37, %v2856_v6  ;;  %v2862_v22 = vshrl.u32 %v8709_v39, %v2856_v6  ;;  %v2854_v35 = vshrl.u32 %v2853_v3, 5 }
 0x4c3   : > { %v2424_v56 = vsel %vm2413_vm14, nan, %v2423_v19  ;;  %v2713_v52 = vand.u32 2147483647, %v2712_v5  ;;  %v2592_v45 = vshll.u32 %v11564_v49, 30  ;;  %v2858_v62 = vshll.u32 %v8707_v33, %v2855_v32 }
 0x4c4   : > { %7591 = vst [vmem:[%s9190_s23 + $0x100] sm:$0xff] %v2424_v56  ;;  %v2865_v14 = vshrl.u32 %v8710_v41, %v2856_v6  ;;  %v2861_v1 = vshll.u32 %v8708_v37, %v2855_v32  ;;  %v2867_v53 = vshll.u32 %v8710_v41, %v2855_v32  ;;  %v2868_v27 = vshrl.u32 %v8711_v43, %v2856_v6  ;;  %v536_v56 = vpop.permute.xlu1 %535 }
 0x4c5   : > { %v2716_v28 = vmul.f32 %v2715_v18, %v2713_v52  ;;  %v11577_v24 = vsub.s32 %v2589_v34, %v2592_v45  ;;  %v2860_v63 = vor.u32 %v2859_v55, %v2858_v62  ;;  %v2864_v26 = vshll.u32 %v8709_v39, %v2855_v32 }
 0x4c6   : > { %v2863_v59 = vor.u32 %v2862_v22, %v2861_v1  ;;  %v2869_v38 = vor.u32 %v2868_v27, %v2867_v53  ;;  %v2871_v51 = vshrl.u32 %v8712_v50, %v2856_v6  ;;  %v2726_v36 = vadd.s32 3, %v2722_v48 }
 0x4c7   : > { %v2717_v21 = vxor.u32 2147483648, %v2716_v28  ;;  %vm2531_vm5 = vcmp.lt.s32.totalorder %v11397_v57, 0  ;;  %v2595_v46 = vsub.s32 0, %v11577_v24  ;;  %v2866_v61 = vor.u32 %v2865_v14, %v2864_v26 }
 0x4c8   : > { %v2870_v31 = vshll.u32 %v8711_v43, %v2855_v32  ;;  %vm2873_vm6 = vcmp.lt.s32.totalorder %v2854_v35, 1  ;;  %v2889_v2 = vshll.u32 %v2849_v15, 8  ;;  %v11592_v12 = vadd.f32 %v11589_v11, %v607_v4 }
 0x4c9   : > { %v2718_v3 = vsel %vm2635_vm13, %v2717_v21, %v2716_v28  ;;  %v7804_v7 = vmin.u32 %v2595_v46, %v11577_v24  ;;  %vm2876_vm7 = vcmp.lt.s32.totalorder %v2854_v35, 4  ;;  %v2857_v29 = vshrl.u32 %v8707_v33, %v2856_v6 }
 0x4ca   : > { %v2721_v17 = vsel %vm11530_vm12, %v11349_v16, %v2718_v3  ;;  %v2872_v10 = vor.u32 %v2871_v51, %v2870_v31  ;;  %v2881_v34 = vsel %vm2873_vm6, %v2860_v63, %v2863_v59  ;;  %v2882_v23 = vsel %vm2876_vm7, %v2869_v38, 920167782 }
 0x4cb   : > { %8459 = vcosq.f32 %v2721_v17  ;;  %vm11603_vm8 = vcmp.le.f32.partialorder %v2529_v25, 0.7853982  ;;  %v2597_v42 = vclz %v7804_v7  ;;  %vm2875_vm9 = vcmp.lt.s32.totalorder %v2854_v35, 3 }
 0x4cc   : > { %8461 = vsinq.f32 %v2721_v17  ;;  %v2878_v9 = vsel %vm2876_vm7, %v2866_v61, 2102212464  ;;  %v2615_v8 = vsub.s32 4, %v11564_v49  ;;  %vm2874_vm10 = vcmp.lt.s32.totalorder %v2854_v35, 2 }
 0x4cd   : > { %v2883_v0 = vsel %vm2875_vm9, %v2866_v61, %v2882_v23  ;;  %v2885_v44 = vsel %vm2873_vm6, %v2863_v59, %v2866_v61  ;;  %v7805_v58 = vadd.s32 4294967294, %v2597_v42  ;;  %v2877_v60 = vsel %vm2873_vm6, %v2857_v29, %v2860_v63 }
 0x4ce   : > { %v2884_v6 = vsel %vm2874_vm10, %v2881_v34, %v2883_v0  ;;  %v2886_v25 = vsel %vm2876_vm7, %v2872_v10, 1326507024  ;;  %v2879_v30 = vsel %vm2875_vm9, %v2863_v59, %v2878_v9  ;;  %v2585_v19 = vadd.s32 %v11522_v47, %v11536_v54  ;;  %v532_v0 = vpop.permute.xlu0 %531 }
 0x4cf   : > { %v2887_v5 = vsel %vm2875_vm9, %v2869_v38, %v2886_v25  ;;  %v11613_v48 = vmul.u32.u64.low %v2889_v2, %v2884_v6  ;;  %v11614_v4 = vmul.u32.u64.high %v2889_v2, %v2884_v6, %v11613_v48  ;;  %vm7806_vm11 = vcmp.lt.s32.totalorder %v7805_v58, 0 }
 0x4d0   : > { %v2888_v15 = vsel %vm2874_vm10, %v2885_v44, %v2887_v5  ;;  %v2740_v55 = vand.u32 2139095040, %v11592_v12  ;;  %v2600_v52 = vsel %vm7806_vm11, 0, %v7805_v58  ;;  %v2616_v18 = vsel %vm2531_vm5, %v2615_v8, %v11564_v49 }
 0x4d1   : > { %v11624_v22 = vmul.u32.u64.low %v2889_v2, %v2888_v15  ;;  %v11625_v45 = vmul.u32.u64.high %v2889_v2, %v2888_v15, %v11624_v22  ;;  %v2601_v62 = vsub.s32 32, %v2600_v52  ;;  %v2605_v14 = vsub.s32 4294967266, %v2600_v52 }
 0x4d2   : > { %v2880_v28 = vsel %vm2874_vm10, %v2877_v60, %v2879_v30  ;;  %v2741_v1 = vshrl.u32 %v2740_v55, 23  ;;  %v2727_v47 = vand.u32 3, %v2726_v36  ;;  %v2899_v54 = vadd.s32 1, %v11614_v4 }
 0x4d3   : > { %v2737_v53 = vand.u32 2147483647, %v11592_v12  ;;  %v610_v27 = vmul.f32 %v11560_v20, %v536_v56  ;;  %v2602_v63 = vshll.u32 %v11577_v24, %v2600_v52  ;;  %v2603_v26 = vshrl.u32 %v2585_v19, %v2601_v62 }
 0x4d4   : > { %v2606_v21 = vadd.s32 127, %v2605_v14  ;;  %v7811_v49 = vadd.s32 4294967169, %v2741_v1  ;;  %v2618_v59 = vsel %vm11603_vm8, 0, %v2616_v18  ;;  %v2896_v38 = vmul.u32 %v2889_v2, %v2880_v28 }
 0x4d5   : > { %vm2898_vm12 = vc.u32 %v11625_v45, %v11613_v48  ;;  %v2604_v35 = vor.u32 %v2603_v26, %v2602_v63  ;;  %v2744_v31 = vand.u32 8388607, %v2737_v53  ;;  %v11640_v24 = vadd.f32 %v11589_v11, %v610_v27 }
 0x4d6   : > { %v2607_v51 = vshll.u32 %v2606_v21, 23  ;;  %v2900_v36 = vsel %vm2898_vm12, %v2899_v54, %v11614_v4  ;;  %v2747_v46 = vadd.s32 1, %v7811_v49  ;;  %vm2729_vm13 = vcmp.eq.s32.totalorder %v2727_v47, 0 }
 0x4d7   : > { %v2901_v61 = vadd.s32 %v2900_v36, %v2896_v38  ;;  %vm2732_vm15 = vcmp.eq.s32.totalorder %v2727_v47, 2  ;;  %v2622_v10 = vadd.s32 3, %v2618_v59  ;;  %v2611_v9 = vcvt.s32.f32 %v2604_v35 }
 0x4d8   : > { %v8460_v3 = vpop.eup %8459  ;;  %v2608_v17 = vor.u32 4788187, %v2607_v51  ;;  %vm2748_vm14 = vcmp.gt.s32.totalorder %v2747_v46, 0  ;;  %v2745_v60 = vor.u32 8388608, %v2744_v31  ;;  %v3052_v6 = vand.u32 2139095040, %v11640_v24 }
 0x4d9   : > { %v8462_v2 = vpop.eup %8461  ;;  %v2733_v7 = vxor.u32 2147483648, %v8460_v3  ;;  %v2902_v29 = vadd.s32 536870912, %v2901_v61  ;;  %v2749_v34 = vsel %vm2748_vm14, %v2747_v46, 0  ;;  %vm2728_vm0 = vcmp.lt.s32.totalorder %v2727_v47, 2 }
 0x4da   : > { %v2730_v23 = vxor.u32 2147483648, %v8462_v2  ;;  %v2609_v42 = vand.u32 2147483647, %v2608_v17  ;;  %v2751_v8 = vand.u32 31, %v2749_v34  ;;  %vm2725_vm1 = vweird.f32 %v11349_v16 }
 0x4db   : > { %v2734_v44 = vsel %vm2732_vm15, %v2733_v7, %v8462_v2  ;;  %v11642_v58 = vshrl.u32 %v2902_v29, 30  ;;  %v11649_v15 = vmul.f32 %v11560_v20, %v532_v0  ;;  %v11651_v52 = vand.u32 3, %v2622_v10 }
 0x4dc   : > { %v2731_v25 = vsel %vm2729_vm13, %v8460_v3, %v2730_v23  ;;  %v2612_v30 = vmul.f32 %v2611_v9, %v2609_v42  ;;  %v2752_v5 = vsub.s32 32, %v2751_v8  ;;  %v11658_v14 = vshll.u32 %v2745_v60, 8 }
 0x4dd   : > { %v2735_v4 = vsel %vm2728_vm0, %v2731_v25, %v2734_v44  ;;  %v2904_v19 = vshll.u32 %v11642_v58, 30  ;;  %v3053_v16 = vshrl.u32 %v3052_v6, 23  ;;  %v2750_v1 = vshrl.u32 %v2749_v34, 5 }
 0x4de   : > { %v2736_v55 = vsel %vm2725_vm1, nan, %v2735_v4  ;;  %v2613_v56 = vxor.u32 2147483648, %v2612_v30  ;;  %v2755_v18 = vshrl.u32 %v8708_v37, %v2752_v5  ;;  %v2758_v62 = vshrl.u32 %v8709_v39, %v2752_v5 }
 0x4df   : > { %7597 = vst [vmem:[%s9190_s23 + $0x130] sm:$0xff] %v2736_v55  ;;  %v11655_v22 = vsub.s32 %v2901_v61, %v2904_v19  ;;  %v2754_v47 = vshll.u32 %v8707_v33, %v2751_v8  ;;  %v2761_v54 = vshrl.u32 %v8710_v41, %v2752_v5  ;;  %v2757_v26 = vshll.u32 %v8708_v37, %v2751_v8 }
 0x4e0   : > { %v2614_v28 = vsel %vm2531_vm5, %v2613_v56, %v2612_v30  ;;  %v2760_v21 = vshll.u32 %v8709_v39, %v2751_v8  ;;  %v2763_v59 = vshll.u32 %v8710_v41, %v2751_v8  ;;  %v2764_v38 = vshrl.u32 %v8711_v43, %v2752_v5 }
 0x4e1   : > { %v2617_v27 = vsel %vm11603_vm8, %v11397_v57, %v2614_v28  ;;  %v2907_v63 = vsub.s32 0, %v11655_v22  ;;  %v2756_v49 = vor.u32 %v2755_v18, %v2754_v47  ;;  %v2759_v51 = vor.u32 %v2758_v62, %v2757_v26 }
 0x4e2   : > { %8463 = vcosq.f32 %v2617_v27  ;;  %v2762_v36 = vor.u32 %v2761_v54, %v2760_v21  ;;  %v2765_v46 = vor.u32 %v2764_v38, %v2763_v59  ;;  %v2766_v32 = vshll.u32 %v8711_v43, %v2751_v8 }
 0x4e3   : > { %8465 = vsinq.f32 %v2617_v27  ;;  %v7816_v35 = vmin.u32 %v2907_v63, %v11655_v22  ;;  %v2767_v61 = vshrl.u32 %v8712_v50, %v2752_v5  ;;  %v3049_v31 = vand.u32 2147483647, %v11640_v24 }
 0x4e4   : > { %v2753_v17 = vshrl.u32 %v8707_v33, %v2752_v5  ;;  %vm2769_vm2 = vcmp.lt.s32.totalorder %v2750_v1, 1  ;;  %v7823_v2 = vadd.s32 4294967169, %v3053_v16  ;;  %vm2770_vm3 = vcmp.lt.s32.totalorder %v2750_v1, 2 }
 0x4e5   : > { %v2909_v3 = vclz %v7816_v35  ;;  %v2768_v7 = vor.u32 %v2767_v61, %v2766_v32  ;;  %vm2771_vm4 = vcmp.lt.s32.totalorder %v2750_v1, 3  ;;  %vm2772_vm5 = vcmp.lt.s32.totalorder %v2750_v1, 4 }
 0x4e6   : > { %vm2843_vm6 = vcmp.lt.s32.totalorder %v11473_v13, 0  ;;  %v2774_v29 = vsel %vm2772_vm5, %v2762_v36, 2102212464  ;;  %v2777_v34 = vsel %vm2769_vm2, %v2756_v49, %v2759_v51  ;;  %v2778_v23 = vsel %vm2772_vm5, %v2765_v46, 920167782 }
 0x4e7   : > { %v7817_v10 = vadd.s32 4294967294, %v2909_v3  ;;  %v2773_v42 = vsel %vm2769_vm2, %v2753_v17, %v2756_v49  ;;  %v2779_v9 = vsel %vm2771_vm4, %v2762_v36, %v2778_v23  ;;  %v2781_v8 = vsel %vm2769_vm2, %v2759_v51, %v2762_v36 }
 0x4e8   : > { %v2782_v0 = vsel %vm2772_vm5, %v2768_v7, 1326507024  ;;  %v2775_v44 = vsel %vm2771_vm4, %v2759_v51, %v2774_v29  ;;  %v2780_v60 = vsel %vm2770_vm3, %v2777_v34, %v2779_v9  ;;  %vm11681_vm8 = vcmp.le.f32.partialorder %v2841_v40, 0.7853982 }
 0x4e9   : > { %vm7818_vm7 = vcmp.lt.s32.totalorder %v7817_v10, 0  ;;  %v2783_v6 = vsel %vm2771_vm4, %v2765_v46, %v2782_v0  ;;  %v11687_v4 = vmul.u32.u64.low %v11658_v14, %v2780_v60  ;;  %v11688_v19 = vmul.u32.u64.high %v11658_v14, %v2780_v60, %v11687_v4 }
 0x4ea   : > { %v2912_v30 = vsel %vm7818_vm7, 0, %v7817_v10  ;;  %v2784_v5 = vsel %vm2770_vm3, %v2781_v8, %v2783_v6  ;;  %vm2624_vm9 = vcmp.lt.s32.totalorder %v11651_v52, 2  ;;  %v2897_v55 = vadd.s32 %v11613_v48, %v11625_v45 }
 0x4eb   : > { %v2913_v56 = vsub.s32 32, %v2912_v30  ;;  %v2917_v18 = vsub.s32 4294967266, %v2912_v30  ;;  %vm2621_vm10 = vweird.f32 %v11397_v57  ;;  %v2927_v40 = vsub.s32 4, %v11642_v58 }
 0x4ec   : > { %v11697_v62 = vmul.u32.u64.low %v11658_v14, %v2784_v5  ;;  %v11698_v16 = vmul.u32.u64.high %v11658_v14, %v2784_v5, %v11697_v62  ;;  %v3059_v28 = vadd.s32 1, %v7823_v2  ;;  %v2914_v47 = vshll.u32 %v11655_v22, %v2912_v30 }
 0x4ed   : > { %v2915_v54 = vshrl.u32 %v2897_v55, %v2913_v56  ;;  %v2918_v27 = vadd.s32 127, %v2917_v18  ;;  %v2776_v63 = vsel %vm2770_vm3, %v2773_v42, %v2775_v44  ;;  %vm2625_vm11 = vcmp.eq.s32.totalorder %v11651_v52, 0 }
 0x4ee   : > { %v2795_v48 = vadd.s32 1, %v11688_v19  ;;  %v3056_v45 = vand.u32 8388607, %v3049_v31  ;;  %vm3060_vm12 = vcmp.gt.s32.totalorder %v3059_v28, 0  ;;  %vm2628_vm13 = vcmp.eq.s32.totalorder %v11651_v52, 2 }
 0x4ef   : > { %v8464_v26 = vpop.eup %8463  ;;  %v2916_v21 = vor.u32 %v2915_v54, %v2914_v47  ;;  %v2919_v49 = vshll.u32 %v2918_v27, 23  ;;  %v3061_v59 = vsel %vm3060_vm12, %v3059_v28, 0  ;;  %v2928_v1 = vsel %vm2843_vm6, %v2927_v40, %v11642_v58 }
 0x4f0   : > { %v8466_v38 = vpop.eup %8465  ;;  %v2629_v22 = vxor.u32 2147483648, %v8464_v26  ;;  %v2792_v35 = vmul.u32 %v11658_v14, %v2776_v63  ;;  %vm2794_vm15 = vc.u32 %v11698_v16, %v11687_v4  ;;  %v11716_v32 = vadd.f32 %v11589_v11, %v11649_v15 }
 0x4f1   : > { %v2626_v51 = vxor.u32 2147483648, %v8466_v38  ;;  %v2920_v36 = vor.u32 4788187, %v2919_v49  ;;  %v2796_v46 = vsel %vm2794_vm15, %v2795_v48, %v11688_v19  ;;  %v3057_v17 = vor.u32 8388608, %v3056_v45 }
 0x4f2   : > { %v2630_v61 = vsel %vm2628_vm13, %v2629_v22, %v8466_v38  ;;  %v2797_v3 = vadd.s32 %v2796_v46, %v2792_v35  ;;  %v3063_v2 = vand.u32 31, %v3061_v59  ;;  %v2923_v7 = vcvt.s32.f32 %v2916_v21 }
 0x4f3   : > { %v2627_v58 = vsel %vm2625_vm11, %v8464_v26, %v2626_v51  ;;  %v2921_v14 = vand.u32 2147483647, %v2920_v36  ;;  %v2930_v10 = vsel %vm11681_vm8, 0, %v2928_v1  ;;  %v11724_v23 = vshrl.u32 %v3061_v59, 5 }
 0x4f4   : > { %v2631_v29 = vsel %vm2624_vm9, %v2627_v58, %v2630_v61  ;;  %v2798_v34 = vadd.s32 536870912, %v2797_v3  ;;  %v3064_v15 = vsub.s32 32, %v3063_v2  ;;  %v3066_v8 = vshll.u32 %v8707_v33, %v3063_v2 }
 0x4f5   : > { %v2632_v42 = vsel %vm2621_vm10, nan, %v2631_v29  ;;  %v2924_v9 = vmul.f32 %v2923_v7, %v2921_v14  ;;  %v3069_v0 = vshll.u32 %v8708_v37, %v3063_v2  ;;  %v3072_v6 = vshll.u32 %v8709_v39, %v3063_v2 }
 0x4f6   : > { %7595 = vst [vmem:[%s9190_s23 + $0x120] sm:$0xff] %v2632_v42  ;;  %v11731_v44 = vshrl.u32 %v2798_v34, 30  ;;  %v3067_v60 = vshrl.u32 %v8708_v37, %v3064_v15  ;;  %v3070_v52 = vshrl.u32 %v8709_v39, %v3064_v15  ;;  %v3073_v5 = vshrl.u32 %v8710_v41, %v3064_v15 }
 0x4f7   : > { %v2925_v30 = vxor.u32 2147483648, %v2924_v9  ;;  %v3075_v57 = vshll.u32 %v8710_v41, %v3063_v2  ;;  %v3076_v19 = vshrl.u32 %v8711_v43, %v3064_v15  ;;  %v2934_v55 = vadd.s32 3, %v2930_v10 }
 0x4f8   : > { %v2800_v56 = vshll.u32 %v11731_v44, 30  ;;  %v3068_v18 = vor.u32 %v3067_v60, %v3066_v8  ;;  %v3071_v62 = vor.u32 %v3070_v52, %v3069_v0  ;;  %v3074_v28 = vor.u32 %v3073_v5, %v3072_v6 }
 0x4f9   : > { %v2926_v40 = vsel %vm2843_vm6, %v2925_v30, %v2924_v9  ;;  %v3077_v47 = vor.u32 %v3076_v19, %v3075_v57  ;;  %v3078_v63 = vshll.u32 %v8711_v43, %v3063_v2  ;;  %v3079_v48 = vshrl.u32 %v8712_v50, %v3064_v15 }
 0x4fa   : > { %v2929_v54 = vsel %vm11681_vm8, %v11473_v13, %v2926_v40  ;;  %v11745_v27 = vsub.s32 %v2797_v3, %v2800_v56  ;;  %vm3081_vm14 = vcmp.lt.s32.totalorder %v11724_v23, 1  ;;  %v3097_v45 = vshll.u32 %v3057_v17, 8 }
 0x4fb   : > { %8467 = vcosq.f32 %v2929_v54  ;;  %v2948_v26 = vand.u32 2139095040, %v11716_v32  ;;  %v3080_v49 = vor.u32 %v3079_v48, %v3078_v63  ;;  %vm3084_vm0 = vcmp.lt.s32.totalorder %v11724_v23, 4 }
 0x4fc   : > { %8469 = vsinq.f32 %v2929_v54  ;;  %v2803_v21 = vsub.s32 0, %v11745_v27  ;;  %vm3082_vm1 = vcmp.lt.s32.totalorder %v11724_v23, 2  ;;  %vm3083_vm2 = vcmp.lt.s32.totalorder %v11724_v23, 3 }
 0x4fd   : > { %v3089_v25 = vsel %vm3081_vm14, %v3068_v18, %v3071_v62  ;;  %v3090_v59 = vsel %vm3084_vm0, %v3077_v47, 920167782  ;;  %v3065_v22 = vshrl.u32 %v8707_v33, %v3064_v15  ;;  %v3086_v1 = vsel %vm3084_vm0, %v3074_v28, 2102212464 }
 0x4fe   : > { %v7812_v38 = vmin.u32 %v2803_v21, %v11745_v27  ;;  %v3091_v35 = vsel %vm3083_vm2, %v3074_v28, %v3090_v59  ;;  %v3093_v36 = vsel %vm3081_vm14, %v3071_v62, %v3074_v28  ;;  %v3094_v46 = vsel %vm3084_vm0, %v3080_v49, 1326507024 }
 0x4ff   : > { %v3092_v51 = vsel %vm3082_vm1, %v3089_v25, %v3091_v35  ;;  %v2949_v61 = vshrl.u32 %v2948_v26, 23  ;;  %v2935_v3 = vand.u32 3, %v2934_v55  ;;  %v3085_v2 = vsel %vm3081_vm14, %v3065_v22, %v3068_v18 }
 0x500   : > { %v2805_v17 = vclz %v7812_v38  ;;  %v3087_v58 = vsel %vm3083_vm2, %v3071_v62, %v3086_v1  ;;  %v3095_v14 = vsel %vm3083_vm2, %v3077_v47, %v3094_v46  ;;  %vm11773_vm3 = vcmp.le.f32.partialorder %v2737_v53, 0.7853982 }
 0x501   : > { %v11765_v7 = vmul.u32.u64.low %v3097_v45, %v3092_v51  ;;  %v11766_v10 = vmul.u32.u64.high %v3097_v45, %v3092_v51, %v11765_v7  ;;  %v3096_v34 = vsel %vm3082_vm1, %v3093_v36, %v3095_v14  ;;  %v7819_v15 = vadd.s32 4294967169, %v2949_v61 }
 0x502   : > { %v7813_v29 = vadd.s32 4294967294, %v2805_v17  ;;  %v2823_v9 = vsub.s32 4, %v11731_v44  ;;  %v11778_v8 = vmul.u32.u64.low %v3097_v45, %v3096_v34  ;;  %v11779_v0 = vmul.u32.u64.high %v3097_v45, %v3096_v34, %v11778_v8 }
 0x503   : > { %vm2739_vm4 = vcmp.lt.s32.totalorder %v11592_v12, 0  ;;  %v3088_v60 = vsel %vm3082_vm1, %v3085_v2, %v3087_v58  ;;  %v2955_v52 = vadd.s32 1, %v7819_v15  ;;  %vm2933_vm6 = vweird.f32 %v11473_v13 }
 0x504   : > { %vm7814_vm5 = vcmp.lt.s32.totalorder %v7813_v29, 0  ;;  %vm2936_vm7 = vcmp.lt.s32.totalorder %v2935_v3, 2  ;;  %v3107_v53 = vadd.s32 1, %v11766_v10  ;;  %v2945_v30 = vand.u32 2147483647, %v11716_v32 }
 0x505   : > { %v2808_v6 = vsel %vm7814_vm5, 0, %v7813_v29  ;;  %v2793_v5 = vadd.s32 %v11687_v4, %v11698_v16  ;;  %vm2956_vm8 = vcmp.gt.s32.totalorder %v2955_v52, 0  ;;  %v2824_v23 = vsel %vm2739_vm4, %v2823_v9, %v11731_v44  ;;  %v547_v44 = vpop.permute.xlu1 %546 }
 0x506   : > { %v2809_v57 = vsub.s32 32, %v2808_v6  ;;  %v2813_v19 = vsub.s32 4294967266, %v2808_v6  ;;  %v3104_v55 = vmul.u32 %v3097_v45, %v3088_v60  ;;  %vm3106_vm9 = vc.u32 %v11779_v0, %v11765_v7 }
 0x507   : > { %v2957_v56 = vsel %vm2956_vm8, %v2955_v52, 0  ;;  %v2810_v40 = vshll.u32 %v11745_v27, %v2808_v6  ;;  %v3108_v47 = vsel %vm3106_vm9, %v3107_v53, %v11766_v10  ;;  %v2952_v63 = vand.u32 8388607, %v2945_v30 }
 0x508   : > { %v8468_v18 = vpop.eup %8467  ;;  %v2811_v62 = vshrl.u32 %v2793_v5, %v2809_v57  ;;  %v2814_v28 = vadd.s32 127, %v2813_v19  ;;  %v3109_v54 = vadd.s32 %v3108_v47, %v3104_v55  ;;  %v2959_v48 = vand.u32 31, %v2957_v56 }
 0x509   : > { %v8470_v4 = vpop.eup %8469  ;;  %v2941_v16 = vxor.u32 2147483648, %v8468_v18  ;;  %vm2940_vm10 = vcmp.eq.s32.totalorder %v2935_v3, 2  ;;  %vm2937_vm11 = vcmp.eq.s32.totalorder %v2935_v3, 0  ;;  %v2826_v22 = vsel %vm11773_vm3, 0, %v2824_v23 }
 0x50a   : > { %v2938_v45 = vxor.u32 2147483648, %v8470_v4  ;;  %v2812_v26 = vor.u32 %v2811_v62, %v2810_v40  ;;  %v2815_v21 = vshll.u32 %v2814_v28, 23  ;;  %v3110_v27 = vadd.s32 536870912, %v3109_v54 }
 0x50b   : > { %v2942_v49 = vsel %vm2940_vm10, %v2941_v16, %v8470_v4  ;;  %v2960_v25 = vsub.s32 32, %v2959_v48  ;;  %v612_v1 = vmul.f32 %v11560_v20, %v547_v44  ;;  %v2953_v36 = vor.u32 8388608, %v2952_v63 }
 0x50c   : > { %v2939_v59 = vsel %vm2937_vm11, %v8468_v18, %v2938_v45  ;;  %v2816_v38 = vor.u32 4788187, %v2815_v21  ;;  %v11802_v51 = vshrl.u32 %v3110_v27, 30  ;;  %v2819_v2 = vcvt.s32.f32 %v2812_v26 }
 0x50d   : > { %v2943_v35 = vsel %vm2936_vm7, %v2939_v59, %v2942_v49  ;;  %v2963_v46 = vshrl.u32 %v8708_v37, %v2960_v25  ;;  %v2966_v58 = vshrl.u32 %v8709_v39, %v2960_v25  ;;  %v2958_v10 = vshrl.u32 %v2957_v56, 5 }
 0x50e   : > { %v2944_v61 = vsel %vm2933_vm6, nan, %v2943_v35  ;;  %v2817_v17 = vand.u32 2147483647, %v2816_v38  ;;  %v3112_v14 = vshll.u32 %v11802_v51, 30  ;;  %v2962_v29 = vshll.u32 %v8707_v33, %v2959_v48 }
 0x50f   : > { %7601 = vst [vmem:[%s9190_s23 + $0x150] sm:$0xff] %v2944_v61  ;;  %v2969_v3 = vshrl.u32 %v8710_v41, %v2960_v25  ;;  %v2965_v15 = vshll.u32 %v8708_v37, %v2959_v48  ;;  %v2971_v9 = vshll.u32 %v8710_v41, %v2959_v48  ;;  %v2972_v13 = vshrl.u32 %v8711_v43, %v2960_v25  ;;  %v543_v61 = vpop.permute.xlu0 %542 }
 0x510   : > { %v2820_v34 = vmul.f32 %v2819_v2, %v2817_v17  ;;  %v11815_v8 = vsub.s32 %v3109_v54, %v3112_v14  ;;  %v2964_v60 = vor.u32 %v2963_v46, %v2962_v29  ;;  %v2968_v52 = vshll.u32 %v8709_v39, %v2959_v48 }
 0x511   : > { %v2967_v53 = vor.u32 %v2966_v58, %v2965_v15  ;;  %v2973_v5 = vor.u32 %v2972_v13, %v2971_v9  ;;  %v2975_v57 = vshrl.u32 %v8712_v50, %v2960_v25  ;;  %v2830_v19 = vadd.s32 3, %v2826_v22 }
 0x512   : > { %v2821_v6 = vxor.u32 2147483648, %v2820_v34  ;;  %vm3051_vm12 = vcmp.lt.s32.totalorder %v11640_v24, 0  ;;  %v3115_v23 = vsub.s32 0, %v11815_v8  ;;  %v2970_v55 = vor.u32 %v2969_v3, %v2968_v52 }
 0x513   : > { %v2974_v56 = vshll.u32 %v8711_v43, %v2959_v48  ;;  %vm2977_vm13 = vcmp.lt.s32.totalorder %v2958_v10, 1  ;;  %v2993_v40 = vshll.u32 %v2953_v36, 8  ;;  %v11825_v62 = vadd.f32 %v11589_v11, %v612_v1 }
 0x514   : > { %v2822_v18 = vsel %vm2739_vm4, %v2821_v6, %v2820_v34  ;;  %v7824_v47 = vmin.u32 %v3115_v23, %v11815_v8  ;;  %vm2980_vm15 = vcmp.lt.s32.totalorder %v2958_v10, 4  ;;  %v2961_v16 = vshrl.u32 %v8707_v33, %v2960_v25 }
 0x515   : > { %v2825_v28 = vsel %vm11773_vm3, %v11592_v12, %v2822_v18  ;;  %v2976_v4 = vor.u32 %v2975_v57, %v2974_v56  ;;  %v2985_v54 = vsel %vm2977_vm13, %v2964_v60, %v2967_v53  ;;  %v2986_v63 = vsel %vm2980_vm15, %v2973_v5, 920167782 }
 0x516   : > { %8471 = vcosq.f32 %v2825_v28  ;;  %vm11836_vm14 = vcmp.le.f32.partialorder %v3049_v31, 0.7853982  ;;  %v3117_v42 = vclz %v7824_v47  ;;  %vm2979_vm0 = vcmp.lt.s32.totalorder %v2958_v10, 3 }
 0x517   : > { %8473 = vsinq.f32 %v2825_v28  ;;  %v2982_v44 = vsel %vm2980_vm15, %v2970_v55, 2102212464  ;;  %v3135_v45 = vsub.s32 4, %v11802_v51  ;;  %vm2978_vm1 = vcmp.lt.s32.totalorder %v2958_v10, 2 }
 0x518   : > { %v2987_v26 = vsel %vm2979_vm0, %v2970_v55, %v2986_v63  ;;  %v2989_v21 = vsel %vm2977_vm13, %v2967_v53, %v2970_v55  ;;  %v7825_v49 = vadd.s32 4294967294, %v3117_v42  ;;  %v2981_v27 = vsel %vm2977_vm13, %v2961_v16, %v2964_v60 }
 0x519   : > { %v2988_v25 = vsel %vm2978_vm1, %v2985_v54, %v2987_v26  ;;  %v2990_v31 = vsel %vm2980_vm15, %v2976_v4, 1326507024  ;;  %v2983_v59 = vsel %vm2979_vm0, %v2967_v53, %v2982_v44  ;;  %v3105_v35 = vadd.s32 %v11765_v7, %v11779_v0  ;;  %v558_v26 = vpop.permute.xlu1 %557 }
 0x51a   : > { %v2991_v38 = vsel %vm2979_vm0, %v2973_v5, %v2990_v31  ;;  %v11846_v22 = vmul.u32.u64.low %v2993_v40, %v2988_v25  ;;  %v11847_v1 = vmul.u32.u64.high %v2993_v40, %v2988_v25, %v11846_v22  ;;  %vm7826_vm2 = vcmp.lt.s32.totalorder %v7825_v49, 0 }
 0x51b   : > { %v2992_v36 = vsel %vm2978_vm1, %v2989_v21, %v2991_v38  ;;  %v3260_v46 = vand.u32 2139095040, %v11825_v62  ;;  %v3120_v17 = vsel %vm7826_vm2, 0, %v7825_v49  ;;  %v3136_v2 = vsel %vm3051_vm12, %v3135_v45, %v11802_v51 }
 0x51c   : > { %v11857_v58 = vmul.u32.u64.low %v2993_v40, %v2992_v36  ;;  %v11858_v14 = vmul.u32.u64.high %v2993_v40, %v2992_v36, %v11857_v58  ;;  %v3121_v29 = vsub.s32 32, %v3120_v17  ;;  %v3125_v3 = vsub.s32 4294967266, %v3120_v17 }
 0x51d   : > { %v2984_v34 = vsel %vm2978_vm1, %v2981_v27, %v2983_v59  ;;  %v3261_v15 = vshrl.u32 %v3260_v46, 23  ;;  %v2831_v7 = vand.u32 3, %v2830_v19  ;;  %v3003_v0 = vadd.s32 1, %v11847_v1 }
 0x51e   : > { %v3257_v9 = vand.u32 2147483647, %v11825_v62  ;;  %v611_v13 = vmul.f32 %v11560_v20, %v543_v61  ;;  %v3122_v60 = vshll.u32 %v11815_v8, %v3120_v17  ;;  %v3123_v52 = vshrl.u32 %v3105_v35, %v3121_v29 }
 0x51f   : > { %v3126_v6 = vadd.s32 127, %v3125_v3  ;;  %v7831_v51 = vadd.s32 4294967169, %v3261_v15  ;;  %v3138_v53 = vsel %vm11836_vm14, 0, %v3136_v2  ;;  %v3000_v5 = vmul.u32 %v2993_v40, %v2984_v34 }
 0x520   : > { %vm3002_vm3 = vc.u32 %v11858_v14, %v11846_v22  ;;  %v3124_v10 = vor.u32 %v3123_v52, %v3122_v60  ;;  %v3264_v56 = vand.u32 8388607, %v3257_v9  ;;  %v11873_v8 = vadd.f32 %v11589_v11, %v611_v13 }
 0x521   : > { %v3127_v57 = vshll.u32 %v3126_v6, 23  ;;  %v3004_v19 = vsel %vm3002_vm3, %v3003_v0, %v11847_v1  ;;  %v3267_v23 = vadd.s32 1, %v7831_v51  ;;  %vm2833_vm4 = vcmp.eq.s32.totalorder %v2831_v7, 0 }
 0x522   : > { %v3005_v55 = vadd.s32 %v3004_v19, %v3000_v5  ;;  %vm2836_vm5 = vcmp.eq.s32.totalorder %v2831_v7, 2  ;;  %v3142_v4 = vadd.s32 3, %v3138_v53  ;;  %v3131_v44 = vcvt.s32.f32 %v3124_v10 }
 0x523   : > { %v8472_v18 = vpop.eup %8471  ;;  %v3128_v28 = vor.u32 4788187, %v3127_v57  ;;  %vm3268_vm6 = vcmp.gt.s32.totalorder %v3267_v23, 0  ;;  %v3265_v27 = vor.u32 8388608, %v3264_v56  ;;  %v3156_v25 = vand.u32 2139095040, %v11873_v8 }
 0x524   : > { %v8474_v40 = vpop.eup %8473  ;;  %v2837_v47 = vxor.u32 2147483648, %v8472_v18  ;;  %v3006_v16 = vadd.s32 536870912, %v3005_v55  ;;  %v3269_v54 = vsel %vm3268_vm6, %v3267_v23, 0  ;;  %vm2832_vm7 = vcmp.lt.s32.totalorder %v2831_v7, 2 }
 0x525   : > { %v2834_v63 = vxor.u32 2147483648, %v8474_v40  ;;  %v3129_v42 = vand.u32 2147483647, %v3128_v28  ;;  %v3271_v45 = vand.u32 31, %v3269_v54  ;;  %vm2829_vm8 = vweird.f32 %v11592_v12 }
 0x526   : > { %v2838_v21 = vsel %vm2836_vm5, %v2837_v47, %v8474_v40  ;;  %v11875_v49 = vshrl.u32 %v3006_v16, 30  ;;  %v11882_v36 = vmul.f32 %v11560_v20, %v558_v26  ;;  %v11884_v17 = vand.u32 3, %v3142_v4 }
 0x527   : > { %v2835_v31 = vsel %vm2833_vm4, %v8472_v18, %v2834_v63  ;;  %v3132_v59 = vmul.f32 %v3131_v44, %v3129_v42  ;;  %v3272_v38 = vsub.s32 32, %v3271_v45  ;;  %v11891_v3 = vshll.u32 %v3265_v27, 8 }
 0x528   : > { %v2839_v1 = vsel %vm2832_vm7, %v2835_v31, %v2838_v21  ;;  %v3008_v35 = vshll.u32 %v11875_v49, 30  ;;  %v3157_v12 = vshrl.u32 %v3156_v25, 23  ;;  %v3270_v15 = vshrl.u32 %v3269_v54, 5 }
 0x529   : > { %v2840_v46 = vsel %vm2829_vm8, nan, %v2839_v1  ;;  %v3133_v61 = vxor.u32 2147483648, %v3132_v59  ;;  %v3275_v2 = vshrl.u32 %v8708_v37, %v3272_v38  ;;  %v3278_v29 = vshrl.u32 %v8709_v39, %v3272_v38 }
 0x52a   : > { %7599 = vst [vmem:[%s9190_s23 + $0x140] sm:$0xff] %v2840_v46  ;;  %v11888_v58 = vsub.s32 %v3005_v55, %v3008_v35  ;;  %v3274_v20 = vshll.u32 %v8707_v33, %v3271_v45  ;;  %v3281_v7 = vshrl.u32 %v8710_v41, %v3272_v38  ;;  %v3277_v60 = vshll.u32 %v8708_v37, %v3271_v45 }
 0x52b   : > { %v3134_v34 = vsel %vm3051_vm12, %v3133_v61, %v3132_v59  ;;  %v3280_v52 = vshll.u32 %v8709_v39, %v3271_v45  ;;  %v3283_v51 = vshll.u32 %v8710_v41, %v3271_v45  ;;  %v3284_v53 = vshrl.u32 %v8711_v43, %v3272_v38 }
 0x52c   : > { %v3137_v0 = vsel %vm11836_vm14, %v11640_v24, %v3134_v34  ;;  %v3011_v13 = vsub.s32 0, %v11888_v58  ;;  %v3276_v6 = vor.u32 %v3275_v2, %v3274_v20  ;;  %v3279_v10 = vor.u32 %v3278_v29, %v3277_v60 }
 0x52d   : > { %8475 = vcosq.f32 %v3137_v0  ;;  %v3282_v57 = vor.u32 %v3281_v7, %v3280_v52  ;;  %v3285_v19 = vor.u32 %v3284_v53, %v3283_v51  ;;  %v3286_v48 = vshll.u32 %v8711_v43, %v3271_v45 }
 0x52e   : > { %8477 = vsinq.f32 %v3137_v0  ;;  %v7820_v5 = vmin.u32 %v3011_v13, %v11888_v58  ;;  %v3287_v23 = vshrl.u32 %v8712_v50, %v3272_v38  ;;  %v3153_v55 = vand.u32 2147483647, %v11873_v8 }
 0x52f   : > { %v3273_v18 = vshrl.u32 %v8707_v33, %v3272_v38  ;;  %vm3289_vm9 = vcmp.lt.s32.totalorder %v3270_v15, 1  ;;  %v7827_v28 = vadd.s32 4294967169, %v3157_v12  ;;  %vm3290_vm10 = vcmp.lt.s32.totalorder %v3270_v15, 2 }
 0x530   : > { %v3013_v56 = vclz %v7820_v5  ;;  %v3288_v40 = vor.u32 %v3287_v23, %v3286_v48  ;;  %vm3291_vm11 = vcmp.lt.s32.totalorder %v3270_v15, 3  ;;  %vm3292_vm12 = vcmp.lt.s32.totalorder %v3270_v15, 4 }
 0x531   : > { %vm2947_vm13 = vcmp.lt.s32.totalorder %v11716_v32, 0  ;;  %v3294_v4 = vsel %vm3292_vm12, %v3282_v57, 2102212464  ;;  %v3297_v16 = vsel %vm3289_vm9, %v3276_v6, %v3279_v10  ;;  %v3298_v54 = vsel %vm3292_vm12, %v3285_v19, 920167782 }
 0x532   : > { %v7821_v47 = vadd.s32 4294967294, %v3013_v56  ;;  %v3293_v63 = vsel %vm3289_vm9, %v3273_v18, %v3276_v6  ;;  %v3299_v42 = vsel %vm3291_vm11, %v3282_v57, %v3298_v54  ;;  %v3301_v44 = vsel %vm3289_vm9, %v3279_v10, %v3282_v57 }
 0x533   : > { %v3302_v45 = vsel %vm3292_vm12, %v3288_v40, 1326507024  ;;  %v3295_v26 = vsel %vm3291_vm11, %v3279_v10, %v3294_v4  ;;  %v3300_v21 = vsel %vm3290_vm10, %v3297_v16, %v3299_v42  ;;  %vm11914_vm14 = vcmp.le.f32.partialorder %v2945_v30, 0.7853982 }
 0x534   : > { %vm7822_vm15 = vcmp.lt.s32.totalorder %v7821_v47, 0  ;;  %v3303_v27 = vsel %vm3291_vm11, %v3285_v19, %v3302_v45  ;;  %v11920_v38 = vmul.u32.u64.low %v11891_v3, %v3300_v21  ;;  %v11921_v1 = vmul.u32.u64.high %v11891_v3, %v3300_v21, %v11920_v38 }
 0x535   : > { %v3016_v31 = vsel %vm7822_vm15, 0, %v7821_v47  ;;  %v3304_v59 = vsel %vm3290_vm10, %v3301_v44, %v3303_v27  ;;  %vm3144_vm0 = vcmp.lt.s32.totalorder %v11884_v17, 2  ;;  %v3001_v35 = vadd.s32 %v11846_v22, %v11858_v14 }
 0x536   : > { %v3017_v46 = vsub.s32 32, %v3016_v31  ;;  %v3021_v61 = vsub.s32 4294967266, %v3016_v31  ;;  %vm3141_vm1 = vweird.f32 %v11640_v24  ;;  %v3031_v30 = vsub.s32 4, %v11875_v49 }
 0x537   : > { %v11930_v2 = vmul.u32.u64.low %v11891_v3, %v3304_v59  ;;  %v11931_v29 = vmul.u32.u64.high %v11891_v3, %v3304_v59, %v11930_v2  ;;  %v3163_v12 = vadd.s32 1, %v7827_v28  ;;  %v3018_v34 = vshll.u32 %v11888_v58, %v3016_v31 }
 0x538   : > { %v3019_v20 = vshrl.u32 %v3001_v35, %v3017_v46  ;;  %v3022_v7 = vadd.s32 127, %v3021_v61  ;;  %v3296_v0 = vsel %vm3290_vm10, %v3293_v63, %v3295_v26  ;;  %vm3145_vm2 = vcmp.eq.s32.totalorder %v11884_v17, 0 }
 0x539   : > { %v3315_v22 = vadd.s32 1, %v11921_v1  ;;  %v3160_v14 = vand.u32 8388607, %v3153_v55  ;;  %vm3164_vm3 = vcmp.gt.s32.totalorder %v3163_v12, 0  ;;  %vm3148_vm4 = vcmp.eq.s32.totalorder %v11884_v17, 2 }
 0x53a   : > { %v8476_v13 = vpop.eup %8475  ;;  %v3020_v60 = vor.u32 %v3019_v20, %v3018_v34  ;;  %v3023_v52 = vshll.u32 %v3022_v7, 23  ;;  %v3165_v6 = vsel %vm3164_vm3, %v3163_v12, 0  ;;  %v3032_v15 = vsel %vm2947_vm13, %v3031_v30, %v11875_v49 }
 0x53b   : > { %v8478_v51 = vpop.eup %8477  ;;  %v3149_v58 = vxor.u32 2147483648, %v8476_v13  ;;  %v3312_v53 = vmul.u32 %v11891_v3, %v3296_v0  ;;  %vm3314_vm5 = vc.u32 %v11931_v29, %v11920_v38  ;;  %v11949_v19 = vadd.f32 %v11589_v11, %v11882_v36 }
 0x53c   : > { %v3146_v5 = vxor.u32 2147483648, %v8478_v51  ;;  %v3024_v10 = vor.u32 4788187, %v3023_v52  ;;  %v3316_v57 = vsel %vm3314_vm5, %v3315_v22, %v11921_v1  ;;  %v3161_v56 = vor.u32 8388608, %v3160_v14 }
 0x53d   : > { %v3150_v48 = vsel %vm3148_vm4, %v3149_v58, %v8478_v51  ;;  %v3317_v23 = vadd.s32 %v3316_v57, %v3312_v53  ;;  %v3167_v18 = vand.u32 31, %v3165_v6  ;;  %v3027_v28 = vcvt.s32.f32 %v3020_v60 }
 0x53e   : > { %v3147_v49 = vsel %vm3145_vm2, %v8476_v13, %v3146_v5  ;;  %v3025_v3 = vand.u32 2147483647, %v3024_v10  ;;  %v3034_v40 = vsel %vm11914_vm14, 0, %v3032_v15  ;;  %v11957_v16 = vshrl.u32 %v3165_v6, 5 }
 0x53f   : > { %v3151_v47 = vsel %vm3144_vm0, %v3147_v49, %v3150_v48  ;;  %v3318_v4 = vadd.s32 536870912, %v3317_v23  ;;  %v3168_v11 = vsub.s32 32, %v3167_v18  ;;  %v3170_v63 = vshll.u32 %v8707_v33, %v3167_v18 }
 0x540   : > { %v3152_v36 = vsel %vm3141_vm1, nan, %v3151_v47  ;;  %v3028_v54 = vmul.f32 %v3027_v28, %v3025_v3  ;;  %v3173_v42 = vshll.u32 %v8708_v37, %v3167_v18  ;;  %v3176_v26 = vshll.u32 %v8709_v39, %v3167_v18 }
 0x541   : > { %7605 = vst [vmem:[%s9190_s23 + $0x170] sm:$0xff] %v3152_v36  ;;  %v11964_v44 = vshrl.u32 %v3318_v4, 30  ;;  %v3171_v45 = vshrl.u32 %v8708_v37, %v3168_v11  ;;  %v3174_v17 = vshrl.u32 %v8709_v39, %v3168_v11  ;;  %v3177_v27 = vshrl.u32 %v8710_v41, %v3168_v11 }
 0x542   : > { %v3029_v21 = vxor.u32 2147483648, %v3028_v54  ;;  %v3179_v24 = vshll.u32 %v8710_v41, %v3167_v18  ;;  %v3180_v31 = vshrl.u32 %v8711_v43, %v3168_v11  ;;  %v3038_v59 = vadd.s32 3, %v3034_v40 }
 0x543   : > { %v3320_v1 = vshll.u32 %v11964_v44, 30  ;;  %v3172_v35 = vor.u32 %v3171_v45, %v3170_v63  ;;  %v3175_v61 = vor.u32 %v3174_v17, %v3173_v42  ;;  %v3178_v30 = vor.u32 %v3177_v27, %v3176_v26 }
 0x544   : > { %v3030_v46 = vsel %vm2947_vm13, %v3029_v21, %v3028_v54  ;;  %v3181_v2 = vor.u32 %v3180_v31, %v3179_v24  ;;  %v3182_v20 = vshll.u32 %v8711_v43, %v3167_v18  ;;  %v3183_v7 = vshrl.u32 %v8712_v50, %v3168_v11 }
 0x545   : > { %v3033_v12 = vsel %vm11914_vm14, %v11716_v32, %v3030_v46  ;;  %v11978_v34 = vsub.s32 %v3317_v23, %v3320_v1  ;;  %vm3185_vm6 = vcmp.lt.s32.totalorder %v11957_v16, 1  ;;  %v3201_v0 = vshll.u32 %v3161_v56, 8 }
 0x546   : > { %8479 = vcosq.f32 %v3033_v12  ;;  %v3468_v22 = vand.u32 2139095040, %v11949_v19  ;;  %v3184_v13 = vor.u32 %v3183_v7, %v3182_v20  ;;  %vm3188_vm7 = vcmp.lt.s32.totalorder %v11957_v16, 4 }
 0x547   : > { %8481 = vsinq.f32 %v3033_v12  ;;  %v3323_v14 = vsub.s32 0, %v11978_v34  ;;  %vm3186_vm8 = vcmp.lt.s32.totalorder %v11957_v16, 2  ;;  %vm3187_vm9 = vcmp.lt.s32.totalorder %v11957_v16, 3 }
 0x548   : > { %v3193_v25 = vsel %vm3185_vm6, %v3172_v35, %v3175_v61  ;;  %v3194_v60 = vsel %vm3188_vm7, %v3181_v2, 920167782  ;;  %v3169_v6 = vshrl.u32 %v8707_v33, %v3168_v11  ;;  %v3190_v51 = vsel %vm3188_vm7, %v3178_v30, 2102212464 }
 0x549   : > { %v7832_v52 = vmin.u32 %v3323_v14, %v11978_v34  ;;  %v3195_v58 = vsel %vm3187_vm9, %v3178_v30, %v3194_v60  ;;  %v3197_v53 = vsel %vm3185_vm6, %v3175_v61, %v3178_v30  ;;  %v3198_v5 = vsel %vm3188_vm7, %v3184_v13, 1326507024 }
 0x54a   : > { %v3196_v15 = vsel %vm3186_vm8, %v3193_v25, %v3195_v58  ;;  %v3469_v10 = vshrl.u32 %v3468_v22, 23  ;;  %v3039_v57 = vand.u32 3, %v3038_v59  ;;  %v3189_v23 = vsel %vm3185_vm6, %v3169_v6, %v3172_v35 }
 0x54b   : > { %v3325_v48 = vclz %v7832_v52  ;;  %v3191_v56 = vsel %vm3187_vm9, %v3175_v61, %v3190_v51  ;;  %v3199_v18 = vsel %vm3187_vm9, %v3181_v2, %v3198_v5  ;;  %vm12006_vm10 = vcmp.le.f32.partialorder %v3257_v9, 0.7853982  ;;  %v12036_v52 = vld [vmem:[%s13941_s1] ss:$0 sm:$0xff] }
 0x54c   : > { %v11998_v49 = vmul.u32.u64.low %v3201_v0, %v3196_v15  ;;  %v11999_v3 = vmul.u32.u64.high %v3201_v0, %v3196_v15, %v11998_v49  ;;  %v3200_v40 = vsel %vm3186_vm8, %v3197_v53, %v3199_v18  ;;  %v7839_v47 = vadd.s32 4294967169, %v3469_v10 }
 0x54d   : > { %v7833_v28 = vadd.s32 4294967294, %v3325_v48  ;;  %v3343_v11 = vsub.s32 4, %v11964_v44  ;;  %v12011_v36 = vmul.u32.u64.low %v3201_v0, %v3200_v40  ;;  %v12012_v54 = vmul.u32.u64.high %v3201_v0, %v3200_v40, %v12011_v36 }
 0x54e   : > { %vm3259_vm11 = vcmp.lt.s32.totalorder %v11825_v62, 0  ;;  %v3192_v63 = vsel %vm3186_vm8, %v3189_v23, %v3191_v56  ;;  %v3475_v42 = vadd.s32 1, %v7839_v47  ;;  %vm3037_vm13 = vweird.f32 %v11716_v32 }
 0x54f   : > { %vm7834_vm12 = vcmp.lt.s32.totalorder %v7833_v28, 0  ;;  %vm3040_vm15 = vcmp.lt.s32.totalorder %v3039_v57, 2  ;;  %v3211_v9 = vadd.s32 1, %v11999_v3  ;;  %v3465_v17 = vand.u32 2147483647, %v11949_v19 }
 0x550   : > { %v3328_v45 = vsel %vm7834_vm12, 0, %v7833_v28  ;;  %v3313_v26 = vadd.s32 %v11920_v38, %v11931_v29  ;;  %vm3476_vm14 = vcmp.gt.s32.totalorder %v3475_v42, 0  ;;  %v3344_v16 = vsel %vm3259_vm11, %v3343_v11, %v11964_v44  ;;  %v554_v44 = vpop.permute.xlu0 %553 }
 0x551   : > { %v3329_v21 = vsub.s32 32, %v3328_v45  ;;  %v3333_v27 = vsub.s32 4294967266, %v3328_v45  ;;  %v3208_v24 = vmul.u32 %v3201_v0, %v3192_v63  ;;  %vm3210_vm0 = vc.u32 %v12012_v54, %v11998_v49 }
 0x552   : > { %v3477_v31 = vsel %vm3476_vm14, %v3475_v42, 0  ;;  %v3330_v1 = vshll.u32 %v11978_v34, %v3328_v45  ;;  %v3212_v61 = vsel %vm3210_vm0, %v3211_v9, %v11999_v3  ;;  %v3472_v2 = vand.u32 8388607, %v3465_v17 }
 0x553   : > { %v8480_v59 = vpop.eup %8479  ;;  %v3331_v35 = vshrl.u32 %v3313_v26, %v3329_v21  ;;  %v3334_v46 = vadd.s32 127, %v3333_v27  ;;  %v3213_v30 = vadd.s32 %v3212_v61, %v3208_v24  ;;  %v3479_v12 = vand.u32 31, %v3477_v31 }
 0x554   : > { %v8482_v38 = vpop.eup %8481  ;;  %v3045_v29 = vxor.u32 2147483648, %v8480_v59  ;;  %vm3044_vm1 = vcmp.eq.s32.totalorder %v3039_v57, 2  ;;  %vm3041_vm2 = vcmp.eq.s32.totalorder %v3039_v57, 0  ;;  %v3346_v60 = vsel %vm12006_vm10, 0, %v3344_v16 }
 0x555   : > { %v3042_v20 = vxor.u32 2147483648, %v8482_v38  ;;  %v3332_v7 = vor.u32 %v3331_v35, %v3330_v1  ;;  %v3335_v0 = vshll.u32 %v3334_v46, 23  ;;  %v3214_v34 = vadd.s32 536870912, %v3213_v30  ;;  %v12065_v1 = vld [vmem:[%s13943_s3] ss:$0 sm:$0xff] }
 0x556   : > { %v3046_v22 = vsel %vm3044_vm1, %v3045_v29, %v8482_v38  ;;  %v3480_v14 = vsub.s32 32, %v3479_v12  ;;  %v613_v6 = vmul.f32 %v12036_v52, %v554_v44  ;;  %v3473_v15 = vor.u32 8388608, %v3472_v2 }
 0x557   : > { %v3043_v13 = vsel %vm3041_vm2, %v8480_v59, %v3042_v20  ;;  %v3336_v25 = vor.u32 4788187, %v3335_v0  ;;  %v12040_v58 = vshrl.u32 %v3214_v34, 30  ;;  %v3339_v48 = vcvt.s32.f32 %v3332_v7 }
 0x558   : > { %v3047_v51 = vsel %vm3040_vm15, %v3043_v13, %v3046_v22  ;;  %v3483_v53 = vshrl.u32 %v8708_v37, %v3480_v14  ;;  %v3486_v23 = vshrl.u32 %v8709_v39, %v3480_v14  ;;  %v3478_v18 = vshrl.u32 %v3477_v31, 5 }
 0x559   : > { %v3048_v5 = vsel %vm3037_vm13, nan, %v3047_v51  ;;  %v3337_v10 = vand.u32 2147483647, %v3336_v25  ;;  %v3216_v56 = vshll.u32 %v12040_v58, 30  ;;  %v3482_v3 = vshll.u32 %v8707_v33, %v3479_v12 }
 0x55a   : > { %7603 = vst [vmem:[%s9190_s23 + $0x160] sm:$0xff] %v3048_v5  ;;  %v3489_v57 = vshrl.u32 %v8710_v41, %v3480_v14  ;;  %v3485_v40 = vshll.u32 %v8708_v37, %v3479_v12  ;;  %v3491_v47 = vshll.u32 %v8710_v41, %v3479_v12  ;;  %v3492_v32 = vshrl.u32 %v8711_v43, %v3480_v14  ;;  %v569_v5 = vpop.permute.xlu1 %568 }
 0x55b   : > { %v3340_v28 = vmul.f32 %v3339_v48, %v3337_v10  ;;  %v12053_v11 = vsub.s32 %v3213_v30, %v3216_v56  ;;  %v3484_v36 = vor.u32 %v3483_v53, %v3482_v3  ;;  %v3488_v63 = vshll.u32 %v8709_v39, %v3479_v12 }
 0x55c   : > { %v3487_v45 = vor.u32 %v3486_v23, %v3485_v40  ;;  %v3493_v9 = vor.u32 %v3492_v32, %v3491_v47  ;;  %v3495_v26 = vshrl.u32 %v8712_v50, %v3480_v14  ;;  %v3350_v21 = vadd.s32 3, %v3346_v60 }
 0x55d   : > { %v3341_v42 = vxor.u32 2147483648, %v3340_v28  ;;  %vm3155_vm3 = vcmp.lt.s32.totalorder %v11873_v8, 0  ;;  %v3219_v27 = vsub.s32 0, %v12053_v11  ;;  %v3490_v16 = vor.u32 %v3489_v57, %v3488_v63 }
 0x55e   : > { %v3494_v24 = vshll.u32 %v8711_v43, %v3479_v12  ;;  %vm3497_vm4 = vcmp.lt.s32.totalorder %v3478_v18, 1  ;;  %v3513_v59 = vshll.u32 %v3473_v15, 8  ;;  %v12068_v35 = vadd.f32 %v12065_v1, %v613_v6 }
 0x55f   : > { %v3342_v31 = vsel %vm3259_vm11, %v3341_v42, %v3340_v28  ;;  %v7828_v61 = vmin.u32 %v3219_v27, %v12053_v11  ;;  %vm3500_vm5 = vcmp.lt.s32.totalorder %v3478_v18, 4  ;;  %v3481_v29 = vshrl.u32 %v8707_v33, %v3480_v14 }
 0x560   : > { %v3345_v46 = vsel %vm12006_vm10, %v11825_v62, %v3342_v31  ;;  %v3496_v38 = vor.u32 %v3495_v26, %v3494_v24  ;;  %v3505_v30 = vsel %vm3497_vm4, %v3484_v36, %v3487_v45  ;;  %v3506_v2 = vsel %vm3500_vm5, %v3493_v9, 920167782 }
 0x561   : > { %8483 = vcosq.f32 %v3345_v46  ;;  %vm12079_vm6 = vcmp.le.f32.partialorder %v3153_v55, 0.7853982  ;;  %v3221_v4 = vclz %v7828_v61  ;;  %vm3499_vm7 = vcmp.lt.s32.totalorder %v3478_v18, 3 }
 0x562   : > { %8485 = vsinq.f32 %v3345_v46  ;;  %v3502_v44 = vsel %vm3500_vm5, %v3490_v16, 2102212464  ;;  %v3239_v20 = vsub.s32 4, %v12040_v58  ;;  %vm3498_vm8 = vcmp.lt.s32.totalorder %v3478_v18, 2 }
 0x563   : > { %v3507_v7 = vsel %vm3499_vm7, %v3490_v16, %v3506_v2  ;;  %v3509_v0 = vsel %vm3497_vm4, %v3487_v45, %v3490_v16  ;;  %v7829_v22 = vadd.s32 4294967294, %v3221_v4  ;;  %v3501_v34 = vsel %vm3497_vm4, %v3481_v29, %v3484_v36 }
 0x564   : > { %v3508_v14 = vsel %vm3498_vm8, %v3505_v30, %v3507_v7  ;;  %v3510_v55 = vsel %vm3500_vm5, %v3496_v38, 1326507024  ;;  %v3503_v13 = vsel %vm3499_vm7, %v3487_v45, %v3502_v44  ;;  %v3209_v51 = vadd.s32 %v11998_v49, %v12012_v54  ;;  %v565_v7 = vpop.permute.xlu0 %564 }
 0x565   : > { %v3511_v25 = vsel %vm3499_vm7, %v3493_v9, %v3510_v55  ;;  %v12089_v60 = vmul.u32.u64.low %v3513_v59, %v3508_v14  ;;  %v12090_v6 = vmul.u32.u64.high %v3513_v59, %v3508_v14, %v12089_v60  ;;  %vm7830_vm9 = vcmp.lt.s32.totalorder %v7829_v22, 0 }
 0x566   : > { %v3512_v15 = vsel %vm3498_vm8, %v3509_v0, %v3511_v25  ;;  %v3364_v53 = vand.u32 2139095040, %v12068_v35  ;;  %v3224_v10 = vsel %vm7830_vm9, 0, %v7829_v22  ;;  %v3240_v48 = vsel %vm3155_vm3, %v3239_v20, %v12040_v58 }
 0x567   : > { %v12100_v23 = vmul.u32.u64.low %v3513_v59, %v3512_v15  ;;  %v12101_v56 = vmul.u32.u64.high %v3513_v59, %v3512_v15, %v12100_v23  ;;  %v3225_v3 = vsub.s32 32, %v3224_v10  ;;  %v3229_v57 = vsub.s32 4294967266, %v3224_v10 }
 0x568   : > { %v3504_v28 = vsel %vm3498_vm8, %v3501_v34, %v3503_v13  ;;  %v3365_v40 = vshrl.u32 %v3364_v53, 23  ;;  %v3351_v49 = vand.u32 3, %v3350_v21  ;;  %v3523_v54 = vadd.s32 1, %v12090_v6 }
 0x569   : > { %v3361_v47 = vand.u32 2147483647, %v12068_v35  ;;  %v616_v32 = vmul.f32 %v12036_v52, %v569_v5  ;;  %v3226_v36 = vshll.u32 %v12053_v11, %v3224_v10  ;;  %v3227_v63 = vshrl.u32 %v3209_v51, %v3225_v3 }
 0x56a   : > { %v3230_v42 = vadd.s32 127, %v3229_v57  ;;  %v7835_v58 = vadd.s32 4294967169, %v3365_v40  ;;  %v3242_v45 = vsel %vm12079_vm6, 0, %v3240_v48  ;;  %v3520_v9 = vmul.u32 %v3513_v59, %v3504_v28 }
 0x56b   : > { %vm3522_vm10 = vc.u32 %v12101_v56, %v12089_v60  ;;  %v3228_v18 = vor.u32 %v3227_v63, %v3226_v36  ;;  %v3368_v24 = vand.u32 8388607, %v3361_v47  ;;  %v12116_v11 = vadd.f32 %v12065_v1, %v616_v32 }
 0x56c   : > { %v3231_v26 = vshll.u32 %v3230_v42, 23  ;;  %v3524_v21 = vsel %vm3522_vm10, %v3523_v54, %v12090_v6  ;;  %v3371_v27 = vadd.s32 1, %v7835_v58  ;;  %vm3353_vm11 = vcmp.eq.s32.totalorder %v3351_v49, 0 }
 0x56d   : > { %v3525_v16 = vadd.s32 %v3524_v21, %v3520_v9  ;;  %vm3356_vm12 = vcmp.eq.s32.totalorder %v3351_v49, 2  ;;  %v3246_v38 = vadd.s32 3, %v3242_v45  ;;  %v3235_v44 = vcvt.s32.f32 %v3228_v18 }
 0x56e   : > { %v8484_v31 = vpop.eup %8483  ;;  %v3232_v46 = vor.u32 4788187, %v3231_v26  ;;  %vm3372_vm13 = vcmp.gt.s32.totalorder %v3371_v27, 0  ;;  %v3369_v34 = vor.u32 8388608, %v3368_v24  ;;  %v3676_v14 = vand.u32 2139095040, %v12116_v11 }
 0x56f   : > { %v8486_v59 = vpop.eup %8485  ;;  %v3357_v61 = vxor.u32 2147483648, %v8484_v31  ;;  %v3526_v29 = vadd.s32 536870912, %v3525_v16  ;;  %v3373_v30 = vsel %vm3372_vm13, %v3371_v27, 0  ;;  %vm3352_vm15 = vcmp.lt.s32.totalorder %v3351_v49, 2 }
 0x570   : > { %v3354_v2 = vxor.u32 2147483648, %v8486_v59  ;;  %v3233_v4 = vand.u32 2147483647, %v3232_v46  ;;  %v3375_v20 = vand.u32 31, %v3373_v30  ;;  %vm3349_vm14 = vweird.f32 %v11825_v62 }
 0x571   : > { %v3358_v0 = vsel %vm3356_vm12, %v3357_v61, %v8486_v59  ;;  %v12118_v22 = vshrl.u32 %v3526_v29, 30  ;;  %v12125_v15 = vmul.f32 %v12036_v52, %v565_v7  ;;  %v12127_v10 = vand.u32 3, %v3246_v38 }
 0x572   : > { %v3355_v55 = vsel %vm3353_vm11, %v8484_v31, %v3354_v2  ;;  %v3236_v13 = vmul.f32 %v3235_v44, %v3233_v4  ;;  %v3376_v25 = vsub.s32 32, %v3375_v20  ;;  %v12134_v57 = vshll.u32 %v3369_v34, 8 }
 0x573   : > { %v3359_v6 = vsel %vm3352_vm15, %v3355_v55, %v3358_v0  ;;  %v3528_v51 = vshll.u32 %v12118_v22, 30  ;;  %v3677_v62 = vshrl.u32 %v3676_v14, 23  ;;  %v3374_v40 = vshrl.u32 %v3373_v30, 5 }
 0x574   : > { %v3360_v53 = vsel %vm3349_vm14, nan, %v3359_v6  ;;  %v3237_v5 = vxor.u32 2147483648, %v3236_v13  ;;  %v3379_v48 = vshrl.u32 %v8708_v37, %v3376_v25  ;;  %v3382_v3 = vshrl.u32 %v8709_v39, %v3376_v25 }
 0x575   : > { %7609 = vst [vmem:[%s9190_s23 + $0x190] sm:$0xff] %v3360_v53  ;;  %v12131_v23 = vsub.s32 %v3525_v16, %v3528_v51  ;;  %v3378_v49 = vshll.u32 %v8707_v33, %v3375_v20  ;;  %v3385_v54 = vshrl.u32 %v8710_v41, %v3376_v25  ;;  %v3381_v63 = vshll.u32 %v8708_v37, %v3375_v20 }
 0x576   : > { %v3238_v28 = vsel %vm3155_vm3, %v3237_v5, %v3236_v13  ;;  %v3384_v42 = vshll.u32 %v8709_v39, %v3375_v20  ;;  %v3387_v45 = vshll.u32 %v8710_v41, %v3375_v20  ;;  %v3388_v9 = vshrl.u32 %v8711_v43, %v3376_v25 }
 0x577   : > { %v3241_v32 = vsel %vm12079_vm6, %v11873_v8, %v3238_v28  ;;  %v3531_v36 = vsub.s32 0, %v12131_v23  ;;  %v3380_v58 = vor.u32 %v3379_v48, %v3378_v49  ;;  %v3383_v26 = vor.u32 %v3382_v3, %v3381_v63 }
 0x578   : > { %8487 = vcosq.f32 %v3241_v32  ;;  %v3386_v21 = vor.u32 %v3385_v54, %v3384_v42  ;;  %v3389_v27 = vor.u32 %v3388_v9, %v3387_v45  ;;  %v3390_v12 = vshll.u32 %v8711_v43, %v3375_v20 }
 0x579   : > { %8489 = vsinq.f32 %v3241_v32  ;;  %v7840_v18 = vmin.u32 %v3531_v36, %v12131_v23  ;;  %v3391_v16 = vshrl.u32 %v8712_v50, %v3376_v25  ;;  %v3673_v24 = vand.u32 2147483647, %v12116_v11 }
 0x57a   : > { %v3377_v46 = vshrl.u32 %v8707_v33, %v3376_v25  ;;  %vm3393_vm0 = vcmp.lt.s32.totalorder %v3374_v40, 1  ;;  %v7847_v59 = vadd.s32 4294967169, %v3677_v62  ;;  %vm3394_vm1 = vcmp.lt.s32.totalorder %v3374_v40, 2 }
 0x57b   : > { %v3533_v31 = vclz %v7840_v18  ;;  %v3392_v61 = vor.u32 %v3391_v16, %v3390_v12  ;;  %vm3395_vm2 = vcmp.lt.s32.totalorder %v3374_v40, 3  ;;  %vm3396_vm3 = vcmp.lt.s32.totalorder %v3374_v40, 4 }
 0x57c   : > { %vm3467_vm4 = vcmp.lt.s32.totalorder %v11949_v19, 0  ;;  %v3398_v29 = vsel %vm3396_vm3, %v3386_v21, 2102212464  ;;  %v3401_v30 = vsel %vm3393_vm0, %v3380_v58, %v3383_v26  ;;  %v3402_v2 = vsel %vm3396_vm3, %v3389_v27, 920167782 }
 0x57d   : > { %v7841_v38 = vadd.s32 4294967294, %v3533_v31  ;;  %v3397_v4 = vsel %vm3393_vm0, %v3377_v46, %v3380_v58  ;;  %v3403_v44 = vsel %vm3395_vm2, %v3386_v21, %v3402_v2  ;;  %v3405_v20 = vsel %vm3393_vm0, %v3383_v26, %v3386_v21 }
 0x57e   : > { %v3406_v7 = vsel %vm3396_vm3, %v3392_v61, 1326507024  ;;  %v3399_v0 = vsel %vm3395_vm2, %v3383_v26, %v3398_v29  ;;  %v3404_v34 = vsel %vm3394_vm1, %v3401_v30, %v3403_v44  ;;  %vm12157_vm6 = vcmp.le.f32.partialorder %v3465_v17, 0.7853982 }
 0x57f   : > { %vm7842_vm5 = vcmp.lt.s32.totalorder %v7841_v38, 0  ;;  %v3407_v14 = vsel %vm3395_vm2, %v3389_v27, %v3406_v7  ;;  %v12163_v6 = vmul.u32.u64.low %v12134_v57, %v3404_v34  ;;  %v12164_v51 = vmul.u32.u64.high %v12134_v57, %v3404_v34, %v12163_v6 }
 0x580   : > { %v3536_v13 = vsel %vm7842_vm5, 0, %v7841_v38  ;;  %v3408_v25 = vsel %vm3394_vm1, %v3405_v20, %v3407_v14  ;;  %vm3248_vm7 = vcmp.lt.s32.totalorder %v12127_v10, 2  ;;  %v3521_v53 = vadd.s32 %v12089_v60, %v12101_v56 }
 0x581   : > { %v3537_v5 = vsub.s32 32, %v3536_v13  ;;  %v3541_v48 = vsub.s32 4294967266, %v3536_v13  ;;  %vm3245_vm8 = vweird.f32 %v11873_v8  ;;  %v3551_v17 = vsub.s32 4, %v12118_v22 }
 0x582   : > { %v12173_v3 = vmul.u32.u64.low %v12134_v57, %v3408_v25  ;;  %v12174_v62 = vmul.u32.u64.high %v12134_v57, %v3408_v25, %v12173_v3  ;;  %v3683_v28 = vadd.s32 1, %v7847_v59  ;;  %v3538_v49 = vshll.u32 %v12131_v23, %v3536_v13 }
 0x583   : > { %v3539_v54 = vshrl.u32 %v3521_v53, %v3537_v5  ;;  %v3542_v32 = vadd.s32 127, %v3541_v48  ;;  %v3400_v36 = vsel %vm3394_vm1, %v3397_v4, %v3399_v0  ;;  %vm3249_vm9 = vcmp.eq.s32.totalorder %v12127_v10, 0 }
 0x584   : > { %v3419_v60 = vadd.s32 1, %v12164_v51  ;;  %v3680_v56 = vand.u32 8388607, %v3673_v24  ;;  %vm3684_vm10 = vcmp.gt.s32.totalorder %v3683_v28, 0  ;;  %vm3252_vm11 = vcmp.eq.s32.totalorder %v12127_v10, 2 }
 0x585   : > { %v8488_v63 = vpop.eup %8487  ;;  %v3540_v42 = vor.u32 %v3539_v54, %v3538_v49  ;;  %v3543_v58 = vshll.u32 %v3542_v32, 23  ;;  %v3685_v45 = vsel %vm3684_vm10, %v3683_v28, 0  ;;  %v3552_v40 = vsel %vm3467_vm4, %v3551_v17, %v12118_v22 }
 0x586   : > { %v8490_v9 = vpop.eup %8489  ;;  %v3253_v23 = vxor.u32 2147483648, %v8488_v63  ;;  %v3416_v18 = vmul.u32 %v12134_v57, %v3400_v36  ;;  %vm3418_vm12 = vc.u32 %v12174_v62, %v12163_v6  ;;  %v12192_v12 = vadd.f32 %v12065_v1, %v12125_v15 }
 0x587   : > { %v3250_v26 = vxor.u32 2147483648, %v8490_v9  ;;  %v3544_v21 = vor.u32 4788187, %v3543_v58  ;;  %v3420_v27 = vsel %vm3418_vm12, %v3419_v60, %v12164_v51  ;;  %v3681_v46 = vor.u32 8388608, %v3680_v56 }
 0x588   : > { %v3254_v16 = vsel %vm3252_vm11, %v3253_v23, %v8490_v9  ;;  %v3421_v31 = vadd.s32 %v3420_v27, %v3416_v18  ;;  %v3687_v59 = vand.u32 31, %v3685_v45  ;;  %v3547_v61 = vcvt.s32.f32 %v3540_v42 }
 0x589   : > { %v3251_v22 = vsel %vm3249_vm9, %v8488_v63, %v3250_v26  ;;  %v3545_v57 = vand.u32 2147483647, %v3544_v21  ;;  %v3554_v38 = vsel %vm12157_vm6, 0, %v3552_v40  ;;  %v12200_v2 = vshrl.u32 %v3685_v45, 5 }
 0x58a   : > { %v3255_v29 = vsel %vm3248_vm7, %v3251_v22, %v3254_v16  ;;  %v3422_v30 = vadd.s32 536870912, %v3421_v31  ;;  %v3688_v15 = vsub.s32 32, %v3687_v59  ;;  %v3690_v20 = vshll.u32 %v8707_v33, %v3687_v59 }
 0x58b   : > { %v3256_v4 = vsel %vm3245_vm8, nan, %v3255_v29  ;;  %v3548_v44 = vmul.f32 %v3547_v61, %v3545_v57  ;;  %v3693_v7 = vshll.u32 %v8708_v37, %v3687_v59  ;;  %v3696_v14 = vshll.u32 %v8709_v39, %v3687_v59 }
 0x58c   : > { %7607 = vst [vmem:[%s9190_s23 + $0x180] sm:$0xff] %v3256_v4  ;;  %v12207_v0 = vshrl.u32 %v3422_v30, 30  ;;  %v3691_v34 = vshrl.u32 %v8708_v37, %v3688_v15  ;;  %v3694_v10 = vshrl.u32 %v8709_v39, %v3688_v15  ;;  %v3697_v25 = vshrl.u32 %v8710_v41, %v3688_v15 }
 0x58d   : > { %v3549_v13 = vxor.u32 2147483648, %v3548_v44  ;;  %v3699_v8 = vshll.u32 %v8710_v41, %v3687_v59  ;;  %v3700_v51 = vshrl.u32 %v8711_v43, %v3688_v15  ;;  %v3558_v53 = vadd.s32 3, %v3554_v38 }
 0x58e   : > { %v3424_v5 = vshll.u32 %v12207_v0, 30  ;;  %v3692_v48 = vor.u32 %v3691_v34, %v3690_v20  ;;  %v3695_v3 = vor.u32 %v3694_v10, %v3693_v7  ;;  %v3698_v28 = vor.u32 %v3697_v25, %v3696_v14 }
 0x58f   : > { %v3550_v17 = vsel %vm3467_vm4, %v3549_v13, %v3548_v44  ;;  %v3701_v49 = vor.u32 %v3700_v51, %v3699_v8  ;;  %v3702_v36 = vshll.u32 %v8711_v43, %v3687_v59  ;;  %v3703_v60 = vshrl.u32 %v8712_v50, %v3688_v15 }
 0x590   : > { %v3553_v54 = vsel %vm12157_vm6, %v11949_v19, %v3550_v17  ;;  %v12221_v32 = vsub.s32 %v3421_v31, %v3424_v5  ;;  %vm3705_vm13 = vcmp.lt.s32.totalorder %v12200_v2, 1  ;;  %v3721_v56 = vshll.u32 %v3681_v46, 8 }
 0x591   : > { %8491 = vcosq.f32 %v3553_v54  ;;  %v3572_v63 = vand.u32 2139095040, %v12192_v12  ;;  %v3704_v58 = vor.u32 %v3703_v60, %v3702_v36  ;;  %vm3708_vm15 = vcmp.lt.s32.totalorder %v12200_v2, 4 }
 0x592   : > { %8493 = vsinq.f32 %v3553_v54  ;;  %v3427_v42 = vsub.s32 0, %v12221_v32  ;;  %vm3706_vm14 = vcmp.lt.s32.totalorder %v12200_v2, 2  ;;  %vm3707_vm0 = vcmp.lt.s32.totalorder %v12200_v2, 3 }
 0x593   : > { %v3713_v55 = vsel %vm3705_vm13, %v3692_v48, %v3695_v3  ;;  %v3714_v45 = vsel %vm3708_vm15, %v3701_v49, 920167782  ;;  %v3689_v23 = vshrl.u32 %v8707_v33, %v3688_v15  ;;  %v3710_v40 = vsel %vm3708_vm15, %v3698_v28, 2102212464 }
 0x594   : > { %v7836_v9 = vmin.u32 %v3427_v42, %v12221_v32  ;;  %v3715_v18 = vsel %vm3707_vm0, %v3698_v28, %v3714_v45  ;;  %v3717_v21 = vsel %vm3705_vm13, %v3695_v3, %v3698_v28  ;;  %v3718_v27 = vsel %vm3708_vm15, %v3704_v58, 1326507024 }
 0x595   : > { %v3716_v26 = vsel %vm3706_vm14, %v3713_v55, %v3715_v18  ;;  %v3573_v16 = vshrl.u32 %v3572_v63, 23  ;;  %v3559_v31 = vand.u32 3, %v3558_v53  ;;  %v3709_v59 = vsel %vm3705_vm13, %v3689_v23, %v3692_v48 }
 0x596   : > { %v3429_v46 = vclz %v7836_v9  ;;  %v3711_v22 = vsel %vm3707_vm0, %v3695_v3, %v3710_v40  ;;  %v3719_v57 = vsel %vm3707_vm0, %v3701_v49, %v3718_v27  ;;  %vm12249_vm1 = vcmp.le.f32.partialorder %v3361_v47, 0.7853982 }
 0x597   : > { %v12241_v61 = vmul.u32.u64.low %v3721_v56, %v3716_v26  ;;  %v12242_v38 = vmul.u32.u64.high %v3721_v56, %v3716_v26, %v12241_v61  ;;  %v3720_v30 = vsel %vm3706_vm14, %v3717_v21, %v3719_v57  ;;  %v7843_v15 = vadd.s32 4294967169, %v3573_v16 }
 0x598   : > { %v7837_v29 = vadd.s32 4294967294, %v3429_v46  ;;  %v3447_v44 = vsub.s32 4, %v12207_v0  ;;  %v12254_v20 = vmul.u32.u64.low %v3721_v56, %v3720_v30  ;;  %v12255_v7 = vmul.u32.u64.high %v3721_v56, %v3720_v30, %v12254_v20 }
 0x599   : > { %vm3363_vm2 = vcmp.lt.s32.totalorder %v12068_v35, 0  ;;  %v3712_v34 = vsel %vm3706_vm14, %v3709_v59, %v3711_v22  ;;  %v3579_v10 = vadd.s32 1, %v7843_v15  ;;  %vm3557_vm4 = vweird.f32 %v11949_v19 }
 0x59a   : > { %vm7838_vm3 = vcmp.lt.s32.totalorder %v7837_v29, 0  ;;  %vm3560_vm5 = vcmp.lt.s32.totalorder %v3559_v31, 2  ;;  %v3731_v47 = vadd.s32 1, %v12242_v38  ;;  %v3569_v13 = vand.u32 2147483647, %v12192_v12 }
 0x59b   : > { %v3432_v14 = vsel %vm7838_vm3, 0, %v7837_v29  ;;  %v3417_v25 = vadd.s32 %v12163_v6, %v12174_v62  ;;  %vm3580_vm6 = vcmp.gt.s32.totalorder %v3579_v10, 0  ;;  %v3448_v2 = vsel %vm3363_vm2, %v3447_v44, %v12207_v0  ;;  %v580_v0 = vpop.permute.xlu1 %579 }
 0x59c   : > { %v3433_v8 = vsub.s32 32, %v3432_v14  ;;  %v3437_v51 = vsub.s32 4294967266, %v3432_v14  ;;  %v3728_v53 = vmul.u32 %v3721_v56, %v3712_v34  ;;  %vm3730_vm7 = vc.u32 %v12255_v7, %v12241_v61 }
 0x59d   : > { %v3581_v5 = vsel %vm3580_vm6, %v3579_v10, 0  ;;  %v3434_v17 = vshll.u32 %v12221_v32, %v3432_v14  ;;  %v3732_v49 = vsel %vm3730_vm7, %v3731_v47, %v12242_v38  ;;  %v3576_v36 = vand.u32 8388607, %v3569_v13 }
 0x59e   : > { %v8492_v48 = vpop.eup %8491  ;;  %v3435_v3 = vshrl.u32 %v3417_v25, %v3433_v8  ;;  %v3438_v28 = vadd.s32 127, %v3437_v51  ;;  %v3733_v54 = vadd.s32 %v3732_v49, %v3728_v53  ;;  %v3583_v60 = vand.u32 31, %v3581_v5 }
 0x59f   : > { %v8494_v6 = vpop.eup %8493  ;;  %v3565_v62 = vxor.u32 2147483648, %v8492_v48  ;;  %vm3564_vm8 = vcmp.eq.s32.totalorder %v3559_v31, 2  ;;  %vm3561_vm9 = vcmp.eq.s32.totalorder %v3559_v31, 0  ;;  %v3450_v23 = vsel %vm12249_vm1, 0, %v3448_v2 }
 0x5a0   : > { %v3562_v56 = vxor.u32 2147483648, %v8494_v6  ;;  %v3436_v63 = vor.u32 %v3435_v3, %v3434_v17  ;;  %v3439_v42 = vshll.u32 %v3438_v28, 23  ;;  %v3734_v32 = vadd.s32 536870912, %v3733_v54 }
 0x5a1   : > { %v3566_v58 = vsel %vm3564_vm8, %v3565_v62, %v8494_v6  ;;  %v3584_v55 = vsub.s32 32, %v3583_v60  ;;  %v618_v40 = vmul.f32 %v12036_v52, %v580_v0  ;;  %v3577_v21 = vor.u32 8388608, %v3576_v36 }
 0x5a2   : > { %v3563_v45 = vsel %vm3561_vm9, %v8492_v48, %v3562_v56  ;;  %v3440_v9 = vor.u32 4788187, %v3439_v42  ;;  %v12278_v26 = vshrl.u32 %v3734_v32, 30  ;;  %v3443_v59 = vcvt.s32.f32 %v3436_v63 }
 0x5a3   : > { %v3567_v18 = vsel %vm3560_vm5, %v3563_v45, %v3566_v58  ;;  %v3587_v27 = vshrl.u32 %v8708_v37, %v3584_v55  ;;  %v3590_v22 = vshrl.u32 %v8709_v39, %v3584_v55  ;;  %v3582_v38 = vshrl.u32 %v3581_v5, 5 }
 0x5a4   : > { %v3568_v16 = vsel %vm3557_vm4, nan, %v3567_v18  ;;  %v3441_v46 = vand.u32 2147483647, %v3440_v9  ;;  %v3736_v57 = vshll.u32 %v12278_v26, 30  ;;  %v3586_v29 = vshll.u32 %v8707_v33, %v3583_v60 }
 0x5a5   : > { %7613 = vst [vmem:[%s9190_s23 + $0x1b0] sm:$0xff] %v3568_v16  ;;  %v3593_v31 = vshrl.u32 %v8710_v41, %v3584_v55  ;;  %v3589_v15 = vshll.u32 %v8708_v37, %v3583_v60  ;;  %v3595_v44 = vshll.u32 %v8710_v41, %v3583_v60  ;;  %v3596_v19 = vshrl.u32 %v8711_v43, %v3584_v55  ;;  %v576_v16 = vpop.permute.xlu0 %575 }
 0x5a6   : > { %v3444_v30 = vmul.f32 %v3443_v59, %v3441_v46  ;;  %v12291_v20 = vsub.s32 %v3733_v54, %v3736_v57  ;;  %v3588_v34 = vor.u32 %v3587_v27, %v3586_v29  ;;  %v3592_v10 = vshll.u32 %v8709_v39, %v3583_v60 }
 0x5a7   : > { %v3591_v47 = vor.u32 %v3590_v22, %v3589_v15  ;;  %v3597_v25 = vor.u32 %v3596_v19, %v3595_v44  ;;  %v3599_v8 = vshrl.u32 %v8712_v50, %v3584_v55  ;;  %v3454_v51 = vadd.s32 3, %v3450_v23 }
 0x5a8   : > { %v3445_v14 = vxor.u32 2147483648, %v3444_v30  ;;  %vm3675_vm10 = vcmp.lt.s32.totalorder %v12116_v11, 0  ;;  %v3739_v2 = vsub.s32 0, %v12291_v20  ;;  %v3594_v53 = vor.u32 %v3593_v31, %v3592_v10 }
 0x5a9   : > { %v3598_v5 = vshll.u32 %v8711_v43, %v3583_v60  ;;  %vm3601_vm11 = vcmp.lt.s32.totalorder %v3582_v38, 1  ;;  %v3617_v17 = vshll.u32 %v3577_v21, 8  ;;  %v12301_v3 = vadd.f32 %v12065_v1, %v618_v40 }
 0x5aa   : > { %v3446_v48 = vsel %vm3363_vm2, %v3445_v14, %v3444_v30  ;;  %v7848_v49 = vmin.u32 %v3739_v2, %v12291_v20  ;;  %vm3604_vm12 = vcmp.lt.s32.totalorder %v3582_v38, 4  ;;  %v3585_v62 = vshrl.u32 %v8707_v33, %v3584_v55 }
 0x5ab   : > { %v3449_v28 = vsel %vm12249_vm1, %v12068_v35, %v3446_v48  ;;  %v3600_v6 = vor.u32 %v3599_v8, %v3598_v5  ;;  %v3609_v54 = vsel %vm3601_vm11, %v3588_v34, %v3591_v47  ;;  %v3610_v36 = vsel %vm3604_vm12, %v3597_v25, 920167782 }
 0x5ac   : > { %8495 = vcosq.f32 %v3449_v28  ;;  %vm12312_vm13 = vcmp.le.f32.partialorder %v3673_v24, 0.7853982  ;;  %v3741_v4 = vclz %v7848_v49  ;;  %vm3603_vm15 = vcmp.lt.s32.totalorder %v3582_v38, 3 }
 0x5ad   : > { %8497 = vsinq.f32 %v3449_v28  ;;  %v3606_v0 = vsel %vm3604_vm12, %v3594_v53, 2102212464  ;;  %v3759_v56 = vsub.s32 4, %v12278_v26  ;;  %vm3602_vm14 = vcmp.lt.s32.totalorder %v3582_v38, 2 }
 0x5ae   : > { %v3611_v63 = vsel %vm3603_vm15, %v3594_v53, %v3610_v36  ;;  %v3613_v42 = vsel %vm3601_vm11, %v3591_v47, %v3594_v53  ;;  %v7849_v58 = vadd.s32 4294967294, %v3741_v4  ;;  %v3605_v32 = vsel %vm3601_vm11, %v3585_v62, %v3588_v34 }
 0x5af   : > { %v3612_v55 = vsel %vm3602_vm14, %v3609_v54, %v3611_v63  ;;  %v3614_v24 = vsel %vm3604_vm12, %v3600_v6, 1326507024  ;;  %v3607_v45 = vsel %vm3603_vm15, %v3591_v47, %v3606_v0  ;;  %v3729_v18 = vadd.s32 %v12241_v61, %v12255_v7  ;;  %v422_v63 = vpop.permute.xlu1 %421 }
 0x5b0   : > { %v3615_v9 = vsel %vm3603_vm15, %v3597_v25, %v3614_v24  ;;  %v12322_v23 = vmul.u32.u64.low %v3617_v17, %v3612_v55  ;;  %v12323_v40 = vmul.u32.u64.high %v3617_v17, %v3612_v55, %v12322_v23  ;;  %vm7850_vm0 = vcmp.lt.s32.totalorder %v7849_v58, 0 }
 0x5b1   : > { %v3616_v21 = vsel %vm3602_vm14, %v3613_v42, %v3615_v9  ;;  %v3884_v27 = vand.u32 2139095040, %v12301_v3  ;;  %v3744_v46 = vsel %vm7850_vm0, 0, %v7849_v58  ;;  %v3760_v59 = vsel %vm3675_vm10, %v3759_v56, %v12278_v26 }
 0x5b2   : > { %v12333_v22 = vmul.u32.u64.low %v3617_v17, %v3616_v21  ;;  %v12334_v57 = vmul.u32.u64.high %v3617_v17, %v3616_v21, %v12333_v22  ;;  %v3745_v29 = vsub.s32 32, %v3744_v46  ;;  %v3749_v31 = vsub.s32 4294967266, %v3744_v46 }
 0x5b3   : > { %v3608_v30 = vsel %vm3602_vm14, %v3605_v32, %v3607_v45  ;;  %v3885_v15 = vshrl.u32 %v3884_v27, 23  ;;  %v3455_v61 = vand.u32 3, %v3454_v51  ;;  %v3627_v7 = vadd.s32 1, %v12323_v40 }
 0x5b4   : > { %v3881_v44 = vand.u32 2147483647, %v12301_v3  ;;  %v617_v19 = vmul.f32 %v12036_v52, %v576_v16  ;;  %v3746_v34 = vshll.u32 %v12291_v20, %v3744_v46  ;;  %v3747_v10 = vshrl.u32 %v3729_v18, %v3745_v29 }
 0x5b5   : > { %v3750_v14 = vadd.s32 127, %v3749_v31  ;;  %v7855_v26 = vadd.s32 4294967169, %v3885_v15  ;;  %v3762_v47 = vsel %vm12312_vm13, 0, %v3760_v59  ;;  %v3624_v25 = vmul.u32 %v3617_v17, %v3608_v30 }
 0x5b6   : > { %vm3626_vm1 = vc.u32 %v12334_v57, %v12322_v23  ;;  %v3748_v38 = vor.u32 %v3747_v10, %v3746_v34  ;;  %v3888_v5 = vand.u32 8388607, %v3881_v44  ;;  %v12349_v20 = vadd.f32 %v12065_v1, %v617_v19 }
 0x5b7   : > { %v3751_v8 = vshll.u32 %v3750_v14, 23  ;;  %v3628_v51 = vsel %vm3626_vm1, %v3627_v7, %v12323_v40  ;;  %v3891_v2 = vadd.s32 1, %v7855_v26  ;;  %vm3457_vm2 = vcmp.eq.s32.totalorder %v3455_v61, 0 }
 0x5b8   : > { %v3629_v53 = vadd.s32 %v3628_v51, %v3624_v25  ;;  %vm3460_vm3 = vcmp.eq.s32.totalorder %v3455_v61, 2  ;;  %v3766_v6 = vadd.s32 3, %v3762_v47  ;;  %v3755_v0 = vcvt.s32.f32 %v3748_v38 }
 0x5b9   : > { %v8496_v48 = vpop.eup %8495  ;;  %v3752_v28 = vor.u32 4788187, %v3751_v8  ;;  %vm3892_vm4 = vcmp.gt.s32.totalorder %v3891_v2, 0  ;;  %v3889_v32 = vor.u32 8388608, %v3888_v5  ;;  %v3780_v55 = vand.u32 2139095040, %v12349_v20 }
 0x5ba   : > { %v8498_v17 = vpop.eup %8497  ;;  %v3461_v49 = vxor.u32 2147483648, %v8496_v48  ;;  %v3630_v62 = vadd.s32 536870912, %v3629_v53  ;;  %v3893_v54 = vsel %vm3892_vm4, %v3891_v2, 0  ;;  %vm3456_vm5 = vcmp.lt.s32.totalorder %v3455_v61, 2 }
 0x5bb   : > { %v3458_v36 = vxor.u32 2147483648, %v8498_v17  ;;  %v3753_v4 = vand.u32 2147483647, %v3752_v28  ;;  %v3895_v56 = vand.u32 31, %v3893_v54  ;;  %vm3453_vm6 = vweird.f32 %v12068_v35 }
 0x5bc   : > { %v3462_v42 = vsel %vm3460_vm3, %v3461_v49, %v8498_v17  ;;  %v12351_v58 = vshrl.u32 %v3630_v62, 30  ;;  %v12358_v21 = vmul.f32 %v12036_v52, %v422_v63  ;;  %v12360_v46 = vand.u32 3, %v3766_v6 }
 0x5bd   : > { %v3459_v24 = vsel %vm3457_vm2, %v8496_v48, %v3458_v36  ;;  %v3756_v45 = vmul.f32 %v3755_v0, %v3753_v4  ;;  %v3896_v9 = vsub.s32 32, %v3895_v56  ;;  %v12367_v31 = vshll.u32 %v3889_v32, 8 }
 0x5be   : > { %v3463_v40 = vsel %vm3456_vm5, %v3459_v24, %v3462_v42  ;;  %v3632_v18 = vshll.u32 %v12351_v58, 30  ;;  %v3781_v35 = vshrl.u32 %v3780_v55, 23  ;;  %v3894_v15 = vshrl.u32 %v3893_v54, 5 }
 0x5bf   : > { %v3464_v27 = vsel %vm3453_vm6, nan, %v3463_v40  ;;  %v3757_v16 = vxor.u32 2147483648, %v3756_v45  ;;  %v3899_v59 = vshrl.u32 %v8708_v37, %v3896_v9  ;;  %v3902_v29 = vshrl.u32 %v8709_v39, %v3896_v9 }
 0x5c0   : > { %7611 = vst [vmem:[%s9190_s23 + $0x1a0] sm:$0xff] %v3464_v27  ;;  %v12364_v22 = vsub.s32 %v3629_v53, %v3632_v18  ;;  %v3898_v52 = vshll.u32 %v8707_v33, %v3895_v56  ;;  %v3905_v61 = vshrl.u32 %v8710_v41, %v3896_v9  ;;  %v3901_v34 = vshll.u32 %v8708_v37, %v3895_v56 }
 0x5c1   : > { %v3758_v30 = vsel %vm3675_vm10, %v3757_v16, %v3756_v45  ;;  %v3904_v10 = vshll.u32 %v8709_v39, %v3895_v56  ;;  %v3907_v26 = vshll.u32 %v8710_v41, %v3895_v56  ;;  %v3908_v47 = vshrl.u32 %v8711_v43, %v3896_v9 }
 0x5c2   : > { %v3761_v7 = vsel %vm12312_vm13, %v12116_v11, %v3758_v30  ;;  %v3635_v19 = vsub.s32 0, %v12364_v22  ;;  %v3900_v14 = vor.u32 %v3899_v59, %v3898_v52  ;;  %v3903_v38 = vor.u32 %v3902_v29, %v3901_v34 }
 0x5c3   : > { %8499 = vcosq.f32 %v3761_v7  ;;  %v3906_v8 = vor.u32 %v3905_v61, %v3904_v10  ;;  %v3909_v51 = vor.u32 %v3908_v47, %v3907_v26  ;;  %v3910_v60 = vshll.u32 %v8711_v43, %v3895_v56 }
 0x5c4   : > { %8501 = vsinq.f32 %v3761_v7  ;;  %v7844_v25 = vmin.u32 %v3635_v19, %v12364_v22  ;;  %v3911_v2 = vshrl.u32 %v8712_v50, %v3896_v9  ;;  %v3777_v53 = vand.u32 2147483647, %v12349_v20 }
 0x5c5   : > { %v3897_v48 = vshrl.u32 %v8707_v33, %v3896_v9  ;;  %vm3913_vm7 = vcmp.lt.s32.totalorder %v3894_v15, 1  ;;  %v7851_v28 = vadd.s32 4294967169, %v3781_v35  ;;  %vm3914_vm8 = vcmp.lt.s32.totalorder %v3894_v15, 2 }
 0x5c6   : > { %v3637_v5 = vclz %v7844_v25  ;;  %v3912_v17 = vor.u32 %v3911_v2, %v3910_v60  ;;  %vm3915_vm9 = vcmp.lt.s32.totalorder %v3894_v15, 3  ;;  %vm3916_vm10 = vcmp.lt.s32.totalorder %v3894_v15, 4 }
 0x5c7   : > { %vm3571_vm11 = vcmp.lt.s32.totalorder %v12192_v12, 0  ;;  %v3918_v6 = vsel %vm3916_vm10, %v3906_v8, 2102212464  ;;  %v3921_v62 = vsel %vm3913_vm7, %v3900_v14, %v3903_v38  ;;  %v3922_v54 = vsel %vm3916_vm10, %v3909_v51, 920167782 }
 0x5c8   : > { %v7845_v49 = vadd.s32 4294967294, %v3637_v5  ;;  %v3917_v36 = vsel %vm3913_vm7, %v3897_v48, %v3900_v14  ;;  %v3923_v4 = vsel %vm3915_vm9, %v3906_v8, %v3922_v54  ;;  %v3925_v0 = vsel %vm3913_vm7, %v3903_v38, %v3906_v8 }
 0x5c9   : > { %v3926_v56 = vsel %vm3916_vm10, %v3912_v17, 1326507024  ;;  %v3919_v63 = vsel %vm3915_vm9, %v3903_v38, %v3918_v6  ;;  %v3924_v42 = vsel %vm3914_vm8, %v3921_v62, %v3923_v4  ;;  %vm12390_vm13 = vcmp.le.f32.partialorder %v3569_v13, 0.7853982 }
 0x5ca   : > { %vm7846_vm12 = vcmp.lt.s32.totalorder %v7845_v49, 0  ;;  %v3927_v32 = vsel %vm3915_vm9, %v3909_v51, %v3926_v56  ;;  %v12396_v9 = vmul.u32.u64.low %v12367_v31, %v3924_v42  ;;  %v12397_v40 = vmul.u32.u64.high %v12367_v31, %v3924_v42, %v12396_v9 }
 0x5cb   : > { %v3640_v24 = vsel %vm7846_vm12, 0, %v7845_v49  ;;  %v3928_v45 = vsel %vm3914_vm8, %v3925_v0, %v3927_v32  ;;  %vm3768_vm15 = vcmp.lt.s32.totalorder %v12360_v46, 2  ;;  %v3625_v18 = vadd.s32 %v12322_v23, %v12334_v57 }
 0x5cc   : > { %v3641_v27 = vsub.s32 32, %v3640_v24  ;;  %v3645_v16 = vsub.s32 4294967266, %v3640_v24  ;;  %vm3765_vm14 = vweird.f32 %v12116_v11  ;;  %v3655_v13 = vsub.s32 4, %v12351_v58 }
 0x5cd   : > { %v12406_v59 = vmul.u32.u64.low %v12367_v31, %v3928_v45  ;;  %v12407_v29 = vmul.u32.u64.high %v12367_v31, %v3928_v45, %v12406_v59  ;;  %v3787_v35 = vadd.s32 1, %v7851_v28  ;;  %v3642_v30 = vshll.u32 %v12364_v22, %v3640_v24 }
 0x5ce   : > { %v3643_v52 = vshrl.u32 %v3625_v18, %v3641_v27  ;;  %v3646_v61 = vadd.s32 127, %v3645_v16  ;;  %v3920_v7 = vsel %vm3914_vm8, %v3917_v36, %v3919_v63  ;;  %vm3769_vm0 = vcmp.eq.s32.totalorder %v12360_v46, 0 }
 0x5cf   : > { %v3939_v23 = vadd.s32 1, %v12397_v40  ;;  %v3784_v57 = vand.u32 8388607, %v3777_v53  ;;  %vm3788_vm1 = vcmp.gt.s32.totalorder %v3787_v35, 0  ;;  %vm3772_vm2 = vcmp.eq.s32.totalorder %v12360_v46, 2 }
 0x5d0   : > { %v8500_v19 = vpop.eup %8499  ;;  %v3644_v34 = vor.u32 %v3643_v52, %v3642_v30  ;;  %v3647_v10 = vshll.u32 %v3646_v61, 23  ;;  %v3789_v14 = vsel %vm3788_vm1, %v3787_v35, 0  ;;  %v3656_v15 = vsel %vm3571_vm11, %v3655_v13, %v12351_v58 }
 0x5d1   : > { %v8502_v26 = vpop.eup %8501  ;;  %v3773_v22 = vxor.u32 2147483648, %v8500_v19  ;;  %v3936_v47 = vmul.u32 %v12367_v31, %v3920_v7  ;;  %vm3938_vm3 = vc.u32 %v12407_v29, %v12396_v9  ;;  %v12425_v51 = vadd.f32 %v12065_v1, %v12358_v21 }
 0x5d2   : > { %v3770_v25 = vxor.u32 2147483648, %v8502_v26  ;;  %v3648_v38 = vor.u32 4788187, %v3647_v10  ;;  %v3940_v8 = vsel %vm3938_vm3, %v3939_v23, %v12397_v40  ;;  %v3785_v5 = vor.u32 8388608, %v3784_v57 }
 0x5d3   : > { %v3774_v60 = vsel %vm3772_vm2, %v3773_v22, %v8502_v26  ;;  %v3941_v2 = vadd.s32 %v3940_v8, %v3936_v47  ;;  %v3791_v48 = vand.u32 31, %v3789_v14  ;;  %v3651_v28 = vcvt.s32.f32 %v3644_v34 }
 0x5d4   : > { %v3771_v58 = vsel %vm3769_vm0, %v8500_v19, %v3770_v25  ;;  %v3649_v31 = vand.u32 2147483647, %v3648_v38  ;;  %v3658_v17 = vsel %vm12390_vm13, 0, %v3656_v15  ;;  %v12433_v62 = vshrl.u32 %v3789_v14, 5 }
 0x5d5   : > { %v3775_v49 = vsel %vm3768_vm15, %v3771_v58, %v3774_v60  ;;  %v3942_v6 = vadd.s32 536870912, %v3941_v2  ;;  %v3792_v1 = vsub.s32 32, %v3791_v48  ;;  %v3794_v36 = vshll.u32 %v8707_v33, %v3791_v48 }
 0x5d6   : > { %v3776_v21 = vsel %vm3765_vm14, nan, %v3775_v49  ;;  %v3652_v54 = vmul.f32 %v3651_v28, %v3649_v31  ;;  %v3797_v4 = vshll.u32 %v8708_v37, %v3791_v48  ;;  %v3800_v63 = vshll.u32 %v8709_v39, %v3791_v48 }
 0x5d7   : > { %7617 = vst [vmem:[%s9190_s23 + $0x1d0] sm:$0xff] %v3776_v21  ;;  %v12440_v0 = vshrl.u32 %v3942_v6, 30  ;;  %v3795_v56 = vshrl.u32 %v8708_v37, %v3792_v1  ;;  %v3798_v46 = vshrl.u32 %v8709_v39, %v3792_v1  ;;  %v3801_v32 = vshrl.u32 %v8710_v41, %v3792_v1 }
 0x5d8   : > { %v3653_v42 = vxor.u32 2147483648, %v3652_v54  ;;  %v3803_v11 = vshll.u32 %v8710_v41, %v3791_v48  ;;  %v3804_v24 = vshrl.u32 %v8711_v43, %v3792_v1  ;;  %v3662_v45 = vadd.s32 3, %v3658_v17 }
 0x5d9   : > { %v3944_v40 = vshll.u32 %v12440_v0, 30  ;;  %v3796_v18 = vor.u32 %v3795_v56, %v3794_v36  ;;  %v3799_v16 = vor.u32 %v3798_v46, %v3797_v4  ;;  %v3802_v13 = vor.u32 %v3801_v32, %v3800_v63 }
 0x5da   : > { %v3654_v27 = vsel %vm3571_vm11, %v3653_v42, %v3652_v54  ;;  %v3805_v59 = vor.u32 %v3804_v24, %v3803_v11  ;;  %v3806_v52 = vshll.u32 %v8711_v43, %v3791_v48  ;;  %v3807_v61 = vshrl.u32 %v8712_v50, %v3792_v1 }
 0x5db   : > { %v3657_v35 = vsel %vm12390_vm13, %v12192_v12, %v3654_v27  ;;  %v12454_v30 = vsub.s32 %v3941_v2, %v3944_v40  ;;  %vm3809_vm4 = vcmp.lt.s32.totalorder %v12433_v62, 1  ;;  %v3825_v7 = vshll.u32 %v3785_v5, 8 }
 0x5dc   : > { %8503 = vcosq.f32 %v3657_v35  ;;  %v868_v23 = vand.u32 2139095040, %v12425_v51  ;;  %v3808_v19 = vor.u32 %v3807_v61, %v3806_v52  ;;  %vm3812_vm5 = vcmp.lt.s32.totalorder %v12433_v62, 4 }
 0x5dd   : > { %8505 = vsinq.f32 %v3657_v35  ;;  %v3947_v57 = vsub.s32 0, %v12454_v30  ;;  %vm3810_vm6 = vcmp.lt.s32.totalorder %v12433_v62, 2  ;;  %vm3811_vm7 = vcmp.lt.s32.totalorder %v12433_v62, 3 }
 0x5de   : > { %v3817_v55 = vsel %vm3809_vm4, %v3796_v18, %v3799_v16  ;;  %v3818_v34 = vsel %vm3812_vm5, %v3805_v59, 920167782  ;;  %v3793_v14 = vshrl.u32 %v8707_v33, %v3792_v1  ;;  %v3814_v26 = vsel %vm3812_vm5, %v3802_v13, 2102212464 }
 0x5df   : > { %v7856_v10 = vmin.u32 %v3947_v57, %v12454_v30  ;;  %v3819_v22 = vsel %vm3811_vm7, %v3802_v13, %v3818_v34  ;;  %v3821_v47 = vsel %vm3809_vm4, %v3799_v16, %v3802_v13  ;;  %v3822_v25 = vsel %vm3812_vm5, %v3808_v19, 1326507024 }
 0x5e0   : > { %v3820_v15 = vsel %vm3810_vm6, %v3817_v55, %v3819_v22  ;;  %v869_v38 = vshrl.u32 %v868_v23, 23  ;;  %v3663_v8 = vand.u32 3, %v3662_v45  ;;  %v3813_v2 = vsel %vm3809_vm4, %v3793_v14, %v3796_v18 }
 0x5e1   : > { %v3949_v60 = vclz %v7856_v10  ;;  %v3815_v5 = vsel %vm3811_vm7, %v3799_v16, %v3814_v26  ;;  %v3823_v48 = vsel %vm3811_vm7, %v3805_v59, %v3822_v25  ;;  %vm12482_vm8 = vcmp.le.f32.partialorder %v3881_v44, 0.7853982  ;;  %v12512_v10 = vld [vmem:[%s13941_s1] ss:$0 sm:$0xff] }
 0x5e2   : > { %v12474_v58 = vmul.u32.u64.low %v3825_v7, %v3820_v15  ;;  %v12475_v31 = vmul.u32.u64.high %v3825_v7, %v3820_v15, %v12474_v58  ;;  %v3824_v17 = vsel %vm3810_vm6, %v3821_v47, %v3823_v48  ;;  %v7739_v49 = vadd.s32 4294967169, %v869_v38 }
 0x5e3   : > { %v7857_v28 = vadd.s32 4294967294, %v3949_v60  ;;  %v3967_v1 = vsub.s32 4, %v12440_v0  ;;  %v12487_v21 = vmul.u32.u64.low %v3825_v7, %v3824_v17  ;;  %v12488_v54 = vmul.u32.u64.high %v3825_v7, %v3824_v17, %v12487_v21 }
 0x5e4   : > { %vm3883_vm9 = vcmp.lt.s32.totalorder %v12301_v3, 0  ;;  %v3816_v36 = vsel %vm3810_vm6, %v3813_v2, %v3815_v5  ;;  %v875_v4 = vadd.s32 1, %v7739_v49  ;;  %vm3661_vm11 = vweird.f32 %v12192_v12 }
 0x5e5   : > { %vm7858_vm10 = vcmp.lt.s32.totalorder %v7857_v28, 0  ;;  %vm3664_vm12 = vcmp.lt.s32.totalorder %v3663_v8, 2  ;;  %v3835_v44 = vadd.s32 1, %v12475_v31  ;;  %v865_v46 = vand.u32 2147483647, %v12425_v51 }
 0x5e6   : > { %v3952_v56 = vsel %vm7858_vm10, 0, %v7857_v28  ;;  %v3937_v63 = vadd.s32 %v12396_v9, %v12407_v29  ;;  %vm876_vm13 = vcmp.gt.s32.totalorder %v875_v4, 0  ;;  %v3968_v62 = vsel %vm3883_vm9, %v3967_v1, %v12440_v0  ;;  %v411_v0 = vpop.permute.xlu0 %410 }
 0x5e7   : > { %v3953_v42 = vsub.s32 32, %v3952_v56  ;;  %v3957_v32 = vsub.s32 4294967266, %v3952_v56  ;;  %v3832_v11 = vmul.u32 %v3825_v7, %v3816_v36  ;;  %vm3834_vm15 = vc.u32 %v12488_v54, %v12474_v58 }
 0x5e8   : > { %v877_v24 = vsel %vm876_vm13, %v875_v4, 0  ;;  %v3954_v40 = vshll.u32 %v12454_v30, %v3952_v56  ;;  %v3836_v16 = vsel %vm3834_vm15, %v3835_v44, %v12475_v31  ;;  %v872_v59 = vand.u32 8388607, %v865_v46 }
 0x5e9   : > { %v8504_v45 = vpop.eup %8503  ;;  %v3955_v18 = vshrl.u32 %v3937_v63, %v3953_v42  ;;  %v3958_v27 = vadd.s32 127, %v3957_v32  ;;  %v3837_v13 = vadd.s32 %v3836_v16, %v3832_v11  ;;  %v879_v35 = vand.u32 31, %v877_v24 }
 0x5ea   : > { %v8506_v9 = vpop.eup %8505  ;;  %v3669_v29 = vxor.u32 2147483648, %v8504_v45  ;;  %vm3668_vm14 = vcmp.eq.s32.totalorder %v3663_v8, 2  ;;  %vm3665_vm0 = vcmp.eq.s32.totalorder %v3663_v8, 0  ;;  %v3970_v34 = vsel %vm12482_vm8, 0, %v3968_v62 }
 0x5eb   : > { %v3666_v52 = vxor.u32 2147483648, %v8506_v9  ;;  %v3956_v61 = vor.u32 %v3955_v18, %v3954_v40  ;;  %v3959_v7 = vshll.u32 %v3958_v27, 23  ;;  %v3838_v30 = vadd.s32 536870912, %v3837_v13  ;;  %v12541_v40 = vld [vmem:[%s13943_s3] ss:$0 sm:$0xff] }
 0x5ec   : > { %v3670_v23 = vsel %vm3668_vm14, %v3669_v29, %v8506_v9  ;;  %v880_v57 = vsub.s32 32, %v879_v35  ;;  %v587_v14 = vmul.f32 %v12512_v10, %v411_v0  ;;  %v873_v15 = vor.u32 8388608, %v872_v59 }
 0x5ed   : > { %v3667_v19 = vsel %vm3665_vm0, %v8504_v45, %v3666_v52  ;;  %v3960_v55 = vor.u32 4788187, %v3959_v7  ;;  %v12516_v22 = vshrl.u32 %v3838_v30, 30  ;;  %v3963_v60 = vcvt.s32.f32 %v3956_v61 }
 0x5ee   : > { %v3671_v26 = vsel %vm3664_vm12, %v3667_v19, %v3670_v23  ;;  %v883_v47 = vshrl.u32 %v8708_v37, %v880_v57  ;;  %v886_v2 = vshrl.u32 %v8709_v39, %v880_v57  ;;  %v878_v48 = vshrl.u32 %v877_v24, 5 }
 0x5ef   : > { %v3672_v25 = vsel %vm3661_vm11, nan, %v3671_v26  ;;  %v3961_v38 = vand.u32 2147483647, %v3960_v55  ;;  %v3840_v5 = vshll.u32 %v12516_v22, 30  ;;  %v882_v31 = vshll.u32 %v8707_v33, %v879_v35 }
 0x5f0   : > { %7615 = vst [vmem:[%s9190_s23 + $0x1c0] sm:$0xff] %v3672_v25  ;;  %v889_v8 = vshrl.u32 %v8710_v41, %v880_v57  ;;  %v885_v17 = vshll.u32 %v8708_v37, %v879_v35  ;;  %v891_v49 = vshll.u32 %v8710_v41, %v879_v35  ;;  %v892_v12 = vshrl.u32 %v8711_v43, %v880_v57  ;;  %v426_v25 = vpop.permute.xlu1 %425 }
 0x5f1   : > { %v3964_v28 = vmul.f32 %v3963_v60, %v3961_v38  ;;  %v12529_v1 = vsub.s32 %v3837_v13, %v3840_v5  ;;  %v884_v21 = vor.u32 %v883_v47, %v882_v31  ;;  %v888_v36 = vshll.u32 %v8709_v39, %v879_v35 }
 0x5f2   : > { %v887_v56 = vor.u32 %v886_v2, %v885_v17  ;;  %v893_v44 = vor.u32 %v892_v12, %v891_v49  ;;  %v895_v63 = vshrl.u32 %v8712_v50, %v880_v57  ;;  %v3974_v42 = vadd.s32 3, %v3970_v34 }
 0x5f3   : > { %v3965_v4 = vxor.u32 2147483648, %v3964_v28  ;;  %vm3779_vm1 = vcmp.lt.s32.totalorder %v12349_v20, 0  ;;  %v3843_v32 = vsub.s32 0, %v12529_v1  ;;  %v890_v62 = vor.u32 %v889_v8, %v888_v36 }
 0x5f4   : > { %v894_v11 = vshll.u32 %v8711_v43, %v879_v35  ;;  %vm897_vm2 = vcmp.lt.s32.totalorder %v878_v48, 1  ;;  %v913_v45 = vshll.u32 %v873_v15, 8  ;;  %v12544_v18 = vadd.f32 %v12541_v40, %v587_v14 }
 0x5f5   : > { %v3966_v24 = vsel %vm3883_vm9, %v3965_v4, %v3964_v28  ;;  %v7852_v16 = vmin.u32 %v3843_v32, %v12529_v1  ;;  %vm900_vm3 = vcmp.lt.s32.totalorder %v878_v48, 4  ;;  %v881_v29 = vshrl.u32 %v8707_v33, %v880_v57 }
 0x5f6   : > { %v3969_v27 = vsel %vm12482_vm8, %v12301_v3, %v3966_v24  ;;  %v896_v9 = vor.u32 %v895_v63, %v894_v11  ;;  %v905_v13 = vsel %vm897_vm2, %v884_v21, %v887_v56  ;;  %v906_v59 = vsel %vm900_vm3, %v893_v44, 920167782 }
 0x5f7   : > { %8507 = vcosq.f32 %v3969_v27  ;;  %vm12555_vm4 = vcmp.le.f32.partialorder %v3777_v53, 0.7853982  ;;  %v3845_v6 = vclz %v7852_v16  ;;  %vm899_vm5 = vcmp.lt.s32.totalorder %v878_v48, 3 }
 0x5f8   : > { %8509 = vsinq.f32 %v3969_v27  ;;  %v902_v0 = vsel %vm900_vm3, %v890_v62, 2102212464  ;;  %v3863_v52 = vsub.s32 4, %v12516_v22  ;;  %vm898_vm6 = vcmp.lt.s32.totalorder %v878_v48, 2 }
 0x5f9   : > { %v907_v61 = vsel %vm899_vm5, %v890_v62, %v906_v59  ;;  %v909_v7 = vsel %vm897_vm2, %v887_v56, %v890_v62  ;;  %v7853_v23 = vadd.s32 4294967294, %v3845_v6  ;;  %v901_v30 = vsel %vm897_vm2, %v881_v29, %v884_v21 }
 0x5fa   : > { %v908_v57 = vsel %vm898_vm6, %v905_v13, %v907_v61  ;;  %v910_v53 = vsel %vm900_vm3, %v896_v9, 1326507024  ;;  %v903_v19 = vsel %vm899_vm5, %v887_v56, %v902_v0  ;;  %v3833_v26 = vadd.s32 %v12474_v58, %v12488_v54  ;;  %v415_v61 = vpop.permute.xlu0 %414 }
 0x5fb   : > { %v911_v55 = vsel %vm899_vm5, %v893_v44, %v910_v53  ;;  %v12565_v34 = vmul.u32.u64.low %v913_v45, %v908_v57  ;;  %v12566_v14 = vmul.u32.u64.high %v913_v45, %v908_v57, %v12565_v34  ;;  %vm7854_vm7 = vcmp.lt.s32.totalorder %v7853_v23, 0 }
 0x5fc   : > { %v912_v15 = vsel %vm898_vm6, %v909_v7, %v911_v55  ;;  %v660_v47 = vand.u32 2139095040, %v12544_v18  ;;  %v3848_v38 = vsel %vm7854_vm7, 0, %v7853_v23  ;;  %v3864_v60 = vsel %vm3779_vm1, %v3863_v52, %v12516_v22 }
 0x5fd   : > { %v12576_v2 = vmul.u32.u64.low %v913_v45, %v912_v15  ;;  %v12577_v5 = vmul.u32.u64.high %v913_v45, %v912_v15, %v12576_v2  ;;  %v3849_v31 = vsub.s32 32, %v3848_v38  ;;  %v3853_v8 = vsub.s32 4294967266, %v3848_v38 }
 0x5fe   : > { %v904_v28 = vsel %vm898_vm6, %v901_v30, %v903_v19  ;;  %v661_v17 = vshrl.u32 %v660_v47, 23  ;;  %v3975_v58 = vand.u32 3, %v3974_v42  ;;  %v923_v54 = vadd.s32 1, %v12566_v14 }
 0x5ff   : > { %v657_v49 = vand.u32 2147483647, %v12544_v18  ;;  %v590_v12 = vmul.f32 %v12512_v10, %v426_v25  ;;  %v3850_v21 = vshll.u32 %v12529_v1, %v3848_v38  ;;  %v3851_v36 = vshrl.u32 %v3833_v26, %v3849_v31 }
 0x600   : > { %v3854_v4 = vadd.s32 127, %v3853_v8  ;;  %v7731_v22 = vadd.s32 4294967169, %v661_v17  ;;  %v3866_v56 = vsel %vm12555_vm4, 0, %v3864_v60  ;;  %v920_v44 = vmul.u32 %v913_v45, %v904_v28 }
 0x601   : > { %vm922_vm8 = vc.u32 %v12577_v5, %v12565_v34  ;;  %v3852_v48 = vor.u32 %v3851_v36, %v3850_v21  ;;  %v664_v11 = vand.u32 8388607, %v657_v49  ;;  %v12592_v1 = vadd.f32 %v12541_v40, %v590_v12 }
 0x602   : > { %v3855_v63 = vshll.u32 %v3854_v4, 23  ;;  %v924_v42 = vsel %vm922_vm8, %v923_v54, %v12566_v14  ;;  %v667_v32 = vadd.s32 1, %v7731_v22  ;;  %vm3977_vm9 = vcmp.eq.s32.totalorder %v3975_v58, 0 }
 0x603   : > { %v925_v62 = vadd.s32 %v924_v42, %v920_v44  ;;  %vm3980_vm10 = vcmp.eq.s32.totalorder %v3975_v58, 2  ;;  %v3870_v9 = vadd.s32 3, %v3866_v56  ;;  %v3859_v0 = vcvt.s32.f32 %v3852_v48 }
 0x604   : > { %v8508_v24 = vpop.eup %8507  ;;  %v3856_v27 = vor.u32 4788187, %v3855_v63  ;;  %vm668_vm11 = vcmp.gt.s32.totalorder %v667_v32, 0  ;;  %v665_v30 = vor.u32 8388608, %v664_v11  ;;  %v972_v57 = vand.u32 2139095040, %v12592_v1 }
 0x605   : > { %v8510_v45 = vpop.eup %8509  ;;  %v3981_v16 = vxor.u32 2147483648, %v8508_v24  ;;  %v926_v29 = vadd.s32 536870912, %v925_v62  ;;  %v669_v13 = vsel %vm668_vm11, %v667_v32, 0  ;;  %vm3976_vm12 = vcmp.lt.s32.totalorder %v3975_v58, 2 }
 0x606   : > { %v3978_v59 = vxor.u32 2147483648, %v8510_v45  ;;  %v3857_v6 = vand.u32 2147483647, %v3856_v27  ;;  %v671_v52 = vand.u32 31, %v669_v13  ;;  %vm3973_vm13 = vweird.f32 %v12301_v3 }
 0x607   : > { %v3982_v7 = vsel %vm3980_vm10, %v3981_v16, %v8510_v45  ;;  %v12594_v23 = vshrl.u32 %v926_v29, 30  ;;  %v12601_v15 = vmul.f32 %v12512_v10, %v415_v61  ;;  %v12603_v38 = vand.u32 3, %v3870_v9 }
 0x608   : > { %v3979_v53 = vsel %vm3977_vm9, %v8508_v24, %v3978_v59  ;;  %v3860_v19 = vmul.f32 %v3859_v0, %v3857_v6  ;;  %v672_v55 = vsub.s32 32, %v671_v52  ;;  %v12610_v8 = vshll.u32 %v665_v30, 8 }
 0x609   : > { %v3983_v14 = vsel %vm3976_vm12, %v3979_v53, %v3982_v7  ;;  %v928_v26 = vshll.u32 %v12594_v23, 30  ;;  %v973_v3 = vshrl.u32 %v972_v57, 23  ;;  %v670_v17 = vshrl.u32 %v669_v13, 5 }
 0x60a   : > { %v3984_v47 = vsel %vm3973_vm13, nan, %v3983_v14  ;;  %v3861_v25 = vxor.u32 2147483648, %v3860_v19  ;;  %v675_v60 = vshrl.u32 %v8708_v37, %v672_v55  ;;  %v678_v31 = vshrl.u32 %v8709_v39, %v672_v55 }
 0x60b   : > { %7621 = vst [vmem:[%s9190_s23 + $0x1f0] sm:$0xff] %v3984_v47  ;;  %v12607_v2 = vsub.s32 %v925_v62, %v928_v26  ;;  %v674_v58 = vshll.u32 %v8707_v33, %v671_v52  ;;  %v681_v54 = vshrl.u32 %v8710_v41, %v672_v55  ;;  %v677_v36 = vshll.u32 %v8708_v37, %v671_v52 }
 0x60c   : > { %v3862_v28 = vsel %vm3779_vm1, %v3861_v25, %v3860_v19  ;;  %v680_v4 = vshll.u32 %v8709_v39, %v671_v52  ;;  %v683_v56 = vshll.u32 %v8710_v41, %v671_v52  ;;  %v684_v44 = vshrl.u32 %v8711_v43, %v672_v55 }
 0x60d   : > { %v3865_v12 = vsel %vm12555_vm4, %v12349_v20, %v3862_v28  ;;  %v931_v21 = vsub.s32 0, %v12607_v2  ;;  %v676_v22 = vor.u32 %v675_v60, %v674_v58  ;;  %v679_v63 = vor.u32 %v678_v31, %v677_v36 }
 0x60e   : > { %8511 = vcosq.f32 %v3865_v12  ;;  %v682_v42 = vor.u32 %v681_v54, %v680_v4  ;;  %v685_v32 = vor.u32 %v684_v44, %v683_v56  ;;  %v686_v35 = vshll.u32 %v8711_v43, %v671_v52 }
 0x60f   : > { %8513 = vsinq.f32 %v3865_v12  ;;  %v7740_v48 = vmin.u32 %v931_v21, %v12607_v2  ;;  %v687_v62 = vshrl.u32 %v8712_v50, %v672_v55  ;;  %v969_v11 = vand.u32 2147483647, %v12592_v1 }
 0x610   : > { %v673_v27 = vshrl.u32 %v8707_v33, %v672_v55  ;;  %vm689_vm15 = vcmp.lt.s32.totalorder %v670_v17, 1  ;;  %v7743_v45 = vadd.s32 4294967169, %v973_v3  ;;  %vm690_vm14 = vcmp.lt.s32.totalorder %v670_v17, 2 }
 0x611   : > { %v933_v24 = vclz %v7740_v48  ;;  %v688_v16 = vor.u32 %v687_v62, %v686_v35  ;;  %vm691_vm0 = vcmp.lt.s32.totalorder %v670_v17, 3  ;;  %vm692_vm1 = vcmp.lt.s32.totalorder %v670_v17, 4 }
 0x612   : > { %vm867_vm2 = vcmp.lt.s32.totalorder %v12425_v51, 0  ;;  %v694_v29 = vsel %vm692_vm1, %v682_v42, 2102212464  ;;  %v697_v13 = vsel %vm689_vm15, %v676_v22, %v679_v63  ;;  %v698_v59 = vsel %vm692_vm1, %v685_v32, 920167782 }
 0x613   : > { %v7741_v9 = vadd.s32 4294967294, %v933_v24  ;;  %v693_v6 = vsel %vm689_vm15, %v673_v27, %v676_v22  ;;  %v699_v0 = vsel %vm691_vm0, %v682_v42, %v698_v59  ;;  %v701_v52 = vsel %vm689_vm15, %v679_v63, %v682_v42 }
 0x614   : > { %v702_v61 = vsel %vm692_vm1, %v688_v16, 1326507024  ;;  %v695_v7 = vsel %vm691_vm0, %v679_v63, %v694_v29  ;;  %v700_v30 = vsel %vm690_vm14, %v697_v13, %v699_v0  ;;  %vm12633_vm4 = vcmp.le.f32.partialorder %v865_v46, 0.7853982 }
 0x615   : > { %vm7742_vm3 = vcmp.lt.s32.totalorder %v7741_v9, 0  ;;  %v703_v57 = vsel %vm691_vm0, %v685_v32, %v702_v61  ;;  %v12639_v14 = vmul.u32.u64.low %v12610_v8, %v700_v30  ;;  %v12640_v26 = vmul.u32.u64.high %v12610_v8, %v700_v30, %v12639_v14 }
 0x616   : > { %v936_v19 = vsel %vm7742_vm3, 0, %v7741_v9  ;;  %v704_v55 = vsel %vm690_vm14, %v701_v52, %v703_v57  ;;  %vm3872_vm5 = vcmp.lt.s32.totalorder %v12603_v38, 2  ;;  %v921_v47 = vadd.s32 %v12565_v34, %v12577_v5 }
 0x617   : > { %v937_v25 = vsub.s32 32, %v936_v19  ;;  %v941_v60 = vsub.s32 4294967266, %v936_v19  ;;  %vm3869_vm6 = vweird.f32 %v12349_v20  ;;  %v951_v46 = vsub.s32 4, %v12594_v23 }
 0x618   : > { %v12649_v31 = vmul.u32.u64.low %v12610_v8, %v704_v55  ;;  %v12650_v3 = vmul.u32.u64.high %v12610_v8, %v704_v55, %v12649_v31  ;;  %v979_v28 = vadd.s32 1, %v7743_v45  ;;  %v938_v58 = vshll.u32 %v12607_v2, %v936_v19 }
 0x619   : > { %v939_v54 = vshrl.u32 %v921_v47, %v937_v25  ;;  %v942_v12 = vadd.s32 127, %v941_v60  ;;  %v696_v21 = vsel %vm690_vm14, %v693_v6, %v695_v7  ;;  %vm3873_vm7 = vcmp.eq.s32.totalorder %v12603_v38, 0 }
 0x61a   : > { %v715_v34 = vadd.s32 1, %v12640_v26  ;;  %v976_v5 = vand.u32 8388607, %v969_v11  ;;  %vm980_vm8 = vcmp.gt.s32.totalorder %v979_v28, 0  ;;  %vm3876_vm9 = vcmp.eq.s32.totalorder %v12603_v38, 2 }
 0x61b   : > { %v8512_v36 = vpop.eup %8511  ;;  %v940_v4 = vor.u32 %v939_v54, %v938_v58  ;;  %v943_v22 = vshll.u32 %v942_v12, 23  ;;  %v981_v56 = vsel %vm980_vm8, %v979_v28, 0  ;;  %v952_v17 = vsel %vm867_vm2, %v951_v46, %v12594_v23 }
 0x61c   : > { %v8514_v44 = vpop.eup %8513  ;;  %v3877_v2 = vxor.u32 2147483648, %v8512_v36  ;;  %v712_v48 = vmul.u32 %v12610_v8, %v696_v21  ;;  %vm714_vm10 = vc.u32 %v12650_v3, %v12639_v14  ;;  %v12668_v35 = vadd.f32 %v12541_v40, %v12601_v15 }
 0x61d   : > { %v3874_v63 = vxor.u32 2147483648, %v8514_v44  ;;  %v944_v42 = vor.u32 4788187, %v943_v22  ;;  %v716_v32 = vsel %vm714_vm10, %v715_v34, %v12640_v26  ;;  %v977_v27 = vor.u32 8388608, %v976_v5 }
 0x61e   : > { %v3878_v62 = vsel %vm3876_vm9, %v3877_v2, %v8514_v44  ;;  %v717_v24 = vadd.s32 %v716_v32, %v712_v48  ;;  %v983_v45 = vand.u32 31, %v981_v56  ;;  %v947_v16 = vcvt.s32.f32 %v940_v4 }
 0x61f   : > { %v3875_v23 = vsel %vm3873_vm7, %v8512_v36, %v3874_v63  ;;  %v945_v8 = vand.u32 2147483647, %v944_v42  ;;  %v954_v9 = vsel %vm12633_vm4, 0, %v952_v17  ;;  %v12676_v59 = vshrl.u32 %v981_v56, 5 }
 0x620   : > { %v3879_v29 = vsel %vm3872_vm5, %v3875_v23, %v3878_v62  ;;  %v718_v13 = vadd.s32 536870912, %v717_v24  ;;  %v984_v15 = vsub.s32 32, %v983_v45  ;;  %v986_v52 = vshll.u32 %v8707_v33, %v983_v45 }
 0x621   : > { %v3880_v6 = vsel %vm3869_vm6, nan, %v3879_v29  ;;  %v948_v0 = vmul.f32 %v947_v16, %v945_v8  ;;  %v989_v61 = vshll.u32 %v8708_v37, %v983_v45  ;;  %v992_v57 = vshll.u32 %v8709_v39, %v983_v45 }
 0x622   : > { %7619 = vst [vmem:[%s9190_s23 + $0x1e0] sm:$0xff] %v3880_v6  ;;  %v12683_v7 = vshrl.u32 %v718_v13, 30  ;;  %v987_v30 = vshrl.u32 %v8708_v37, %v984_v15  ;;  %v990_v38 = vshrl.u32 %v8709_v39, %v984_v15  ;;  %v993_v55 = vshrl.u32 %v8710_v41, %v984_v15 }
 0x623   : > { %v949_v19 = vxor.u32 2147483648, %v948_v0  ;;  %v995_v20 = vshll.u32 %v8710_v41, %v983_v45  ;;  %v996_v26 = vshrl.u32 %v8711_v43, %v984_v15  ;;  %v958_v47 = vadd.s32 3, %v954_v9 }
 0x624   : > { %v720_v25 = vshll.u32 %v12683_v7, 30  ;;  %v988_v60 = vor.u32 %v987_v30, %v986_v52  ;;  %v991_v31 = vor.u32 %v990_v38, %v989_v61  ;;  %v994_v28 = vor.u32 %v993_v55, %v992_v57 }
 0x625   : > { %v950_v46 = vsel %vm867_vm2, %v949_v19, %v948_v0  ;;  %v997_v58 = vor.u32 %v996_v26, %v995_v20  ;;  %v998_v21 = vshll.u32 %v8711_v43, %v983_v45  ;;  %v999_v34 = vshrl.u32 %v8712_v50, %v984_v15 }
 0x626   : > { %v953_v54 = vsel %vm12633_vm4, %v12425_v51, %v950_v46  ;;  %v12697_v12 = vsub.s32 %v717_v24, %v720_v25  ;;  %vm1001_vm11 = vcmp.lt.s32.totalorder %v12676_v59, 1  ;;  %v1017_v5 = vshll.u32 %v977_v27, 8 }
 0x627   : > { %8515 = vcosq.f32 %v953_v54  ;;  %v764_v36 = vand.u32 2139095040, %v12668_v35  ;;  %v1000_v22 = vor.u32 %v999_v34, %v998_v21  ;;  %vm1004_vm12 = vcmp.lt.s32.totalorder %v12676_v59, 4 }
 0x628   : > { %8517 = vsinq.f32 %v953_v54  ;;  %v723_v4 = vsub.s32 0, %v12697_v12  ;;  %vm1002_vm13 = vcmp.lt.s32.totalorder %v12676_v59, 2  ;;  %vm1003_vm15 = vcmp.lt.s32.totalorder %v12676_v59, 3 }
 0x629   : > { %v1009_v53 = vsel %vm1001_vm11, %v988_v60, %v991_v31  ;;  %v1010_v56 = vsel %vm1004_vm12, %v997_v58, 920167782  ;;  %v985_v2 = vshrl.u32 %v8707_v33, %v984_v15  ;;  %v1006_v17 = vsel %vm1004_vm12, %v994_v28, 2102212464 }
 0x62a   : > { %v7732_v44 = vmin.u32 %v723_v4, %v12697_v12  ;;  %v1011_v48 = vsel %vm1003_vm15, %v994_v28, %v1010_v56  ;;  %v1013_v42 = vsel %vm1001_vm11, %v991_v31, %v994_v28  ;;  %v1014_v32 = vsel %vm1004_vm12, %v1000_v22, 1326507024 }
 0x62b   : > { %v1012_v63 = vsel %vm1002_vm13, %v1009_v53, %v1011_v48  ;;  %v765_v62 = vshrl.u32 %v764_v36, 23  ;;  %v959_v24 = vand.u32 3, %v958_v47  ;;  %v1005_v45 = vsel %vm1001_vm11, %v985_v2, %v988_v60 }
 0x62c   : > { %v725_v27 = vclz %v7732_v44  ;;  %v1007_v23 = vsel %vm1003_vm15, %v991_v31, %v1006_v17  ;;  %v1015_v8 = vsel %vm1003_vm15, %v997_v58, %v1014_v32  ;;  %vm12725_vm14 = vcmp.le.f32.partialorder %v657_v49, 0.7853982 }
 0x62d   : > { %v12717_v16 = vmul.u32.u64.low %v1017_v5, %v1012_v63  ;;  %v12718_v9 = vmul.u32.u64.high %v1017_v5, %v1012_v63, %v12717_v16  ;;  %v1016_v13 = vsel %vm1002_vm13, %v1013_v42, %v1015_v8  ;;  %v7735_v15 = vadd.s32 4294967169, %v765_v62 }
 0x62e   : > { %v7733_v29 = vadd.s32 4294967294, %v725_v27  ;;  %v743_v0 = vsub.s32 4, %v12683_v7  ;;  %v12730_v52 = vmul.u32.u64.low %v1017_v5, %v1016_v13  ;;  %v12731_v61 = vmul.u32.u64.high %v1017_v5, %v1016_v13, %v12730_v52 }
 0x62f   : > { %vm659_vm0 = vcmp.lt.s32.totalorder %v12544_v18, 0  ;;  %v1008_v30 = vsel %vm1002_vm13, %v1005_v45, %v1007_v23  ;;  %v771_v38 = vadd.s32 1, %v7735_v15  ;;  %vm957_vm2 = vweird.f32 %v12425_v51 }
 0x630   : > { %vm7734_vm1 = vcmp.lt.s32.totalorder %v7733_v29, 0  ;;  %vm960_vm3 = vcmp.lt.s32.totalorder %v959_v24, 2  ;;  %v1027_v49 = vadd.s32 1, %v12718_v9  ;;  %v761_v19 = vand.u32 2147483647, %v12668_v35 }
 0x631   : > { %v728_v57 = vsel %vm7734_vm1, 0, %v7733_v29  ;;  %v713_v55 = vadd.s32 %v12639_v14, %v12650_v3  ;;  %vm772_vm4 = vcmp.gt.s32.totalorder %v771_v38, 0  ;;  %v744_v59 = vsel %vm659_vm0, %v743_v0, %v12683_v7  ;;  %v437_v7 = vpop.permute.xlu1 %436 }
 0x632   : > { %v729_v20 = vsub.s32 32, %v728_v57  ;;  %v733_v26 = vsub.s32 4294967266, %v728_v57  ;;  %v1024_v47 = vmul.u32 %v1017_v5, %v1008_v30  ;;  %vm1026_vm5 = vc.u32 %v12731_v61, %v12717_v16 }
 0x633   : > { %v773_v25 = vsel %vm772_vm4, %v771_v38, 0  ;;  %v730_v46 = vshll.u32 %v12697_v12, %v728_v57  ;;  %v1028_v58 = vsel %vm1026_vm5, %v1027_v49, %v12718_v9  ;;  %v768_v21 = vand.u32 8388607, %v761_v19 }
 0x634   : > { %v8516_v60 = vpop.eup %8515  ;;  %v731_v31 = vshrl.u32 %v713_v55, %v729_v20  ;;  %v734_v28 = vadd.s32 127, %v733_v26  ;;  %v1029_v54 = vadd.s32 %v1028_v58, %v1024_v47  ;;  %v775_v34 = vand.u32 31, %v773_v25 }
 0x635   : > { %v8518_v14 = vpop.eup %8517  ;;  %v965_v3 = vxor.u32 2147483648, %v8516_v60  ;;  %vm964_vm6 = vcmp.eq.s32.totalorder %v959_v24, 2  ;;  %vm961_vm7 = vcmp.eq.s32.totalorder %v959_v24, 0  ;;  %v746_v2 = vsel %vm12725_vm14, 0, %v744_v59 }
 0x636   : > { %v962_v5 = vxor.u32 2147483648, %v8518_v14  ;;  %v732_v36 = vor.u32 %v731_v31, %v730_v46  ;;  %v735_v4 = vshll.u32 %v734_v28, 23  ;;  %v1030_v12 = vadd.s32 536870912, %v1029_v54 }
 0x637   : > { %v966_v22 = vsel %vm964_vm6, %v965_v3, %v8518_v14  ;;  %v776_v53 = vsub.s32 32, %v775_v34  ;;  %v592_v17 = vmul.f32 %v12512_v10, %v437_v7  ;;  %v769_v42 = vor.u32 8388608, %v768_v21 }
 0x638   : > { %v963_v56 = vsel %vm961_vm7, %v8516_v60, %v962_v5  ;;  %v736_v44 = vor.u32 4788187, %v735_v4  ;;  %v12754_v63 = vshrl.u32 %v1030_v12, 30  ;;  %v739_v45 = vcvt.s32.f32 %v732_v36 }
 0x639   : > { %v967_v48 = vsel %vm960_vm3, %v963_v56, %v966_v22  ;;  %v779_v32 = vshrl.u32 %v8708_v37, %v776_v53  ;;  %v782_v23 = vshrl.u32 %v8709_v39, %v776_v53  ;;  %v774_v9 = vshrl.u32 %v773_v25, 5 }
 0x63a   : > { %v968_v62 = vsel %vm957_vm2, nan, %v967_v48  ;;  %v737_v27 = vand.u32 2147483647, %v736_v44  ;;  %v1032_v8 = vshll.u32 %v12754_v63, 30  ;;  %v778_v29 = vshll.u32 %v8707_v33, %v775_v34 }
 0x63b   : > { %7563 = vst [vmem:[%s9190_s23 + $0x20] sm:$0xff] %v968_v62  ;;  %v785_v24 = vshrl.u32 %v8710_v41, %v776_v53  ;;  %v781_v15 = vshll.u32 %v8708_v37, %v775_v34  ;;  %v787_v0 = vshll.u32 %v8710_v41, %v775_v34  ;;  %v788_v51 = vshrl.u32 %v8711_v43, %v776_v53  ;;  %v433_v62 = vpop.permute.xlu0 %432 }
 0x63c   : > { %v740_v13 = vmul.f32 %v739_v45, %v737_v27  ;;  %v12767_v52 = vsub.s32 %v1029_v54, %v1032_v8  ;;  %v780_v30 = vor.u32 %v779_v32, %v778_v29  ;;  %v784_v38 = vshll.u32 %v8709_v39, %v775_v34 }
 0x63d   : > { %v783_v49 = vor.u32 %v782_v23, %v781_v15  ;;  %v789_v55 = vor.u32 %v788_v51, %v787_v0  ;;  %v791_v20 = vshrl.u32 %v8712_v50, %v776_v53  ;;  %v750_v26 = vadd.s32 3, %v746_v2 }
 0x63e   : > { %v741_v57 = vxor.u32 2147483648, %v740_v13  ;;  %vm971_vm8 = vcmp.lt.s32.totalorder %v12592_v1, 0  ;;  %v1035_v59 = vsub.s32 0, %v12767_v52  ;;  %v786_v47 = vor.u32 %v785_v24, %v784_v38 }
 0x63f   : > { %v790_v25 = vshll.u32 %v8711_v43, %v775_v34  ;;  %vm793_vm9 = vcmp.lt.s32.totalorder %v774_v9, 1  ;;  %v809_v46 = vshll.u32 %v769_v42, 8  ;;  %v12777_v31 = vadd.f32 %v12541_v40, %v592_v17 }
 0x640   : > { %v742_v60 = vsel %vm659_vm0, %v741_v57, %v740_v13  ;;  %v7744_v58 = vmin.u32 %v1035_v59, %v12767_v52  ;;  %vm796_vm10 = vcmp.lt.s32.totalorder %v774_v9, 4  ;;  %v777_v3 = vshrl.u32 %v8707_v33, %v776_v53 }
 0x641   : > { %v745_v28 = vsel %vm12725_vm14, %v12544_v18, %v742_v60  ;;  %v792_v14 = vor.u32 %v791_v20, %v790_v25  ;;  %v801_v54 = vsel %vm793_vm9, %v780_v30, %v783_v49  ;;  %v802_v21 = vsel %vm796_vm10, %v789_v55, 920167782 }
 0x642   : > { %8519 = vcosq.f32 %v745_v28  ;;  %vm12788_vm11 = vcmp.le.f32.partialorder %v969_v11, 0.7853982  ;;  %v1037_v6 = vclz %v7744_v58  ;;  %vm795_vm12 = vcmp.lt.s32.totalorder %v774_v9, 3 }
 0x643   : > { %8521 = vsinq.f32 %v745_v28  ;;  %v798_v7 = vsel %vm796_vm10, %v786_v47, 2102212464  ;;  %v1055_v5 = vsub.s32 4, %v12754_v63  ;;  %vm794_vm13 = vcmp.lt.s32.totalorder %v774_v9, 2 }
 0x644   : > { %v803_v36 = vsel %vm795_vm12, %v786_v47, %v802_v21  ;;  %v805_v4 = vsel %vm793_vm9, %v783_v49, %v786_v47  ;;  %v7745_v22 = vadd.s32 4294967294, %v1037_v6  ;;  %v797_v12 = vsel %vm793_vm9, %v777_v3, %v780_v30 }
 0x645   : > { %v804_v53 = vsel %vm794_vm13, %v801_v54, %v803_v36  ;;  %v806_v11 = vsel %vm796_vm10, %v792_v14, 1326507024  ;;  %v799_v56 = vsel %vm795_vm12, %v783_v49, %v798_v7  ;;  %v1025_v48 = vadd.s32 %v12717_v16, %v12731_v61  ;;  %v448_v36 = vpop.permute.xlu1 %447 }
 0x646   : > { %v807_v44 = vsel %vm795_vm12, %v789_v55, %v806_v11  ;;  %v12798_v2 = vmul.u32.u64.low %v809_v46, %v804_v53  ;;  %v12799_v17 = vmul.u32.u64.high %v809_v46, %v804_v53, %v12798_v2  ;;  %vm7746_vm15 = vcmp.lt.s32.totalorder %v7745_v22, 0 }
 0x647   : > { %v808_v42 = vsel %vm794_vm13, %v805_v4, %v807_v44  ;;  %v1180_v32 = vand.u32 2139095040, %v12777_v31  ;;  %v1040_v27 = vsel %vm7746_vm15, 0, %v7745_v22  ;;  %v1056_v45 = vsel %vm971_vm8, %v1055_v5, %v12754_v63 }
 0x648   : > { %v12809_v23 = vmul.u32.u64.low %v809_v46, %v808_v42  ;;  %v12810_v8 = vmul.u32.u64.high %v809_v46, %v808_v42, %v12809_v23  ;;  %v1041_v29 = vsub.s32 32, %v1040_v27  ;;  %v1045_v24 = vsub.s32 4294967266, %v1040_v27 }
 0x649   : > { %v800_v13 = vsel %vm794_vm13, %v797_v12, %v799_v56  ;;  %v1181_v15 = vshrl.u32 %v1180_v32, 23  ;;  %v751_v16 = vand.u32 3, %v750_v26  ;;  %v819_v61 = vadd.s32 1, %v12799_v17 }
 0x64a   : > { %v1177_v0 = vand.u32 2147483647, %v12777_v31  ;;  %v591_v51 = vmul.f32 %v12512_v10, %v433_v62  ;;  %v1042_v30 = vshll.u32 %v12767_v52, %v1040_v27  ;;  %v1043_v38 = vshrl.u32 %v1025_v48, %v1041_v29 }
 0x64b   : > { %v1046_v57 = vadd.s32 127, %v1045_v24  ;;  %v7751_v63 = vadd.s32 4294967169, %v1181_v15  ;;  %v1058_v49 = vsel %vm12788_vm11, 0, %v1056_v45  ;;  %v816_v55 = vmul.u32 %v809_v46, %v800_v13 }
 0x64c   : > { %vm818_vm14 = vc.u32 %v12810_v8, %v12798_v2  ;;  %v1044_v9 = vor.u32 %v1043_v38, %v1042_v30  ;;  %v1184_v25 = vand.u32 8388607, %v1177_v0  ;;  %v12825_v52 = vadd.f32 %v12541_v40, %v591_v51 }
 0x64d   : > { %v1047_v20 = vshll.u32 %v1046_v57, 23  ;;  %v820_v26 = vsel %vm818_vm14, %v819_v61, %v12799_v17  ;;  %v1187_v59 = vadd.s32 1, %v7751_v63  ;;  %vm753_vm0 = vcmp.eq.s32.totalorder %v751_v16, 0 }
 0x64e   : > { %v821_v47 = vadd.s32 %v820_v26, %v816_v55  ;;  %vm756_vm1 = vcmp.eq.s32.totalorder %v751_v16, 2  ;;  %v1062_v14 = vadd.s32 3, %v1058_v49  ;;  %v1051_v7 = vcvt.s32.f32 %v1044_v9 }
 0x64f   : > { %v8520_v60 = vpop.eup %8519  ;;  %v1048_v28 = vor.u32 4788187, %v1047_v20  ;;  %vm1188_vm2 = vcmp.gt.s32.totalorder %v1187_v59, 0  ;;  %v1185_v12 = vor.u32 8388608, %v1184_v25  ;;  %v1076_v53 = vand.u32 2139095040, %v12825_v52 }
 0x650   : > { %v8522_v46 = vpop.eup %8521  ;;  %v757_v58 = vxor.u32 2147483648, %v8520_v60  ;;  %v822_v3 = vadd.s32 536870912, %v821_v47  ;;  %v1189_v54 = vsel %vm1188_vm2, %v1187_v59, 0  ;;  %vm752_vm3 = vcmp.lt.s32.totalorder %v751_v16, 2 }
 0x651   : > { %v754_v21 = vxor.u32 2147483648, %v8522_v46  ;;  %v1049_v6 = vand.u32 2147483647, %v1048_v28  ;;  %v1191_v5 = vand.u32 31, %v1189_v54  ;;  %vm749_vm4 = vweird.f32 %v12544_v18 }
 0x652   : > { %v758_v4 = vsel %vm756_vm1, %v757_v58, %v8522_v46  ;;  %v12827_v22 = vshrl.u32 %v822_v3, 30  ;;  %v12834_v42 = vmul.f32 %v12512_v10, %v448_v36  ;;  %v12836_v27 = vand.u32 3, %v1062_v14 }
 0x653   : > { %v755_v11 = vsel %vm753_vm0, %v8520_v60, %v754_v21  ;;  %v1052_v56 = vmul.f32 %v1051_v7, %v1049_v6  ;;  %v1192_v44 = vsub.s32 32, %v1191_v5  ;;  %v12843_v24 = vshll.u32 %v1185_v12, 8 }
 0x654   : > { %v759_v17 = vsel %vm752_vm3, %v755_v11, %v758_v4  ;;  %v824_v48 = vshll.u32 %v12827_v22, 30  ;;  %v1077_v18 = vshrl.u32 %v1076_v53, 23  ;;  %v1190_v15 = vshrl.u32 %v1189_v54, 5 }
 0x655   : > { %v760_v32 = vsel %vm749_vm4, nan, %v759_v17  ;;  %v1053_v62 = vxor.u32 2147483648, %v1052_v56  ;;  %v1195_v45 = vshrl.u32 %v8708_v37, %v1192_v44  ;;  %v1198_v29 = vshrl.u32 %v8709_v39, %v1192_v44 }
 0x656   : > { %7559 = vst [vmem:[%s9190_s23] sm:$0xff] %v760_v32  ;;  %v12840_v23 = vsub.s32 %v821_v47, %v824_v48  ;;  %v1194_v10 = vshll.u32 %v8707_v33, %v1191_v5  ;;  %v1201_v16 = vshrl.u32 %v8710_v41, %v1192_v44  ;;  %v1197_v30 = vshll.u32 %v8708_v37, %v1191_v5 }
 0x657   : > { %v1054_v13 = vsel %vm971_vm8, %v1053_v62, %v1052_v56  ;;  %v1200_v38 = vshll.u32 %v8709_v39, %v1191_v5  ;;  %v1203_v63 = vshll.u32 %v8710_v41, %v1191_v5  ;;  %v1204_v49 = vshrl.u32 %v8711_v43, %v1192_v44 }
 0x658   : > { %v1057_v61 = vsel %vm12788_vm11, %v12592_v1, %v1054_v13  ;;  %v827_v51 = vsub.s32 0, %v12840_v23  ;;  %v1196_v57 = vor.u32 %v1195_v45, %v1194_v10  ;;  %v1199_v9 = vor.u32 %v1198_v29, %v1197_v30 }
 0x659   : > { %8523 = vcosq.f32 %v1057_v61  ;;  %v1202_v20 = vor.u32 %v1201_v16, %v1200_v38  ;;  %v1205_v26 = vor.u32 %v1204_v49, %v1203_v63  ;;  %v1206_v34 = vshll.u32 %v8711_v43, %v1191_v5 }
 0x65a   : > { %8525 = vsinq.f32 %v1057_v61  ;;  %v7736_v55 = vmin.u32 %v827_v51, %v12840_v23  ;;  %v1207_v59 = vshrl.u32 %v8712_v50, %v1192_v44  ;;  %v1073_v47 = vand.u32 2147483647, %v12825_v52 }
 0x65b   : > { %v1193_v60 = vshrl.u32 %v8707_v33, %v1192_v44  ;;  %vm1209_vm5 = vcmp.lt.s32.totalorder %v1190_v15, 1  ;;  %v7747_v28 = vadd.s32 4294967169, %v1077_v18  ;;  %vm1210_vm6 = vcmp.lt.s32.totalorder %v1190_v15, 2 }
 0x65c   : > { %v829_v25 = vclz %v7736_v55  ;;  %v1208_v46 = vor.u32 %v1207_v59, %v1206_v34  ;;  %vm1211_vm7 = vcmp.lt.s32.totalorder %v1190_v15, 3  ;;  %vm1212_vm8 = vcmp.lt.s32.totalorder %v1190_v15, 4 }
 0x65d   : > { %vm763_vm9 = vcmp.lt.s32.totalorder %v12668_v35, 0  ;;  %v1214_v14 = vsel %vm1212_vm8, %v1202_v20, 2102212464  ;;  %v1217_v3 = vsel %vm1209_vm5, %v1196_v57, %v1199_v9  ;;  %v1218_v54 = vsel %vm1212_vm8, %v1205_v26, 920167782 }
 0x65e   : > { %v7737_v58 = vadd.s32 4294967294, %v829_v25  ;;  %v1213_v21 = vsel %vm1209_vm5, %v1193_v60, %v1196_v57  ;;  %v1219_v6 = vsel %vm1211_vm7, %v1202_v20, %v1218_v54  ;;  %v1221_v7 = vsel %vm1209_vm5, %v1199_v9, %v1202_v20 }
 0x65f   : > { %v1222_v5 = vsel %vm1212_vm8, %v1208_v46, 1326507024  ;;  %v1215_v36 = vsel %vm1211_vm7, %v1199_v9, %v1214_v14  ;;  %v1220_v4 = vsel %vm1210_vm6, %v1217_v3, %v1219_v6  ;;  %vm12866_vm11 = vcmp.le.f32.partialorder %v761_v19, 0.7853982 }
 0x660   : > { %vm7738_vm10 = vcmp.lt.s32.totalorder %v7737_v58, 0  ;;  %v1223_v12 = vsel %vm1211_vm7, %v1205_v26, %v1222_v5  ;;  %v12872_v44 = vmul.u32.u64.low %v12843_v24, %v1220_v4  ;;  %v12873_v17 = vmul.u32.u64.high %v12843_v24, %v1220_v4, %v12872_v44 }
 0x661   : > { %v832_v11 = vsel %vm7738_vm10, 0, %v7737_v58  ;;  %v1224_v56 = vsel %vm1210_vm6, %v1221_v7, %v1223_v12  ;;  %vm1064_vm12 = vcmp.lt.s32.totalorder %v12836_v27, 2  ;;  %v817_v48 = vadd.s32 %v12798_v2, %v12810_v8 }
 0x662   : > { %v833_v32 = vsub.s32 32, %v832_v11  ;;  %v837_v62 = vsub.s32 4294967266, %v832_v11  ;;  %vm1061_vm13 = vweird.f32 %v12592_v1  ;;  %v847_v19 = vsub.s32 4, %v12827_v22 }
 0x663   : > { %v12882_v45 = vmul.u32.u64.low %v12843_v24, %v1224_v56  ;;  %v12883_v29 = vmul.u32.u64.high %v12843_v24, %v1224_v56, %v12882_v45  ;;  %v1083_v18 = vadd.s32 1, %v7747_v28  ;;  %v834_v13 = vshll.u32 %v12840_v23, %v832_v11 }
 0x664   : > { %v835_v10 = vshrl.u32 %v817_v48, %v833_v32  ;;  %v838_v16 = vadd.s32 127, %v837_v62  ;;  %v1216_v61 = vsel %vm1210_vm6, %v1213_v21, %v1215_v36  ;;  %vm1065_vm15 = vcmp.eq.s32.totalorder %v12836_v27, 0 }
 0x665   : > { %v1235_v2 = vadd.s32 1, %v12873_v17  ;;  %v1080_v8 = vand.u32 8388607, %v1073_v47  ;;  %vm1084_vm14 = vcmp.gt.s32.totalorder %v1083_v18, 0  ;;  %vm1068_vm0 = vcmp.eq.s32.totalorder %v12836_v27, 2 }
 0x666   : > { %v8524_v51 = vpop.eup %8523  ;;  %v836_v30 = vor.u32 %v835_v10, %v834_v13  ;;  %v839_v38 = vshll.u32 %v838_v16, 23  ;;  %v1085_v57 = vsel %vm1084_vm14, %v1083_v18, 0  ;;  %v848_v15 = vsel %vm763_vm9, %v847_v19, %v12827_v22 }
 0x667   : > { %v8526_v63 = vpop.eup %8525  ;;  %v1069_v23 = vxor.u32 2147483648, %v8524_v51  ;;  %v1232_v49 = vmul.u32 %v12843_v24, %v1216_v61  ;;  %vm1234_vm1 = vc.u32 %v12883_v29, %v12872_v44  ;;  %v12901_v26 = vadd.f32 %v12541_v40, %v12834_v42 }
 0x668   : > { %v1066_v55 = vxor.u32 2147483648, %v8526_v63  ;;  %v840_v9 = vor.u32 4788187, %v839_v38  ;;  %v1236_v20 = vsel %vm1234_vm1, %v1235_v2, %v12873_v17  ;;  %v1081_v25 = vor.u32 8388608, %v1080_v8 }
 0x669   : > { %v1070_v34 = vsel %vm1068_vm0, %v1069_v23, %v8526_v63  ;;  %v1237_v59 = vadd.s32 %v1236_v20, %v1232_v49  ;;  %v1087_v60 = vand.u32 31, %v1085_v57  ;;  %v843_v28 = vcvt.s32.f32 %v836_v30 }
 0x66a   : > { %v1067_v22 = vsel %vm1065_vm15, %v8524_v51, %v1066_v55  ;;  %v841_v24 = vand.u32 2147483647, %v840_v9  ;;  %v850_v46 = vsel %vm12866_vm11, 0, %v848_v15  ;;  %v12909_v3 = vshrl.u32 %v1085_v57, 5 }
 0x66b   : > { %v1071_v58 = vsel %vm1064_vm12, %v1067_v22, %v1070_v34  ;;  %v1238_v14 = vadd.s32 536870912, %v1237_v59  ;;  %v1088_v40 = vsub.s32 32, %v1087_v60  ;;  %v1090_v21 = vshll.u32 %v8707_v33, %v1087_v60 }
 0x66c   : > { %v1072_v42 = vsel %vm1061_vm13, nan, %v1071_v58  ;;  %v844_v54 = vmul.f32 %v843_v28, %v841_v24  ;;  %v1093_v6 = vshll.u32 %v8708_v37, %v1087_v60  ;;  %v1096_v36 = vshll.u32 %v8709_v39, %v1087_v60 }
 0x66d   : > { %7565 = vst [vmem:[%s9190_s23 + $0x30] sm:$0xff] %v1072_v42  ;;  %v12916_v7 = vshrl.u32 %v1238_v14, 30  ;;  %v1091_v5 = vshrl.u32 %v8708_v37, %v1088_v40  ;;  %v1094_v27 = vshrl.u32 %v8709_v39, %v1088_v40  ;;  %v1097_v12 = vshrl.u32 %v8710_v41, %v1088_v40 }
 0x66e   : > { %v845_v4 = vxor.u32 2147483648, %v844_v54  ;;  %v1099_v1 = vshll.u32 %v8710_v41, %v1087_v60  ;;  %v1100_v11 = vshrl.u32 %v8711_v43, %v1088_v40  ;;  %v854_v56 = vadd.s32 3, %v850_v46 }
 0x66f   : > { %v1240_v17 = vshll.u32 %v12916_v7, 30  ;;  %v1092_v48 = vor.u32 %v1091_v5, %v1090_v21  ;;  %v1095_v62 = vor.u32 %v1094_v27, %v1093_v6  ;;  %v1098_v19 = vor.u32 %v1097_v12, %v1096_v36 }
 0x670   : > { %v846_v32 = vsel %vm763_vm9, %v845_v4, %v844_v54  ;;  %v1101_v45 = vor.u32 %v1100_v11, %v1099_v1  ;;  %v1102_v10 = vshll.u32 %v8711_v43, %v1087_v60  ;;  %v1103_v16 = vshrl.u32 %v8712_v50, %v1088_v40 }
 0x671   : > { %v849_v18 = vsel %vm12866_vm11, %v12668_v35, %v846_v32  ;;  %v12930_v13 = vsub.s32 %v1237_v59, %v1240_v17  ;;  %vm1105_vm2 = vcmp.lt.s32.totalorder %v12909_v3, 1  ;;  %v1121_v61 = vshll.u32 %v1081_v25, 8 }
 0x672   : > { %8527 = vcosq.f32 %v849_v18  ;;  %v1388_v2 = vand.u32 2139095040, %v12901_v26  ;;  %v1104_v51 = vor.u32 %v1103_v16, %v1102_v10  ;;  %vm1108_vm3 = vcmp.lt.s32.totalorder %v12909_v3, 4 }
 0x673   : > { %8529 = vsinq.f32 %v849_v18  ;;  %v1243_v8 = vsub.s32 0, %v12930_v13  ;;  %vm1106_vm4 = vcmp.lt.s32.totalorder %v12909_v3, 2  ;;  %vm1107_vm5 = vcmp.lt.s32.totalorder %v12909_v3, 3 }
 0x674   : > { %v1113_v53 = vsel %vm1105_vm2, %v1092_v48, %v1095_v62  ;;  %v1114_v30 = vsel %vm1108_vm3, %v1101_v45, 920167782  ;;  %v1089_v57 = vshrl.u32 %v8707_v33, %v1088_v40  ;;  %v1110_v63 = vsel %vm1108_vm3, %v1098_v19, 2102212464 }
 0x675   : > { %v7752_v38 = vmin.u32 %v1243_v8, %v12930_v13  ;;  %v1115_v23 = vsel %vm1107_vm5, %v1098_v19, %v1114_v30  ;;  %v1117_v49 = vsel %vm1105_vm2, %v1095_v62, %v1098_v19  ;;  %v1118_v55 = vsel %vm1108_vm3, %v1104_v51, 1326507024 }
 0x676   : > { %v1116_v15 = vsel %vm1106_vm4, %v1113_v53, %v1115_v23  ;;  %v1389_v9 = vshrl.u32 %v1388_v2, 23  ;;  %v855_v20 = vand.u32 3, %v854_v56  ;;  %v1109_v59 = vsel %vm1105_vm2, %v1089_v57, %v1092_v48 }
 0x677   : > { %v1245_v34 = vclz %v7752_v38  ;;  %v1111_v25 = vsel %vm1107_vm5, %v1095_v62, %v1110_v63  ;;  %v1119_v60 = vsel %vm1107_vm5, %v1101_v45, %v1118_v55  ;;  %vm12958_vm6 = vcmp.le.f32.partialorder %v1177_v0, 0.7853982  ;;  %v12988_v38 = vld [vmem:[%s13941_s1] ss:$0 sm:$0xff] }
 0x678   : > { %v12950_v22 = vmul.u32.u64.low %v1121_v61, %v1116_v15  ;;  %v12951_v24 = vmul.u32.u64.high %v1121_v61, %v1116_v15, %v12950_v22  ;;  %v1120_v46 = vsel %vm1106_vm4, %v1117_v49, %v1119_v60  ;;  %v7759_v58 = vadd.s32 4294967169, %v1389_v9 }
 0x679   : > { %v7753_v28 = vadd.s32 4294967294, %v1245_v34  ;;  %v1263_v40 = vsub.s32 4, %v12916_v7  ;;  %v12963_v42 = vmul.u32.u64.low %v1121_v61, %v1120_v46  ;;  %v12964_v54 = vmul.u32.u64.high %v1121_v61, %v1120_v46, %v12963_v42 }
 0x67a   : > { %vm1179_vm7 = vcmp.lt.s32.totalorder %v12777_v31, 0  ;;  %v1112_v21 = vsel %vm1106_vm4, %v1109_v59, %v1111_v25  ;;  %v1395_v6 = vadd.s32 1, %v7759_v58  ;;  %vm853_vm9 = vweird.f32 %v12668_v35 }
 0x67b   : > { %vm7754_vm8 = vcmp.lt.s32.totalorder %v7753_v28, 0  ;;  %vm856_vm10 = vcmp.lt.s32.totalorder %v855_v20, 2  ;;  %v1131_v0 = vadd.s32 1, %v12951_v24  ;;  %v1385_v27 = vand.u32 2147483647, %v12901_v26 }
 0x67c   : > { %v1248_v5 = vsel %vm7754_vm8, 0, %v7753_v28  ;;  %v1233_v36 = vadd.s32 %v12872_v44, %v12883_v29  ;;  %vm1396_vm11 = vcmp.gt.s32.totalorder %v1395_v6, 0  ;;  %v1264_v3 = vsel %vm1179_vm7, %v1263_v40, %v12916_v7  ;;  %v444_v7 = vpop.permute.xlu0 %443 }
 0x67d   : > { %v1249_v4 = vsub.s32 32, %v1248_v5  ;;  %v1253_v12 = vsub.s32 4294967266, %v1248_v5  ;;  %v1128_v1 = vmul.u32 %v1121_v61, %v1112_v21  ;;  %vm1130_vm12 = vc.u32 %v12964_v54, %v12950_v22 }
 0x67e   : > { %v1397_v11 = vsel %vm1396_vm11, %v1395_v6, 0  ;;  %v1250_v17 = vshll.u32 %v12930_v13, %v1248_v5  ;;  %v1132_v62 = vsel %vm1130_vm12, %v1131_v0, %v12951_v24  ;;  %v1392_v45 = vand.u32 8388607, %v1385_v27 }
 0x67f   : > { %v8528_v56 = vpop.eup %8527  ;;  %v1251_v48 = vshrl.u32 %v1233_v36, %v1249_v4  ;;  %v1254_v32 = vadd.s32 127, %v1253_v12  ;;  %v1133_v19 = vadd.s32 %v1132_v62, %v1128_v1  ;;  %v1399_v18 = vand.u32 31, %v1397_v11 }
 0x680   : > { %v8530_v44 = vpop.eup %8529  ;;  %v861_v29 = vxor.u32 2147483648, %v8528_v56  ;;  %vm860_vm13 = vcmp.eq.s32.totalorder %v855_v20, 2  ;;  %vm857_vm15 = vcmp.eq.s32.totalorder %v855_v20, 0  ;;  %v1266_v30 = vsel %vm12958_vm6, 0, %v1264_v3 }
 0x681   : > { %v858_v10 = vxor.u32 2147483648, %v8530_v44  ;;  %v1252_v16 = vor.u32 %v1251_v48, %v1250_v17  ;;  %v1255_v61 = vshll.u32 %v1254_v32, 23  ;;  %v1134_v13 = vadd.s32 536870912, %v1133_v19  ;;  %v13017_v17 = vld [vmem:[%s13943_s3] ss:$0 sm:$0xff] }
 0x682   : > { %v862_v2 = vsel %vm860_vm13, %v861_v29, %v8530_v44  ;;  %v1400_v8 = vsub.s32 32, %v1399_v18  ;;  %v593_v57 = vmul.f32 %v12988_v38, %v444_v7  ;;  %v1393_v15 = vor.u32 8388608, %v1392_v45 }
 0x683   : > { %v859_v51 = vsel %vm857_vm15, %v8528_v56, %v858_v10  ;;  %v1256_v53 = vor.u32 4788187, %v1255_v61  ;;  %v12992_v23 = vshrl.u32 %v1134_v13, 30  ;;  %v1259_v34 = vcvt.s32.f32 %v1252_v16 }
 0x684   : > { %v863_v63 = vsel %vm856_vm10, %v859_v51, %v862_v2  ;;  %v1403_v49 = vshrl.u32 %v8708_v37, %v1400_v8  ;;  %v1406_v59 = vshrl.u32 %v8709_v39, %v1400_v8  ;;  %v1398_v60 = vshrl.u32 %v1397_v11, 5 }
 0x685   : > { %v864_v55 = vsel %vm853_vm9, nan, %v863_v63  ;;  %v1257_v9 = vand.u32 2147483647, %v1256_v53  ;;  %v1136_v25 = vshll.u32 %v12992_v23, 30  ;;  %v1402_v24 = vshll.u32 %v8707_v33, %v1399_v18 }
 0x686   : > { %7561 = vst [vmem:[%s9190_s23 + $0x10] sm:$0xff] %v864_v55  ;;  %v1409_v20 = vshrl.u32 %v8710_v41, %v1400_v8  ;;  %v1405_v46 = vshll.u32 %v8708_v37, %v1399_v18  ;;  %v1411_v58 = vshll.u32 %v8710_v41, %v1399_v18  ;;  %v1412_v35 = vshrl.u32 %v8711_v43, %v1400_v8  ;;  %v459_v55 = vpop.permute.xlu1 %458 }
 0x687   : > { %v1260_v28 = vmul.f32 %v1259_v34, %v1257_v9  ;;  %v13005_v40 = vsub.s32 %v1133_v19, %v1136_v25  ;;  %v1404_v42 = vor.u32 %v1403_v49, %v1402_v24  ;;  %v1408_v21 = vshll.u32 %v8709_v39, %v1399_v18 }
 0x688   : > { %v1407_v5 = vor.u32 %v1406_v59, %v1405_v46  ;;  %v1413_v0 = vor.u32 %v1412_v35, %v1411_v58  ;;  %v1415_v36 = vshrl.u32 %v8712_v50, %v1400_v8  ;;  %v1270_v4 = vadd.s32 3, %v1266_v30 }
 0x689   : > { %v1261_v6 = vxor.u32 2147483648, %v1260_v28  ;;  %vm1075_vm14 = vcmp.lt.s32.totalorder %v12825_v52, 0  ;;  %v1139_v12 = vsub.s32 0, %v13005_v40  ;;  %v1410_v3 = vor.u32 %v1409_v20, %v1408_v21 }
 0x68a   : > { %v1414_v1 = vshll.u32 %v8711_v43, %v1399_v18  ;;  %vm1417_vm0 = vcmp.lt.s32.totalorder %v1398_v60, 1  ;;  %v1433_v56 = vshll.u32 %v1393_v15, 8  ;;  %v13020_v48 = vadd.f32 %v13017_v17, %v593_v57 }
 0x68b   : > { %v1262_v11 = vsel %vm1179_vm7, %v1261_v6, %v1260_v28  ;;  %v7748_v62 = vmin.u32 %v1139_v12, %v13005_v40  ;;  %vm1420_vm1 = vcmp.lt.s32.totalorder %v1398_v60, 4  ;;  %v1401_v29 = vshrl.u32 %v8707_v33, %v1400_v8 }
 0x68c   : > { %v1265_v32 = vsel %vm12958_vm6, %v12777_v31, %v1262_v11  ;;  %v1416_v44 = vor.u32 %v1415_v36, %v1414_v1  ;;  %v1425_v19 = vsel %vm1417_vm0, %v1404_v42, %v1407_v5  ;;  %v1426_v45 = vsel %vm1420_vm1, %v1413_v0, 920167782 }
 0x68d   : > { %8531 = vcosq.f32 %v1265_v32  ;;  %vm13031_vm2 = vcmp.le.f32.partialorder %v1073_v47, 0.7853982  ;;  %v1141_v14 = vclz %v7748_v62  ;;  %vm1419_vm3 = vcmp.lt.s32.totalorder %v1398_v60, 3 }
 0x68e   : > { %8533 = vsinq.f32 %v1265_v32  ;;  %v1422_v7 = vsel %vm1420_vm1, %v1410_v3, 2102212464  ;;  %v1159_v10 = vsub.s32 4, %v12992_v23  ;;  %vm1418_vm4 = vcmp.lt.s32.totalorder %v1398_v60, 2 }
 0x68f   : > { %v1427_v16 = vsel %vm1419_vm3, %v1410_v3, %v1426_v45  ;;  %v1429_v61 = vsel %vm1417_vm0, %v1407_v5, %v1410_v3  ;;  %v7749_v2 = vadd.s32 4294967294, %v1141_v14  ;;  %v1421_v13 = vsel %vm1417_vm0, %v1401_v29, %v1404_v42 }
 0x690   : > { %v1428_v8 = vsel %vm1418_vm4, %v1425_v19, %v1427_v16  ;;  %v1430_v47 = vsel %vm1420_vm1, %v1416_v44, 1326507024  ;;  %v1423_v51 = vsel %vm1419_vm3, %v1407_v5, %v1422_v7  ;;  %v1129_v63 = vadd.s32 %v12950_v22, %v12964_v54  ;;  %v455_v16 = vpop.permute.xlu0 %454 }
 0x691   : > { %v1431_v53 = vsel %vm1419_vm3, %v1413_v0, %v1430_v47  ;;  %v13041_v30 = vmul.u32.u64.low %v1433_v56, %v1428_v8  ;;  %v13042_v57 = vmul.u32.u64.high %v1433_v56, %v1428_v8, %v13041_v30  ;;  %vm7750_vm5 = vcmp.lt.s32.totalorder %v7749_v2, 0 }
 0x692   : > { %v1432_v15 = vsel %vm1418_vm4, %v1429_v61, %v1431_v53  ;;  %v1284_v49 = vand.u32 2139095040, %v13020_v48  ;;  %v1144_v9 = vsel %vm7750_vm5, 0, %v7749_v2  ;;  %v1160_v34 = vsel %vm1075_vm14, %v1159_v10, %v12992_v23 }
 0x693   : > { %v13052_v59 = vmul.u32.u64.low %v1433_v56, %v1432_v15  ;;  %v13053_v25 = vmul.u32.u64.high %v1433_v56, %v1432_v15, %v13052_v59  ;;  %v1145_v24 = vsub.s32 32, %v1144_v9  ;;  %v1149_v20 = vsub.s32 4294967266, %v1144_v9 }
 0x694   : > { %v1424_v28 = vsel %vm1418_vm4, %v1421_v13, %v1423_v51  ;;  %v1285_v46 = vshrl.u32 %v1284_v49, 23  ;;  %v1271_v22 = vand.u32 3, %v1270_v4  ;;  %v1443_v54 = vadd.s32 1, %v13042_v57 }
 0x695   : > { %v1281_v58 = vand.u32 2147483647, %v13020_v48  ;;  %v596_v35 = vmul.f32 %v12988_v38, %v459_v55  ;;  %v1146_v42 = vshll.u32 %v13005_v40, %v1144_v9  ;;  %v1147_v21 = vshrl.u32 %v1129_v63, %v1145_v24 }
 0x696   : > { %v1150_v6 = vadd.s32 127, %v1149_v20  ;;  %v7755_v23 = vadd.s32 4294967169, %v1285_v46  ;;  %v1162_v5 = vsel %vm13031_vm2, 0, %v1160_v34  ;;  %v1440_v0 = vmul.u32 %v1433_v56, %v1424_v28 }
 0x697   : > { %vm1442_vm6 = vc.u32 %v13053_v25, %v13041_v30  ;;  %v1148_v60 = vor.u32 %v1147_v21, %v1146_v42  ;;  %v1288_v1 = vand.u32 8388607, %v1281_v58  ;;  %v13068_v40 = vadd.f32 %v13017_v17, %v596_v35 }
 0x698   : > { %v1151_v36 = vshll.u32 %v1150_v6, 23  ;;  %v1444_v4 = vsel %vm1442_vm6, %v1443_v54, %v13042_v57  ;;  %v1291_v12 = vadd.s32 1, %v7755_v23  ;;  %vm1273_vm7 = vcmp.eq.s32.totalorder %v1271_v22, 0 }
 0x699   : > { %v1445_v3 = vadd.s32 %v1444_v4, %v1440_v0  ;;  %vm1276_vm8 = vcmp.eq.s32.totalorder %v1271_v22, 2  ;;  %v1166_v44 = vadd.s32 3, %v1162_v5  ;;  %v1155_v7 = vcvt.s32.f32 %v1148_v60 }
 0x69a   : > { %v8532_v11 = vpop.eup %8531  ;;  %v1152_v32 = vor.u32 4788187, %v1151_v36  ;;  %vm1292_vm9 = vcmp.gt.s32.totalorder %v1291_v12, 0  ;;  %v1289_v13 = vor.u32 8388608, %v1288_v1  ;;  %v1596_v8 = vand.u32 2139095040, %v13068_v40 }
 0x69b   : > { %v8534_v56 = vpop.eup %8533  ;;  %v1277_v62 = vxor.u32 2147483648, %v8532_v11  ;;  %v1446_v29 = vadd.s32 536870912, %v1445_v3  ;;  %v1293_v19 = vsel %vm1292_vm9, %v1291_v12, 0  ;;  %vm1272_vm10 = vcmp.lt.s32.totalorder %v1271_v22, 2 }
 0x69c   : > { %v1274_v45 = vxor.u32 2147483648, %v8534_v56  ;;  %v1153_v14 = vand.u32 2147483647, %v1152_v32  ;;  %v1295_v10 = vand.u32 31, %v1293_v19  ;;  %vm1269_vm11 = vweird.f32 %v12777_v31 }
 0x69d   : > { %v1278_v61 = vsel %vm1276_vm8, %v1277_v62, %v8534_v56  ;;  %v13070_v2 = vshrl.u32 %v1446_v29, 30  ;;  %v13077_v15 = vmul.f32 %v12988_v38, %v455_v16  ;;  %v13079_v9 = vand.u32 3, %v1166_v44 }
 0x69e   : > { %v1275_v47 = vsel %vm1273_vm7, %v8532_v11, %v1274_v45  ;;  %v1156_v51 = vmul.f32 %v1155_v7, %v1153_v14  ;;  %v1296_v53 = vsub.s32 32, %v1295_v10  ;;  %v13086_v20 = vshll.u32 %v1289_v13, 8 }
 0x69f   : > { %v1279_v57 = vsel %vm1272_vm10, %v1275_v47, %v1278_v61  ;;  %v1448_v63 = vshll.u32 %v13070_v2, 30  ;;  %v1597_v31 = vshrl.u32 %v1596_v8, 23  ;;  %v1294_v46 = vshrl.u32 %v1293_v19, 5 }
 0x6a0   : > { %v1280_v49 = vsel %vm1269_vm11, nan, %v1279_v57  ;;  %v1157_v55 = vxor.u32 2147483648, %v1156_v51  ;;  %v1299_v34 = vshrl.u32 %v8708_v37, %v1296_v53  ;;  %v1302_v24 = vshrl.u32 %v8709_v39, %v1296_v53 }
 0x6a1   : > { %7569 = vst [vmem:[%s9190_s23 + $0x50] sm:$0xff] %v1280_v49  ;;  %v13083_v59 = vsub.s32 %v1445_v3, %v1448_v63  ;;  %v1298_v22 = vshll.u32 %v8707_v33, %v1295_v10  ;;  %v1305_v54 = vshrl.u32 %v8710_v41, %v1296_v53  ;;  %v1301_v21 = vshll.u32 %v8708_v37, %v1295_v10 }
 0x6a2   : > { %v1158_v28 = vsel %vm1075_vm14, %v1157_v55, %v1156_v51  ;;  %v1304_v6 = vshll.u32 %v8709_v39, %v1295_v10  ;;  %v1307_v5 = vshll.u32 %v8710_v41, %v1295_v10  ;;  %v1308_v0 = vshrl.u32 %v8711_v43, %v1296_v53 }
 0x6a3   : > { %v1161_v35 = vsel %vm13031_vm2, %v12825_v52, %v1158_v28  ;;  %v1451_v42 = vsub.s32 0, %v13083_v59  ;;  %v1300_v23 = vor.u32 %v1299_v34, %v1298_v22  ;;  %v1303_v36 = vor.u32 %v1302_v24, %v1301_v21 }
 0x6a4   : > { %8535 = vcosq.f32 %v1161_v35  ;;  %v1306_v4 = vor.u32 %v1305_v54, %v1304_v6  ;;  %v1309_v12 = vor.u32 %v1308_v0, %v1307_v5  ;;  %v1310_v18 = vshll.u32 %v8711_v43, %v1295_v10 }
 0x6a5   : > { %8537 = vsinq.f32 %v1161_v35  ;;  %v7760_v60 = vmin.u32 %v1451_v42, %v13083_v59  ;;  %v1311_v3 = vshrl.u32 %v8712_v50, %v1296_v53  ;;  %v1593_v1 = vand.u32 2147483647, %v13068_v40 }
 0x6a6   : > { %v1297_v32 = vshrl.u32 %v8707_v33, %v1296_v53  ;;  %vm1313_vm12 = vcmp.lt.s32.totalorder %v1294_v46, 1  ;;  %v7767_v56 = vadd.s32 4294967169, %v1597_v31  ;;  %vm1314_vm13 = vcmp.lt.s32.totalorder %v1294_v46, 2 }
 0x6a7   : > { %v1453_v11 = vclz %v7760_v60  ;;  %v1312_v62 = vor.u32 %v1311_v3, %v1310_v18  ;;  %vm1315_vm15 = vcmp.lt.s32.totalorder %v1294_v46, 3  ;;  %vm1316_vm14 = vcmp.lt.s32.totalorder %v1294_v46, 4 }
 0x6a8   : > { %vm1387_vm0 = vcmp.lt.s32.totalorder %v12901_v26, 0  ;;  %v1318_v29 = vsel %vm1316_vm14, %v1306_v4, 2102212464  ;;  %v1321_v19 = vsel %vm1313_vm12, %v1300_v23, %v1303_v36  ;;  %v1322_v45 = vsel %vm1316_vm14, %v1309_v12, 920167782 }
 0x6a9   : > { %v7761_v44 = vadd.s32 4294967294, %v1453_v11  ;;  %v1317_v14 = vsel %vm1313_vm12, %v1297_v32, %v1300_v23  ;;  %v1323_v7 = vsel %vm1315_vm15, %v1306_v4, %v1322_v45  ;;  %v1325_v10 = vsel %vm1313_vm12, %v1303_v36, %v1306_v4 }
 0x6aa   : > { %v1326_v16 = vsel %vm1316_vm14, %v1312_v62, 1326507024  ;;  %v1319_v61 = vsel %vm1315_vm15, %v1303_v36, %v1318_v29  ;;  %v1324_v13 = vsel %vm1314_vm13, %v1321_v19, %v1323_v7  ;;  %vm13109_vm2 = vcmp.le.f32.partialorder %v1385_v27, 0.7853982 }
 0x6ab   : > { %vm7762_vm1 = vcmp.lt.s32.totalorder %v7761_v44, 0  ;;  %v1327_v8 = vsel %vm1315_vm15, %v1309_v12, %v1326_v16  ;;  %v13115_v57 = vmul.u32.u64.low %v13086_v20, %v1324_v13  ;;  %v13116_v63 = vmul.u32.u64.high %v13086_v20, %v1324_v13, %v13115_v57 }
 0x6ac   : > { %v1456_v51 = vsel %vm7762_vm1, 0, %v7761_v44  ;;  %v1328_v53 = vsel %vm1314_vm13, %v1325_v10, %v1327_v8  ;;  %vm1168_vm3 = vcmp.lt.s32.totalorder %v13079_v9, 2  ;;  %v1441_v49 = vadd.s32 %v13041_v30, %v13053_v25 }
 0x6ad   : > { %v1457_v55 = vsub.s32 32, %v1456_v51  ;;  %v1461_v34 = vsub.s32 4294967266, %v1456_v51  ;;  %vm1165_vm4 = vweird.f32 %v12825_v52  ;;  %v1471_v27 = vsub.s32 4, %v13070_v2 }
 0x6ae   : > { %v13125_v24 = vmul.u32.u64.low %v13086_v20, %v1328_v53  ;;  %v13126_v31 = vmul.u32.u64.high %v13086_v20, %v1328_v53, %v13125_v24  ;;  %v1603_v28 = vadd.s32 1, %v7767_v56  ;;  %v1458_v22 = vshll.u32 %v13083_v59, %v1456_v51 }
 0x6af   : > { %v1459_v54 = vshrl.u32 %v1441_v49, %v1457_v55  ;;  %v1462_v35 = vadd.s32 127, %v1461_v34  ;;  %v1320_v42 = vsel %vm1314_vm13, %v1317_v14, %v1319_v61  ;;  %vm1169_vm5 = vcmp.eq.s32.totalorder %v13079_v9, 0 }
 0x6b0   : > { %v1339_v30 = vadd.s32 1, %v13116_v63  ;;  %v1600_v25 = vand.u32 8388607, %v1593_v1  ;;  %vm1604_vm6 = vcmp.gt.s32.totalorder %v1603_v28, 0  ;;  %vm1172_vm7 = vcmp.eq.s32.totalorder %v13079_v9, 2 }
 0x6b1   : > { %v8536_v21 = vpop.eup %8535  ;;  %v1460_v6 = vor.u32 %v1459_v54, %v1458_v22  ;;  %v1463_v23 = vshll.u32 %v1462_v35, 23  ;;  %v1605_v5 = vsel %vm1604_vm6, %v1603_v28, 0  ;;  %v1472_v46 = vsel %vm1387_vm0, %v1471_v27, %v13070_v2 }
 0x6b2   : > { %v8538_v0 = vpop.eup %8537  ;;  %v1173_v59 = vxor.u32 2147483648, %v8536_v21  ;;  %v1336_v60 = vmul.u32 %v13086_v20, %v1320_v42  ;;  %vm1338_vm8 = vc.u32 %v13126_v31, %v13115_v57  ;;  %v13144_v18 = vadd.f32 %v13017_v17, %v13077_v15 }
 0x6b3   : > { %v1170_v36 = vxor.u32 2147483648, %v8538_v0  ;;  %v1464_v4 = vor.u32 4788187, %v1463_v23  ;;  %v1340_v12 = vsel %vm1338_vm8, %v1339_v30, %v13116_v63  ;;  %v1601_v32 = vor.u32 8388608, %v1600_v25 }
 0x6b4   : > { %v1174_v3 = vsel %vm1172_vm7, %v1173_v59, %v8538_v0  ;;  %v1341_v11 = vadd.s32 %v1340_v12, %v1336_v60  ;;  %v1607_v56 = vand.u32 31, %v1605_v5  ;;  %v1467_v62 = vcvt.s32.f32 %v1460_v6 }
 0x6b5   : > { %v1171_v2 = vsel %vm1169_vm5, %v8536_v21, %v1170_v36  ;;  %v1465_v20 = vand.u32 2147483647, %v1464_v4  ;;  %v1474_v44 = vsel %vm13109_vm2, 0, %v1472_v46  ;;  %v13152_v45 = vshrl.u32 %v1605_v5, 5 }
 0x6b6   : > { %v1175_v29 = vsel %vm1168_vm3, %v1171_v2, %v1174_v3  ;;  %v1342_v19 = vadd.s32 536870912, %v1341_v11  ;;  %v1608_v15 = vsub.s32 32, %v1607_v56  ;;  %v1610_v10 = vshll.u32 %v8707_v33, %v1607_v56 }
 0x6b7   : > { %v1176_v14 = vsel %vm1165_vm4, nan, %v1175_v29  ;;  %v1468_v7 = vmul.f32 %v1467_v62, %v1465_v20  ;;  %v1613_v16 = vshll.u32 %v8708_v37, %v1607_v56  ;;  %v1616_v8 = vshll.u32 %v8709_v39, %v1607_v56 }
 0x6b8   : > { %7567 = vst [vmem:[%s9190_s23 + $0x40] sm:$0xff] %v1176_v14  ;;  %v13159_v61 = vshrl.u32 %v1342_v19, 30  ;;  %v1611_v13 = vshrl.u32 %v8708_v37, %v1608_v15  ;;  %v1614_v9 = vshrl.u32 %v8709_v39, %v1608_v15  ;;  %v1617_v53 = vshrl.u32 %v8710_v41, %v1608_v15 }
 0x6b9   : > { %v1469_v51 = vxor.u32 2147483648, %v1468_v7  ;;  %v1619_v52 = vshll.u32 %v8710_v41, %v1607_v56  ;;  %v1620_v63 = vshrl.u32 %v8711_v43, %v1608_v15  ;;  %v1478_v49 = vadd.s32 3, %v1474_v44 }
 0x6ba   : > { %v1344_v55 = vshll.u32 %v13159_v61, 30  ;;  %v1612_v34 = vor.u32 %v1611_v13, %v1610_v10  ;;  %v1615_v24 = vor.u32 %v1614_v9, %v1613_v16  ;;  %v1618_v28 = vor.u32 %v1617_v53, %v1616_v8 }
 0x6bb   : > { %v1470_v27 = vsel %vm1387_vm0, %v1469_v51, %v1468_v7  ;;  %v1621_v22 = vor.u32 %v1620_v63, %v1619_v52  ;;  %v1622_v42 = vshll.u32 %v8711_v43, %v1607_v56  ;;  %v1623_v30 = vshrl.u32 %v8712_v50, %v1608_v15 }
 0x6bc   : > { %v1473_v54 = vsel %vm13109_vm2, %v12901_v26, %v1470_v27  ;;  %v13173_v35 = vsub.s32 %v1341_v11, %v1344_v55  ;;  %vm1625_vm9 = vcmp.lt.s32.totalorder %v13152_v45, 1  ;;  %v1641_v25 = vshll.u32 %v1601_v32, 8 }
 0x6bd   : > { %8539 = vcosq.f32 %v1473_v54  ;;  %v1492_v21 = vand.u32 2139095040, %v13144_v18  ;;  %v1624_v23 = vor.u32 %v1623_v30, %v1622_v42  ;;  %vm1628_vm10 = vcmp.lt.s32.totalorder %v13152_v45, 4 }
 0x6be   : > { %8541 = vsinq.f32 %v1473_v54  ;;  %v1347_v6 = vsub.s32 0, %v13173_v35  ;;  %vm1626_vm11 = vcmp.lt.s32.totalorder %v13152_v45, 2  ;;  %vm1627_vm12 = vcmp.lt.s32.totalorder %v13152_v45, 3 }
 0x6bf   : > { %v1633_v47 = vsel %vm1625_vm9, %v1612_v34, %v1615_v24  ;;  %v1634_v5 = vsel %vm1628_vm10, %v1621_v22, 920167782  ;;  %v1609_v59 = vshrl.u32 %v8707_v33, %v1608_v15  ;;  %v1630_v46 = vsel %vm1628_vm10, %v1618_v28, 2102212464 }
 0x6c0   : > { %v7756_v0 = vmin.u32 %v1347_v6, %v13173_v35  ;;  %v1635_v60 = vsel %vm1627_vm12, %v1618_v28, %v1634_v5  ;;  %v1637_v4 = vsel %vm1625_vm9, %v1615_v24, %v1618_v28  ;;  %v1638_v12 = vsel %vm1628_vm10, %v1624_v23, 1326507024 }
 0x6c1   : > { %v1636_v36 = vsel %vm1626_vm11, %v1633_v47, %v1635_v60  ;;  %v1493_v3 = vshrl.u32 %v1492_v21, 23  ;;  %v1479_v11 = vand.u32 3, %v1478_v49  ;;  %v1629_v56 = vsel %vm1625_vm9, %v1609_v59, %v1612_v34 }
 0x6c2   : > { %v1349_v32 = vclz %v7756_v0  ;;  %v1631_v2 = vsel %vm1627_vm12, %v1615_v24, %v1630_v46  ;;  %v1639_v20 = vsel %vm1627_vm12, %v1621_v22, %v1638_v12  ;;  %vm13201_vm13 = vcmp.le.f32.partialorder %v1281_v58, 0.7853982 }
 0x6c3   : > { %v13193_v62 = vmul.u32.u64.low %v1641_v25, %v1636_v36  ;;  %v13194_v44 = vmul.u32.u64.high %v1641_v25, %v1636_v36, %v13193_v62  ;;  %v1640_v19 = vsel %vm1626_vm11, %v1637_v4, %v1639_v20  ;;  %v7763_v15 = vadd.s32 4294967169, %v1493_v3 }
 0x6c4   : > { %v7757_v29 = vadd.s32 4294967294, %v1349_v32  ;;  %v1367_v7 = vsub.s32 4, %v13159_v61  ;;  %v13206_v10 = vmul.u32.u64.low %v1641_v25, %v1640_v19  ;;  %v13207_v16 = vmul.u32.u64.high %v1641_v25, %v1640_v19, %v13206_v10 }
 0x6c5   : > { %vm1283_vm15 = vcmp.lt.s32.totalorder %v13020_v48, 0  ;;  %v1632_v13 = vsel %vm1626_vm11, %v1629_v56, %v1631_v2  ;;  %v1499_v9 = vadd.s32 1, %v7763_v15  ;;  %vm1477_vm0 = vweird.f32 %v12901_v26 }
 0x6c6   : > { %vm7758_vm14 = vcmp.lt.s32.totalorder %v7757_v29, 0  ;;  %vm1480_vm1 = vcmp.lt.s32.totalorder %v1479_v11, 2  ;;  %v1651_v58 = vadd.s32 1, %v13194_v44  ;;  %v1489_v51 = vand.u32 2147483647, %v13144_v18 }
 0x6c7   : > { %v1352_v8 = vsel %vm7758_vm14, 0, %v7757_v29  ;;  %v1337_v53 = vadd.s32 %v13115_v57, %v13126_v31  ;;  %vm1500_vm2 = vcmp.gt.s32.totalorder %v1499_v9, 0  ;;  %v1368_v45 = vsel %vm1283_vm15, %v1367_v7, %v13159_v61  ;;  %v470_v61 = vpop.permute.xlu1 %469 }
 0x6c8   : > { %v1353_v52 = vsub.s32 32, %v1352_v8  ;;  %v1357_v63 = vsub.s32 4294967266, %v1352_v8  ;;  %v1648_v49 = vmul.u32 %v1641_v25, %v1632_v13  ;;  %vm1650_vm3 = vc.u32 %v13207_v16, %v13193_v62 }
 0x6c9   : > { %v1501_v55 = vsel %vm1500_vm2, %v1499_v9, 0  ;;  %v1354_v27 = vshll.u32 %v13173_v35, %v1352_v8  ;;  %v1652_v22 = vsel %vm1650_vm3, %v1651_v58, %v13194_v44  ;;  %v1496_v42 = vand.u32 8388607, %v1489_v51 }
 0x6ca   : > { %v8540_v34 = vpop.eup %8539  ;;  %v1355_v24 = vshrl.u32 %v1337_v53, %v1353_v52  ;;  %v1358_v28 = vadd.s32 127, %v1357_v63  ;;  %v1653_v54 = vadd.s32 %v1652_v22, %v1648_v49  ;;  %v1503_v30 = vand.u32 31, %v1501_v55 }
 0x6cb   : > { %v8542_v57 = vpop.eup %8541  ;;  %v1485_v31 = vxor.u32 2147483648, %v8540_v34  ;;  %vm1484_vm4 = vcmp.eq.s32.totalorder %v1479_v11, 2  ;;  %vm1481_vm5 = vcmp.eq.s32.totalorder %v1479_v11, 0  ;;  %v1370_v59 = vsel %vm13201_vm13, 0, %v1368_v45 }
 0x6cc   : > { %v1482_v25 = vxor.u32 2147483648, %v8542_v57  ;;  %v1356_v21 = vor.u32 %v1355_v24, %v1354_v27  ;;  %v1359_v6 = vshll.u32 %v1358_v28, 23  ;;  %v1654_v35 = vadd.s32 536870912, %v1653_v54 }
 0x6cd   : > { %v1486_v23 = vsel %vm1484_vm4, %v1485_v31, %v8542_v57  ;;  %v1504_v47 = vsub.s32 32, %v1503_v30  ;;  %v598_v46 = vmul.f32 %v12988_v38, %v470_v61  ;;  %v1497_v4 = vor.u32 8388608, %v1496_v42 }
 0x6ce   : > { %v1483_v5 = vsel %vm1481_vm5, %v8540_v34, %v1482_v25  ;;  %v1360_v0 = vor.u32 4788187, %v1359_v6  ;;  %v13230_v36 = vshrl.u32 %v1654_v35, 30  ;;  %v1363_v56 = vcvt.s32.f32 %v1356_v21 }
 0x6cf   : > { %v1487_v60 = vsel %vm1480_vm1, %v1483_v5, %v1486_v23  ;;  %v1507_v12 = vshrl.u32 %v8708_v37, %v1504_v47  ;;  %v1510_v2 = vshrl.u32 %v8709_v39, %v1504_v47  ;;  %v1502_v44 = vshrl.u32 %v1501_v55, 5 }
 0x6d0   : > { %v1488_v3 = vsel %vm1477_vm0, nan, %v1487_v60  ;;  %v1361_v32 = vand.u32 2147483647, %v1360_v0  ;;  %v1656_v20 = vshll.u32 %v13230_v36, 30  ;;  %v1506_v29 = vshll.u32 %v8707_v33, %v1503_v30 }
 0x6d1   : > { %7573 = vst [vmem:[%s9190_s23 + $0x70] sm:$0xff] %v1488_v3  ;;  %v1513_v11 = vshrl.u32 %v8710_v41, %v1504_v47  ;;  %v1509_v15 = vshll.u32 %v8708_v37, %v1503_v30  ;;  %v1515_v7 = vshll.u32 %v8710_v41, %v1503_v30  ;;  %v1516_v26 = vshrl.u32 %v8711_v43, %v1504_v47  ;;  %v466_v3 = vpop.permute.xlu0 %465 }
 0x6d2   : > { %v1364_v19 = vmul.f32 %v1363_v56, %v1361_v32  ;;  %v13243_v10 = vsub.s32 %v1653_v54, %v1656_v20  ;;  %v1508_v13 = vor.u32 %v1507_v12, %v1506_v29  ;;  %v1512_v9 = vshll.u32 %v8709_v39, %v1503_v30 }
 0x6d3   : > { %v1511_v58 = vor.u32 %v1510_v2, %v1509_v15  ;;  %v1517_v53 = vor.u32 %v1516_v26, %v1515_v7  ;;  %v1519_v52 = vshrl.u32 %v8712_v50, %v1504_v47  ;;  %v1374_v63 = vadd.s32 3, %v1370_v59 }
 0x6d4   : > { %v1365_v8 = vxor.u32 2147483648, %v1364_v19  ;;  %vm1595_vm6 = vcmp.lt.s32.totalorder %v13068_v40, 0  ;;  %v1659_v45 = vsub.s32 0, %v13243_v10  ;;  %v1514_v49 = vor.u32 %v1513_v11, %v1512_v9 }
 0x6d5   : > { %v1518_v55 = vshll.u32 %v8711_v43, %v1503_v30  ;;  %vm1521_vm7 = vcmp.lt.s32.totalorder %v1502_v44, 1  ;;  %v1537_v27 = vshll.u32 %v1497_v4, 8  ;;  %v13253_v24 = vadd.f32 %v13017_v17, %v598_v46 }
 0x6d6   : > { %v1366_v34 = vsel %vm1283_vm15, %v1365_v8, %v1364_v19  ;;  %v7768_v22 = vmin.u32 %v1659_v45, %v13243_v10  ;;  %vm1524_vm8 = vcmp.lt.s32.totalorder %v1502_v44, 4  ;;  %v1505_v31 = vshrl.u32 %v8707_v33, %v1504_v47 }
 0x6d7   : > { %v1369_v28 = vsel %vm13201_vm13, %v13020_v48, %v1366_v34  ;;  %v1520_v57 = vor.u32 %v1519_v52, %v1518_v55  ;;  %v1529_v54 = vsel %vm1521_vm7, %v1508_v13, %v1511_v58  ;;  %v1530_v42 = vsel %vm1524_vm8, %v1517_v53, 920167782 }
 0x6d8   : > { %8543 = vcosq.f32 %v1369_v28  ;;  %vm13264_vm9 = vcmp.le.f32.partialorder %v1593_v1, 0.7853982  ;;  %v1661_v14 = vclz %v7768_v22  ;;  %vm1523_vm10 = vcmp.lt.s32.totalorder %v1502_v44, 3 }
 0x6d9   : > { %8545 = vsinq.f32 %v1369_v28  ;;  %v1526_v61 = vsel %vm1524_vm8, %v1514_v49, 2102212464  ;;  %v1679_v25 = vsub.s32 4, %v13230_v36  ;;  %vm1522_vm11 = vcmp.lt.s32.totalorder %v1502_v44, 2 }
 0x6da   : > { %v1531_v21 = vsel %vm1523_vm10, %v1514_v49, %v1530_v42  ;;  %v1533_v6 = vsel %vm1521_vm7, %v1511_v58, %v1514_v49  ;;  %v7769_v23 = vadd.s32 4294967294, %v1661_v14  ;;  %v1525_v35 = vsel %vm1521_vm7, %v1505_v31, %v1508_v13 }
 0x6db   : > { %v1532_v47 = vsel %vm1522_vm11, %v1529_v54, %v1531_v21  ;;  %v1534_v1 = vsel %vm1524_vm8, %v1520_v57, 1326507024  ;;  %v1527_v5 = vsel %vm1523_vm10, %v1511_v58, %v1526_v61  ;;  %v1649_v60 = vadd.s32 %v13193_v62, %v13207_v16  ;;  %v481_v21 = vpop.permute.xlu1 %480 }
 0x6dc   : > { %v1535_v0 = vsel %vm1523_vm10, %v1517_v53, %v1534_v1  ;;  %v13274_v59 = vmul.u32.u64.low %v1537_v27, %v1532_v47  ;;  %v13275_v46 = vmul.u32.u64.high %v1537_v27, %v1532_v47, %v13274_v59  ;;  %vm7770_vm12 = vcmp.lt.s32.totalorder %v7769_v23, 0 }
 0x6dd   : > { %v1536_v4 = vsel %vm1522_vm11, %v1533_v6, %v1535_v0  ;;  %v1804_v12 = vand.u32 2139095040, %v13253_v24  ;;  %v1664_v32 = vsel %vm7770_vm12, 0, %v7769_v23  ;;  %v1680_v56 = vsel %vm1595_vm6, %v1679_v25, %v13230_v36 }
 0x6de   : > { %v13285_v2 = vmul.u32.u64.low %v1537_v27, %v1536_v4  ;;  %v13286_v20 = vmul.u32.u64.high %v1537_v27, %v1536_v4, %v13285_v2  ;;  %v1665_v29 = vsub.s32 32, %v1664_v32  ;;  %v1669_v11 = vsub.s32 4294967266, %v1664_v32 }
 0x6df   : > { %v1528_v19 = vsel %vm1522_vm11, %v1525_v35, %v1527_v5  ;;  %v1805_v15 = vshrl.u32 %v1804_v12, 23  ;;  %v1375_v62 = vand.u32 3, %v1374_v63  ;;  %v1547_v16 = vadd.s32 1, %v13275_v46 }
 0x6e0   : > { %v1801_v7 = vand.u32 2147483647, %v13253_v24  ;;  %v597_v26 = vmul.f32 %v12988_v38, %v466_v3  ;;  %v1666_v13 = vshll.u32 %v13243_v10, %v1664_v32  ;;  %v1667_v9 = vshrl.u32 %v1649_v60, %v1665_v29 }
 0x6e1   : > { %v1670_v8 = vadd.s32 127, %v1669_v11  ;;  %v7775_v36 = vadd.s32 4294967169, %v1805_v15  ;;  %v1682_v58 = vsel %vm13264_vm9, 0, %v1680_v56  ;;  %v1544_v53 = vmul.u32 %v1537_v27, %v1528_v19 }
 0x6e2   : > { %vm1546_vm13 = vc.u32 %v13286_v20, %v13274_v59  ;;  %v1668_v44 = vor.u32 %v1667_v9, %v1666_v13  ;;  %v1808_v55 = vand.u32 8388607, %v1801_v7  ;;  %v13301_v10 = vadd.f32 %v13017_v17, %v597_v26 }
 0x6e3   : > { %v1671_v52 = vshll.u32 %v1670_v8, 23  ;;  %v1548_v63 = vsel %vm1546_vm13, %v1547_v16, %v13275_v46  ;;  %v1811_v45 = vadd.s32 1, %v7775_v36  ;;  %vm1377_vm15 = vcmp.eq.s32.totalorder %v1375_v62, 0 }
 0x6e4   : > { %v1549_v49 = vadd.s32 %v1548_v63, %v1544_v53  ;;  %vm1380_vm14 = vcmp.eq.s32.totalorder %v1375_v62, 2  ;;  %v1686_v57 = vadd.s32 3, %v1682_v58  ;;  %v1675_v61 = vcvt.s32.f32 %v1668_v44 }
 0x6e5   : > { %v8544_v34 = vpop.eup %8543  ;;  %v1672_v28 = vor.u32 4788187, %v1671_v52  ;;  %vm1812_vm0 = vcmp.gt.s32.totalorder %v1811_v45, 0  ;;  %v1809_v35 = vor.u32 8388608, %v1808_v55  ;;  %v1700_v47 = vand.u32 2139095040, %v13301_v10 }
 0x6e6   : > { %v8546_v27 = vpop.eup %8545  ;;  %v1381_v22 = vxor.u32 2147483648, %v8544_v34  ;;  %v1550_v31 = vadd.s32 536870912, %v1549_v49  ;;  %v1813_v54 = vsel %vm1812_vm0, %v1811_v45, 0  ;;  %vm1376_vm1 = vcmp.lt.s32.totalorder %v1375_v62, 2 }
 0x6e7   : > { %v1378_v42 = vxor.u32 2147483648, %v8546_v27  ;;  %v1673_v14 = vand.u32 2147483647, %v1672_v28  ;;  %v1815_v25 = vand.u32 31, %v1813_v54  ;;  %vm1373_vm2 = vweird.f32 %v13020_v48 }
 0x6e8   : > { %v1382_v6 = vsel %vm1380_vm14, %v1381_v22, %v8546_v27  ;;  %v13303_v23 = vshrl.u32 %v1550_v31, 30  ;;  %v13310_v4 = vmul.f32 %v12988_v38, %v481_v21  ;;  %v13312_v32 = vand.u32 3, %v1686_v57 }
 0x6e9   : > { %v1379_v1 = vsel %vm1377_vm15, %v8544_v34, %v1378_v42  ;;  %v1676_v5 = vmul.f32 %v1675_v61, %v1673_v14  ;;  %v1816_v0 = vsub.s32 32, %v1815_v25  ;;  %v13319_v11 = vshll.u32 %v1809_v35, 8 }
 0x6ea   : > { %v1383_v46 = vsel %vm1376_vm1, %v1379_v1, %v1382_v6  ;;  %v1552_v60 = vshll.u32 %v13303_v23, 30  ;;  %v1701_v48 = vshrl.u32 %v1700_v47, 23  ;;  %v1814_v15 = vshrl.u32 %v1813_v54, 5 }
 0x6eb   : > { %v1384_v12 = vsel %vm1373_vm2, nan, %v1383_v46  ;;  %v1677_v3 = vxor.u32 2147483648, %v1676_v5  ;;  %v1819_v56 = vshrl.u32 %v8708_v37, %v1816_v0  ;;  %v1822_v29 = vshrl.u32 %v8709_v39, %v1816_v0 }
 0x6ec   : > { %7571 = vst [vmem:[%s9190_s23 + $0x60] sm:$0xff] %v1384_v12  ;;  %v13316_v2 = vsub.s32 %v1549_v49, %v1552_v60  ;;  %v1818_v38 = vshll.u32 %v8707_v33, %v1815_v25  ;;  %v1825_v62 = vshrl.u32 %v8710_v41, %v1816_v0  ;;  %v1821_v13 = vshll.u32 %v8708_v37, %v1815_v25 }
 0x6ed   : > { %v1678_v19 = vsel %vm1595_vm6, %v1677_v3, %v1676_v5  ;;  %v1824_v9 = vshll.u32 %v8709_v39, %v1815_v25  ;;  %v1827_v36 = vshll.u32 %v8710_v41, %v1815_v25  ;;  %v1828_v58 = vshrl.u32 %v8711_v43, %v1816_v0 }
 0x6ee   : > { %v1681_v16 = vsel %vm13264_vm9, %v13068_v40, %v1678_v19  ;;  %v1555_v26 = vsub.s32 0, %v13316_v2  ;;  %v1820_v8 = vor.u32 %v1819_v56, %v1818_v38  ;;  %v1823_v44 = vor.u32 %v1822_v29, %v1821_v13 }
 0x6ef   : > { %8547 = vcosq.f32 %v1681_v16  ;;  %v1826_v52 = vor.u32 %v1825_v62, %v1824_v9  ;;  %v1829_v63 = vor.u32 %v1828_v58, %v1827_v36  ;;  %v1830_v30 = vshll.u32 %v8711_v43, %v1815_v25 }
 0x6f0   : > { %8549 = vsinq.f32 %v1681_v16  ;;  %v7764_v53 = vmin.u32 %v1555_v26, %v13316_v2  ;;  %v1831_v45 = vshrl.u32 %v8712_v50, %v1816_v0  ;;  %v1697_v49 = vand.u32 2147483647, %v13301_v10 }
 0x6f1   : > { %v1817_v34 = vshrl.u32 %v8707_v33, %v1816_v0  ;;  %vm1833_vm3 = vcmp.lt.s32.totalorder %v1814_v15, 1  ;;  %v7771_v28 = vadd.s32 4294967169, %v1701_v48  ;;  %vm1834_vm4 = vcmp.lt.s32.totalorder %v1814_v15, 2 }
 0x6f2   : > { %v1557_v55 = vclz %v7764_v53  ;;  %v1832_v27 = vor.u32 %v1831_v45, %v1830_v30  ;;  %vm1835_vm5 = vcmp.lt.s32.totalorder %v1814_v15, 3  ;;  %vm1836_vm6 = vcmp.lt.s32.totalorder %v1814_v15, 4 }
 0x6f3   : > { %vm1491_vm7 = vcmp.lt.s32.totalorder %v13144_v18, 0  ;;  %v1838_v57 = vsel %vm1836_vm6, %v1826_v52, 2102212464  ;;  %v1841_v31 = vsel %vm1833_vm3, %v1820_v8, %v1823_v44  ;;  %v1842_v54 = vsel %vm1836_vm6, %v1829_v63, 920167782 }
 0x6f4   : > { %v7765_v22 = vadd.s32 4294967294, %v1557_v55  ;;  %v1837_v42 = vsel %vm1833_vm3, %v1817_v34, %v1820_v8  ;;  %v1843_v14 = vsel %vm1835_vm5, %v1826_v52, %v1842_v54  ;;  %v1845_v61 = vsel %vm1833_vm3, %v1823_v44, %v1826_v52 }
 0x6f5   : > { %v1846_v25 = vsel %vm1836_vm6, %v1832_v27, 1326507024  ;;  %v1839_v21 = vsel %vm1835_vm5, %v1823_v44, %v1838_v57  ;;  %v1844_v6 = vsel %vm1834_vm4, %v1841_v31, %v1843_v14  ;;  %vm13342_vm9 = vcmp.le.f32.partialorder %v1489_v51, 0.7853982 }
 0x6f6   : > { %vm7766_vm8 = vcmp.lt.s32.totalorder %v7765_v22, 0  ;;  %v1847_v35 = vsel %vm1835_vm5, %v1829_v63, %v1846_v25  ;;  %v13348_v0 = vmul.u32.u64.low %v13319_v11, %v1844_v6  ;;  %v13349_v46 = vmul.u32.u64.high %v13319_v11, %v1844_v6, %v13348_v0 }
 0x6f7   : > { %v1560_v1 = vsel %vm7766_vm8, 0, %v7765_v22  ;;  %v1848_v5 = vsel %vm1834_vm4, %v1845_v61, %v1847_v35  ;;  %vm1688_vm10 = vcmp.lt.s32.totalorder %v13312_v32, 2  ;;  %v1545_v60 = vadd.s32 %v13274_v59, %v13286_v20 }
 0x6f8   : > { %v1561_v12 = vsub.s32 32, %v1560_v1  ;;  %v1565_v3 = vsub.s32 4294967266, %v1560_v1  ;;  %vm1685_vm11 = vweird.f32 %v13068_v40  ;;  %v1575_v51 = vsub.s32 4, %v13303_v23 }
 0x6f9   : > { %v13358_v56 = vmul.u32.u64.low %v13319_v11, %v1848_v5  ;;  %v13359_v29 = vmul.u32.u64.high %v13319_v11, %v1848_v5, %v13358_v56  ;;  %v1707_v48 = vadd.s32 1, %v7771_v28  ;;  %v1562_v19 = vshll.u32 %v13316_v2, %v1560_v1 }
 0x6fa   : > { %v1563_v38 = vshrl.u32 %v1545_v60, %v1561_v12  ;;  %v1566_v62 = vadd.s32 127, %v1565_v3  ;;  %v1840_v16 = vsel %vm1834_vm4, %v1837_v42, %v1839_v21  ;;  %vm1689_vm12 = vcmp.eq.s32.totalorder %v13312_v32, 0 }
 0x6fb   : > { %v1859_v59 = vadd.s32 1, %v13349_v46  ;;  %v1704_v20 = vand.u32 8388607, %v1697_v49  ;;  %vm1708_vm13 = vcmp.gt.s32.totalorder %v1707_v48, 0  ;;  %vm1692_vm15 = vcmp.eq.s32.totalorder %v13312_v32, 2 }
 0x6fc   : > { %v8548_v26 = vpop.eup %8547  ;;  %v1564_v13 = vor.u32 %v1563_v38, %v1562_v19  ;;  %v1567_v9 = vshll.u32 %v1566_v62, 23  ;;  %v1709_v8 = vsel %vm1708_vm13, %v1707_v48, 0  ;;  %v1576_v15 = vsel %vm1491_vm7, %v1575_v51, %v13303_v23 }
 0x6fd   : > { %v8550_v36 = vpop.eup %8549  ;;  %v1693_v2 = vxor.u32 2147483648, %v8548_v26  ;;  %v1856_v58 = vmul.u32 %v13319_v11, %v1840_v16  ;;  %vm1858_vm14 = vc.u32 %v13359_v29, %v13348_v0  ;;  %v13377_v63 = vadd.f32 %v13017_v17, %v13310_v4 }
 0x6fe   : > { %v1690_v53 = vxor.u32 2147483648, %v8550_v36  ;;  %v1568_v44 = vor.u32 4788187, %v1567_v9  ;;  %v1860_v52 = vsel %vm1858_vm14, %v1859_v59, %v13349_v46  ;;  %v1705_v55 = vor.u32 8388608, %v1704_v20 }
 0x6ff   : > { %v1694_v30 = vsel %vm1692_vm15, %v1693_v2, %v8550_v36  ;;  %v1861_v45 = vadd.s32 %v1860_v52, %v1856_v58  ;;  %v1711_v34 = vand.u32 31, %v1709_v8  ;;  %v1571_v28 = vcvt.s32.f32 %v1564_v13 }
 0x700   : > { %v1691_v23 = vsel %vm1689_vm12, %v8548_v26, %v1690_v53  ;;  %v1569_v11 = vand.u32 2147483647, %v1568_v44  ;;  %v1578_v27 = vsel %vm13342_vm9, 0, %v1576_v15  ;;  %v13385_v31 = vshrl.u32 %v1709_v8, 5 }
 0x701   : > { %v1695_v22 = vsel %vm1688_vm10, %v1691_v23, %v1694_v30  ;;  %v1862_v57 = vadd.s32 536870912, %v1861_v45  ;;  %v1712_v17 = vsub.s32 32, %v1711_v34  ;;  %v1714_v42 = vshll.u32 %v8707_v33, %v1711_v34 }
 0x702   : > { %v1696_v4 = vsel %vm1685_vm11, nan, %v1695_v22  ;;  %v1572_v54 = vmul.f32 %v1571_v28, %v1569_v11  ;;  %v1717_v14 = vshll.u32 %v8708_v37, %v1711_v34  ;;  %v1720_v21 = vshll.u32 %v8709_v39, %v1711_v34 }
 0x703   : > { %7577 = vst [vmem:[%s9190_s23 + $0x90] sm:$0xff] %v1696_v4  ;;  %v13392_v61 = vshrl.u32 %v1862_v57, 30  ;;  %v1715_v25 = vshrl.u32 %v8708_v37, %v1712_v17  ;;  %v1718_v32 = vshrl.u32 %v8709_v39, %v1712_v17  ;;  %v1721_v35 = vshrl.u32 %v8710_v41, %v1712_v17 }
 0x704   : > { %v1573_v6 = vxor.u32 2147483648, %v1572_v54  ;;  %v1723_v40 = vshll.u32 %v8710_v41, %v1711_v34  ;;  %v1724_v1 = vshrl.u32 %v8711_v43, %v1712_v17  ;;  %v1582_v5 = vadd.s32 3, %v1578_v27 }
 0x705   : > { %v1864_v46 = vshll.u32 %v13392_v61, 30  ;;  %v1716_v60 = vor.u32 %v1715_v25, %v1714_v42  ;;  %v1719_v3 = vor.u32 %v1718_v32, %v1717_v14  ;;  %v1722_v51 = vor.u32 %v1721_v35, %v1720_v21 }
 0x706   : > { %v1574_v12 = vsel %vm1491_vm7, %v1573_v6, %v1572_v54  ;;  %v1725_v56 = vor.u32 %v1724_v1, %v1723_v40  ;;  %v1726_v38 = vshll.u32 %v8711_v43, %v1711_v34  ;;  %v1727_v62 = vshrl.u32 %v8712_v50, %v1712_v17 }
 0x707   : > { %v1577_v48 = vsel %vm13342_vm9, %v13144_v18, %v1574_v12  ;;  %v13406_v19 = vsub.s32 %v1861_v45, %v1864_v46  ;;  %vm1729_vm0 = vcmp.lt.s32.totalorder %v13385_v31, 1  ;;  %v1745_v16 = vshll.u32 %v1705_v55, 8 }
 0x708   : > { %8551 = vcosq.f32 %v1577_v48  ;;  %v2012_v59 = vand.u32 2139095040, %v13377_v63  ;;  %v1728_v26 = vor.u32 %v1727_v62, %v1726_v38  ;;  %vm1732_vm1 = vcmp.lt.s32.totalorder %v13385_v31, 4 }
 0x709   : > { %8553 = vsinq.f32 %v1577_v48  ;;  %v1867_v20 = vsub.s32 0, %v13406_v19  ;;  %vm1730_vm2 = vcmp.lt.s32.totalorder %v13385_v31, 2  ;;  %vm1731_vm3 = vcmp.lt.s32.totalorder %v13385_v31, 3 }
 0x70a   : > { %v1737_v47 = vsel %vm1729_vm0, %v1716_v60, %v1719_v3  ;;  %v1738_v13 = vsel %vm1732_vm1, %v1725_v56, 920167782  ;;  %v1713_v8 = vshrl.u32 %v8707_v33, %v1712_v17  ;;  %v1734_v36 = vsel %vm1732_vm1, %v1722_v51, 2102212464 }
 0x70b   : > { %v7776_v9 = vmin.u32 %v1867_v20, %v13406_v19  ;;  %v1739_v2 = vsel %vm1731_vm3, %v1722_v51, %v1738_v13  ;;  %v1741_v58 = vsel %vm1729_vm0, %v1719_v3, %v1722_v51  ;;  %v1742_v53 = vsel %vm1732_vm1, %v1728_v26, 1326507024 }
 0x70c   : > { %v1740_v15 = vsel %vm1730_vm2, %v1737_v47, %v1739_v2  ;;  %v2013_v44 = vshrl.u32 %v2012_v59, 23  ;;  %v1583_v52 = vand.u32 3, %v1582_v5  ;;  %v1733_v45 = vsel %vm1729_vm0, %v1713_v8, %v1716_v60 }
 0x70d   : > { %v1869_v30 = vclz %v7776_v9  ;;  %v1735_v55 = vsel %vm1731_vm3, %v1719_v3, %v1734_v36  ;;  %v1743_v34 = vsel %vm1731_vm3, %v1725_v56, %v1742_v53  ;;  %vm13434_vm4 = vcmp.le.f32.partialorder %v1801_v7, 0.7853982  ;;  %v13464_v9 = vld [vmem:[%s13941_s1] ss:$0 sm:$0xff] }
 0x70e   : > { %v13426_v23 = vmul.u32.u64.low %v1745_v16, %v1740_v15  ;;  %v13427_v11 = vmul.u32.u64.high %v1745_v16, %v1740_v15, %v13426_v23  ;;  %v1744_v27 = vsel %vm1730_vm2, %v1741_v58, %v1743_v34  ;;  %v7783_v22 = vadd.s32 4294967169, %v2013_v44 }
 0x70f   : > { %v7777_v28 = vadd.s32 4294967294, %v1869_v30  ;;  %v1887_v17 = vsub.s32 4, %v13392_v61  ;;  %v13439_v4 = vmul.u32.u64.low %v1745_v16, %v1744_v27  ;;  %v13440_v54 = vmul.u32.u64.high %v1745_v16, %v1744_v27, %v13439_v4 }
 0x710   : > { %vm1803_vm5 = vcmp.lt.s32.totalorder %v13253_v24, 0  ;;  %v1736_v42 = vsel %vm1730_vm2, %v1733_v45, %v1735_v55  ;;  %v2019_v14 = vadd.s32 1, %v7783_v22  ;;  %vm1581_vm7 = vweird.f32 %v13144_v18 }
 0x711   : > { %vm7778_vm6 = vcmp.lt.s32.totalorder %v7777_v28, 0  ;;  %vm1584_vm8 = vcmp.lt.s32.totalorder %v1583_v52, 2  ;;  %v1755_v7 = vadd.s32 1, %v13427_v11  ;;  %v2009_v32 = vand.u32 2147483647, %v13377_v63 }
 0x712   : > { %v1872_v25 = vsel %vm7778_vm6, 0, %v7777_v28  ;;  %v1857_v21 = vadd.s32 %v13348_v0, %v13359_v29  ;;  %vm2020_vm9 = vcmp.gt.s32.totalorder %v2019_v14, 0  ;;  %v1888_v31 = vsel %vm1803_vm5, %v1887_v17, %v13392_v61  ;;  %v477_v61 = vpop.permute.xlu0 %476 }
 0x713   : > { %v1873_v6 = vsub.s32 32, %v1872_v25  ;;  %v1877_v35 = vsub.s32 4294967266, %v1872_v25  ;;  %v1752_v40 = vmul.u32 %v1745_v16, %v1736_v42  ;;  %vm1754_vm10 = vc.u32 %v13440_v54, %v13426_v23 }
 0x714   : > { %v2021_v1 = vsel %vm2020_vm9, %v2019_v14, 0  ;;  %v1874_v46 = vshll.u32 %v13406_v19, %v1872_v25  ;;  %v1756_v3 = vsel %vm1754_vm10, %v1755_v7, %v13427_v11  ;;  %v2016_v56 = vand.u32 8388607, %v2009_v32 }
 0x715   : > { %v8552_v5 = vpop.eup %8551  ;;  %v1875_v60 = vshrl.u32 %v1857_v21, %v1873_v6  ;;  %v1878_v12 = vadd.s32 127, %v1877_v35  ;;  %v1757_v51 = vadd.s32 %v1756_v3, %v1752_v40  ;;  %v2023_v48 = vand.u32 31, %v2021_v1 }
 0x716   : > { %v8554_v0 = vpop.eup %8553  ;;  %v1589_v29 = vxor.u32 2147483648, %v8552_v5  ;;  %vm1588_vm11 = vcmp.eq.s32.totalorder %v1583_v52, 2  ;;  %vm1585_vm12 = vcmp.eq.s32.totalorder %v1583_v52, 0  ;;  %v1890_v13 = vsel %vm13434_vm4, 0, %v1888_v31 }
 0x717   : > { %v1586_v38 = vxor.u32 2147483648, %v8554_v0  ;;  %v1876_v62 = vor.u32 %v1875_v60, %v1874_v46  ;;  %v1879_v16 = vshll.u32 %v1878_v12, 23  ;;  %v1758_v19 = vadd.s32 536870912, %v1757_v51  ;;  %v13493_v46 = vld [vmem:[%s13943_s3] ss:$0 sm:$0xff] }
 0x718   : > { %v1590_v59 = vsel %vm1588_vm11, %v1589_v29, %v8554_v0  ;;  %v2024_v20 = vsub.s32 32, %v2023_v48  ;;  %v599_v8 = vmul.f32 %v13464_v9, %v477_v61  ;;  %v2017_v15 = vor.u32 8388608, %v2016_v56 }
 0x719   : > { %v1587_v26 = vsel %vm1585_vm12, %v8552_v5, %v1586_v38  ;;  %v1880_v47 = vor.u32 4788187, %v1879_v16  ;;  %v13468_v2 = vshrl.u32 %v1758_v19, 30  ;;  %v1883_v30 = vcvt.s32.f32 %v1876_v62 }
 0x71a   : > { %v1591_v36 = vsel %vm1584_vm8, %v1587_v26, %v1590_v59  ;;  %v2027_v58 = vshrl.u32 %v8708_v37, %v2024_v20  ;;  %v2030_v45 = vshrl.u32 %v8709_v39, %v2024_v20  ;;  %v2022_v34 = vshrl.u32 %v2021_v1, 5 }
 0x71b   : > { %v1592_v53 = vsel %vm1581_vm7, nan, %v1591_v36  ;;  %v1881_v44 = vand.u32 2147483647, %v1880_v47  ;;  %v1760_v55 = vshll.u32 %v13468_v2, 30  ;;  %v2026_v11 = vshll.u32 %v8707_v33, %v2023_v48 }
 0x71c   : > { %7575 = vst [vmem:[%s9190_s23 + $0x80] sm:$0xff] %v1592_v53  ;;  %v2033_v52 = vshrl.u32 %v8710_v41, %v2024_v20  ;;  %v2029_v27 = vshll.u32 %v8708_v37, %v2023_v48  ;;  %v2035_v22 = vshll.u32 %v8710_v41, %v2023_v48  ;;  %v2036_v18 = vshrl.u32 %v8711_v43, %v2024_v20  ;;  %v492_v53 = vpop.permute.xlu1 %491 }
 0x71d   : > { %v1884_v28 = vmul.f32 %v1883_v30, %v1881_v44  ;;  %v13481_v17 = vsub.s32 %v1757_v51, %v1760_v55  ;;  %v2028_v4 = vor.u32 %v2027_v58, %v2026_v11  ;;  %v2032_v42 = vshll.u32 %v8709_v39, %v2023_v48 }
 0x71e   : > { %v2031_v25 = vor.u32 %v2030_v45, %v2029_v27  ;;  %v2037_v7 = vor.u32 %v2036_v18, %v2035_v22  ;;  %v2039_v21 = vshrl.u32 %v8712_v50, %v2024_v20  ;;  %v1894_v6 = vadd.s32 3, %v1890_v13 }
 0x71f   : > { %v1885_v14 = vxor.u32 2147483648, %v1884_v28  ;;  %vm1699_vm13 = vcmp.lt.s32.totalorder %v13301_v10, 0  ;;  %v1763_v35 = vsub.s32 0, %v13481_v17  ;;  %v2034_v31 = vor.u32 %v2033_v52, %v2032_v42 }
 0x720   : > { %v2038_v40 = vshll.u32 %v8711_v43, %v2023_v48  ;;  %vm2041_vm15 = vcmp.lt.s32.totalorder %v2022_v34, 1  ;;  %v2057_v5 = vshll.u32 %v2017_v15, 8  ;;  %v13496_v60 = vadd.f32 %v13493_v46, %v599_v8 }
 0x721   : > { %v1886_v1 = vsel %vm1803_vm5, %v1885_v14, %v1884_v28  ;;  %v7772_v3 = vmin.u32 %v1763_v35, %v13481_v17  ;;  %vm2044_vm14 = vcmp.lt.s32.totalorder %v2022_v34, 4  ;;  %v2025_v29 = vshrl.u32 %v8707_v33, %v2024_v20 }
 0x722   : > { %v1889_v12 = vsel %vm13434_vm4, %v13253_v24, %v1886_v1  ;;  %v2040_v0 = vor.u32 %v2039_v21, %v2038_v40  ;;  %v2049_v51 = vsel %vm2041_vm15, %v2028_v4, %v2031_v25  ;;  %v2050_v56 = vsel %vm2044_vm14, %v2037_v7, 920167782 }
 0x723   : > { %8555 = vcosq.f32 %v1889_v12  ;;  %vm13507_vm0 = vcmp.le.f32.partialorder %v1697_v49, 0.7853982  ;;  %v1765_v57 = vclz %v7772_v3  ;;  %vm2043_vm1 = vcmp.lt.s32.totalorder %v2022_v34, 3 }
 0x724   : > { %8557 = vsinq.f32 %v1889_v12  ;;  %v2046_v61 = vsel %vm2044_vm14, %v2034_v31, 2102212464  ;;  %v1783_v38 = vsub.s32 4, %v13468_v2  ;;  %vm2042_vm2 = vcmp.lt.s32.totalorder %v2022_v34, 2 }
 0x725   : > { %v2051_v62 = vsel %vm2043_vm1, %v2034_v31, %v2050_v56  ;;  %v2053_v16 = vsel %vm2041_vm15, %v2031_v25, %v2034_v31  ;;  %v7773_v59 = vadd.s32 4294967294, %v1765_v57  ;;  %v2045_v19 = vsel %vm2041_vm15, %v2025_v29, %v2028_v4 }
 0x726   : > { %v2052_v20 = vsel %vm2042_vm2, %v2049_v51, %v2051_v62  ;;  %v2054_v49 = vsel %vm2044_vm14, %v2040_v0, 1326507024  ;;  %v2047_v26 = vsel %vm2043_vm1, %v2031_v25, %v2046_v61  ;;  %v1753_v36 = vadd.s32 %v13426_v23, %v13440_v54  ;;  %v488_v62 = vpop.permute.xlu0 %487 }
 0x727   : > { %v2055_v47 = vsel %vm2043_vm1, %v2037_v7, %v2054_v49  ;;  %v13517_v13 = vmul.u32.u64.low %v2057_v5, %v2052_v20  ;;  %v13518_v8 = vmul.u32.u64.high %v2057_v5, %v2052_v20, %v13517_v13  ;;  %vm7774_vm3 = vcmp.lt.s32.totalorder %v7773_v59, 0 }
 0x728   : > { %v2056_v15 = vsel %vm2042_vm2, %v2053_v16, %v2055_v47  ;;  %v1908_v58 = vand.u32 2139095040, %v13496_v60  ;;  %v1768_v44 = vsel %vm7774_vm3, 0, %v7773_v59  ;;  %v1784_v30 = vsel %vm1699_vm13, %v1783_v38, %v13468_v2 }
 0x729   : > { %v13528_v45 = vmul.u32.u64.low %v2057_v5, %v2056_v15  ;;  %v13529_v55 = vmul.u32.u64.high %v2057_v5, %v2056_v15, %v13528_v45  ;;  %v1769_v11 = vsub.s32 32, %v1768_v44  ;;  %v1773_v52 = vsub.s32 4294967266, %v1768_v44 }
 0x72a   : > { %v2048_v28 = vsel %vm2042_vm2, %v2045_v19, %v2047_v26  ;;  %v1909_v27 = vshrl.u32 %v1908_v58, 23  ;;  %v1895_v23 = vand.u32 3, %v1894_v6  ;;  %v2067_v54 = vadd.s32 1, %v13518_v8 }
 0x72b   : > { %v1905_v22 = vand.u32 2147483647, %v13496_v60  ;;  %v602_v18 = vmul.f32 %v13464_v9, %v492_v53  ;;  %v1770_v4 = vshll.u32 %v13481_v17, %v1768_v44  ;;  %v1771_v42 = vshrl.u32 %v1753_v36, %v1769_v11 }
 0x72c   : > { %v1774_v14 = vadd.s32 127, %v1773_v52  ;;  %v7779_v2 = vadd.s32 4294967169, %v1909_v27  ;;  %v1786_v25 = vsel %vm13507_vm0, 0, %v1784_v30  ;;  %v2064_v7 = vmul.u32 %v2057_v5, %v2048_v28 }
 0x72d   : > { %vm2066_vm4 = vc.u32 %v13529_v55, %v13517_v13  ;;  %v1772_v34 = vor.u32 %v1771_v42, %v1770_v4  ;;  %v1912_v40 = vand.u32 8388607, %v1905_v22  ;;  %v13544_v17 = vadd.f32 %v13493_v46, %v602_v18 }
 0x72e   : > { %v1775_v21 = vshll.u32 %v1774_v14, 23  ;;  %v2068_v6 = vsel %vm2066_vm4, %v2067_v54, %v13518_v8  ;;  %v1915_v35 = vadd.s32 1, %v7779_v2  ;;  %vm1897_vm5 = vcmp.eq.s32.totalorder %v1895_v23, 0 }
 0x72f   : > { %v2069_v31 = vadd.s32 %v2068_v6, %v2064_v7  ;;  %vm1900_vm6 = vcmp.eq.s32.totalorder %v1895_v23, 2  ;;  %v1790_v0 = vadd.s32 3, %v1786_v25  ;;  %v1779_v61 = vcvt.s32.f32 %v1772_v34 }
 0x730   : > { %v8556_v1 = vpop.eup %8555  ;;  %v1776_v12 = vor.u32 4788187, %v1775_v21  ;;  %vm1916_vm7 = vcmp.gt.s32.totalorder %v1915_v35, 0  ;;  %v1913_v19 = vor.u32 8388608, %v1912_v40  ;;  %v2220_v20 = vand.u32 2139095040, %v13544_v17 }
 0x731   : > { %v8558_v5 = vpop.eup %8557  ;;  %v1901_v3 = vxor.u32 2147483648, %v8556_v1  ;;  %v2070_v29 = vadd.s32 536870912, %v2069_v31  ;;  %v1917_v51 = vsel %vm1916_vm7, %v1915_v35, 0  ;;  %vm1896_vm8 = vcmp.lt.s32.totalorder %v1895_v23, 2 }
 0x732   : > { %v1898_v56 = vxor.u32 2147483648, %v8558_v5  ;;  %v1777_v57 = vand.u32 2147483647, %v1776_v12  ;;  %v1919_v38 = vand.u32 31, %v1917_v51  ;;  %vm1893_vm9 = vweird.f32 %v13253_v24 }
 0x733   : > { %v1902_v16 = vsel %vm1900_vm6, %v1901_v3, %v8558_v5  ;;  %v13546_v59 = vshrl.u32 %v2070_v29, 30  ;;  %v13553_v15 = vmul.f32 %v13464_v9, %v488_v62  ;;  %v13555_v44 = vand.u32 3, %v1790_v0 }
 0x734   : > { %v1899_v49 = vsel %vm1897_vm5, %v8556_v1, %v1898_v56  ;;  %v1780_v26 = vmul.f32 %v1779_v61, %v1777_v57  ;;  %v1920_v47 = vsub.s32 32, %v1919_v38  ;;  %v13562_v52 = vshll.u32 %v1913_v19, 8 }
 0x735   : > { %v1903_v8 = vsel %vm1896_vm8, %v1899_v49, %v1902_v16  ;;  %v2072_v36 = vshll.u32 %v13546_v59, 30  ;;  %v2221_v24 = vshrl.u32 %v2220_v20, 23  ;;  %v1918_v27 = vshrl.u32 %v1917_v51, 5 }
 0x736   : > { %v1904_v58 = vsel %vm1893_vm9, nan, %v1903_v8  ;;  %v1781_v53 = vxor.u32 2147483648, %v1780_v26  ;;  %v1923_v30 = vshrl.u32 %v8708_v37, %v1920_v47  ;;  %v1926_v11 = vshrl.u32 %v8709_v39, %v1920_v47 }
 0x737   : > { %7581 = vst [vmem:[%s9190_s23 + $0xb0] sm:$0xff] %v1904_v58  ;;  %v13559_v45 = vsub.s32 %v2069_v31, %v2072_v36  ;;  %v1922_v9 = vshll.u32 %v8707_v33, %v1919_v38  ;;  %v1929_v23 = vshrl.u32 %v8710_v41, %v1920_v47  ;;  %v1925_v4 = vshll.u32 %v8708_v37, %v1919_v38 }
 0x738   : > { %v1782_v28 = vsel %vm1699_vm13, %v1781_v53, %v1780_v26  ;;  %v1928_v42 = vshll.u32 %v8709_v39, %v1919_v38  ;;  %v1931_v2 = vshll.u32 %v8710_v41, %v1919_v38  ;;  %v1932_v25 = vshrl.u32 %v8711_v43, %v1920_v47 }
 0x739   : > { %v1785_v54 = vsel %vm13507_vm0, %v13301_v10, %v1782_v28  ;;  %v2075_v18 = vsub.s32 0, %v13559_v45  ;;  %v1924_v14 = vor.u32 %v1923_v30, %v1922_v9  ;;  %v1927_v34 = vor.u32 %v1926_v11, %v1925_v4 }
 0x73a   : > { %8559 = vcosq.f32 %v1785_v54  ;;  %v1930_v21 = vor.u32 %v1929_v23, %v1928_v42  ;;  %v1933_v6 = vor.u32 %v1932_v25, %v1931_v2  ;;  %v1934_v48 = vshll.u32 %v8711_v43, %v1919_v38 }
 0x73b   : > { %8561 = vsinq.f32 %v1785_v54  ;;  %v7784_v7 = vmin.u32 %v2075_v18, %v13559_v45  ;;  %v1935_v35 = vshrl.u32 %v8712_v50, %v1920_v47  ;;  %v2217_v31 = vand.u32 2147483647, %v13544_v17 }
 0x73c   : > { %v1921_v1 = vshrl.u32 %v8707_v33, %v1920_v47  ;;  %vm1937_vm10 = vcmp.lt.s32.totalorder %v1918_v27, 1  ;;  %v7791_v12 = vadd.s32 4294967169, %v2221_v24  ;;  %vm1938_vm11 = vcmp.lt.s32.totalorder %v1918_v27, 2 }
 0x73d   : > { %v2077_v40 = vclz %v7784_v7  ;;  %v1936_v5 = vor.u32 %v1935_v35, %v1934_v48  ;;  %vm1939_vm12 = vcmp.lt.s32.totalorder %v1918_v27, 3  ;;  %vm1940_vm13 = vcmp.lt.s32.totalorder %v1918_v27, 4 }
 0x73e   : > { %vm2011_vm15 = vcmp.lt.s32.totalorder %v13377_v63, 0  ;;  %v1942_v0 = vsel %vm1940_vm13, %v1930_v21, 2102212464  ;;  %v1945_v29 = vsel %vm1937_vm10, %v1924_v14, %v1927_v34  ;;  %v1946_v51 = vsel %vm1940_vm13, %v1933_v6, 920167782 }
 0x73f   : > { %v7785_v3 = vadd.s32 4294967294, %v2077_v40  ;;  %v1941_v56 = vsel %vm1937_vm10, %v1921_v1, %v1924_v14  ;;  %v1947_v57 = vsel %vm1939_vm12, %v1930_v21, %v1946_v51  ;;  %v1949_v61 = vsel %vm1937_vm10, %v1927_v34, %v1930_v21 }
 0x740   : > { %v1950_v38 = vsel %vm1940_vm13, %v1936_v5, 1326507024  ;;  %v1943_v62 = vsel %vm1939_vm12, %v1927_v34, %v1942_v0  ;;  %v1948_v16 = vsel %vm1938_vm11, %v1945_v29, %v1947_v57  ;;  %vm13585_vm0 = vcmp.le.f32.partialorder %v2009_v32, 0.7853982 }
 0x741   : > { %vm7786_vm14 = vcmp.lt.s32.totalorder %v7785_v3, 0  ;;  %v1951_v19 = vsel %vm1939_vm12, %v1933_v6, %v1950_v38  ;;  %v13591_v47 = vmul.u32.u64.low %v13562_v52, %v1948_v16  ;;  %v13592_v8 = vmul.u32.u64.high %v13562_v52, %v1948_v16, %v13591_v47 }
 0x742   : > { %v2080_v49 = vsel %vm7786_vm14, 0, %v7785_v3  ;;  %v1952_v26 = vsel %vm1938_vm11, %v1949_v61, %v1951_v19  ;;  %vm1792_vm1 = vcmp.lt.s32.totalorder %v13555_v44, 2  ;;  %v2065_v36 = vadd.s32 %v13517_v13, %v13529_v55 }
 0x743   : > { %v2081_v58 = vsub.s32 32, %v2080_v49  ;;  %v2085_v53 = vsub.s32 4294967266, %v2080_v49  ;;  %vm1789_vm2 = vweird.f32 %v13301_v10  ;;  %v2095_v32 = vsub.s32 4, %v13546_v59 }
 0x744   : > { %v13601_v30 = vmul.u32.u64.low %v13562_v52, %v1952_v26  ;;  %v13602_v11 = vmul.u32.u64.high %v13562_v52, %v1952_v26, %v13601_v30  ;;  %v2227_v24 = vadd.s32 1, %v7791_v12  ;;  %v2082_v28 = vshll.u32 %v13559_v45, %v2080_v49 }
 0x745   : > { %v2083_v9 = vshrl.u32 %v2065_v36, %v2081_v58  ;;  %v2086_v23 = vadd.s32 127, %v2085_v53  ;;  %v1944_v54 = vsel %vm1938_vm11, %v1941_v56, %v1943_v62  ;;  %vm1793_vm3 = vcmp.eq.s32.totalorder %v13555_v44, 0 }
 0x746   : > { %v1963_v13 = vadd.s32 1, %v13592_v8  ;;  %v2224_v55 = vand.u32 8388607, %v2217_v31  ;;  %vm2228_vm4 = vcmp.gt.s32.totalorder %v2227_v24, 0  ;;  %vm1796_vm5 = vcmp.eq.s32.totalorder %v13555_v44, 2 }
 0x747   : > { %v8560_v18 = vpop.eup %8559  ;;  %v2084_v4 = vor.u32 %v2083_v9, %v2082_v28  ;;  %v2087_v42 = vshll.u32 %v2086_v23, 23  ;;  %v2229_v14 = vsel %vm2228_vm4, %v2227_v24, 0  ;;  %v2096_v27 = vsel %vm2011_vm15, %v2095_v32, %v13546_v59 }
 0x748   : > { %v8562_v2 = vpop.eup %8561  ;;  %v1797_v45 = vxor.u32 2147483648, %v8560_v18  ;;  %v1960_v25 = vmul.u32 %v13562_v52, %v1944_v54  ;;  %vm1962_vm6 = vc.u32 %v13602_v11, %v13591_v47  ;;  %v13620_v6 = vadd.f32 %v13493_v46, %v13553_v15 }
 0x749   : > { %v1794_v7 = vxor.u32 2147483648, %v8562_v2  ;;  %v2088_v34 = vor.u32 4788187, %v2087_v42  ;;  %v1964_v21 = vsel %vm1962_vm6, %v1963_v13, %v13592_v8  ;;  %v2225_v40 = vor.u32 8388608, %v2224_v55 }
 0x74a   : > { %v1798_v48 = vsel %vm1796_vm5, %v1797_v45, %v8562_v2  ;;  %v1965_v35 = vadd.s32 %v1964_v21, %v1960_v25  ;;  %v2231_v1 = vand.u32 31, %v2229_v14  ;;  %v2091_v12 = vcvt.s32.f32 %v2084_v4 }
 0x74b   : > { %v1795_v59 = vsel %vm1793_vm3, %v8560_v18, %v1794_v7  ;;  %v2089_v52 = vand.u32 2147483647, %v2088_v34  ;;  %v2098_v5 = vsel %vm13585_vm0, 0, %v2096_v27  ;;  %v2230_v29 = vshrl.u32 %v2229_v14, 5 }
 0x74c   : > { %v1799_v3 = vsel %vm1792_vm1, %v1795_v59, %v1798_v48  ;;  %v1966_v0 = vadd.s32 536870912, %v1965_v35  ;;  %v2232_v15 = vsub.s32 32, %v2231_v1  ;;  %v2234_v57 = vshll.u32 %v8707_v33, %v2231_v1 }
 0x74d   : > { %v1800_v51 = vsel %vm1789_vm2, nan, %v1799_v3  ;;  %v2092_v56 = vmul.f32 %v2091_v12, %v2089_v52  ;;  %v2237_v61 = vshll.u32 %v8708_v37, %v2231_v1  ;;  %v2240_v44 = vshll.u32 %v8709_v39, %v2231_v1 }
 0x74e   : > { %7579 = vst [vmem:[%s9190_s23 + $0xa0] sm:$0xff] %v1800_v51  ;;  %v13633_v38 = vshrl.u32 %v1966_v0, 30  ;;  %v2235_v62 = vshrl.u32 %v8708_v37, %v2232_v15  ;;  %v2238_v16 = vshrl.u32 %v8709_v39, %v2232_v15  ;;  %v2241_v49 = vshrl.u32 %v8710_v41, %v2232_v15 }
 0x74f   : > { %v2093_v19 = vxor.u32 2147483648, %v2092_v56  ;;  %v2243_v10 = vshll.u32 %v8710_v41, %v2231_v1  ;;  %v2244_v26 = vshrl.u32 %v8711_v43, %v2232_v15  ;;  %v2102_v8 = vadd.s32 3, %v2098_v5 }
 0x750   : > { %v1968_v36 = vshll.u32 %v13633_v38, 30  ;;  %v2236_v58 = vor.u32 %v2235_v62, %v2234_v57  ;;  %v2239_v32 = vor.u32 %v2238_v16, %v2237_v61  ;;  %v2242_v30 = vor.u32 %v2241_v49, %v2240_v44 }
 0x751   : > { %v2094_v53 = vsel %vm2011_vm15, %v2093_v19, %v2092_v56  ;;  %v2245_v24 = vor.u32 %v2244_v26, %v2243_v10  ;;  %v2246_v23 = vshll.u32 %v8711_v43, %v2231_v1  ;;  %v2247_v54 = vshrl.u32 %v8712_v50, %v2232_v15 }
 0x752   : > { %v2097_v28 = vsel %vm13585_vm0, %v13377_v63, %v2094_v53  ;;  %v13647_v9 = vsub.s32 %v1965_v35, %v1968_v36  ;;  %vm2249_vm7 = vcmp.lt.s32.totalorder %v2230_v29, 1  ;;  %v2265_v13 = vshll.u32 %v2225_v40, 8 }
 0x753   : > { %8563 = vcosq.f32 %v2097_v28  ;;  %v2116_v55 = vand.u32 2139095040, %v13620_v6  ;;  %v2248_v4 = vor.u32 %v2247_v54, %v2246_v23  ;;  %vm2252_vm8 = vcmp.lt.s32.totalorder %v2230_v29, 4 }
 0x754   : > { %8565 = vsinq.f32 %v2097_v28  ;;  %v1971_v18 = vsub.s32 0, %v13647_v9  ;;  %vm2250_vm9 = vcmp.lt.s32.totalorder %v2230_v29, 2  ;;  %vm2251_vm10 = vcmp.lt.s32.totalorder %v2230_v29, 3 }
 0x755   : > { %v2257_v20 = vsel %vm2249_vm7, %v2236_v58, %v2239_v32  ;;  %v2258_v42 = vsel %vm2252_vm8, %v2245_v24, 920167782  ;;  %v2233_v2 = vshrl.u32 %v8707_v33, %v2232_v15  ;;  %v2254_v45 = vsel %vm2252_vm8, %v2242_v30, 2102212464 }
 0x756   : > { %v7780_v14 = vmin.u32 %v1971_v18, %v13647_v9  ;;  %v2259_v27 = vsel %vm2251_vm10, %v2242_v30, %v2258_v42  ;;  %v2261_v7 = vsel %vm2249_vm7, %v2239_v32, %v2242_v30  ;;  %v2262_v34 = vsel %vm2252_vm8, %v2248_v4, 1326507024 }
 0x757   : > { %v2260_v25 = vsel %vm2250_vm9, %v2257_v20, %v2259_v27  ;;  %v2117_v21 = vshrl.u32 %v2116_v55, 23  ;;  %v2103_v48 = vand.u32 3, %v2102_v8  ;;  %v2253_v40 = vsel %vm2249_vm7, %v2233_v2, %v2236_v58  ;;  %v4160_v55 = vpop.permute.xlu1 %4159 }
 0x758   : > { %v1973_v35 = vclz %v7780_v14  ;;  %v2255_v1 = vsel %vm2251_vm10, %v2239_v32, %v2254_v45  ;;  %v2263_v59 = vsel %vm2251_vm10, %v2245_v24, %v2262_v34  ;;  %vm13666_vm11 = vcmp.le.f32.partialorder %v1905_v22, 0.7853982 }
 0x759   : > { %v13659_v52 = vmul.u32.u64.low %v2265_v13, %v2260_v25  ;;  %v13660_v12 = vmul.u32.u64.high %v2265_v13, %v2260_v25, %v13659_v52  ;;  %v2264_v3 = vsel %vm2250_vm9, %v2261_v7, %v2263_v59  ;;  %v7787_v0 = vadd.s32 4294967169, %v2117_v21  ;;  %v13699_v25 = vld [vmem:[%s13942_s2] ss:$0 sm:$0xff] }
 0x75a   : > { %v7781_v5 = vadd.s32 4294967294, %v1973_v35  ;;  %v13670_v51 = vmul.u32.u64.low %v2265_v13, %v2264_v3  ;;  %v13671_v56 = vmul.u32.u64.high %v2265_v13, %v2264_v3, %v13670_v51  ;;  %vm1907_vm12 = vcmp.lt.s32.totalorder %v13496_v60, 0 }
 0x75b   : > { %v2256_v57 = vsel %vm2250_vm9, %v2253_v40, %v2255_v1  ;;  %v2123_v61 = vadd.s32 1, %v7787_v0  ;;  %vm2101_vm15 = vweird.f32 %v13377_v63  ;;  %vm2104_vm14 = vcmp.lt.s32.totalorder %v2103_v48, 2 }
 0x75c   : > { %vm7782_vm13 = vcmp.lt.s32.totalorder %v7781_v5, 0  ;;  %v1991_v16 = vsub.s32 4, %v13633_v38  ;;  %v2275_v22 = vadd.s32 1, %v13660_v12  ;;  %v1961_v44 = vadd.s32 %v13591_v47, %v13602_v11 }
 0x75d   : > { %v1976_v62 = vsel %vm7782_vm13, 0, %v7781_v5  ;;  %vm2124_vm0 = vcmp.gt.s32.totalorder %v2123_v61, 0  ;;  %v2272_v10 = vmul.u32 %v2265_v13, %v2256_v57  ;;  %vm2274_vm1 = vc.u32 %v13671_v56, %v13659_v52 }
 0x75e   : > { %v1977_v19 = vsub.s32 32, %v1976_v62  ;;  %v1981_v49 = vsub.s32 4294967266, %v1976_v62  ;;  %v2113_v29 = vand.u32 2147483647, %v13620_v6  ;;  %v2125_v26 = vsel %vm2124_vm0, %v2123_v61, 0 }
 0x75f   : > { %v1978_v36 = vshll.u32 %v13647_v9, %v1976_v62  ;;  %v2276_v32 = vsel %vm2274_vm1, %v2275_v22, %v13660_v12  ;;  %v1992_v47 = vsel %vm1907_vm12, %v1991_v16, %v13633_v38  ;;  %v2127_v28 = vand.u32 31, %v2125_v26 }
 0x760   : > { %v8564_v8 = vpop.eup %8563  ;;  %v1979_v58 = vshrl.u32 %v1961_v44, %v1977_v19  ;;  %v1982_v53 = vadd.s32 127, %v1981_v49  ;;  %v2277_v11 = vadd.s32 %v2276_v32, %v2272_v10  ;;  %vm2108_vm2 = vcmp.eq.s32.totalorder %v2103_v48, 2 }
 0x761   : > { %v8566_v30 = vpop.eup %8565  ;;  %v2109_v24 = vxor.u32 2147483648, %v8564_v8  ;;  %vm2105_vm3 = vcmp.eq.s32.totalorder %v2103_v48, 0  ;;  %v2128_v4 = vsub.s32 32, %v2127_v28  ;;  %v1994_v14 = vsel %vm13666_vm11, 0, %v1992_v47 }
 0x762   : > { %v2106_v23 = vxor.u32 2147483648, %v8566_v30  ;;  %v1980_v54 = vor.u32 %v1979_v58, %v1978_v36  ;;  %v1983_v13 = vshll.u32 %v1982_v53, 23  ;;  %v2278_v9 = vadd.s32 536870912, %v2277_v11 }
 0x763   : > { %v2110_v18 = vsel %vm2108_vm2, %v2109_v24, %v8566_v30  ;;  %v2120_v38 = vand.u32 8388607, %v2113_v29  ;;  %v2131_v27 = vshrl.u32 %v8708_v37, %v2128_v4  ;;  %v4198_v7 = vmul.f32 %v13699_v25, %v4160_v55 }
 0x764   : > { %v2107_v20 = vsel %vm2105_vm3, %v8564_v8, %v2106_v23  ;;  %v1984_v42 = vor.u32 4788187, %v1983_v13  ;;  %v13693_v45 = vshrl.u32 %v2278_v9, 30  ;;  %v1987_v35 = vcvt.s32.f32 %v1980_v54 }
 0x765   : > { %v2111_v2 = vsel %vm2104_vm14, %v2107_v20, %v2110_v18  ;;  %v2134_v40 = vshrl.u32 %v8709_v39, %v2128_v4  ;;  %v2126_v1 = vshrl.u32 %v2125_v26, 5  ;;  %v2130_v59 = vshll.u32 %v8707_v33, %v2127_v28 }
 0x766   : > { %v2112_v34 = vsel %vm2101_vm15, nan, %v2111_v2  ;;  %v1985_v21 = vand.u32 2147483647, %v1984_v42  ;;  %v2280_v48 = vshll.u32 %v13693_v45, 30  ;;  %v2137_v12 = vshrl.u32 %v8710_v41, %v2128_v4 }
 0x767   : > { %7585 = vst [vmem:[%s9190_s23 + $0xd0] sm:$0xff] %v2112_v34  ;;  %v2133_v3 = vshll.u32 %v8708_v37, %v2127_v28  ;;  %v2139_v0 = vshll.u32 %v8710_v41, %v2127_v28  ;;  %v2140_v63 = vshrl.u32 %v8711_v43, %v2128_v4  ;;  %v2132_v57 = vor.u32 %v2131_v27, %v2130_v59  ;;  %v4156_v34 = vpop.permute.xlu0 %4155 }
 0x768   : > { %v1988_v5 = vmul.f32 %v1987_v35, %v1985_v21  ;;  %v13712_v51 = vsub.s32 %v2277_v11, %v2280_v48  ;;  %v2136_v61 = vshll.u32 %v8709_v39, %v2127_v28  ;;  %v2143_v44 = vshrl.u32 %v8712_v50, %v2128_v4 }
 0x769   : > { %v2135_v16 = vor.u32 %v2134_v40, %v2133_v3  ;;  %v2141_v22 = vor.u32 %v2140_v63, %v2139_v0  ;;  %v1998_v19 = vadd.s32 3, %v1994_v14  ;;  %v2142_v26 = vshll.u32 %v8711_v43, %v2127_v28 }
 0x76a   : > { %v1989_v62 = vxor.u32 2147483648, %v1988_v5  ;;  %v2283_v49 = vsub.s32 0, %v13712_v51  ;;  %v2138_v10 = vor.u32 %v2137_v12, %v2136_v61  ;;  %v2121_v36 = vor.u32 8388608, %v2120_v38 }
 0x76b   : > { %vm2145_vm4 = vcmp.lt.s32.totalorder %v2126_v1, 1  ;;  %v13721_v58 = vadd.f32 %v13493_v46, %v4198_v7  ;;  %v2144_v30 = vor.u32 %v2143_v44, %v2142_v26  ;;  %vm2148_vm5 = vcmp.lt.s32.totalorder %v2126_v1, 4 }
 0x76c   : > { %v1990_v8 = vsel %vm1907_vm12, %v1989_v62, %v1988_v5  ;;  %v7792_v32 = vmin.u32 %v2283_v49, %v13712_v51  ;;  %v2129_v24 = vshrl.u32 %v8707_v33, %v2128_v4  ;;  %v2153_v47 = vsel %vm2145_vm4, %v2132_v57, %v2135_v16 }
 0x76d   : > { %v1993_v53 = vsel %vm13666_vm11, %v13496_v60, %v1990_v8  ;;  %v2154_v11 = vsel %vm2148_vm5, %v2141_v22, 920167782  ;;  %vm2147_vm6 = vcmp.lt.s32.totalorder %v2126_v1, 3  ;;  %v2150_v23 = vsel %vm2148_vm5, %v2138_v10, 2102212464 }
 0x76e   : > { %8567 = vcosq.f32 %v1993_v53  ;;  %v2285_v28 = vclz %v7792_v32  ;;  %vm2146_vm7 = vcmp.lt.s32.totalorder %v2126_v1, 2  ;;  %v2155_v54 = vsel %vm2147_vm6, %v2138_v10, %v2154_v11 }
 0x76f   : > { %8569 = vsinq.f32 %v1993_v53  ;;  %v2157_v15 = vsel %vm2145_vm4, %v2135_v16, %v2138_v10  ;;  %v2161_v13 = vshll.u32 %v2121_v36, 8  ;;  %v2149_v18 = vsel %vm2145_vm4, %v2129_v24, %v2132_v57 }
 0x770   : > { %v7793_v55 = vadd.s32 4294967294, %v2285_v28  ;;  %v2156_v9 = vsel %vm2146_vm7, %v2153_v47, %v2155_v54  ;;  %v2158_v4 = vsel %vm2148_vm5, %v2144_v30, 1326507024  ;;  %v2151_v20 = vsel %vm2147_vm6, %v2135_v16, %v2150_v23 }
 0x771   : > { %v2159_v42 = vsel %vm2147_vm6, %v2141_v22, %v2158_v4  ;;  %v13735_v14 = vmul.u32.u64.low %v2161_v13, %v2156_v9  ;;  %v13736_v38 = vmul.u32.u64.high %v2161_v13, %v2156_v9, %v13735_v14  ;;  %v2273_v2 = vadd.s32 %v13659_v52, %v13671_v56 }
 0x772   : > { %vm7794_vm8 = vcmp.lt.s32.totalorder %v7793_v55, 0  ;;  %v2160_v27 = vsel %vm2146_vm7, %v2157_v15, %v2159_v42  ;;  %v7458_v7 = vand.u32 2139095040, %v13721_v58  ;;  %v2303_v35 = vsub.s32 4, %v13693_v45 }
 0x773   : > { %v2288_v21 = vsel %vm7794_vm8, 0, %v7793_v55  ;;  %v13744_v40 = vmul.u32.u64.low %v2161_v13, %v2160_v27  ;;  %v13745_v48 = vmul.u32.u64.high %v2161_v13, %v2160_v27, %v13744_v40  ;;  %v2152_v5 = vsel %vm2146_vm7, %v2149_v18, %v2151_v20 }
 0x774   : > { %v2289_v59 = vsub.s32 32, %v2288_v21  ;;  %v2293_v12 = vsub.s32 4294967266, %v2288_v21  ;;  %v7459_v3 = vshrl.u32 %v7458_v7, 23  ;;  %v1999_v0 = vand.u32 3, %v1998_v19 }
 0x775   : > { %vm2219_vm9 = vcmp.lt.s32.totalorder %v13544_v17, 0  ;;  %v2171_v52 = vadd.s32 1, %v13736_v38  ;;  %v4197_v56 = vmul.f32 %v13699_v25, %v4156_v34  ;;  %v2290_v63 = vshll.u32 %v13712_v51, %v2288_v21 }
 0x776   : > { %v2291_v57 = vshrl.u32 %v2273_v2, %v2289_v59  ;;  %v2294_v61 = vadd.s32 127, %v2293_v12  ;;  %v7984_v62 = vadd.s32 4294967169, %v7459_v3  ;;  %v2304_v16 = vsel %vm2219_vm9, %v2303_v35, %v13693_v45 }
 0x777   : > { %v2168_v22 = vmul.u32 %v2161_v13, %v2152_v5  ;;  %vm2170_vm10 = vc.u32 %v13745_v48, %v13735_v14  ;;  %vm13760_vm11 = vcmp.le.f32.partialorder %v2217_v31, 0.7853982  ;;  %v7455_v10 = vand.u32 2147483647, %v13721_v58 }
 0x778   : > { %v2292_v1 = vor.u32 %v2291_v57, %v2290_v63  ;;  %v2295_v44 = vshll.u32 %v2294_v61, 23  ;;  %v2172_v19 = vsel %vm2170_vm10, %v2171_v52, %v13736_v38  ;;  %v7465_v49 = vadd.s32 1, %v7984_v62 }
 0x779   : > { %v2173_v51 = vadd.s32 %v2172_v19, %v2168_v22  ;;  %v13766_v45 = vadd.f32 %v13493_v46, %v4197_v56  ;;  %vm2001_vm12 = vcmp.eq.s32.totalorder %v1999_v0, 0  ;;  %vm2004_vm13 = vcmp.eq.s32.totalorder %v1999_v0, 2 }
 0x77a   : > { %v2296_v8 = vor.u32 4788187, %v2295_v44  ;;  %vm7466_vm15 = vcmp.gt.s32.totalorder %v7465_v49, 0  ;;  %v2306_v32 = vsel %vm13760_vm11, 0, %v2304_v16  ;;  %v2299_v11 = vcvt.s32.f32 %v2292_v1 }
 0x77b   : > { %v8568_v26 = vpop.eup %8567  ;;  %v2174_v31 = vadd.s32 536870912, %v2173_v51  ;;  %v7467_v30 = vsel %vm7466_vm15, %v7465_v49, 0  ;;  %v7462_v54 = vand.u32 8388607, %v7455_v10  ;;  %v7354_v15 = vand.u32 2139095040, %v13766_v45 }
 0x77c   : > { %v8570_v36 = vpop.eup %8569  ;;  %v2005_v53 = vxor.u32 2147483648, %v8568_v26  ;;  %v2297_v47 = vand.u32 2147483647, %v2296_v8  ;;  %v7469_v28 = vand.u32 31, %v7467_v30  ;;  %vm2000_vm14 = vcmp.lt.s32.totalorder %v1999_v0, 2 }
 0x77d   : > { %v2002_v24 = vxor.u32 2147483648, %v8570_v36  ;;  %v13770_v46 = vshrl.u32 %v2174_v31, 30  ;;  %vm1997_vm0 = vweird.f32 %v13496_v60  ;;  %v2310_v38 = vadd.s32 3, %v2306_v32 }
 0x77e   : > { %v2006_v23 = vsel %vm2004_vm13, %v2005_v53, %v8570_v36  ;;  %v2300_v55 = vmul.f32 %v2299_v11, %v2297_v47  ;;  %v7470_v18 = vsub.s32 32, %v7469_v28  ;;  %v7463_v7 = vor.u32 8388608, %v7462_v54 }
 0x77f   : > { %v2003_v13 = vsel %vm2001_vm12, %v8568_v26, %v2002_v24  ;;  %v2176_v4 = vshll.u32 %v13770_v46, 30  ;;  %v7355_v21 = vshrl.u32 %v7354_v15, 23  ;;  %v7468_v40 = vshrl.u32 %v7467_v30, 5 }
 0x780   : > { %v2007_v9 = vsel %vm2000_vm14, %v2003_v13, %v2006_v23  ;;  %v2301_v42 = vxor.u32 2147483648, %v2300_v55  ;;  %v7473_v2 = vshrl.u32 %v8708_v37, %v7470_v18  ;;  %v7476_v34 = vshrl.u32 %v8709_v39, %v7470_v18 }
 0x781   : > { %v2008_v20 = vsel %vm1997_vm0, nan, %v2007_v9  ;;  %v13780_v27 = vsub.s32 %v2173_v51, %v2176_v4  ;;  %v7472_v60 = vshll.u32 %v8707_v33, %v7469_v28  ;;  %v7479_v59 = vshrl.u32 %v8710_v41, %v7470_v18 }
 0x782   : > { %7583 = vst [vmem:[%s9190_s23 + $0xc0] sm:$0xff] %v2008_v20  ;;  %v2302_v35 = vsel %vm2219_vm9, %v2301_v42, %v2300_v55  ;;  %v7475_v3 = vshll.u32 %v8708_v37, %v7469_v28  ;;  %v7478_v0 = vshll.u32 %v8709_v39, %v7469_v28  ;;  %v7481_v56 = vshll.u32 %v8710_v41, %v7469_v28 }
 0x783   : > { %v2305_v12 = vsel %vm13760_vm11, %v13544_v17, %v2302_v35  ;;  %v2179_v5 = vsub.s32 0, %v13780_v27  ;;  %v7474_v52 = vor.u32 %v7473_v2, %v7472_v60  ;;  %v7482_v63 = vshrl.u32 %v8711_v43, %v7470_v18 }
 0x784   : > { %8571 = vcosq.f32 %v2305_v12  ;;  %v7477_v61 = vor.u32 %v7476_v34, %v7475_v3  ;;  %v7480_v62 = vor.u32 %v7479_v59, %v7478_v0  ;;  %v7484_v22 = vshll.u32 %v8711_v43, %v7469_v28 }
 0x785   : > { %8573 = vsinq.f32 %v2305_v12  ;;  %v7788_v57 = vmin.u32 %v2179_v5, %v13780_v27  ;;  %v7483_v16 = vor.u32 %v7482_v63, %v7481_v56  ;;  %v7485_v1 = vshrl.u32 %v8712_v50, %v7470_v18 }
 0x786   : > { %v7503_v44 = vshll.u32 %v7463_v7, 8  ;;  %v7471_v49 = vshrl.u32 %v8707_v33, %v7470_v18  ;;  %vm7487_vm1 = vcmp.lt.s32.totalorder %v7468_v40, 1  ;;  %v7980_v25 = vadd.s32 4294967169, %v7355_v21 }
 0x787   : > { %v2181_v19 = vclz %v7788_v57  ;;  %v7486_v51 = vor.u32 %v7485_v1, %v7484_v22  ;;  %vm7488_vm2 = vcmp.lt.s32.totalorder %v7468_v40, 2  ;;  %vm7489_vm3 = vcmp.lt.s32.totalorder %v7468_v40, 3 }
 0x788   : > { %vm7490_vm4 = vcmp.lt.s32.totalorder %v7468_v40, 4  ;;  %v7495_v36 = vsel %vm7487_vm1, %v7474_v52, %v7477_v61  ;;  %v7491_v32 = vsel %vm7487_vm1, %v7471_v49, %v7474_v52  ;;  %v7499_v30 = vsel %vm7487_vm1, %v7477_v61, %v7480_v62 }
 0x789   : > { %v7789_v26 = vadd.s32 4294967294, %v2181_v19  ;;  %v7492_v8 = vsel %vm7490_vm4, %v7480_v62, 2102212464  ;;  %v7496_v53 = vsel %vm7490_vm4, %v7483_v16, 920167782  ;;  %v2311_v55 = vand.u32 3, %v2310_v38 }
 0x78a   : > { %v7497_v31 = vsel %vm7489_vm3, %v7480_v62, %v7496_v53  ;;  %v7500_v24 = vsel %vm7490_vm4, %v7486_v51, 1326507024  ;;  %v7493_v47 = vsel %vm7489_vm3, %v7477_v61, %v7492_v8  ;;  %v2169_v18 = vadd.s32 %v13735_v14, %v13745_v48 }
 0x78b   : > { %vm7790_vm5 = vcmp.lt.s32.totalorder %v7789_v26, 0  ;;  %v7498_v11 = vsel %vm7488_vm2, %v7495_v36, %v7497_v31  ;;  %v7501_v28 = vsel %vm7489_vm3, %v7483_v16, %v7500_v24  ;;  %v7361_v2 = vadd.s32 1, %v7980_v25 }
 0x78c   : > { %v2184_v23 = vsel %vm7790_vm5, 0, %v7789_v26  ;;  %v7502_v54 = vsel %vm7488_vm2, %v7499_v30, %v7501_v28  ;;  %v13801_v15 = vmul.u32.u64.low %v7503_v44, %v7498_v11  ;;  %v13802_v13 = vmul.u32.u64.high %v7503_v44, %v7498_v11, %v13801_v15 }
 0x78d   : > { %v2185_v9 = vsub.s32 32, %v2184_v23  ;;  %v2189_v4 = vsub.s32 4294967266, %v2184_v23  ;;  %v13807_v20 = vmul.u32.u64.low %v7503_v44, %v7502_v54  ;;  %v13808_v42 = vmul.u32.u64.high %v7503_v44, %v7502_v54, %v13807_v20 }
 0x78e   : > { %v2186_v7 = vshll.u32 %v13780_v27, %v2184_v23  ;;  %v7494_v35 = vsel %vm7488_vm2, %v7491_v32, %v7493_v47  ;;  %vm2309_vm6 = vweird.f32 %v13544_v17  ;;  %v7513_v60 = vadd.s32 1, %v13802_v13 }
 0x78f   : > { %v2187_v34 = vshrl.u32 %v2169_v18, %v2185_v9  ;;  %v2190_v21 = vadd.s32 127, %v2189_v4  ;;  %v7351_v38 = vand.u32 2147483647, %v13766_v45  ;;  %vm7362_vm7 = vcmp.gt.s32.totalorder %v7361_v2, 0 }
 0x790   : > { %vm2312_vm8 = vcmp.lt.s32.totalorder %v2311_v55, 2  ;;  %vm2115_vm9 = vcmp.lt.s32.totalorder %v13620_v6, 0  ;;  %v7363_v12 = vsel %vm7362_vm7, %v7361_v2, 0  ;;  %vm2313_vm10 = vcmp.eq.s32.totalorder %v2311_v55, 0 }
 0x791   : > { %v8572_v14 = vpop.eup %8571  ;;  %v2188_v48 = vor.u32 %v2187_v34, %v2186_v7  ;;  %v2191_v59 = vshll.u32 %v2190_v21, 23  ;;  %v7510_v3 = vmul.u32 %v7503_v44, %v7494_v35  ;;  %vm7512_vm11 = vc.u32 %v13808_v42, %v13801_v15 }
 0x792   : > { %v8574_v5 = vpop.eup %8573  ;;  %v2317_v27 = vxor.u32 2147483648, %v8572_v14  ;;  %vm2316_vm12 = vcmp.eq.s32.totalorder %v2311_v55, 2  ;;  %v7514_v52 = vsel %vm7512_vm11, %v7513_v60, %v13802_v13  ;;  %v7358_v57 = vand.u32 8388607, %v7351_v38 }
 0x793   : > { %v2314_v40 = vxor.u32 2147483648, %v8574_v5  ;;  %v2192_v0 = vor.u32 4788187, %v2191_v59  ;;  %v7515_v63 = vadd.s32 %v7514_v52, %v7510_v3  ;;  %v7365_v61 = vand.u32 31, %v7363_v12 }
 0x794   : > { %v2318_v56 = vsel %vm2316_vm12, %v2317_v27, %v8574_v5  ;;  %v2195_v22 = vcvt.s32.f32 %v2188_v48  ;;  %v2199_v1 = vsub.s32 4, %v13770_v46  ;;  %v7364_v49 = vshrl.u32 %v7363_v12, 5 }
 0x795   : > { %v2315_v62 = vsel %vm2313_vm10, %v8572_v14, %v2314_v40  ;;  %v2193_v16 = vand.u32 2147483647, %v2192_v0  ;;  %v7516_v19 = vadd.s32 536870912, %v7515_v63  ;;  %v7366_v25 = vsub.s32 32, %v7365_v61 }
 0x796   : > { %v2319_v44 = vsel %vm2312_vm8, %v2315_v62, %v2318_v56  ;;  %v7368_v8 = vshll.u32 %v8707_v33, %v7365_v61  ;;  %v7371_v36 = vshll.u32 %v8708_v37, %v7365_v61  ;;  %v7374_v30 = vshll.u32 %v8709_v39, %v7365_v61 }
 0x797   : > { %v2320_v51 = vsel %vm2309_vm6, nan, %v2319_v44  ;;  %v2196_v26 = vmul.f32 %v2195_v22, %v2193_v16  ;;  %v13828_v53 = vshrl.u32 %v7516_v19, 30  ;;  %v7369_v32 = vshrl.u32 %v8708_v37, %v7366_v25 }
 0x798   : > { %7589 = vst [vmem:[%s9190_s23 + $0xf0] sm:$0xff] %v2320_v51  ;;  %v7372_v31 = vshrl.u32 %v8709_v39, %v7366_v25  ;;  %v7375_v47 = vshrl.u32 %v8710_v41, %v7366_v25  ;;  %v7377_v17 = vshll.u32 %v8710_v41, %v7365_v61  ;;  %v7378_v11 = vshrl.u32 %v8711_v43, %v7366_v25 }
 0x799   : > { %v2197_v24 = vxor.u32 2147483648, %v2196_v26  ;;  %vm13838_vm13 = vcmp.le.f32.partialorder %v2113_v29, 0.7853982  ;;  %v2200_v37 = vsel %vm2115_vm9, %v2199_v1, %v13770_v46  ;;  %v7518_v23 = vshll.u32 %v13828_v53, 30 }
 0x79a   : > { %v7370_v39 = vor.u32 %v7369_v32, %v7368_v8  ;;  %v7373_v13 = vor.u32 %v7372_v31, %v7371_v36  ;;  %v7376_v41 = vor.u32 %v7375_v47, %v7374_v30  ;;  %v7379_v55 = vor.u32 %v7378_v11, %v7377_v17 }
 0x79b   : > { %v2198_v54 = vsel %vm2115_vm9, %v2197_v24, %v2196_v26  ;;  %v7519_v18 = vsub.s32 %v7515_v63, %v7518_v23  ;;  %v7380_v9 = vshll.u32 %v8711_v43, %v7365_v61  ;;  %v7381_v4 = vshrl.u32 %v8712_v50, %v7366_v25 }
 0x79c   : > { %v2201_v29 = vsel %vm13838_vm13, %v13620_v6, %v2198_v54  ;;  %v2202_v46 = vsel %vm13838_vm13, 0, %v2200_v37  ;;  %v7359_v20 = vor.u32 8388608, %v7358_v57  ;;  %vm7383_vm15 = vcmp.lt.s32.totalorder %v7364_v49, 1 }
 0x79d   : > { %8575 = vcosq.f32 %v2201_v29  ;;  %v7521_v2 = vsub.s32 0, %v7519_v18  ;;  %v7382_v7 = vor.u32 %v7381_v4, %v7380_v9  ;;  %vm7386_vm14 = vcmp.lt.s32.totalorder %v7364_v49, 4 }
 0x79e   : > { %8577 = vsinq.f32 %v2201_v29  ;;  %vm7384_vm0 = vcmp.lt.s32.totalorder %v7364_v49, 2  ;;  %vm7385_vm1 = vcmp.lt.s32.totalorder %v7364_v49, 3  ;;  %v7391_v34 = vsel %vm7383_vm15, %v7370_v39, %v7373_v13 }
 0x79f   : > { %v7392_v21 = vsel %vm7386_vm14, %v7379_v55, 920167782  ;;  %v7985_v35 = vmin.u32 %v7521_v2, %v7519_v18  ;;  %v7367_v43 = vshrl.u32 %v8707_v33, %v7366_v25  ;;  %v7388_v60 = vsel %vm7386_vm14, %v7376_v41, 2102212464 }
 0x7a0   : > { %v7393_v50 = vsel %vm7385_vm1, %v7376_v41, %v7392_v21  ;;  %v7395_v48 = vsel %vm7383_vm15, %v7373_v13, %v7376_v41  ;;  %v7396_v59 = vsel %vm7386_vm14, %v7382_v7, 1326507024  ;;  %v7399_v12 = vshll.u32 %v7359_v20, 8 }
 0x7a1   : > { %v7394_v14 = vsel %vm7384_vm0, %v7391_v34, %v7393_v50  ;;  %v7523_v5 = vclz %v7985_v35  ;;  %v7387_v27 = vsel %vm7383_vm15, %v7367_v43, %v7370_v39  ;;  %v7389_v3 = vsel %vm7385_vm1, %v7373_v13, %v7388_v60 }
 0x7a2   : > { %v7397_v40 = vsel %vm7385_vm1, %v7379_v55, %v7396_v59  ;;  %v13860_v0 = vmul.u32.u64.low %v7399_v12, %v7394_v14  ;;  %v13861_v52 = vmul.u32.u64.high %v7399_v12, %v7394_v14, %v13860_v0  ;;  %v2206_v56 = vadd.s32 3, %v2202_v46 }
 0x7a3   : > { %v7986_v63 = vadd.s32 4294967294, %v7523_v5  ;;  %v7398_v33 = vsel %vm7384_vm0, %v7395_v48, %v7397_v40  ;;  %v7390_v62 = vsel %vm7384_vm0, %v7387_v27, %v7389_v3  ;;  %v7511_v44 = vadd.s32 %v13801_v15, %v13808_v42 }
 0x7a4   : > { %v13864_v57 = vmul.u32.u64.low %v7399_v12, %v7398_v33  ;;  %v13865_v61 = vmul.u32.u64.high %v7399_v12, %v7398_v33, %v13864_v57  ;;  %v7409_v22 = vadd.s32 1, %v13861_v52  ;;  %v2207_v1 = vand.u32 3, %v2206_v56 }
 0x7a5   : > { %vm7987_vm2 = vcmp.lt.s32.totalorder %v7986_v63, 0  ;;  %v7406_v51 = vmul.u32 %v7399_v12, %v7390_v62  ;;  %vm2205_vm7 = vweird.f32 %v13620_v6  ;;  %vm7457_vm8 = vcmp.lt.s32.totalorder %v13721_v58, 0 }
 0x7a6   : > { %v7526_v16 = vsel %vm7987_vm2, 0, %v7986_v63  ;;  %vm7408_vm3 = vc.u32 %v13865_v61, %v13860_v0  ;;  %vm2212_vm4 = vcmp.eq.s32.totalorder %v2207_v1, 2  ;;  %vm2209_vm5 = vcmp.eq.s32.totalorder %v2207_v1, 0 }
 0x7a7   : > { %v7527_v19 = vsub.s32 32, %v7526_v16  ;;  %v7531_v25 = vsub.s32 4294967266, %v7526_v16  ;;  %v7528_v8 = vshll.u32 %v7519_v18, %v7526_v16  ;;  %v7410_v31 = vsel %vm7408_vm3, %v7409_v22, %v13861_v52 }
 0x7a8   : > { %v7411_v24 = vadd.s32 %v7410_v31, %v7406_v51  ;;  %vm2208_vm6 = vcmp.lt.s32.totalorder %v2207_v1, 2  ;;  %v7541_v4 = vsub.s32 4, %v13828_v53  ;;  %vm7456_vm9 = vcmp.le.f32.partialorder %v7455_v10, 0.7853982 }
 0x7a9   : > { %v7529_v36 = vshrl.u32 %v7511_v44, %v7527_v19  ;;  %v7532_v32 = vadd.s32 127, %v7531_v25  ;;  %v7407_v50 = vadd.s32 %v13860_v0, %v13865_v61  ;;  %vm7547_vm15 = vweird.f32 %v13721_v58 }
 0x7aa   : > { %v8576_v26 = vpop.eup %8575  ;;  %v7412_v42 = vadd.s32 536870912, %v7411_v24  ;;  %v7542_v7 = vsel %vm7457_vm8, %v7541_v4, %v13828_v53  ;;  %vm7353_vm14 = vcmp.lt.s32.totalorder %v13766_v45, 0  ;;  %vm7352_vm0 = vcmp.le.f32.partialorder %v7351_v38, 0.7853982 }
 0x7ab   : > { %v8578_v49 = vpop.eup %8577  ;;  %v2213_v30 = vxor.u32 2147483648, %v8576_v26  ;;  %v7530_v17 = vor.u32 %v7529_v36, %v7528_v8  ;;  %v7533_v11 = vshll.u32 %v7532_v32, 23  ;;  %v7544_v35 = vsel %vm7456_vm9, 0, %v7542_v7 }
 0x7ac   : > { %v2210_v47 = vxor.u32 2147483648, %v8578_v49  ;;  %v7413_v39 = vshrl.u32 %v7412_v42, 30  ;;  %v7548_v60 = vadd.s32 3, %v7544_v35 }
 0x7ad   : > { %v2214_v15 = vsel %vm2212_vm4, %v2213_v30, %v8578_v49  ;;  %v7534_v37 = vor.u32 4788187, %v7533_v11  ;;  %v7537_v41 = vcvt.s32.f32 %v7530_v17  ;;  %vm7443_vm4 = vweird.f32 %v13766_v45 }
 0x7ae   : > { %v2211_v28 = vsel %vm2209_vm5, %v8576_v26, %v2210_v47  ;;  %v7414_v55 = vshll.u32 %v7413_v39, 30  ;;  %v7549_v5 = vand.u32 3, %v7548_v60  ;;  %v7437_v44 = vsub.s32 4, %v7413_v39 }
 0x7af   : > { %v2215_v23 = vsel %vm2208_vm6, %v2211_v28, %v2214_v15  ;;  %v7535_v13 = vand.u32 2147483647, %v7534_v37 }
 0x7b0   : > { %v2216_v54 = vsel %vm2205_vm7, nan, %v2215_v23  ;;  %v7415_v18 = vsub.s32 %v7411_v24, %v7414_v55  ;;  %vm7554_vm11 = vcmp.eq.s32.totalorder %v7549_v5, 2  ;;  %vm7551_vm12 = vcmp.eq.s32.totalorder %v7549_v5, 0 }
 0x7b1   : > { %7587 = vst [vmem:[%s9190_s23 + $0xe0] sm:$0xff] %v2216_v54  ;;  %v7538_v29 = vmul.f32 %v7537_v41, %v7535_v13  ;;  %vm7550_vm13 = vcmp.lt.s32.totalorder %v7549_v5, 2  ;;  %v7438_v51 = vsel %vm7353_vm14, %v7437_v44, %v7413_v39 }
 0x7b2   : > { %v7417_v46 = vsub.s32 0, %v7415_v18  ;;  %v7440_v26 = vsel %vm7352_vm0, 0, %v7438_v51 }
 0x7b3   : > { %v7539_v9 = vxor.u32 2147483648, %v7538_v29 }
 0x7b4   : > { %v7981_v2 = vmin.u32 %v7417_v46, %v7415_v18 }
 0x7b5   : > { %v7540_v20 = vsel %vm7457_vm8, %v7539_v9, %v7538_v29 }
 0x7b6   : > { %v7543_v6 = vsel %vm7456_vm9, %v13721_v58, %v7540_v20  ;;  %v7419_v34 = vclz %v7981_v2  ;;  %v7444_v58 = vadd.s32 3, %v7440_v26 }
 0x7b7   : > { %8579 = vcosq.f32 %v7543_v6 }
 0x7b8   : > { %8581 = vsinq.f32 %v7543_v6  ;;  %v7982_v21 = vadd.s32 4294967294, %v7419_v34  ;;  %v7445_v8 = vand.u32 3, %v7444_v58 }
 0x7ba   : > { %vm7983_vm10 = vcmp.lt.s32.totalorder %v7982_v21, 0  ;;  %vm7450_vm1 = vcmp.eq.s32.totalorder %v7445_v8, 2  ;;  %vm7447_vm2 = vcmp.eq.s32.totalorder %v7445_v8, 0  ;;  %vm7446_vm3 = vcmp.lt.s32.totalorder %v7445_v8, 2 }
 0x7bb   : > { %v7422_v43 = vsel %vm7983_vm10, 0, %v7982_v21 }
 0x7bc   : > { %v7423_v14 = vsub.s32 32, %v7422_v43  ;;  %v7427_v48 = vsub.s32 4294967266, %v7422_v43  ;;  %v7424_v59 = vshll.u32 %v7415_v18, %v7422_v43 }
 0x7be   : > { %v7425_v10 = vshrl.u32 %v7407_v50, %v7423_v14  ;;  %v7428_v12 = vadd.s32 127, %v7427_v48 }
 0x7c0   : > { %v7426_v27 = vor.u32 %v7425_v10, %v7424_v59  ;;  %v7429_v3 = vshll.u32 %v7428_v12, 23 }
 0x7c2   : > { %v7430_v52 = vor.u32 4788187, %v7429_v3  ;;  %v7433_v57 = vcvt.s32.f32 %v7426_v27 }
 0x7c4   : > { %v8580_v40 = vpop.eup %8579  ;;  %v7431_v33 = vand.u32 2147483647, %v7430_v52 }
 0x7c5   : > { %v8582_v53 = vpop.eup %8581  ;;  %v7555_v56 = vxor.u32 2147483648, %v8580_v40 }
 0x7c6   : > { %v7552_v63 = vxor.u32 2147483648, %v8582_v53  ;;  %v7434_v61 = vmul.f32 %v7433_v57, %v7431_v33 }
 0x7c7   : > { %v7556_v62 = vsel %vm7554_vm11, %v7555_v56, %v8582_v53 }
 0x7c8   : > { %v7553_v0 = vsel %vm7551_vm12, %v8580_v40, %v7552_v63  ;;  %v7435_v1 = vxor.u32 2147483648, %v7434_v61 }
 0x7c9   : > { %v7557_v16 = vsel %vm7550_vm13, %v7553_v0, %v7556_v62 }
 0x7ca   : > { %v7558_v22 = vsel %vm7547_vm15, nan, %v7557_v16  ;;  %v7436_v19 = vsel %vm7353_vm14, %v7435_v1, %v7434_v61 }
 0x7cb   : > { %7622 = vst [vmem:[%s9190_s23 + $0x1f8] sm:$0xff] %v7558_v22  ;;  %v7439_v25 = vsel %vm7352_vm0, %v13766_v45, %v7436_v19 }
 0x7cc   : > { %8583 = vcosq.f32 %v7439_v25 }
 0x7cd   : > { %8585 = vsinq.f32 %v7439_v25 }
 0x7d9   : > { %v8584_v36 = vpop.eup %8583 }
 0x7da   : > { %v8586_v32 = vpop.eup %8585  ;;  %v7451_v31 = vxor.u32 2147483648, %v8584_v36 }
 0x7db   : > { %v7448_v49 = vxor.u32 2147483648, %v8586_v32 }
 0x7dc   : > { %v7452_v38 = vsel %vm7450_vm1, %v7451_v31, %v8586_v32 }
 0x7dd   : > { %v7449_v30 = vsel %vm7447_vm2, %v8584_v36, %v7448_v49 }
 0x7de   : > { %v7453_v24 = vsel %vm7446_vm3, %v7449_v30, %v7452_v38 }
 0x7df   : > { %v7454_v47 = vsel %vm7443_vm4, nan, %v7453_v24 }
 0x7e0   : > { %7620 = vst [vmem:[%s9190_s23 + $0x1e8] sm:$0xff] %v7454_v47 }
 0x7e1   : > { %8649 = shalt.err (!%p8646_p10)
}
 0x7e2   : > { %s8650_s23 = scalar_lea.hbm %s13893_s5, 8192  ;;  %s8654_s26 = scalar_lea.hbm %s13944_s4, 16384 }
 0x7e3   : > { %p8651_p0 = scmp.ne.s32.totalorder %s13893_s5, %s8650_s23  ;;  %p8655_p1 = scmp.lt.s32.totalorder %s13893_s5, %s13944_s4 }
 0x7e4   : > { %p8656_p3 = scmp.lt.s32.totalorder %s8654_s26, %s8650_s23 }
 0x7e5   : > { %p8652_p2 = pnand %p8651_p0, %p14077_p12 }
 0x7e6   : > { %p8657_p6 = por %p8656_p3, %p8655_p1 }
 0x7e7   : > { %p8653_p9 = pneg %p8652_p2 }
 0x7e9   : > { %p8658_p11 = pnand %p8657_p6, %p8653_p9 }
 0x7eb   : > { %8661 = shalt.err (!%p8658_p11)
}
 0x7ec   : > { %s8714_s11 = smov 256   ;;  %s8715_s12 = smov 16  }
 0x7ed   : > { %8275 = dma.vmem_to_hbm [thread:$0]  (%p14077_p12), %s13895_s25, 8192, %s13893_s5, %s7624_s19, %s8714_s11, %s8714_s11, %s8715_s12  }
 0x7ee PF: > { %s7652_s29 = sand.u32 1, %s8688_s15   ;;  %p14078_p13 = scmp.ne.s32.totalorder %s13950_s28, 0 }
 0x7ef   : > { %p14079_p4 = scmp.ge.s32.totalorder %s8700_s18, 2  ;;  %s7653_s30 = scalar_lea.sflag [#allocation4], %s7652_s29 }
 0x7f1   : > { %p8282_p5 = pnand %p14079_p4, %p14078_p13 }
 0x7f3   : > { %p8283_p7 = pneg %p8282_p5 }
 0x7f5   : > { %8683 = dma.done.wait (%p8283_p7), %s7653_s30, 8192  }
 0x7f6   : > { %8685 = vsyncadd (%p8283_p7), %s7653_s30, 4294959104  ;;  %p17_p8 = scmp.ge.s32.totalorder %s8766_s21, 4   ;;  %s14080_s15 = smov %s8692_s16 }
 0x7f7   : > { %s14081_s16 = smov %s8696_s17  ;;  %s14082_s17 = smov %s8778_s24 }
 0x7f8   : > { %s14083_s18 = smov %s8766_s21  ;;  %19 = sbr.rel (!%p17_p8) target bundleno = 5 (0x5), region = 81 }
 0x7fd   :  { %7658 = vsyncpa [#allocation3], 1 }
 0x7fe   :  { %7660 = vsyncpa [#allocation3 + $0x1], 1 }
 0x7ff   :  { %7661 = vsyncpa [#allocation4], 1 }
 0x800   :  { %7663 = vsyncpa [#allocation4 + $0x1], 1 }

</bundles_post_ra>
